<compile_context>
chip_gen: v5e
topology: v5e:2x2
jax: 0.10.0
libtpu: 0.0.40
codegen_flags: <defaults>
</compile_context>

<pallas_src>
import functools

import jax
import jax.numpy as jnp
from jax.experimental import pallas as pl
from jax.experimental.pallas import tpu as pltpu

# Real config values implied by the reference module.
POSE_EMBED = 256      # nn.Linear(3, pose_embed); 256 keeps the output lane-dense
N_JOINTS = 17         # _C.KEYPOINTS.NUM_JOINTS
N_MARKER = 81         # _C.KEYPOINTS.NUM_MARKER

OUT_DTYPE = jnp.bfloat16   # kernel output dtype (halves dominant HBM write traffic)


def _round_up(x, m):
    return ((x + m - 1) // m) * m


def _proj_marker_fused_kernel(x_ref, w_ref, b_ref, o_ref, *, e, e_out):
    # x_ref: (TM, C_in) raw marker features; xyz lives in the first 3 channels.
    x = x_ref[...].astype(jnp.float32)
    w = w_ref[...].astype(jnp.float32)          # (3, E)
    b = b_ref[...].astype(jnp.float32)          # (1, E)
    xyz = x[:, 0:3]                             # slice of the already-loaded tile

    # K=3 contraction on the VPU: three broadcast FMAs. The MXU would waste >97%
    # of its contraction depth on K=3 and add matmul pipeline latency per tile.
    y = (xyz[:, 0:1] * w[0:1, :]
         + xyz[:, 1:2] * w[1:2, :]
         + xyz[:, 2:3] * w[2:3, :]
         + b)                                   # (TM, E) f32 accumulate

    # Fused concat: projection | xyz | zero padding, all in one lane-dense slab,
    # so the downstream decoder never re-reads / re-writes the projection.
    o_ref[:, 0:e] = y.astype(o_ref.dtype)                              # dense, E % 128 == 0
    o_ref[:, e:] = jnp.zeros((x.shape[0], e_out - e), o_ref.dtype)     # dense 128-wide tail
    o_ref[:, e:e + 3] = xyz.astype(o_ref.dtype)                        # tiny 3-lane store


def proj_marker_fused(x2d, w, b, *, out_dtype=OUT_DTYPE, tm=1024):
    """Fused Linear(3->E) + concat(xyz) over a flat (rows, C_in) marker tensor.

    Returns a (rows, E_OUT) slab (E_OUT = E+3 rounded up to a multiple of 128):
      [:, :E)      = x[:, :3] @ w + b
      [:, E:E+3)   = x[:, :3]
      [:, E+3:)    = 0
    """
    rows, c_in = x2d.shape
    k, e = w.shape
    assert k == 3 and e % 128 == 0, "weight must be (3, E) with E a multiple of 128"
    e_out = _round_up(e + 3, 128)

    grid = (pl.cdiv(rows, tm),)
    kernel = functools.partial(_proj_marker_fused_kernel, e=e, e_out=e_out)

    flops = 2 * rows * 3 * e
    bytes_accessed = (rows * c_in * x2d.dtype.itemsize
                      + (3 * e + e) * 4
                      + rows * e_out * jnp.dtype(out_dtype).itemsize)

    return pl.pallas_call(
        kernel,
        out_shape=jax.ShapeDtypeStruct((rows, e_out), out_dtype),
        grid_spec=pl.GridSpec(
            grid=grid,
            in_specs=[
                pl.BlockSpec((tm, c_in), lambda i: (i, 0)),   # marker rows, tiled
                pl.BlockSpec((3, e), lambda i: (0, 0)),       # weight, resident
                pl.BlockSpec((1, e), lambda i: (0, 0)),       # bias, resident
            ],
            out_specs=pl.BlockSpec((tm, e_out), lambda i: (i, 0)),
        ),
        compiler_params=pltpu.CompilerParams(
            dimension_semantics=("parallel",)),               # shard rows over v7x TCs
        cost_estimate=pl.CostEstimate(
            flops=flops, transcendentals=0, bytes_accessed=bytes_accessed),
    )(x2d, w, b)


def init_params(key):
    """Deterministic init mimicking nn.Linear(3, POSE_EMBED)."""
    k1, k2 = jax.random.split(key)
    bound = 1.0 / jnp.sqrt(3.0)
    w = jax.random.uniform(k1, (3, POSE_EMBED), jnp.float32, -bound, bound)
    b = jax.random.uniform(k2, (1, POSE_EMBED), jnp.float32, -bound, bound)
    return {"proj_marker_w": w, "proj_marker_b": b}


def network_forward(params, joint_feats, marker_feats, img_features=None):
    """JAX/Pallas port of Network.forward (the parts owned by Network itself)."""
    B, T = joint_feats.shape[:2]
    n_marker = marker_feats.shape[2]
    c_mark = marker_feats.shape[-1]

    # 'marker_nn' output of the reference module (kept in f32).
    pred_marker = marker_feats[..., :3]                       # (B, T, 81, 3)

    # Feed raw (rows, C) marker features straight into the kernel; the xyz slice
    # happens inside on the loaded tile, avoiding extra HBM passes (no jnp.pad,
    # no materialized [..., :3] copy for the kernel input).
    x2d = marker_feats.reshape(B * T * n_marker, c_mark)      # no-copy reshape
    slab = proj_marker_fused(x2d, params["proj_marker_w"], params["proj_marker_b"])
    marker_tokens = slab.reshape(B, T, n_marker, -1)
    # marker_tokens[..., :POSE_EMBED+3] == torch.cat((proj_marker(xyz), xyz), -1);
    # the zero tail keeps the slab lane-dense for the downstream decoder.

    pred_kp3d = joint_feats[..., -3:].reshape(B, T, N_JOINTS, 3)

    # TODO(synk): MotionDecoder and the SMPL body model are external submodules whose
    # definitions are not provided in the reference; their forward passes (and the
    # outputs derived from them: pose/betas/cam/contact/verts/...) are not reproduced.
    return {
        "marker_nn": pred_marker,        # pred_marker in the reference
        "kp3d_nn": pred_kp3d,            # joint_feats[..., -3:] reshaped
        "marker_tokens": marker_tokens,  # padded (B,T,81,E_OUT) bf16 token slab
    }


if __name__ == "__main__":
    key = jax.random.PRNGKey(0)
    kp, kj, km = jax.random.split(key, 3)

    params = init_params(kp)

    B, T = 2, 8
    joint_feats = jax.random.normal(kj, (B, T, N_JOINTS, POSE_EMBED), jnp.float32)
    marker_feats = jax.random.normal(km, (B, T, N_MARKER, 6), jnp.float32)

    out = jax.jit(network_forward)(params, joint_feats, marker_feats)
    out = jax.block_until_ready(out)

    # Correctness check of the fused Pallas path against plain JAX.
    mk3 = marker_feats[..., :3].reshape(-1, 3)
    ref = (mk3 @ params["proj_marker_w"] + params["proj_marker_b"]).reshape(
        B, T, N_MARKER, POSE_EMBED)
    got_proj = out["marker_tokens"][..., :POSE_EMBED].astype(jnp.float32)
    assert jnp.allclose(got_proj, ref, atol=5e-2, rtol=5e-2), "projection mismatch"

    got_xyz = out["marker_tokens"][..., POSE_EMBED:POSE_EMBED + 3].astype(jnp.float32)
    ref_xyz = mk3.reshape(B, T, N_MARKER, 3).astype(OUT_DTYPE).astype(jnp.float32)
    assert jnp.allclose(got_xyz, ref_xyz), "xyz passthrough mismatch"

    assert jnp.all(out["marker_tokens"][..., POSE_EMBED + 3:] == 0), "pad lanes not zero"
    assert out["kp3d_nn"].shape == (B, T, N_JOINTS, 3)
    assert out["marker_nn"].shape == (B, T, N_MARKER, 3)

    print("KERNEL_OK")
</pallas_src>

<mosaic_0001>
module attributes {stable_mosaic.version = 11 : i64} {
  func.func @_proj_marker_fused_kernel(%arg0: i32, %arg1: memref<1024x6xf32, #tpu.memory_space<vmem>>, %arg2: memref<3x256xf32, #tpu.memory_space<vmem>>, %arg3: memref<1x256xf32, #tpu.memory_space<vmem>>, %arg4: memref<1024x384xbf16, #tpu.memory_space<vmem>>) attributes {dimension_semantics = [#tpu.dimension_semantics<parallel>], iteration_bounds = array<i64: 2>, scalar_prefetch = 0 : i64, scratch_operands = 0 : i64, tpu.core_type = #tpu.core_type<tc>, window_params = [{transform_indices = @transform_0, window_bounds = array<i64: 1024, 6>}, {pipeline_mode = #tpu.pipeline_mode<synchronous>, transform_indices = @transform_1, window_bounds = array<i64: 3, 256>}, {pipeline_mode = #tpu.pipeline_mode<synchronous>, transform_indices = @transform_2, window_bounds = array<i64: 1, 256>}, {transform_indices = @transform_3, window_bounds = array<i64: 1024, 384>}]} {
    %c0 = arith.constant 0 : index
    %c0_0 = arith.constant 0 : index
    %0 = vector.load %arg1[%c0, %c0_0] : memref<1024x6xf32, #tpu.memory_space<vmem>>, vector<1024x6xf32>
    %c0_1 = arith.constant 0 : index
    %c0_2 = arith.constant 0 : index
    %1 = vector.load %arg2[%c0_1, %c0_2] : memref<3x256xf32, #tpu.memory_space<vmem>>, vector<3x256xf32>
    %c0_3 = arith.constant 0 : index
    %c0_4 = arith.constant 0 : index
    %2 = vector.load %arg3[%c0_3, %c0_4] : memref<1x256xf32, #tpu.memory_space<vmem>>, vector<1x256xf32>
    %3 = vector.extract_strided_slice %0 {offsets = [0, 0], sizes = [1024, 3], strides = [1, 1]} : vector<1024x6xf32> to vector<1024x3xf32>
    %4 = vector.extract_strided_slice %3 {offsets = [0, 0], sizes = [1024, 1], strides = [1, 1]} : vector<1024x3xf32> to vector<1024x1xf32>
    %5 = vector.extract_strided_slice %1 {offsets = [0, 0], sizes = [1, 256], strides = [1, 1]} : vector<3x256xf32> to vector<1x256xf32>
    %6 = vector.broadcast %4 : vector<1024x1xf32> to vector<1024x256xf32>
    %7 = vector.broadcast %5 : vector<1x256xf32> to vector<1024x256xf32>
    %8 = arith.mulf %6, %7 : vector<1024x256xf32>
    %9 = vector.extract_strided_slice %3 {offsets = [0, 1], sizes = [1024, 1], strides = [1, 1]} : vector<1024x3xf32> to vector<1024x1xf32>
    %10 = vector.extract_strided_slice %1 {offsets = [1, 0], sizes = [1, 256], strides = [1, 1]} : vector<3x256xf32> to vector<1x256xf32>
    %11 = vector.broadcast %9 : vector<1024x1xf32> to vector<1024x256xf32>
    %12 = vector.broadcast %10 : vector<1x256xf32> to vector<1024x256xf32>
    %13 = arith.mulf %11, %12 : vector<1024x256xf32>
    %14 = arith.addf %8, %13 : vector<1024x256xf32>
    %15 = vector.extract_strided_slice %3 {offsets = [0, 2], sizes = [1024, 1], strides = [1, 1]} : vector<1024x3xf32> to vector<1024x1xf32>
    %16 = vector.extract_strided_slice %1 {offsets = [2, 0], sizes = [1, 256], strides = [1, 1]} : vector<3x256xf32> to vector<1x256xf32>
    %17 = vector.broadcast %15 : vector<1024x1xf32> to vector<1024x256xf32>
    %18 = vector.broadcast %16 : vector<1x256xf32> to vector<1024x256xf32>
    %19 = arith.mulf %17, %18 : vector<1024x256xf32>
    %20 = arith.addf %14, %19 : vector<1024x256xf32>
    %21 = vector.broadcast %2 : vector<1x256xf32> to vector<1024x256xf32>
    %22 = arith.addf %20, %21 : vector<1024x256xf32>
    %23 = arith.truncf %22 : vector<1024x256xf32> to vector<1024x256xbf16>
    %c0_5 = arith.constant 0 : index
    %c0_6 = arith.constant 0 : index
    %24 = vector.load %arg4[%c0_5, %c0_6] : memref<1024x384xbf16, #tpu.memory_space<vmem>>, vector<1024x256xbf16>
    tpu.vector_store %arg4[%c0_5, %c0_6], %23 {strides = array<i32>} : memref<1024x384xbf16, #tpu.memory_space<vmem>>, vector<1024x256xbf16>,
    %cst = arith.constant 0.000000e+00 : bf16
    %25 = vector.broadcast %cst : bf16 to vector<1024x128xbf16>
    %c0_7 = arith.constant 0 : index
    %c256 = arith.constant 256 : index
    %26 = vector.load %arg4[%c0_7, %c256] : memref<1024x384xbf16, #tpu.memory_space<vmem>>, vector<1024x128xbf16>
    tpu.vector_store %arg4[%c0_7, %c256], %25 {strides = array<i32>} : memref<1024x384xbf16, #tpu.memory_space<vmem>>, vector<1024x128xbf16>,
    %27 = arith.truncf %3 : vector<1024x3xf32> to vector<1024x3xbf16>
    %c0_8 = arith.constant 0 : index
    %c256_9 = arith.constant 256 : index
    %28 = vector.load %arg4[%c0_8, %c256_9] : memref<1024x384xbf16, #tpu.memory_space<vmem>>, vector<1024x3xbf16>
    tpu.vector_store %arg4[%c0_8, %c256_9], %27 {strides = array<i32>} : memref<1024x384xbf16, #tpu.memory_space<vmem>>, vector<1024x3xbf16>,
    return
  }
  func.func @transform_0(%arg0: i32) -> (i32, i32) {
    %c0_i32 = arith.constant 0 : i32
    %c0_i32_0 = arith.constant 0 : i32
    return %arg0, %c0_i32 : i32, i32
  }
  func.func @transform_1(%arg0: i32) -> (i32, i32) {
    %c0_i32 = arith.constant 0 : i32
    %c0_i32_0 = arith.constant 0 : i32
    %c0_i32_1 = arith.constant 0 : i32
    return %c0_i32, %c0_i32_0 : i32, i32
  }
  func.func @transform_2(%arg0: i32) -> (i32, i32) {
    %c0_i32 = arith.constant 0 : i32
    %c0_i32_0 = arith.constant 0 : i32
    %c0_i32_1 = arith.constant 0 : i32
    return %c0_i32, %c0_i32_0 : i32, i32
  }
  func.func @transform_3(%arg0: i32) -> (i32, i32) {
    %c0_i32 = arith.constant 0 : i32
    %c0_i32_0 = arith.constant 0 : i32
    return %arg0, %c0_i32 : i32, i32
  }
}

</mosaic_0001>

<bundles_post_ra>
// kernel: network_forward.1
= control target key start
LH: loop header
LB: loop body
LE: loop exit
PB: predicated region body
PF: predicated region fallthrough
CT: control target
= control target key end

     0   :  { %8 = vsyncpa [#allocation3], 0  ;;  %s10660_s0 = inlined_call_operand.vmem [shape: f32[1296,6], index: 0, kind: input, shape index: {}]   ;;  %s10661_s1 = inlined_call_operand.hbm [shape: f32[3,256], index: 1, kind: input, shape index: {}]   ;;  %s10662_s2 = inlined_call_operand.hbm [shape: f32[1,256], index: 2, kind: input, shape index: {}]   ;;  %s10663_s3 = inlined_call_operand.vmem [shape: bf16[1296,384], index: 3, kind: output, shape index: {}]  }
   0x1   :  { %9 = vsyncpa [#allocation5], 0  ;;  %s5228_s12 = smov 0   ;;  %s5230_s13 = smov 0  }
   0x2   :  { %s5232_s14 = smov 0  }
   0x3 LB: > { %s5241_s15 = sadd.s32 4294967295, %s5137_s14   ;;  %s5243_s16 = sadd.s32 1, %s5137_s14   ;;  %s5137_s14 = sphi %s5232_s14, %s11987_s14   ;;  %s5133_s13 = sphi %s5230_s13, %s11986_s13   ;;  %s5129_s12 = sphi %s5228_s12, %s11985_s12  }
   0x4   : > { %s87_s17 = ssub.s32 %s5137_s14, %s5243_s16  ;;  %s90_s18 = sadd.s32 1, %s5133_s13 }
   0x5   : > { %p88_p0 = scmp.eq.s32.totalorder %s87_s17, 0  ;;  %p100_p1 = scmp.ne.s32.totalorder %s5133_s13, %s5129_s12 }
   0x6   : > { %p101_p2 = scmp.eq.s32.totalorder %s5241_s15, 1  ;;  %p4614_p3 = scmp.ge.s32.totalorder %s5137_s14, 1 }
   0x7   : > { %s5251_s19 = scalar_select %p88_p0, %s5133_s13, %s90_s18  }
   0x8   : > { %p5253_p4 = por %p101_p2, %p100_p1  ;;  %p114_p5 = scmp.lt.s32.totalorder %s5137_s14, 3 }
   0x9   : > { %p4656_p6 = scmp.eq.s32.totalorder %s5241_s15, 0  ;;  %s126_s24 = sshll.u32 %s10661_s1, 4  ;;  %s127_s24 = int_to_ptr.hbm [resolvable:$true] %s126_s24 }
   0xa   : > { %p5258_p7 = pnand %p4614_p3, %p114_p5  ;;  %s5203_s25 = smov [#allocation2]  }
   0xb   : > { %s128_s26 = sshll.u32 %s5203_s25, 4  ;;  %s138_s29 = sshll.u32 %s10662_s2, 4  ;;  %s129_s26 = int_to_ptr.vmem [resolvable:$true] %s128_s26  ;;  %s139_s29 = int_to_ptr.hbm [resolvable:$true] %s138_s29 }
   0xc   : > { %p4649_p8 = pneg %p5258_p7  ;;  %s5204_s30 = smov [#allocation4]  }
   0xd   : > { %s140_s4 = sshll.u32 %s5204_s30, 4  ;;  %170 = sbr.rel (%p5258_p7) target bundleno = 1496 (0x5d8), region = 32  ;;  %s141_s4 = int_to_ptr.vmem [resolvable:$true] %s140_s4 }
   0xe   : > { %p4650_p9 = pnand %p4656_p6, %p4649_p8 }
  0x10   : > { %4652 = dma.hbm_to_vmem [thread:$0]  (!%p4650_p9), %s127_s24, 128, %s129_s26, [#allocation3]  }
  0x11   : > { %4655 = dma.hbm_to_vmem [thread:$0]  (!%p4650_p9), %s139_s29, 32, %s141_s4, [#allocation5]  }
  0x12   : > { %5120 = dma.done.wait (%p4656_p6), [#allocation3], 128  }
  0x13   : > { %5122 = vsyncadd (%p4656_p6), [#allocation3], 4294967168 }
  0x14   : > { %5124 = dma.done.wait (%p4656_p6), [#allocation5], 32  }
  0x15   : > { %5126 = vsyncadd (%p4656_p6), [#allocation5], 4294967264  ;;  %s200_s5 = sand.u32 1, %s5129_s12   ;;  %s5284_s6 = sshll.u32 %s5241_s15, 7  ;;  %v5205_v0 = vmov 0   ;;  %vm4090_vm0 = vcmask 19456  }
  0x16   : > { %4819 = vset.pattern.permute.xlu2 %v5205_v0  ;;  %4818 = vset.pattern.permute.xlu1 %v5205_v0  ;;  %s4639_s7 = smul.u32 1536, %s200_s5  ;;  %p208_p10 = scmp.lt.s32.totalorder %s5284_s6, 161 }
  0x17   : > { %4817 = vset.pattern.permute.xlu0 %v5205_v0  ;;  %s4227_s17 = ssub.s32 (%p5253_p4), 162, %s5284_s6  ;;  %s4640_s18 = smul.u32 (%p5253_p4), 1536, %s5241_s15 }
  0x18   : > { %s209_s8 = scalar_select %p208_p10, %s5284_s6, 161 }
  0x19   : > { %s5291_s9 = scalar_lea.vmem [#allocation6], %s4639_s7   ;;  %p4228_p11 = scmp.lt.s32.totalorder (%p5253_p4), %s4227_s17, 128 }
  0x1a   : > { %3838 = vst [vmem:[%s5291_s9 + $0x38] sm:$0xf] %v5205_v0  ;;  %s4622_s10 = sshll.u32 %s209_s8, 3  ;;  %s10392_s23 = scalar_lea.vmem (%p5253_p4), %s10663_s3, %s4640_s18  }
  0x1b   : > { %3834 = vst [vmem:[%s5291_s9 + $0x8] sm:$0xf] %v5205_v0  ;;  %s5302_s14 = scalar_lea.vmem %s10660_s0, %s4622_s10 }
  0x1c   : > { %3835 = vst [vmem:[%s5291_s9 + $0x14] sm:$0xf] %v5205_v0  ;;  %v228_v1 = vld [vmem:[%s5302_s14 + $0x20] sm:$0xff]  ;;  %v5310_v2 = vld [vmem:[%s5302_s14 + $0x10] sm:$0xff]  ;;  %v5330_v5 = vld [vmem:[%s5302_s14 + $0x28] sm:$0xff] }
  0x1d   : > { %3836 = vst [vmem:[%s5291_s9 + $0x20] sm:$0xf] %v5205_v0  ;;  %v5313_v3 = vld [vmem:[%s5302_s14] sm:$0xff]  ;;  %376 = vperm.xlu2 %4819, %v228_v1   ;;  %v3966_v4 = vpack.c.bf16 %v228_v1, %v228_v1  ;;  %366 = vperm.xlu1 %4818, %v5310_v2   ;;  %v5333_v6 = vld [vmem:[%s5302_s14 + $0x18] sm:$0xff]  ;;  %v5338_v7 = vld [vmem:[%s5302_s14 + $0x8] sm:$0xff]  ;;  %v3964_v56 = vpack.c.bf16 %v5310_v2, %v5310_v2 }
  0x1e   : > { %3837 = vst [vmem:[%s5291_s9 + $0x2c] sm:$0xf] %v5205_v0  ;;  %356 = vperm.xlu0 %4817, %v5313_v3   ;;  %v5358_v8 = vld [vmem:[%s5302_s14 + $0x40] sm:$0xff]  ;;  %v5361_v9 = vld [vmem:[%s5302_s14 + $0x38] sm:$0xff]  ;;  %v5366_v10 = vld [vmem:[%s5302_s14 + $0x30] sm:$0xff]  ;;  %v3962_v57 = vpack.c.bf16 %v5313_v3, %v5313_v3  ;;  %v3967_v58 = vpack.c.bf16 %v5330_v5, %v5330_v5  ;;  %v3965_v61 = vpack.c.bf16 %v5333_v6, %v5333_v6 }
  0x1f   : > { %3839 = vst [vmem:[%s5291_s9 + $0x44] sm:$0xf] %v5205_v0  ;;  %v5386_v11 = vld [vmem:[%s5302_s14 + $0x58] sm:$0xff]  ;;  %v5389_v12 = vld [vmem:[%s5302_s14 + $0x50] sm:$0xff]  ;;  %v5394_v13 = vld [vmem:[%s5302_s14 + $0x48] sm:$0xff]  ;;  %v3963_v63 = vpack.c.bf16 %v5338_v7, %v5338_v7  ;;  %v3970_v1 = vpack.c.bf16 %v5358_v8, %v5358_v8  ;;  %v3969_v3 = vpack.c.bf16 %v5361_v9, %v5361_v9 }
  0x20   : > { %3840 = vst [vmem:[%s5291_s9 + $0x50] sm:$0xf] %v5205_v0  ;;  %v5414_v14 = vld [vmem:[%s5302_s14 + $0x70] sm:$0xff]  ;;  %v5417_v15 = vld [vmem:[%s5302_s14 + $0x68] sm:$0xff]  ;;  %v5422_v16 = vld [vmem:[%s5302_s14 + $0x60] sm:$0xff] }
  0x21   : > { %4095 = vst.msk [vmem:[%s5291_s9 + $0x38] sm:$0xf] %vm4090_vm0, %v3966_v4  ;;  %v5442_v17 = vld [vmem:[%s5302_s14 + $0x88] sm:$0xff]  ;;  %v5445_v18 = vld [vmem:[%s5302_s14 + $0x80] sm:$0xff]  ;;  %v5450_v19 = vld [vmem:[%s5302_s14 + $0x78] sm:$0xff] }
  0x22   : > { %3841 = vst [vmem:[%s5291_s9 + $0x5c] sm:$0xf] %v5205_v0  ;;  %v5470_v20 = vld [vmem:[%s5302_s14 + $0xa0] sm:$0xff]  ;;  %v5473_v21 = vld [vmem:[%s5302_s14 + $0x98] sm:$0xff]  ;;  %v5478_v22 = vld [vmem:[%s5302_s14 + $0x90] sm:$0xff] }
  0x23   : > { %3842 = vst [vmem:[%s5291_s9 + $0x68] sm:$0xf] %v5205_v0  ;;  %v5498_v23 = vld [vmem:[%s5302_s14 + $0xb8] sm:$0xff]  ;;  %v5501_v24 = vld [vmem:[%s5302_s14 + $0xb0] sm:$0xff]  ;;  %v5506_v25 = vld [vmem:[%s5302_s14 + $0xa8] sm:$0xff] }
  0x24   : > { %3843 = vst [vmem:[%s5291_s9 + $0x74] sm:$0xf] %v5205_v0  ;;  %v5526_v26 = vld [vmem:[%s5302_s14 + $0xd0] sm:$0xff]  ;;  %v5529_v27 = vld [vmem:[%s5302_s14 + $0xc8] sm:$0xff]  ;;  %v5534_v28 = vld [vmem:[%s5302_s14 + $0xc0] sm:$0xff] }
  0x25   : > { %3844 = vst [vmem:[%s5291_s9 + $0x80] sm:$0xf] %v5205_v0  ;;  %381 = vperm.xlu2 %4819, %v5330_v5   ;;  %371 = vperm.xlu1 %4818, %v5333_v6   ;;  %v5554_v29 = vld [vmem:[%s5302_s14 + $0xe8] sm:$0xff]  ;;  %v5557_v30 = vld [vmem:[%s5302_s14 + $0xe0] sm:$0xff]  ;;  %v5562_v31 = vld [vmem:[%s5302_s14 + $0xd8] sm:$0xff]  ;;  %v3968_v5 = vpack.c.bf16 %v5366_v10, %v5366_v10  ;;  %v3973_v6 = vpack.c.bf16 %v5386_v11, %v5386_v11 }
  0x26   : > { %3845 = vst [vmem:[%s5291_s9 + $0x8c] sm:$0xf] %v5205_v0  ;;  %361 = vperm.xlu0 %4817, %v5338_v7   ;;  %v5582_v32 = vld [vmem:[%s5302_s14 + $0x100] sm:$0xff]  ;;  %v5585_v33 = vld [vmem:[%s5302_s14 + $0xf8] sm:$0xff]  ;;  %v5590_v34 = vld [vmem:[%s5302_s14 + $0xf0] sm:$0xff]  ;;  %v3972_v7 = vpack.c.bf16 %v5389_v12, %v5389_v12 }
  0x27   : > { %3846 = vst [vmem:[%s5291_s9 + $0x98] sm:$0xf] %v5205_v0  ;;  %v5610_v35 = vld [vmem:[%s5302_s14 + $0x118] sm:$0xff]  ;;  %v5613_v36 = vld [vmem:[%s5302_s14 + $0x110] sm:$0xff]  ;;  %v5618_v37 = vld [vmem:[%s5302_s14 + $0x108] sm:$0xff] }
  0x28   : > { %3847 = vst [vmem:[%s5291_s9 + $0xa4] sm:$0xf] %v5205_v0  ;;  %v5640_v39 = vld [vmem:[%s5302_s14 + $0x130] sm:$0xff]  ;;  %v5643_v40 = vld [vmem:[%s5302_s14 + $0x128] sm:$0xff]  ;;  %v5648_v41 = vld [vmem:[%s5302_s14 + $0x120] sm:$0xff] }
  0x29   : > { %3848 = vst [vmem:[%s5291_s9 + $0xb0] sm:$0xf] %v5205_v0  ;;  %v5670_v43 = vld [vmem:[%s5302_s14 + $0x148] sm:$0xff]  ;;  %v5673_v44 = vld [vmem:[%s5302_s14 + $0x140] sm:$0xff]  ;;  %v5678_v45 = vld [vmem:[%s5302_s14 + $0x138] sm:$0xff] }
  0x2a   : > { %3849 = vst [vmem:[%s5291_s9 + $0xbc] sm:$0xf] %v5205_v0  ;;  %v5700_v47 = vld [vmem:[%s5302_s14 + $0x160] sm:$0xff]  ;;  %v5703_v48 = vld [vmem:[%s5302_s14 + $0x158] sm:$0xff]  ;;  %v5708_v49 = vld [vmem:[%s5302_s14 + $0x150] sm:$0xff] }
  0x2b   : > { %3850 = vst [vmem:[%s5291_s9 + $0xc8] sm:$0xf] %v5205_v0  ;;  %v5734_v53 = vld [vmem:[%s5302_s14 + $0x178] sm:$0xff]  ;;  %v5737_v54 = vld [vmem:[%s5302_s14 + $0x170] sm:$0xff]  ;;  %v5742_v55 = vld [vmem:[%s5302_s14 + $0x168] sm:$0xff] }
  0x2c   : > { %3851 = vst [vmem:[%s5291_s9 + $0xd4] sm:$0xf] %v5205_v0  ;;  %v5780_v2 = vld [vmem:[%s5302_s14 + $0x190] sm:$0xff]  ;;  %v5790_v4 = vld [vmem:[%s5302_s14 + $0x180] sm:$0xff] }
  0x2d   : > { %3852 = vst [vmem:[%s5291_s9 + $0xe0] sm:$0xf] %v5205_v0  ;;  %396 = vperm.xlu2 %4819, %v5358_v8   ;;  %391 = vperm.xlu1 %4818, %v5361_v9   ;;  %v3971_v8 = vpack.c.bf16 %v5394_v13, %v5394_v13 }
  0x2e   : > { %3853 = vst [vmem:[%s5291_s9 + $0xec] sm:$0xf] %v5205_v0  ;;  %386 = vperm.xlu0 %4817, %v5366_v10  }
  0x2f   : > { %3854 = vst [vmem:[%s5291_s9 + $0xf8] sm:$0xf] %v5205_v0 }
  0x30   : > { %3855 = vst [vmem:[%s5291_s9 + $0x104] sm:$0xf] %v5205_v0 }
  0x31   : > { %3856 = vst [vmem:[%s5291_s9 + $0x110] sm:$0xf] %v5205_v0 }
  0x32   : > { %3857 = vst [vmem:[%s5291_s9 + $0x11c] sm:$0xf] %v5205_v0 }
  0x33   : > { %3858 = vst [vmem:[%s5291_s9 + $0x128] sm:$0xf] %v5205_v0 }
  0x34   : > { %3859 = vst [vmem:[%s5291_s9 + $0x134] sm:$0xf] %v5205_v0 }
  0x35   : > { %3860 = vst [vmem:[%s5291_s9 + $0x140] sm:$0xf] %v5205_v0  ;;  %411 = vperm.xlu2 %4819, %v5386_v11   ;;  %406 = vperm.xlu1 %4818, %v5389_v12   ;;  %v3976_v11 = vpack.c.bf16 %v5414_v14, %v5414_v14 }
  0x36   : > { %3861 = vst [vmem:[%s5291_s9 + $0x14c] sm:$0xf] %v5205_v0  ;;  %401 = vperm.xlu0 %4817, %v5394_v13   ;;  %v3974_v13 = vpack.c.bf16 %v5422_v16, %v5422_v16 }
  0x37   : > { %3862 = vst [vmem:[%s5291_s9 + $0x158] sm:$0xf] %v5205_v0 }
  0x38   : > { %3863 = vst [vmem:[%s5291_s9 + $0x164] sm:$0xf] %v5205_v0 }
  0x39   : > { %3864 = vst [vmem:[%s5291_s9 + $0x170] sm:$0xf] %v5205_v0 }
  0x3a   : > { %3865 = vst [vmem:[%s5291_s9 + $0x17c] sm:$0xf] %v5205_v0 }
  0x3b   : > { %3866 = vst [vmem:[%s5291_s9 + $0x188] sm:$0xf] %v5205_v0 }
  0x3c   : > { %3867 = vst [vmem:[%s5291_s9 + $0x194] sm:$0xf] %v5205_v0 }
  0x3d   : > { %3868 = vst [vmem:[%s5291_s9 + $0x1a0] sm:$0xf] %v5205_v0  ;;  %426 = vperm.xlu2 %4819, %v5414_v14   ;;  %421 = vperm.xlu1 %4818, %v5417_v15   ;;  %v3979_v14 = vpack.c.bf16 %v5442_v17, %v5442_v17 }
  0x3e   : > { %3869 = vst [vmem:[%s5291_s9 + $0x1ac] sm:$0xf] %v5205_v0  ;;  %416 = vperm.xlu0 %4817, %v5422_v16   ;;  %v3977_v16 = vpack.c.bf16 %v5450_v19, %v5450_v19 }
  0x3f   : > { %3870 = vst [vmem:[%s5291_s9 + $0x1b8] sm:$0xf] %v5205_v0 }
  0x40   : > { %3871 = vst [vmem:[%s5291_s9 + $0x1c4] sm:$0xf] %v5205_v0 }
  0x41   : > { %3872 = vst [vmem:[%s5291_s9 + $0x1d0] sm:$0xf] %v5205_v0 }
  0x42   : > { %3873 = vst [vmem:[%s5291_s9 + $0x1dc] sm:$0xf] %v5205_v0 }
  0x43   : > { %3874 = vst [vmem:[%s5291_s9 + $0x1e8] sm:$0xf] %v5205_v0 }
  0x44   : > { %3875 = vst [vmem:[%s5291_s9 + $0x1f4] sm:$0xf] %v5205_v0 }
  0x45   : > { %3876 = vst [vmem:[%s5291_s9 + $0x200] sm:$0xf] %v5205_v0  ;;  %441 = vperm.xlu2 %4819, %v5442_v17   ;;  %436 = vperm.xlu1 %4818, %v5445_v18   ;;  %v3982_v17 = vpack.c.bf16 %v5470_v20, %v5470_v20 }
  0x46   : > { %3877 = vst [vmem:[%s5291_s9 + $0x20c] sm:$0xf] %v5205_v0  ;;  %431 = vperm.xlu0 %4817, %v5450_v19  }
  0x47   : > { %3878 = vst [vmem:[%s5291_s9 + $0x218] sm:$0xf] %v5205_v0 }
  0x48   : > { %3879 = vst [vmem:[%s5291_s9 + $0x224] sm:$0xf] %v5205_v0 }
  0x49   : > { %3880 = vst [vmem:[%s5291_s9 + $0x230] sm:$0xf] %v5205_v0 }
  0x4a   : > { %3881 = vst [vmem:[%s5291_s9 + $0x23c] sm:$0xf] %v5205_v0 }
  0x4b   : > { %3882 = vst [vmem:[%s5291_s9 + $0x248] sm:$0xf] %v5205_v0 }
  0x4c   : > { %3883 = vst [vmem:[%s5291_s9 + $0x254] sm:$0xf] %v5205_v0 }
  0x4d   : > { %3884 = vst [vmem:[%s5291_s9 + $0x260] sm:$0xf] %v5205_v0  ;;  %456 = vperm.xlu2 %4819, %v5470_v20   ;;  %451 = vperm.xlu1 %4818, %v5473_v21  }
  0x4e   : > { %3885 = vst [vmem:[%s5291_s9 + $0x26c] sm:$0xf] %v5205_v0  ;;  %446 = vperm.xlu0 %4817, %v5478_v22  }
  0x4f   : > { %3886 = vst [vmem:[%s5291_s9 + $0x278] sm:$0xf] %v5205_v0 }
  0x50   : > { %3887 = vst [vmem:[%s5291_s9 + $0x284] sm:$0xf] %v5205_v0 }
  0x51   : > { %3888 = vst [vmem:[%s5291_s9 + $0x290] sm:$0xf] %v5205_v0 }
  0x52   : > { %3889 = vst [vmem:[%s5291_s9 + $0x29c] sm:$0xf] %v5205_v0 }
  0x53   : > { %3890 = vst [vmem:[%s5291_s9 + $0x2a8] sm:$0xf] %v5205_v0 }
  0x54   : > { %3891 = vst [vmem:[%s5291_s9 + $0x2b4] sm:$0xf] %v5205_v0 }
  0x55   : > { %3892 = vst [vmem:[%s5291_s9 + $0x2c0] sm:$0xf] %v5205_v0  ;;  %471 = vperm.xlu2 %4819, %v5498_v23   ;;  %466 = vperm.xlu1 %4818, %v5501_v24  }
  0x56   : > { %3893 = vst [vmem:[%s5291_s9 + $0x2cc] sm:$0xf] %v5205_v0  ;;  %461 = vperm.xlu0 %4817, %v5506_v25  }
  0x57   : > { %3894 = vst [vmem:[%s5291_s9 + $0x2d8] sm:$0xf] %v5205_v0 }
  0x58   : > { %3895 = vst [vmem:[%s5291_s9 + $0x2e4] sm:$0xf] %v5205_v0 }
  0x59   : > { %3896 = vst [vmem:[%s5291_s9 + $0x2f0] sm:$0xf] %v5205_v0 }
  0x5a   : > { %3897 = vst [vmem:[%s5291_s9 + $0x2fc] sm:$0xf] %v5205_v0 }
  0x5b   : > { %3898 = vst [vmem:[%s5291_s9 + $0x308] sm:$0xf] %v5205_v0 }
  0x5c   : > { %3899 = vst [vmem:[%s5291_s9 + $0x314] sm:$0xf] %v5205_v0 }
  0x5d   : > { %3900 = vst [vmem:[%s5291_s9 + $0x320] sm:$0xf] %v5205_v0  ;;  %486 = vperm.xlu2 %4819, %v5526_v26   ;;  %481 = vperm.xlu1 %4818, %v5529_v27  }
  0x5e   : > { %3901 = vst [vmem:[%s5291_s9 + $0x32c] sm:$0xf] %v5205_v0  ;;  %476 = vperm.xlu0 %4817, %v5534_v28  }
  0x5f   : > { %3902 = vst [vmem:[%s5291_s9 + $0x338] sm:$0xf] %v5205_v0 }
  0x60   : > { %3903 = vst [vmem:[%s5291_s9 + $0x344] sm:$0xf] %v5205_v0 }
  0x61   : > { %3904 = vst [vmem:[%s5291_s9 + $0x350] sm:$0xf] %v5205_v0 }
  0x62   : > { %3905 = vst [vmem:[%s5291_s9 + $0x35c] sm:$0xf] %v5205_v0 }
  0x63   : > { %3906 = vst [vmem:[%s5291_s9 + $0x368] sm:$0xf] %v5205_v0 }
  0x64   : > { %3907 = vst [vmem:[%s5291_s9 + $0x374] sm:$0xf] %v5205_v0 }
  0x65   : > { %3908 = vst [vmem:[%s5291_s9 + $0x380] sm:$0xf] %v5205_v0  ;;  %501 = vperm.xlu2 %4819, %v5554_v29   ;;  %496 = vperm.xlu1 %4818, %v5557_v30  }
  0x66   : > { %3909 = vst [vmem:[%s5291_s9 + $0x38c] sm:$0xf] %v5205_v0  ;;  %491 = vperm.xlu0 %4817, %v5562_v31  }
  0x67   : > { %3910 = vst [vmem:[%s5291_s9 + $0x398] sm:$0xf] %v5205_v0 }
  0x68   : > { %3911 = vst [vmem:[%s5291_s9 + $0x3a4] sm:$0xf] %v5205_v0 }
  0x69   : > { %3912 = vst [vmem:[%s5291_s9 + $0x3b0] sm:$0xf] %v5205_v0 }
  0x6a   : > { %3913 = vst [vmem:[%s5291_s9 + $0x3bc] sm:$0xf] %v5205_v0 }
  0x6b   : > { %3914 = vst [vmem:[%s5291_s9 + $0x3c8] sm:$0xf] %v5205_v0 }
  0x6c   : > { %3915 = vst [vmem:[%s5291_s9 + $0x3d4] sm:$0xf] %v5205_v0 }
  0x6d   : > { %3916 = vst [vmem:[%s5291_s9 + $0x3e0] sm:$0xf] %v5205_v0  ;;  %516 = vperm.xlu2 %4819, %v5582_v32   ;;  %511 = vperm.xlu1 %4818, %v5585_v33  }
  0x6e   : > { %3917 = vst [vmem:[%s5291_s9 + $0x3ec] sm:$0xf] %v5205_v0  ;;  %506 = vperm.xlu0 %4817, %v5590_v34  }
  0x6f   : > { %3918 = vst [vmem:[%s5291_s9 + $0x3f8] sm:$0xf] %v5205_v0 }
  0x70   : > { %3919 = vst [vmem:[%s5291_s9 + $0x404] sm:$0xf] %v5205_v0 }
  0x71   : > { %3920 = vst [vmem:[%s5291_s9 + $0x410] sm:$0xf] %v5205_v0 }
  0x72   : > { %3921 = vst [vmem:[%s5291_s9 + $0x41c] sm:$0xf] %v5205_v0 }
  0x73   : > { %3922 = vst [vmem:[%s5291_s9 + $0x428] sm:$0xf] %v5205_v0 }
  0x74   : > { %3923 = vst [vmem:[%s5291_s9 + $0x434] sm:$0xf] %v5205_v0 }
  0x75   : > { %3924 = vst [vmem:[%s5291_s9 + $0x440] sm:$0xf] %v5205_v0  ;;  %531 = vperm.xlu2 %4819, %v5610_v35   ;;  %526 = vperm.xlu1 %4818, %v5613_v36  }
  0x76   : > { %3925 = vst [vmem:[%s5291_s9 + $0x44c] sm:$0xf] %v5205_v0  ;;  %521 = vperm.xlu0 %4817, %v5618_v37  }
  0x77   : > { %3926 = vst [vmem:[%s5291_s9 + $0x458] sm:$0xf] %v5205_v0  ;;  %v5631_v38 = vpop.permute.xlu2 %376 }
  0x78   : > { %3927 = vst [vmem:[%s5291_s9 + $0x464] sm:$0xf] %v5205_v0 }
  0x79   : > { %3928 = vst [vmem:[%s5291_s9 + $0x470] sm:$0xf] %v5205_v0 }
  0x7a   : > { %10966 = vst [vmem:[#allocation9_spill] sm:$0xff] %v5631_v38 }
  0x7b   : > { %3929 = vst [vmem:[%s5291_s9 + $0x47c] sm:$0xf] %v5205_v0 }
  0x7c   : > { %3930 = vst [vmem:[%s5291_s9 + $0x488] sm:$0xf] %v5205_v0 }
  0x7d   : > { %3931 = vst [vmem:[%s5291_s9 + $0x494] sm:$0xf] %v5205_v0  ;;  %546 = vperm.xlu2 %4819, %v5640_v39   ;;  %541 = vperm.xlu1 %4818, %v5643_v40  }
  0x7e   : > { %3932 = vst [vmem:[%s5291_s9 + $0x4a0] sm:$0xf] %v5205_v0  ;;  %536 = vperm.xlu0 %4817, %v5648_v41  }
  0x7f   : > { %3933 = vst [vmem:[%s5291_s9 + $0x4ac] sm:$0xf] %v5205_v0  ;;  %v5661_v42 = vpop.permute.xlu2 %381 }
  0x80   : > { %3934 = vst [vmem:[%s5291_s9 + $0x4b8] sm:$0xf] %v5205_v0 }
  0x81   : > { %3935 = vst [vmem:[%s5291_s9 + $0x4c4] sm:$0xf] %v5205_v0 }
  0x82   : > { %3936 = vst [vmem:[%s5291_s9 + $0x4d0] sm:$0xf] %v5205_v0 }
  0x83   : > { %10967 = vst [vmem:[#allocation10_spill] sm:$0xff] %v5661_v42 }
  0x84   : > { %3937 = vst [vmem:[%s5291_s9 + $0x4dc] sm:$0xf] %v5205_v0 }
  0x85   : > { %3938 = vst [vmem:[%s5291_s9 + $0x4e8] sm:$0xf] %v5205_v0  ;;  %561 = vperm.xlu2 %4819, %v5670_v43   ;;  %556 = vperm.xlu1 %4818, %v5673_v44  }
  0x86   : > { %3939 = vst [vmem:[%s5291_s9 + $0x4f4] sm:$0xf] %v5205_v0  ;;  %551 = vperm.xlu0 %4817, %v5678_v45  }
  0x87   : > { %3940 = vst [vmem:[%s5291_s9 + $0x500] sm:$0xf] %v5205_v0  ;;  %v5691_v46 = vpop.permute.xlu2 %396 }
  0x88   : > { %3941 = vst [vmem:[%s5291_s9 + $0x50c] sm:$0xf] %v5205_v0 }
  0x89   : > { %3942 = vst [vmem:[%s5291_s9 + $0x518] sm:$0xf] %v5205_v0 }
  0x8a   : > { %3943 = vst [vmem:[%s5291_s9 + $0x524] sm:$0xf] %v5205_v0 }
  0x8b   : > { %3944 = vst [vmem:[%s5291_s9 + $0x530] sm:$0xf] %v5205_v0 }
  0x8c   : > { %10968 = vst [vmem:[#allocation11_spill] sm:$0xff] %v5691_v46  ;;  %v6606_v46 = vld [vmem:[%s5302_s14 + $0x3b8] sm:$0xff] }
  0x8d   : > { %3945 = vst [vmem:[%s5291_s9 + $0x53c] sm:$0xf] %v5205_v0  ;;  %576 = vperm.xlu2 %4819, %v5700_v47   ;;  %571 = vperm.xlu1 %4818, %v5703_v48   ;;  %v4081_v42 = vpack.c.bf16 %v6606_v46, %v6606_v46 }
  0x8e   : > { %3946 = vst [vmem:[%s5291_s9 + $0x548] sm:$0xf] %v5205_v0  ;;  %566 = vperm.xlu0 %4817, %v5708_v49  }
  0x8f   : > { %3947 = vst [vmem:[%s5291_s9 + $0x554] sm:$0xf] %v5205_v0  ;;  %v5721_v50 = vpop.permute.xlu2 %411  ;;  %v5723_v51 = vpop.permute.xlu1 %366 }
  0x90   : > { %3948 = vst [vmem:[%s5291_s9 + $0x560] sm:$0xf] %v5205_v0  ;;  %v5727_v52 = vpop.permute.xlu0 %356 }
  0x91   : > { %3949 = vst [vmem:[%s5291_s9 + $0x56c] sm:$0xf] %v5205_v0 }
  0x92   : > { %3950 = vst [vmem:[%s5291_s9 + $0x578] sm:$0xf] %v5205_v0 }
  0x93   : > { %3951 = vst [vmem:[%s5291_s9 + $0x584] sm:$0xf] %v5205_v0 }
  0x94   : > { %3952 = vst [vmem:[%s5291_s9 + $0x590] sm:$0xf] %v5205_v0 }
  0x95   : > { %10969 = vst [vmem:[#allocation12_spill] sm:$0xff] %v5721_v50  ;;  %591 = vperm.xlu2 %4819, %v5734_v53   ;;  %586 = vperm.xlu1 %4818, %v5737_v54  }
  0x96   : > { %10970 = vst [vmem:[#allocation13_spill] sm:$0xff] %v5723_v51  ;;  %581 = vperm.xlu0 %4817, %v5742_v55  }
  0x97   : > { %3953 = vst [vmem:[%s5291_s9 + $0x59c] sm:$0xf] %v5205_v0  ;;  %v5761_v59 = vpop.permute.xlu2 %426  ;;  %v5763_v60 = vpop.permute.xlu1 %371 }
  0x98   : > { %10971 = vst [vmem:[#allocation14_spill] sm:$0xff] %v5727_v52  ;;  %v5769_v62 = vpop.permute.xlu0 %361  ;;  %v6576_v52 = vld [vmem:[%s5302_s14 + $0x3a0] sm:$0xff] }
  0x99   : > { %3954 = vst [vmem:[%s5291_s9 + $0x5a8] sm:$0xf] %v5205_v0  ;;  %v4078_v51 = vpack.c.bf16 %v6576_v52, %v6576_v52 }
  0x9a   : > { %3955 = vst [vmem:[%s5291_s9 + $0x5b4] sm:$0xf] %v5205_v0 }
  0x9b   : > { %3956 = vst [vmem:[%s5291_s9 + $0x5c0] sm:$0xf] %v5205_v0 }
  0x9c   : > { %3957 = vst [vmem:[%s5291_s9 + $0x5cc] sm:$0xf] %v5205_v0 }
  0x9d   : > { %3958 = vst [vmem:[%s5291_s9 + $0x5d8] sm:$0xf] %v5205_v0  ;;  %606 = vperm.xlu2 %4819, %v5780_v2  }
  0x9e   : > { %3959 = vst [vmem:[%s5291_s9 + $0x5e4] sm:$0xf] %v5205_v0  ;;  %596 = vperm.xlu0 %4817, %v5790_v4  }
  0x9f   : > { %3960 = vst [vmem:[%s5291_s9 + $0x5f0] sm:$0xf] %v5205_v0  ;;  %v5811_v9 = vpop.permute.xlu2 %441  ;;  %v5813_v10 = vpop.permute.xlu1 %391 }
  0xa0   : > { %10972 = vst [vmem:[#allocation15_spill] sm:$0xff] %v5761_v59  ;;  %v5819_v12 = vpop.permute.xlu0 %386 }
  0xa1   : > { %10973 = vst [vmem:[#allocation16_spill] sm:$0xff] %v5763_v60 }
  0xa2   : > { %3961 = vst [vmem:[%s5291_s9 + $0x5fc] sm:$0xf] %v5205_v0  ;;  %v5783_v0 = vld [vmem:[%s5302_s14 + $0x188] sm:$0xff] }
  0xa3   : > { %10974 = vst [vmem:[#allocation17_spill] sm:$0xff] %v5769_v62  ;;  %601 = vperm.xlu1 %4818, %v5783_v0   ;;  %v6546_v62 = vld [vmem:[%s5302_s14 + $0x388] sm:$0xff] }
  0xa4   : > { %4093 = vst.msk [vmem:[%s5291_s9 + $0x20] sm:$0xf] %vm4090_vm0, %v3964_v56  ;;  %v3975_v56 = vpack.c.bf16 %v5417_v15, %v5417_v15  ;;  %v3978_v15 = vpack.c.bf16 %v5445_v18, %v5445_v18  ;;  %v3981_v18 = vpack.c.bf16 %v5473_v21, %v5473_v21  ;;  %v3984_v21 = vpack.c.bf16 %v5501_v24, %v5501_v24 }
  0xa5   : > { %4091 = vst.msk [vmem:[%s5291_s9 + $0x8] sm:$0xf] %vm4090_vm0, %v3962_v57  ;;  %v5830_v57 = vld [vmem:[%s5302_s14 + $0x1a8] sm:$0xff]  ;;  %v3987_v24 = vpack.c.bf16 %v5529_v27, %v5529_v27  ;;  %v4075_v60 = vpack.c.bf16 %v6546_v62, %v6546_v62 }
  0xa6   : > { %4096 = vst.msk [vmem:[%s5291_s9 + $0x44] sm:$0xf] %vm4090_vm0, %v3967_v58  ;;  %v5833_v58 = vld [vmem:[%s5302_s14 + $0x1a0] sm:$0xff]  ;;  %621 = vperm.xlu2 %4819, %v5830_v57  }
  0xa7   : > { %4094 = vst.msk [vmem:[%s5291_s9 + $0x2c] sm:$0xf] %vm4090_vm0, %v3965_v61  ;;  %v5840_v61 = vld [vmem:[%s5302_s14 + $0x198] sm:$0xff]  ;;  %v5861_v19 = vpop.permute.xlu2 %456 }
  0xa8   : > { %4092 = vst.msk [vmem:[%s5291_s9 + $0x14] sm:$0xf] %vm4090_vm0, %v3963_v63  ;;  %611 = vperm.xlu0 %4817, %v5840_v61   ;;  %v5863_v63 = vpop.permute.xlu1 %406  ;;  %v5869_v20 = vpop.permute.xlu0 %401 }
  0xa9   : > { %4099 = vst.msk [vmem:[%s5291_s9 + $0x68] sm:$0xf] %vm4090_vm0, %v3970_v1  ;;  %v3980_v1 = vpack.c.bf16 %v5478_v22, %v5478_v22  ;;  %v3983_v22 = vpack.c.bf16 %v5506_v25, %v5506_v25  ;;  %v3986_v25 = vpack.c.bf16 %v5534_v28, %v5534_v28 }
  0xaa   : > { %4098 = vst.msk [vmem:[%s5291_s9 + $0x5c] sm:$0xf] %vm4090_vm0, %v3969_v3  ;;  %v3985_v3 = vpack.c.bf16 %v5498_v23, %v5498_v23  ;;  %v3988_v23 = vpack.c.bf16 %v5526_v26, %v5526_v26  ;;  %v3991_v26 = vpack.c.bf16 %v5554_v29, %v5554_v29  ;;  %v3994_v29 = vpack.c.bf16 %v5582_v32, %v5582_v32 }
  0xab   : > { %10975 = vst [vmem:[#allocation18_spill] sm:$0xff] %v5811_v9  ;;  %616 = vperm.xlu1 %4818, %v5833_v58   ;;  %v3997_v32 = vpack.c.bf16 %v5610_v35, %v5610_v35 }
  0xac   : > { %10976 = vst [vmem:[#allocation19_spill] sm:$0xff] %v5813_v10 }
  0xad   : > { %4097 = vst.msk [vmem:[%s5291_s9 + $0x50] sm:$0xf] %vm4090_vm0, %v3968_v5  ;;  %v5880_v5 = vld [vmem:[%s5302_s14 + $0x1c0] sm:$0xff] }
  0xae   : > { %10977 = vst [vmem:[#allocation20_spill] sm:$0xff] %v5819_v12  ;;  %636 = vperm.xlu2 %4819, %v5880_v5   ;;  %v6516_v12 = vld [vmem:[%s5302_s14 + $0x370] sm:$0xff] }
  0xaf   : > { %4102 = vst.msk [vmem:[%s5291_s9 + $0x8c] sm:$0xf] %vm4090_vm0, %v3973_v6  ;;  %v5883_v6 = vld [vmem:[%s5302_s14 + $0x1b8] sm:$0xff]  ;;  %v5911_v27 = vpop.permute.xlu2 %471  ;;  %v4072_v10 = vpack.c.bf16 %v6516_v12, %v6516_v12 }
  0xb0   : > { %4101 = vst.msk [vmem:[%s5291_s9 + $0x80] sm:$0xf] %vm4090_vm0, %v3972_v7  ;;  %v5890_v7 = vld [vmem:[%s5302_s14 + $0x1b0] sm:$0xff]  ;;  %v5919_v28 = vpop.permute.xlu0 %416 }
  0xb1   : > { %4100 = vst.msk [vmem:[%s5291_s9 + $0x74] sm:$0xf] %vm4090_vm0, %v3971_v8  ;;  %626 = vperm.xlu0 %4817, %v5890_v7   ;;  %v5913_v8 = vpop.permute.xlu1 %421 }
  0xb2   : > { %4105 = vst.msk [vmem:[%s5291_s9 + $0xb0] sm:$0xf] %vm4090_vm0, %v3976_v11  ;;  %v3990_v11 = vpack.c.bf16 %v5557_v30, %v5557_v30  ;;  %v3993_v30 = vpack.c.bf16 %v5585_v33, %v5585_v33  ;;  %v3996_v33 = vpack.c.bf16 %v5613_v36, %v5613_v36 }
  0xb3   : > { %4104 = vst.msk [vmem:[%s5291_s9 + $0xa4] sm:$0xf] %vm4090_vm0, %v3975_v56  ;;  %631 = vperm.xlu1 %4818, %v5883_v6   ;;  %v3989_v56 = vpack.c.bf16 %v5562_v31, %v5562_v31  ;;  %v3992_v31 = vpack.c.bf16 %v5590_v34, %v5590_v34  ;;  %v3995_v34 = vpack.c.bf16 %v5618_v37, %v5618_v37 }
  0xb4   : > { %4103 = vst.msk [vmem:[%s5291_s9 + $0x98] sm:$0xf] %vm4090_vm0, %v3974_v13  ;;  %v5930_v13 = vld [vmem:[%s5302_s14 + $0x1d8] sm:$0xff]  ;;  %v3998_v37 = vpack.c.bf16 %v5648_v41, %v5648_v41  ;;  %v4001_v41 = vpack.c.bf16 %v5678_v45, %v5678_v45 }
  0xb5   : > { %4108 = vst.msk [vmem:[%s5291_s9 + $0xd4] sm:$0xf] %vm4090_vm0, %v3979_v14  ;;  %v5933_v14 = vld [vmem:[%s5302_s14 + $0x1d0] sm:$0xff] }
  0xb6   : > { %10978 = vst [vmem:[#allocation21_spill] sm:$0xff] %v5861_v19  ;;  %651 = vperm.xlu2 %4819, %v5930_v13  }
  0xb7   : > { %10979 = vst [vmem:[#allocation22_spill] sm:$0xff] %v5863_v63  ;;  %v5961_v35 = vpop.permute.xlu2 %486 }
  0xb8   : > { %4107 = vst.msk [vmem:[%s5291_s9 + $0xc8] sm:$0xf] %vm4090_vm0, %v3978_v15  ;;  %v5940_v15 = vld [vmem:[%s5302_s14 + $0x1c8] sm:$0xff]  ;;  %v5969_v36 = vpop.permute.xlu0 %431 }
  0xb9   : > { %10980 = vst [vmem:[#allocation23_spill] sm:$0xff] %v5869_v20  ;;  %641 = vperm.xlu0 %4817, %v5940_v15   ;;  %v6486_v20 = vld [vmem:[%s5302_s14 + $0x358] sm:$0xff] }
  0xba   : > { %4106 = vst.msk [vmem:[%s5291_s9 + $0xbc] sm:$0xf] %vm4090_vm0, %v3977_v16  ;;  %v5963_v16 = vpop.permute.xlu1 %436  ;;  %v4069_v63 = vpack.c.bf16 %v6486_v20, %v6486_v20 }
  0xbb   : > { %4111 = vst.msk [vmem:[%s5291_s9 + $0xf8] sm:$0xf] %vm4090_vm0, %v3982_v17  ;;  %646 = vperm.xlu1 %4818, %v5933_v14   ;;  %v4000_v17 = vpack.c.bf16 %v5640_v39, %v5640_v39  ;;  %v4003_v39 = vpack.c.bf16 %v5670_v43, %v5670_v43  ;;  %v4006_v43 = vpack.c.bf16 %v5700_v47, %v5700_v47 }
  0xbc   : > { %4110 = vst.msk [vmem:[%s5291_s9 + $0xec] sm:$0xf] %vm4090_vm0, %v3981_v18  ;;  %v3999_v18 = vpack.c.bf16 %v5643_v40, %v5643_v40  ;;  %v4002_v40 = vpack.c.bf16 %v5673_v44, %v5673_v44  ;;  %v4005_v44 = vpack.c.bf16 %v5703_v48, %v5703_v48  ;;  %v4008_v48 = vpack.c.bf16 %v5737_v54, %v5737_v54 }
  0xbd   : > { %4109 = vst.msk [vmem:[%s5291_s9 + $0xe0] sm:$0xf] %vm4090_vm0, %v3980_v1  ;;  %v5980_v1 = vld [vmem:[%s5302_s14 + $0x1f0] sm:$0xff]  ;;  %v4011_v54 = vpack.c.bf16 %v5783_v0, %v5783_v0 }
  0xbe   : > { %4114 = vst.msk [vmem:[%s5291_s9 + $0x11c] sm:$0xf] %vm4090_vm0, %v3985_v3  ;;  %v5983_v3 = vld [vmem:[%s5302_s14 + $0x1e8] sm:$0xff]  ;;  %666 = vperm.xlu2 %4819, %v5980_v1  }
  0xbf   : > { %4113 = vst.msk [vmem:[%s5291_s9 + $0x110] sm:$0xf] %vm4090_vm0, %v3984_v21  ;;  %v5990_v21 = vld [vmem:[%s5302_s14 + $0x1e0] sm:$0xff]  ;;  %v6011_v45 = vpop.permute.xlu2 %501 }
  0xc0   : > { %4112 = vst.msk [vmem:[%s5291_s9 + $0x104] sm:$0xf] %vm4090_vm0, %v3983_v22  ;;  %v6019_v47 = vpop.permute.xlu0 %446 }
  0xc1   : > { %10981 = vst [vmem:[#allocation24_spill] sm:$0xff] %v5911_v27  ;;  %656 = vperm.xlu0 %4817, %v5990_v21  }
  0xc2   : > { %10982 = vst [vmem:[#allocation25_spill] sm:$0xff] %v5913_v8  ;;  %v6013_v22 = vpop.permute.xlu1 %451 }
  0xc3   : > { %4117 = vst.msk [vmem:[%s5291_s9 + $0x140] sm:$0xf] %vm4090_vm0, %v3988_v23  ;;  %661 = vperm.xlu1 %4818, %v5983_v3   ;;  %v4004_v23 = vpack.c.bf16 %v5708_v49, %v5708_v49  ;;  %v4007_v49 = vpack.c.bf16 %v5742_v55, %v5742_v55  ;;  %v4010_v55 = vpack.c.bf16 %v5790_v4, %v5790_v4 }
  0xc4   : > { %10983 = vst [vmem:[#allocation26_spill] sm:$0xff] %v5919_v28  ;;  %v6456_v28 = vld [vmem:[%s5302_s14 + $0x340] sm:$0xff] }
  0xc5   : > { %4116 = vst.msk [vmem:[%s5291_s9 + $0x134] sm:$0xf] %vm4090_vm0, %v3987_v24  ;;  %v4009_v24 = vpack.c.bf16 %v5734_v53, %v5734_v53  ;;  %v4012_v53 = vpack.c.bf16 %v5780_v2, %v5780_v2  ;;  %v4015_v2 = vpack.c.bf16 %v5830_v57, %v5830_v57  ;;  %v4018_v57 = vpack.c.bf16 %v5880_v5, %v5880_v5 }
  0xc6   : > { %4115 = vst.msk [vmem:[%s5291_s9 + $0x128] sm:$0xf] %vm4090_vm0, %v3986_v25  ;;  %v6030_v25 = vld [vmem:[%s5302_s14 + $0x208] sm:$0xff]  ;;  %v4021_v5 = vpack.c.bf16 %v5930_v13, %v5930_v13  ;;  %v4066_v8 = vpack.c.bf16 %v6456_v28, %v6456_v28 }
  0xc7   : > { %4120 = vst.msk [vmem:[%s5291_s9 + $0x164] sm:$0xf] %vm4090_vm0, %v3991_v26  ;;  %v6033_v26 = vld [vmem:[%s5302_s14 + $0x200] sm:$0xff]  ;;  %681 = vperm.xlu2 %4819, %v6030_v25   ;;  %v6061_v0 = vpop.permute.xlu2 %516 }
  0xc8   : > { %4119 = vst.msk [vmem:[%s5291_s9 + $0x158] sm:$0xf] %vm4090_vm0, %v3990_v11  ;;  %v6040_v11 = vld [vmem:[%s5302_s14 + $0x1f8] sm:$0xff]  ;;  %v6069_v4 = vpop.permute.xlu0 %461 }
  0xc9   : > { %4118 = vst.msk [vmem:[%s5291_s9 + $0x14c] sm:$0xf] %vm4090_vm0, %v3989_v56  ;;  %671 = vperm.xlu0 %4817, %v6040_v11  }
  0xca   : > { %4123 = vst.msk [vmem:[%s5291_s9 + $0x188] sm:$0xf] %vm4090_vm0, %v3994_v29  ;;  %v6063_v56 = vpop.permute.xlu1 %466  ;;  %v4014_v29 = vpack.c.bf16 %v5833_v58, %v5833_v58  ;;  %v4017_v58 = vpack.c.bf16 %v5883_v6, %v5883_v6  ;;  %v4020_v6 = vpack.c.bf16 %v5933_v14, %v5933_v14 }
  0xcb   : > { %4122 = vst.msk [vmem:[%s5291_s9 + $0x17c] sm:$0xf] %vm4090_vm0, %v3993_v30  ;;  %676 = vperm.xlu1 %4818, %v6033_v26   ;;  %v4013_v30 = vpack.c.bf16 %v5840_v61, %v5840_v61  ;;  %v4016_v61 = vpack.c.bf16 %v5890_v7, %v5890_v7  ;;  %v4019_v7 = vpack.c.bf16 %v5940_v15, %v5940_v15 }
  0xcc   : > { %10984 = vst [vmem:[#allocation27_spill] sm:$0xff] %v5961_v35  ;;  %v4022_v15 = vpack.c.bf16 %v5990_v21, %v5990_v21 }
  0xcd   : > { %10985 = vst [vmem:[#allocation28_spill] sm:$0xff] %v5963_v16 }
  0xce   : > { %4121 = vst.msk [vmem:[%s5291_s9 + $0x170] sm:$0xf] %vm4090_vm0, %v3992_v31  ;;  %v6080_v31 = vld [vmem:[%s5302_s14 + $0x220] sm:$0xff] }
  0xcf   : > { %10986 = vst [vmem:[#allocation29_spill] sm:$0xff] %v5969_v36  ;;  %696 = vperm.xlu2 %4819, %v6080_v31   ;;  %v6111_v13 = vpop.permute.xlu2 %531  ;;  %v6426_v36 = vld [vmem:[%s5302_s14 + $0x328] sm:$0xff] }
  0xd0   : > { %4126 = vst.msk [vmem:[%s5291_s9 + $0x1ac] sm:$0xf] %vm4090_vm0, %v3997_v32  ;;  %v6083_v32 = vld [vmem:[%s5302_s14 + $0x218] sm:$0xff]  ;;  %v6119_v14 = vpop.permute.xlu0 %476  ;;  %v4063_v16 = vpack.c.bf16 %v6426_v36, %v6426_v36 }
  0xd1   : > { %4125 = vst.msk [vmem:[%s5291_s9 + $0x1a0] sm:$0xf] %vm4090_vm0, %v3996_v33  ;;  %v6090_v33 = vld [vmem:[%s5302_s14 + $0x210] sm:$0xff] }
  0xd2   : > { %4124 = vst.msk [vmem:[%s5291_s9 + $0x194] sm:$0xf] %vm4090_vm0, %v3995_v34  ;;  %686 = vperm.xlu0 %4817, %v6090_v33   ;;  %v6113_v34 = vpop.permute.xlu1 %481 }
  0xd3   : > { %4129 = vst.msk [vmem:[%s5291_s9 + $0x1d0] sm:$0xf] %vm4090_vm0, %v4000_v17  ;;  %691 = vperm.xlu1 %4818, %v6083_v32   ;;  %v4024_v17 = vpack.c.bf16 %v5980_v1, %v5980_v1  ;;  %v4027_v1 = vpack.c.bf16 %v6030_v25, %v6030_v25 }
  0xd4   : > { %4128 = vst.msk [vmem:[%s5291_s9 + $0x1c4] sm:$0xf] %vm4090_vm0, %v3999_v18  ;;  %v4023_v18 = vpack.c.bf16 %v5983_v3, %v5983_v3 }
  0xd5   : > { %4127 = vst.msk [vmem:[%s5291_s9 + $0x1b8] sm:$0xf] %vm4090_vm0, %v3998_v37  ;;  %v6130_v37 = vld [vmem:[%s5302_s14 + $0x238] sm:$0xff] }
  0xd6   : > { %4132 = vst.msk [vmem:[%s5291_s9 + $0x1f4] sm:$0xf] %vm4090_vm0, %v4003_v39  ;;  %v6133_v39 = vld [vmem:[%s5302_s14 + $0x230] sm:$0xff] }
  0xd7   : > { %10987 = vst [vmem:[#allocation30_spill] sm:$0xff] %v6011_v45  ;;  %711 = vperm.xlu2 %4819, %v6130_v37  }
  0xd8   : > { %10988 = vst [vmem:[#allocation31_spill] sm:$0xff] %v6013_v22 }
  0xd9   : > { %4131 = vst.msk [vmem:[%s5291_s9 + $0x1e8] sm:$0xf] %vm4090_vm0, %v4002_v40  ;;  %v6140_v40 = vld [vmem:[%s5302_s14 + $0x228] sm:$0xff] }
  0xda   : > { %10989 = vst [vmem:[#allocation32_spill] sm:$0xff] %v6019_v47  ;;  %701 = vperm.xlu0 %4817, %v6140_v40  }
  0xdb   : > { %4130 = vst.msk [vmem:[%s5291_s9 + $0x1dc] sm:$0xf] %vm4090_vm0, %v4001_v41  ;;  %v4026_v41 = vpack.c.bf16 %v6033_v26, %v6033_v26  ;;  %706 = vperm.xlu1 %4818, %v6133_v39  }
  0xdc   : > { %4135 = vst.msk [vmem:[%s5291_s9 + $0x218] sm:$0xf] %vm4090_vm0, %v4006_v43  ;;  %v4025_v43 = vpack.c.bf16 %v6040_v11, %v6040_v11 }
  0xdd   : > { %4134 = vst.msk [vmem:[%s5291_s9 + $0x20c] sm:$0xf] %vm4090_vm0, %v4005_v44  ;;  %v4030_v44 = vpack.c.bf16 %v6080_v31, %v6080_v31 }
  0xde   : > { %4133 = vst.msk [vmem:[%s5291_s9 + $0x200] sm:$0xf] %vm4090_vm0, %v4004_v23  ;;  %v4029_v23 = vpack.c.bf16 %v6083_v32, %v6083_v32 }
  0xdf   : > { %4138 = vst.msk [vmem:[%s5291_s9 + $0x23c] sm:$0xf] %vm4090_vm0, %v4009_v24  ;;  %v6161_v24 = vpop.permute.xlu2 %546 }
  0xe0   : > { %4137 = vst.msk [vmem:[%s5291_s9 + $0x230] sm:$0xf] %vm4090_vm0, %v4008_v48  ;;  %v6163_v48 = vpop.permute.xlu1 %496 }
  0xe1   : > { %4136 = vst.msk [vmem:[%s5291_s9 + $0x224] sm:$0xf] %vm4090_vm0, %v4007_v49  ;;  %v4028_v49 = vpack.c.bf16 %v6090_v33, %v6090_v33 }
  0xe2   : > { %10990 = vst [vmem:[#allocation33_spill] sm:$0xff] %v6061_v0  ;;  %v6349_v0 = vld [vmem:[%s5302_s14 + $0x2d0] sm:$0xff] }
  0xe3   : > { %10991 = vst [vmem:[#allocation34_spill] sm:$0xff] %v6063_v56  ;;  %v4052_v47 = vpack.c.bf16 %v6349_v0, %v6349_v0 }
  0xe4   : > { %4141 = vst.msk [vmem:[%s5291_s9 + $0x260] sm:$0xf] %vm4090_vm0, %v4012_v53  ;;  %v6169_v53 = vpop.permute.xlu0 %491 }
  0xe5   : > { %10992 = vst [vmem:[#allocation35_spill] sm:$0xff] %v6069_v4 }
  0xe6   : > { %4140 = vst.msk [vmem:[%s5291_s9 + $0x254] sm:$0xf] %vm4090_vm0, %v4011_v54  ;;  %v4033_v54 = vpack.c.bf16 %v6130_v37, %v6130_v37 }
  0xe7   : > { %4139 = vst.msk [vmem:[%s5291_s9 + $0x248] sm:$0xf] %vm4090_vm0, %v4010_v55  ;;  %v4032_v55 = vpack.c.bf16 %v6133_v39, %v6133_v39 }
  0xe8   : > { %4144 = vst.msk [vmem:[%s5291_s9 + $0x284] sm:$0xf] %vm4090_vm0, %v4015_v2  ;;  %v6180_v2 = vld [vmem:[%s5302_s14 + $0x250] sm:$0xff] }
  0xe9   : > { %4143 = vst.msk [vmem:[%s5291_s9 + $0x278] sm:$0xf] %vm4090_vm0, %v4014_v29  ;;  %v6183_v29 = vld [vmem:[%s5302_s14 + $0x248] sm:$0xff]  ;;  %726 = vperm.xlu2 %4819, %v6180_v2  }
  0xea   : > { %4142 = vst.msk [vmem:[%s5291_s9 + $0x26c] sm:$0xf] %vm4090_vm0, %v4013_v30  ;;  %v4031_v30 = vpack.c.bf16 %v6140_v40, %v6140_v40  ;;  %721 = vperm.xlu1 %4818, %v6183_v29  }
  0xeb   : > { %4147 = vst.msk [vmem:[%s5291_s9 + $0x2a8] sm:$0xf] %vm4090_vm0, %v4018_v57  ;;  %v6190_v57 = vld [vmem:[%s5302_s14 + $0x240] sm:$0xff] }
  0xec   : > { %4146 = vst.msk [vmem:[%s5291_s9 + $0x29c] sm:$0xf] %vm4090_vm0, %v4017_v58  ;;  %v4036_v58 = vpack.c.bf16 %v6180_v2, %v6180_v2  ;;  %716 = vperm.xlu0 %4817, %v6190_v57  }
  0xed   : > { %10993 = vst [vmem:[#allocation36_spill] sm:$0xff] %v6111_v13  ;;  %v6338_v13 = vld [vmem:[%s5302_s14 + $0x2d8] sm:$0xff] }
  0xee   : > { %10994 = vst [vmem:[#allocation37_spill] sm:$0xff] %v6113_v34  ;;  %v4053_v56 = vpack.c.bf16 %v6338_v13, %v6338_v13 }
  0xef   : > { %4145 = vst.msk [vmem:[%s5291_s9 + $0x290] sm:$0xf] %vm4090_vm0, %v4016_v61  ;;  %v4035_v61 = vpack.c.bf16 %v6183_v29, %v6183_v29 }
  0xf0   : > { %10995 = vst [vmem:[#allocation38_spill] sm:$0xff] %v6119_v14  ;;  %v6321_v14 = vld [vmem:[%s5302_s14 + $0x2b8] sm:$0xff] }
  0xf1   : > { %4150 = vst.msk [vmem:[%s5291_s9 + $0x2cc] sm:$0xf] %vm4090_vm0, %v4021_v5  ;;  %v4034_v5 = vpack.c.bf16 %v6190_v57, %v6190_v57 }
  0xf2   : > { %4149 = vst.msk [vmem:[%s5291_s9 + $0x2c0] sm:$0xf] %vm4090_vm0, %v4020_v6  ;;  %v6208_v6 = vld [vmem:[%s5302_s14 + $0x268] sm:$0xff] }
  0xf3   : > { %4148 = vst.msk [vmem:[%s5291_s9 + $0x2b4] sm:$0xf] %vm4090_vm0, %v4019_v7  ;;  %v6212_v7 = vpop.permute.xlu2 %561  ;;  %741 = vperm.xlu2 %4819, %v6208_v6  }
  0xf4   : > { %4153 = vst.msk [vmem:[%s5291_s9 + $0x2f0] sm:$0xf] %vm4090_vm0, %v4024_v17  ;;  %v6214_v17 = vpop.permute.xlu1 %511 }
  0xf5   : > { %4152 = vst.msk [vmem:[%s5291_s9 + $0x2e4] sm:$0xf] %vm4090_vm0, %v4023_v18  ;;  %v4039_v18 = vpack.c.bf16 %v6208_v6, %v6208_v6 }
  0xf6   : > { %4151 = vst.msk [vmem:[%s5291_s9 + $0x2d8] sm:$0xf] %vm4090_vm0, %v4022_v15  ;;  %v6219_v15 = vld [vmem:[%s5302_s14 + $0x260] sm:$0xff] }
  0xf7   : > { %4156 = vst.msk [vmem:[%s5291_s9 + $0x314] sm:$0xf] %vm4090_vm0, %v4027_v1  ;;  %v6223_v1 = vpop.permute.xlu0 %506  ;;  %736 = vperm.xlu1 %4818, %v6219_v15  }
  0xf8   : > { %10996 = vst [vmem:[#allocation39_spill] sm:$0xff] %v6161_v24  ;;  %v6314_v24 = vld [vmem:[%s5302_s14 + $0x2c0] sm:$0xff] }
  0xf9   : > { %10997 = vst [vmem:[#allocation40_spill] sm:$0xff] %v6163_v48 }
  0xfa   : > { %4155 = vst.msk [vmem:[%s5291_s9 + $0x308] sm:$0xf] %vm4090_vm0, %v4026_v41  ;;  %v4038_v41 = vpack.c.bf16 %v6219_v15, %v6219_v15 }
  0xfb   : > { %10998 = vst [vmem:[#allocation41_spill] sm:$0xff] %v6169_v53  ;;  %v6284_v53 = vld [vmem:[%s5302_s14 + $0x2b0] sm:$0xff] }
  0xfc   : > { %4154 = vst.msk [vmem:[%s5291_s9 + $0x2fc] sm:$0xf] %vm4090_vm0, %v4025_v43  ;;  %v6228_v43 = vld [vmem:[%s5302_s14 + $0x258] sm:$0xff]  ;;  %v4048_v48 = vpack.c.bf16 %v6284_v53, %v6284_v53 }
  0xfd   : > { %4159 = vst.msk [vmem:[%s5291_s9 + $0x338] sm:$0xf] %vm4090_vm0, %v4030_v44  ;;  %v4037_v44 = vpack.c.bf16 %v6228_v43, %v6228_v43  ;;  %731 = vperm.xlu0 %4817, %v6228_v43  }
  0xfe   : > { %4158 = vst.msk [vmem:[%s5291_s9 + $0x32c] sm:$0xf] %vm4090_vm0, %v4029_v23  ;;  %v6235_v23 = vld [vmem:[%s5302_s14 + $0x280] sm:$0xff] }
  0xff   : > { %4157 = vst.msk [vmem:[%s5291_s9 + $0x320] sm:$0xf] %vm4090_vm0, %v4028_v49  ;;  %v4042_v49 = vpack.c.bf16 %v6235_v23, %v6235_v23  ;;  %756 = vperm.xlu2 %4819, %v6235_v23  }
 0x100   : > { %4162 = vst.msk [vmem:[%s5291_s9 + $0x35c] sm:$0xf] %vm4090_vm0, %v4033_v54  ;;  %v6242_v54 = vld [vmem:[%s5302_s14 + $0x278] sm:$0xff] }
 0x101   : > { %4161 = vst.msk [vmem:[%s5291_s9 + $0x350] sm:$0xf] %vm4090_vm0, %v4032_v55  ;;  %v4041_v55 = vpack.c.bf16 %v6242_v54, %v6242_v54  ;;  %751 = vperm.xlu1 %4818, %v6242_v54  }
 0x102   : > { %4160 = vst.msk [vmem:[%s5291_s9 + $0x344] sm:$0xf] %vm4090_vm0, %v4031_v30  ;;  %v6249_v30 = vld [vmem:[%s5302_s14 + $0x270] sm:$0xff] }
 0x103   : > { %10999 = vst [vmem:[#allocation42_spill] sm:$0xff] %v6212_v7 }
 0x104   : > { %11000 = vst [vmem:[#allocation43_spill] sm:$0xff] %v6214_v17  ;;  %v6277_v17 = vpop.permute.xlu1 %526 }
 0x105   : > { %4165 = vst.msk [vmem:[%s5291_s9 + $0x380] sm:$0xf] %vm4090_vm0, %v4036_v58  ;;  %v4040_v58 = vpack.c.bf16 %v6249_v30, %v6249_v30  ;;  %746 = vperm.xlu0 %4817, %v6249_v30  }
 0x106   : > { %11001 = vst [vmem:[#allocation44_spill] sm:$0xff] %v6223_v1  ;;  %v6273_v1 = vld [vmem:[%s5302_s14 + $0x288] sm:$0xff] }
 0x107   : > { %4164 = vst.msk [vmem:[%s5291_s9 + $0x374] sm:$0xf] %vm4090_vm0, %v4035_v61  ;;  %v6256_v61 = vld [vmem:[%s5302_s14 + $0x298] sm:$0xff]  ;;  %v4043_v7 = vpack.c.bf16 %v6273_v1, %v6273_v1 }
 0x108   : > { %4163 = vst.msk [vmem:[%s5291_s9 + $0x368] sm:$0xf] %vm4090_vm0, %v4034_v5  ;;  %v4045_v5 = vpack.c.bf16 %v6256_v61, %v6256_v61  ;;  %771 = vperm.xlu2 %4819, %v6256_v61  }
 0x109   : > { %4168 = vst.msk [vmem:[%s5291_s9 + $0x3a4] sm:$0xf] %vm4090_vm0, %v4039_v18  ;;  %v6265_v18 = vld [vmem:[%s5302_s14 + $0x290] sm:$0xff] }
 0x10a   : > { %4167 = vst.msk [vmem:[%s5291_s9 + $0x398] sm:$0xf] %vm4090_vm0, %v4038_v41  ;;  %v4044_v41 = vpack.c.bf16 %v6265_v18, %v6265_v18  ;;  %766 = vperm.xlu1 %4818, %v6265_v18  }
 0x10b   : > { %4166 = vst.msk [vmem:[%s5291_s9 + $0x38c] sm:$0xf] %vm4090_vm0, %v4037_v44  ;;  %v6275_v44 = vpop.permute.xlu2 %576 }
 0x10c   : > { %4171 = vst.msk [vmem:[%s5291_s9 + $0x3c8] sm:$0xf] %vm4090_vm0, %v4042_v49  ;;  %v6286_v49 = vpop.permute.xlu0 %521 }
 0x10d   : > { %11002 = vst [vmem:[#allocation45_spill] sm:$0xff] %v6275_v44  ;;  %v6293_v44 = vld [vmem:[%s5302_s14 + $0x2a8] sm:$0xff]  ;;  %761 = vperm.xlu0 %4817, %v6273_v1  }
 0x10e   : > { %11003 = vst [vmem:[#allocation46_spill] sm:$0xff] %v6277_v17  ;;  %v6300_v17 = vld [vmem:[%s5302_s14 + $0x2a0] sm:$0xff] }
 0x10f   : > { %4170 = vst.msk [vmem:[%s5291_s9 + $0x3bc] sm:$0xf] %vm4090_vm0, %v4041_v55  ;;  %v4047_v55 = vpack.c.bf16 %v6293_v44, %v6293_v44 }
 0x110   : > { %11004 = vst [vmem:[#allocation47_spill] sm:$0xff] %v6286_v49  ;;  %v6307_v49 = vld [vmem:[%s5302_s14 + $0x2c8] sm:$0xff]  ;;  %786 = vperm.xlu2 %4819, %v6284_v53  }
 0x111   : > { %4169 = vst.msk [vmem:[%s5291_s9 + $0x3b0] sm:$0xf] %vm4090_vm0, %v4040_v58  ;;  %v4046_v58 = vpack.c.bf16 %v6300_v17, %v6300_v17 }
 0x112   : > { %4174 = vst.msk [vmem:[%s5291_s9 + $0x3ec] sm:$0xf] %vm4090_vm0, %v4045_v5  ;;  %v4051_v5 = vpack.c.bf16 %v6307_v49, %v6307_v49  ;;  %781 = vperm.xlu1 %4818, %v6293_v44  }
 0x113   : > { %4173 = vst.msk [vmem:[%s5291_s9 + $0x3e0] sm:$0xf] %vm4090_vm0, %v4044_v41  ;;  %v4050_v41 = vpack.c.bf16 %v6314_v24, %v6314_v24  ;;  %v6340_v4 = vpop.permute.xlu2 %591 }
 0x114   : > { %4172 = vst.msk [vmem:[%s5291_s9 + $0x3d4] sm:$0xf] %vm4090_vm0, %v4043_v7  ;;  %v4049_v7 = vpack.c.bf16 %v6321_v14, %v6321_v14 }
 0x115   : > { %4177 = vst.msk [vmem:[%s5291_s9 + $0x410] sm:$0xf] %vm4090_vm0, %v4048_v48  ;;  %v6330_v48 = vld [vmem:[%s5302_s14 + $0x2e0] sm:$0xff]  ;;  %776 = vperm.xlu0 %4817, %v6300_v17  }
 0x116   : > { %4176 = vst.msk [vmem:[%s5291_s9 + $0x404] sm:$0xf] %vm4090_vm0, %v4047_v55  ;;  %v4054_v34 = vpack.c.bf16 %v6330_v48, %v6330_v48  ;;  %v6342_v55 = vpop.permute.xlu1 %541 }
 0x117   : > { %4175 = vst.msk [vmem:[%s5291_s9 + $0x3f8] sm:$0xf] %vm4090_vm0, %v4046_v58  ;;  %v6351_v58 = vpop.permute.xlu0 %536 }
 0x118   : > { %11005 = vst [vmem:[#allocation48_spill] sm:$0xff] %v6340_v4  ;;  %v6360_v4 = vld [vmem:[%s5302_s14 + $0x2f8] sm:$0xff]  ;;  %801 = vperm.xlu2 %4819, %v6307_v49  }
 0x119   : > { %11006 = vst [vmem:[#allocation49_spill] sm:$0xff] %v6342_v55 }
 0x11a   : > { %4180 = vst.msk [vmem:[%s5291_s9 + $0x434] sm:$0xf] %vm4090_vm0, %v4051_v5  ;;  %v4057_v5 = vpack.c.bf16 %v6360_v4, %v6360_v4  ;;  %796 = vperm.xlu1 %4818, %v6314_v24  }
 0x11b   : > { %11007 = vst [vmem:[#allocation50_spill] sm:$0xff] %v6351_v58 }
 0x11c   : > { %4179 = vst.msk [vmem:[%s5291_s9 + $0x428] sm:$0xf] %vm4090_vm0, %v4050_v41  ;;  %v6375_v41 = vld [vmem:[%s5302_s14 + $0x2f0] sm:$0xff] }
 0x11d   : > { %4178 = vst.msk [vmem:[%s5291_s9 + $0x41c] sm:$0xf] %vm4090_vm0, %v4049_v7  ;;  %v6385_v7 = vpop.permute.xlu2 %606  ;;  %791 = vperm.xlu0 %4817, %v6321_v14  }
 0x11e   : > { %4183 = vst.msk [vmem:[%s5291_s9 + $0x458] sm:$0xf] %vm4090_vm0, %v4054_v34  ;;  %v6378_v34 = vld [vmem:[%s5302_s14 + $0x2e8] sm:$0xff]  ;;  %v6387_v58 = vpop.permute.xlu1 %556 }
 0x11f   : > { %4182 = vst.msk [vmem:[%s5291_s9 + $0x44c] sm:$0xf] %vm4090_vm0, %v4053_v56  ;;  %v4056_v56 = vpack.c.bf16 %v6375_v41, %v6375_v41  ;;  %v6389_v55 = vpop.permute.xlu0 %551 }
 0x120   : > { %4181 = vst.msk [vmem:[%s5291_s9 + $0x440] sm:$0xf] %vm4090_vm0, %v4052_v47  ;;  %v4055_v47 = vpack.c.bf16 %v6378_v34, %v6378_v34  ;;  %816 = vperm.xlu2 %4819, %v6330_v48  }
 0x121   : > { %4186 = vst.msk [vmem:[%s5291_s9 + $0x47c] sm:$0xf] %vm4090_vm0, %v4057_v5  ;;  %v6396_v5 = vld [vmem:[%s5302_s14 + $0x310] sm:$0xff] }
 0x122   : > { %11008 = vst [vmem:[#allocation51_spill] sm:$0xff] %v6385_v7  ;;  %v4060_v22 = vpack.c.bf16 %v6396_v5, %v6396_v5  ;;  %811 = vperm.xlu1 %4818, %v6338_v13  }
 0x123   : > { %11009 = vst [vmem:[#allocation52_spill] sm:$0xff] %v6387_v58 }
 0x124   : > { %11010 = vst [vmem:[#allocation53_spill] sm:$0xff] %v6389_v55  ;;  %v6405_v55 = vld [vmem:[%s5302_s14 + $0x308] sm:$0xff] }
 0x125   : > { %4185 = vst.msk [vmem:[%s5291_s9 + $0x470] sm:$0xf] %vm4090_vm0, %v4056_v56  ;;  %v6408_v56 = vld [vmem:[%s5302_s14 + $0x300] sm:$0xff]  ;;  %v6415_v7 = vpop.permute.xlu2 %621  ;;  %806 = vperm.xlu0 %4817, %v6349_v0  }
 0x126   : > { %4184 = vst.msk [vmem:[%s5291_s9 + $0x464] sm:$0xf] %vm4090_vm0, %v4055_v47  ;;  %v4059_v47 = vpack.c.bf16 %v6405_v55, %v6405_v55  ;;  %v4058_v58 = vpack.c.bf16 %v6408_v56, %v6408_v56 }
 0x127   : > { %4189 = vst.msk [vmem:[%s5291_s9 + $0x4a0] sm:$0xf] %vm4090_vm0, %v4060_v22  ;;  %v6417_v22 = vpop.permute.xlu1 %571  ;;  %v6419_v45 = vpop.permute.xlu0 %566 }
 0x128   : > { %11011 = vst [vmem:[#allocation54_spill] sm:$0xff] %v6415_v7  ;;  %831 = vperm.xlu2 %4819, %v6360_v4  }
 0x129   : > { %11012 = vst [vmem:[#allocation55_spill] sm:$0xff] %v6417_v22 }
 0x12a   : > { %11013 = vst [vmem:[#allocation56_spill] sm:$0xff] %v6419_v45  ;;  %v6435_v45 = vld [vmem:[%s5302_s14 + $0x320] sm:$0xff]  ;;  %826 = vperm.xlu1 %4818, %v6375_v41  }
 0x12b   : > { %4188 = vst.msk [vmem:[%s5291_s9 + $0x494] sm:$0xf] %vm4090_vm0, %v4059_v47  ;;  %v6438_v47 = vld [vmem:[%s5302_s14 + $0x318] sm:$0xff] }
 0x12c   : > { %4187 = vst.msk [vmem:[%s5291_s9 + $0x488] sm:$0xf] %vm4090_vm0, %v4058_v58  ;;  %v4062_v58 = vpack.c.bf16 %v6435_v45, %v6435_v45  ;;  %v4061_v22 = vpack.c.bf16 %v6438_v47, %v6438_v47 }
 0x12d   : > { %4192 = vst.msk [vmem:[%s5291_s9 + $0x4c4] sm:$0xf] %vm4090_vm0, %v4063_v16  ;;  %v6445_v7 = vpop.permute.xlu2 %636  ;;  %821 = vperm.xlu0 %4817, %v6378_v34  }
 0x12e   : > { %11014 = vst [vmem:[#allocation57_spill] sm:$0xff] %v6445_v7 }
 0x12f   : > { %v6447_v16 = vpop.permute.xlu1 %586  ;;  %v6449_v35 = vpop.permute.xlu0 %581  ;;  %4191 = vst.msk [vmem:[%s5291_s9 + $0x4b8] sm:$0xf] %vm4090_vm0, %v4062_v58  ;;  %v6468_v58 = vld [vmem:[%s5302_s14 + $0x330] sm:$0xff] }
 0x130   : > { %11015 = vst [vmem:[#allocation58_spill] sm:$0xff] %v6447_v16  ;;  %v4064_v16 = vpack.c.bf16 %v6468_v58, %v6468_v58  ;;  %846 = vperm.xlu2 %4819, %v6396_v5  }
 0x131   : > { %11016 = vst [vmem:[#allocation59_spill] sm:$0xff] %v6449_v35  ;;  %v6465_v35 = vld [vmem:[%s5302_s14 + $0x338] sm:$0xff] }
 0x132   : > { %4190 = vst.msk [vmem:[%s5291_s9 + $0x4ac] sm:$0xf] %vm4090_vm0, %v4061_v22  ;;  %v4065_v22 = vpack.c.bf16 %v6465_v35, %v6465_v35  ;;  %841 = vperm.xlu1 %4818, %v6405_v55  }
 0x133   : > { %4195 = vst.msk [vmem:[%s5291_s9 + $0x4e8] sm:$0xf] %vm4090_vm0, %v4066_v8 }
 0x134   : > { %4194 = vst.msk [vmem:[%s5291_s9 + $0x4dc] sm:$0xf] %vm4090_vm0, %v4065_v22  ;;  %v6498_v22 = vld [vmem:[%s5302_s14 + $0x348] sm:$0xff] }
 0x135   : > { %v6475_v7 = vpop.permute.xlu2 %651  ;;  %4193 = vst.msk [vmem:[%s5291_s9 + $0x4d0] sm:$0xf] %vm4090_vm0, %v4064_v16  ;;  %836 = vperm.xlu0 %4817, %v6408_v56  }
 0x136   : > { %11017 = vst [vmem:[#allocation60_spill] sm:$0xff] %v6475_v7 }
 0x137   : > { %v6477_v8 = vpop.permute.xlu1 %601  ;;  %v6479_v27 = vpop.permute.xlu0 %596  ;;  %11020 = vst [vmem:[#allocation63_spill] sm:$0xff] %v6486_v20 }
 0x138   : > { %11018 = vst [vmem:[#allocation61_spill] sm:$0xff] %v6477_v8  ;;  %v4067_v8 = vpack.c.bf16 %v6498_v22, %v6498_v22  ;;  %861 = vperm.xlu2 %4819, %v6426_v36  }
 0x139   : > { %11019 = vst [vmem:[#allocation62_spill] sm:$0xff] %v6479_v27  ;;  %v6495_v27 = vld [vmem:[%s5302_s14 + $0x350] sm:$0xff] }
 0x13a   : > { %4198 = vst.msk [vmem:[%s5291_s9 + $0x50c] sm:$0xf] %vm4090_vm0, %v4069_v63  ;;  %v4068_v16 = vpack.c.bf16 %v6495_v27, %v6495_v27  ;;  %856 = vperm.xlu1 %4818, %v6435_v45  }
 0x13b   : > { %11021 = vst [vmem:[#allocation64_spill] sm:$0xff] %v6495_v27 }
 0x13c   : > { %4197 = vst.msk [vmem:[%s5291_s9 + $0x500] sm:$0xf] %vm4090_vm0, %v4068_v16  ;;  %v6528_v16 = vld [vmem:[%s5302_s14 + $0x360] sm:$0xff] }
 0x13d   : > { %v6505_v7 = vpop.permute.xlu2 %666  ;;  %4196 = vst.msk [vmem:[%s5291_s9 + $0x4f4] sm:$0xf] %vm4090_vm0, %v4067_v8  ;;  %851 = vperm.xlu0 %4817, %v6438_v47  }
 0x13e   : > { %11022 = vst [vmem:[#allocation65_spill] sm:$0xff] %v6505_v7 }
 0x13f   : > { %v6507_v63 = vpop.permute.xlu1 %616  ;;  %v6509_v19 = vpop.permute.xlu0 %611  ;;  %11025 = vst [vmem:[#allocation68_spill] sm:$0xff] %v6516_v12 }
 0x140   : > { %11023 = vst [vmem:[#allocation66_spill] sm:$0xff] %v6507_v63  ;;  %v4070_v63 = vpack.c.bf16 %v6528_v16, %v6528_v16  ;;  %876 = vperm.xlu2 %4819, %v6456_v28  }
 0x141   : > { %11024 = vst [vmem:[#allocation67_spill] sm:$0xff] %v6509_v19  ;;  %v6525_v19 = vld [vmem:[%s5302_s14 + $0x368] sm:$0xff] }
 0x142   : > { %4201 = vst.msk [vmem:[%s5291_s9 + $0x530] sm:$0xf] %vm4090_vm0, %v4072_v10  ;;  %v4071_v8 = vpack.c.bf16 %v6525_v19, %v6525_v19  ;;  %871 = vperm.xlu1 %4818, %v6465_v35  }
 0x143   : > { %11026 = vst [vmem:[#allocation69_spill] sm:$0xff] %v6525_v19 }
 0x144   : > { %11027 = vst [vmem:[#allocation70_spill] sm:$0xff] %v6528_v16 }
 0x145   : > { %v6535_v7 = vpop.permute.xlu2 %681  ;;  %4200 = vst.msk [vmem:[%s5291_s9 + $0x524] sm:$0xf] %vm4090_vm0, %v4071_v8  ;;  %v6558_v8 = vld [vmem:[%s5302_s14 + $0x378] sm:$0xff]  ;;  %866 = vperm.xlu0 %4817, %v6468_v58  }
 0x146   : > { %11028 = vst [vmem:[#allocation71_spill] sm:$0xff] %v6535_v7 }
 0x147   : > { %v6537_v10 = vpop.permute.xlu1 %631  ;;  %v6539_v9 = vpop.permute.xlu0 %626  ;;  %4199 = vst.msk [vmem:[%s5291_s9 + $0x518] sm:$0xf] %vm4090_vm0, %v4070_v63 }
 0x148   : > { %11029 = vst [vmem:[#allocation72_spill] sm:$0xff] %v6537_v10  ;;  %v4073_v10 = vpack.c.bf16 %v6558_v8, %v6558_v8  ;;  %891 = vperm.xlu2 %4819, %v6486_v20   ;;  %v6636_v20 = vld [vmem:[%s5302_s14 + $0x3d0] sm:$0xff] }
 0x149   : > { %11030 = vst [vmem:[#allocation73_spill] sm:$0xff] %v6539_v9  ;;  %v6555_v9 = vld [vmem:[%s5302_s14 + $0x380] sm:$0xff] }
 0x14a   : > { %11031 = vst [vmem:[#allocation74_spill] sm:$0xff] %v6546_v62  ;;  %v4074_v63 = vpack.c.bf16 %v6555_v9, %v6555_v9  ;;  %886 = vperm.xlu1 %4818, %v6495_v27   ;;  %v4084_v27 = vpack.c.bf16 %v6636_v20, %v6636_v20 }
 0x14b   : > { %4204 = vst.msk [vmem:[%s5291_s9 + $0x554] sm:$0xf] %vm4090_vm0, %v4075_v60 }
 0x14c   : > { %11032 = vst [vmem:[#allocation75_spill] sm:$0xff] %v6555_v9 }
 0x14d   : > { %11033 = vst [vmem:[#allocation76_spill] sm:$0xff] %v6558_v8  ;;  %v6565_v7 = vpop.permute.xlu2 %696  ;;  %881 = vperm.xlu0 %4817, %v6498_v22  }
 0x14e   : > { %11034 = vst [vmem:[#allocation77_spill] sm:$0xff] %v6565_v7 }
 0x14f   : > { %v6567_v60 = vpop.permute.xlu1 %646  ;;  %v6569_v59 = vpop.permute.xlu0 %641  ;;  %4203 = vst.msk [vmem:[%s5291_s9 + $0x548] sm:$0xf] %vm4090_vm0, %v4074_v63  ;;  %v6588_v63 = vld [vmem:[%s5302_s14 + $0x390] sm:$0xff] }
 0x150   : > { %11035 = vst [vmem:[#allocation78_spill] sm:$0xff] %v6567_v60  ;;  %v4076_v60 = vpack.c.bf16 %v6588_v63, %v6588_v63  ;;  %906 = vperm.xlu2 %4819, %v6516_v12  }
 0x151   : > { %11036 = vst [vmem:[#allocation79_spill] sm:$0xff] %v6569_v59  ;;  %v6585_v59 = vld [vmem:[%s5302_s14 + $0x398] sm:$0xff] }
 0x152   : > { %4202 = vst.msk [vmem:[%s5291_s9 + $0x53c] sm:$0xf] %vm4090_vm0, %v4073_v10  ;;  %v4077_v10 = vpack.c.bf16 %v6585_v59, %v6585_v59  ;;  %901 = vperm.xlu1 %4818, %v6525_v19   ;;  %v6666_v19 = vld [vmem:[%s5302_s14 + $0x3e8] sm:$0xff] }
 0x153   : > { %11037 = vst [vmem:[#allocation80_spill] sm:$0xff] %v6576_v52 }
 0x154   : > { %4207 = vst.msk [vmem:[%s5291_s9 + $0x578] sm:$0xf] %vm4090_vm0, %v4078_v51 }
 0x155   : > { %11038 = vst [vmem:[#allocation81_spill] sm:$0xff] %v6585_v59  ;;  %v6595_v7 = vpop.permute.xlu2 %711  ;;  %896 = vperm.xlu0 %4817, %v6528_v16   ;;  %v4087_v16 = vpack.c.bf16 %v6666_v19, %v6666_v19 }
 0x156   : > { %11039 = vst [vmem:[#allocation82_spill] sm:$0xff] %v6588_v63 }
 0x157   : > { %11040 = vst [vmem:[#allocation83_spill] sm:$0xff] %v6595_v7  ;;  %v6597_v51 = vpop.permute.xlu1 %661  ;;  %v6599_v50 = vpop.permute.xlu0 %656 }
 0x158   : > { %11041 = vst [vmem:[#allocation84_spill] sm:$0xff] %v6597_v51  ;;  %921 = vperm.xlu2 %4819, %v6546_v62  }
 0x159   : > { %11042 = vst [vmem:[#allocation85_spill] sm:$0xff] %v6599_v50  ;;  %v6615_v50 = vld [vmem:[%s5302_s14 + $0x3b0] sm:$0xff] }
 0x15a   : > { %4206 = vst.msk [vmem:[%s5291_s9 + $0x56c] sm:$0xf] %vm4090_vm0, %v4077_v10  ;;  %v6618_v10 = vld [vmem:[%s5302_s14 + $0x3a8] sm:$0xff]  ;;  %916 = vperm.xlu1 %4818, %v6555_v9   ;;  %v6698_v9 = vld [vmem:[%s5302_s14 + $0x3f8] sm:$0xff] }
 0x15b   : > { %4205 = vst.msk [vmem:[%s5291_s9 + $0x560] sm:$0xf] %vm4090_vm0, %v4076_v60  ;;  %v4080_v60 = vpack.c.bf16 %v6615_v50, %v6615_v50  ;;  %v4079_v51 = vpack.c.bf16 %v6618_v10, %v6618_v10 }
 0x15c   : > { %4210 = vst.msk [vmem:[%s5291_s9 + $0x59c] sm:$0xf] %vm4090_vm0, %v4081_v42 }
 0x15d   : > { %v6625_v7 = vpop.permute.xlu2 %726  ;;  %4209 = vst.msk [vmem:[%s5291_s9 + $0x590] sm:$0xf] %vm4090_vm0, %v4080_v60  ;;  %v6648_v60 = vld [vmem:[%s5302_s14 + $0x3c0] sm:$0xff]  ;;  %911 = vperm.xlu0 %4817, %v6558_v8   ;;  %v6701_v8 = vld [vmem:[%s5302_s14 + $0x3f0] sm:$0xff] }
 0x15e   : > { %11043 = vst [vmem:[#allocation86_spill] sm:$0xff] %v6625_v7 }
 0x15f   : > { %v6627_v42 = vpop.permute.xlu1 %676  ;;  %v6629_v38 = vpop.permute.xlu0 %671  ;;  %4208 = vst.msk [vmem:[%s5291_s9 + $0x584] sm:$0xf] %vm4090_vm0, %v4079_v51 }
 0x160   : > { %11044 = vst [vmem:[#allocation87_spill] sm:$0xff] %v6627_v42  ;;  %v4082_v42 = vpack.c.bf16 %v6648_v60, %v6648_v60  ;;  %936 = vperm.xlu2 %4819, %v6576_v52  }
 0x161   : > { %11045 = vst [vmem:[#allocation88_spill] sm:$0xff] %v6629_v38  ;;  %v6645_v38 = vld [vmem:[%s5302_s14 + $0x3c8] sm:$0xff] }
 0x162   : > { %4213 = vst.msk [vmem:[%s5291_s9 + $0x5c0] sm:$0xf] %vm4090_vm0, %v4084_v27  ;;  %v4083_v51 = vpack.c.bf16 %v6645_v38, %v6645_v38  ;;  %931 = vperm.xlu1 %4818, %v6585_v59  }
 0x163   : > { %4211 = vst.msk [vmem:[%s5291_s9 + $0x5a8] sm:$0xf] %vm4090_vm0, %v4082_v42 }
 0x164   : > { %4212 = vst.msk [vmem:[%s5291_s9 + $0x5b4] sm:$0xf] %vm4090_vm0, %v4083_v51 }
 0x165   : > { %v6655_v7 = vpop.permute.xlu2 %741  ;;  %4216 = vst.msk [vmem:[%s5291_s9 + $0x5e4] sm:$0xf] %vm4090_vm0, %v4087_v16  ;;  %926 = vperm.xlu0 %4817, %v6588_v63  }
 0x166   : > { %11046 = vst [vmem:[#allocation89_spill] sm:$0xff] %v6655_v7 }
 0x167   : > { %v6657_v27 = vpop.permute.xlu1 %691  ;;  %v6659_v12 = vpop.permute.xlu0 %686  ;;  %11052 = vst [vmem:[#allocation95_spill] sm:$0xff] %v6698_v9 }
 0x168   : > { %11047 = vst [vmem:[#allocation90_spill] sm:$0xff] %v6657_v27  ;;  %v6678_v27 = vld [vmem:[%s5302_s14 + $0x3d8] sm:$0xff]  ;;  %951 = vperm.xlu2 %4819, %v6606_v46  }
 0x169   : > { %11048 = vst [vmem:[#allocation91_spill] sm:$0xff] %v6659_v12  ;;  %v6675_v12 = vld [vmem:[%s5302_s14 + $0x3e0] sm:$0xff]  ;;  %v4085_v51 = vpack.c.bf16 %v6678_v27, %v6678_v27 }
 0x16a   : > { %v4086_v42 = vpack.c.bf16 %v6675_v12, %v6675_v12  ;;  %11053 = vst [vmem:[#allocation96_spill] sm:$0xff] %v6701_v8  ;;  %946 = vperm.xlu1 %4818, %v6615_v50  }
 0x16b   : > { %4214 = vst.msk [vmem:[%s5291_s9 + $0x5cc] sm:$0xf] %vm4090_vm0, %v4085_v51 }
 0x16c   : > { %4215 = vst.msk [vmem:[%s5291_s9 + $0x5d8] sm:$0xf] %vm4090_vm0, %v4086_v42 }
 0x16d   : > { %v6685_v7 = vpop.permute.xlu2 %756  ;;  %941 = vperm.xlu0 %4817, %v6618_v10  }
 0x16e   : > { %11049 = vst [vmem:[#allocation92_spill] sm:$0xff] %v6685_v7  ;;  %v4089_v7 = vpack.c.bf16 %v6698_v9, %v6698_v9 }
 0x16f   : > { %v6687_v16 = vpop.permute.xlu1 %706  ;;  %v6689_v62 = vpop.permute.xlu0 %701 }
 0x170   : > { %11050 = vst [vmem:[#allocation93_spill] sm:$0xff] %v6687_v16  ;;  %966 = vperm.xlu2 %4819, %v6636_v20  }
 0x171   : > { %11051 = vst [vmem:[#allocation94_spill] sm:$0xff] %v6689_v62  ;;  %v4088_v62 = vpack.c.bf16 %v6701_v8, %v6701_v8 }
 0x172   : > { %4218 = vst.msk [vmem:[%s5291_s9 + $0x5fc] sm:$0xf] %vm4090_vm0, %v4089_v7  ;;  %961 = vperm.xlu1 %4818, %v6645_v38  }
 0x173   : > { %4217 = vst.msk [vmem:[%s5291_s9 + $0x5f0] sm:$0xf] %vm4090_vm0, %v4088_v62 }
 0x175   : > { %v6708_v16 = vpop.permute.xlu2 %771  ;;  %956 = vperm.xlu0 %4817, %v6648_v60  }
 0x176   : > { %11054 = vst [vmem:[#allocation97_spill] sm:$0xff] %v6708_v16  ;;  %v6766_v16 = vld [vmem:[%s5302_s14 + $0x8] sm:$0xff] }
 0x177   : > { %v6710_v42 = vpop.permute.xlu1 %721  ;;  %v6712_v51 = vpop.permute.xlu0 %716  ;;  %11072 = vst [vmem:[#allocation115_spill] sm:$0xff] %v6766_v16 }
 0x178   : > { %11055 = vst [vmem:[#allocation98_spill] sm:$0xff] %v6710_v42  ;;  %981 = vperm.xlu2 %4819, %v6666_v19   ;;  %v6762_v42 = vld [vmem:[%s5302_s14 + $0x18] sm:$0xff] }
 0x179   : > { %11056 = vst [vmem:[#allocation99_spill] sm:$0xff] %v6712_v51 }
 0x17a   : > { %976 = vperm.xlu1 %4818, %v6675_v12   ;;  %11071 = vst [vmem:[#allocation114_spill] sm:$0xff] %v6762_v42 }
 0x17d   : > { %v6721_v52 = vpop.permute.xlu2 %786  ;;  %971 = vperm.xlu0 %4817, %v6678_v27  }
 0x17e   : > { %11057 = vst [vmem:[#allocation100_spill] sm:$0xff] %v6721_v52 }
 0x17f   : > { %v6723_v59 = vpop.permute.xlu1 %736  ;;  %v6725_v63 = vpop.permute.xlu0 %731 }
 0x180   : > { %11058 = vst [vmem:[#allocation101_spill] sm:$0xff] %v6723_v59 }
 0x181   : > { %11059 = vst [vmem:[#allocation102_spill] sm:$0xff] %v6725_v63 }
 0x182   : > { %991 = vperm.xlu1 %4818, %v6698_v9  }
 0x185   : > { %v6730_v62 = vpop.permute.xlu2 %801  ;;  %986 = vperm.xlu0 %4817, %v6701_v8   ;;  %v4882_v8 = vld [vmem:[%s5302_s14 + $0x1c0] sm:$0xff] }
 0x186   : > { %11060 = vst [vmem:[#allocation103_spill] sm:$0xff] %v6730_v62  ;;  %v5206_v62 = vmov 1  }
 0x187   : > { %v6732_v7 = vpop.permute.xlu1 %751  ;;  %v6734_v51 = vpop.permute.xlu0 %746  ;;  %4820 = vset.pattern.permute.xlu2 %v5206_v62 }
 0x188   : > { %11061 = vst [vmem:[#allocation104_spill] sm:$0xff] %v6732_v7 }
 0x189   : > { %11062 = vst [vmem:[#allocation105_spill] sm:$0xff] %v6734_v51  ;;  %v6748_v51 = vld [vmem:[%s5302_s14] sm:$0xff] }
 0x18a   : > { %11066 = vst [vmem:[#allocation109_spill] sm:$0xff] %v6748_v51  ;;  %1258 = vperm.xlu2 %4820, %v6748_v51   ;;  %4822 = vset.pattern.permute.xlu1 %v5206_v62  ;;  %v6940_v51 = vld [vmem:[%s5302_s14 + $0x108] sm:$0xff] }
 0x18b   : > { %11130 = vst [vmem:[#allocation173_spill] sm:$0xff] %v6940_v51 }
 0x18d   : > { %v6739_v63 = vpop.permute.xlu2 %816  ;;  %4821 = vset.pattern.permute.xlu0 %v5206_v62 }
 0x18e   : > { %11063 = vst [vmem:[#allocation106_spill] sm:$0xff] %v6739_v63  ;;  %1262 = vperm.xlu0 %4821, %v6766_v16   ;;  %v6794_v16 = vld [vmem:[%s5302_s14 + $0x38] sm:$0xff] }
 0x18f   : > { %v6741_v59 = vpop.permute.xlu1 %766  ;;  %v6743_v52 = vpop.permute.xlu0 %761  ;;  %11082 = vst [vmem:[#allocation125_spill] sm:$0xff] %v6794_v16 }
 0x190   : > { %11064 = vst [vmem:[#allocation107_spill] sm:$0xff] %v6741_v59 }
 0x191   : > { %11065 = vst [vmem:[#allocation108_spill] sm:$0xff] %v6743_v52  ;;  %v6758_v52 = vld [vmem:[%s5302_s14 + $0x10] sm:$0xff] }
 0x192   : > { %11070 = vst [vmem:[#allocation113_spill] sm:$0xff] %v6758_v52  ;;  %1266 = vperm.xlu1 %4822, %v6758_v52   ;;  %1270 = vperm.xlu2 %4820, %v6762_v42   ;;  %v6780_v52 = vld [vmem:[%s5302_s14 + $0x28] sm:$0xff]  ;;  %v6784_v42 = vld [vmem:[%s5302_s14 + $0x30] sm:$0xff] }
 0x193   : > { %11077 = vst [vmem:[#allocation120_spill] sm:$0xff] %v6780_v52 }
 0x194   : > { %11078 = vst [vmem:[#allocation121_spill] sm:$0xff] %v6784_v42 }
 0x195   : > { %v6751_v7 = vpop.permute.xlu2 %831 }
 0x196   : > { %11067 = vst [vmem:[#allocation110_spill] sm:$0xff] %v6751_v7  ;;  %v6776_v7 = vld [vmem:[%s5302_s14 + $0x20] sm:$0xff]  ;;  %1282 = vperm.xlu0 %4821, %v6784_v42   ;;  %v6812_v42 = vld [vmem:[%s5302_s14 + $0x50] sm:$0xff] }
 0x197   : > { %v6753_v63 = vpop.permute.xlu1 %781  ;;  %v6755_v59 = vpop.permute.xlu0 %776  ;;  %11076 = vst [vmem:[#allocation119_spill] sm:$0xff] %v6776_v7 }
 0x198   : > { %11068 = vst [vmem:[#allocation111_spill] sm:$0xff] %v6753_v63 }
 0x199   : > { %11069 = vst [vmem:[#allocation112_spill] sm:$0xff] %v6755_v59 }
 0x19a   : > { %1274 = vperm.xlu1 %4822, %v6776_v7   ;;  %1278 = vperm.xlu2 %4820, %v6780_v52   ;;  %v6798_v7 = vld [vmem:[%s5302_s14 + $0x40] sm:$0xff]  ;;  %v6802_v52 = vld [vmem:[%s5302_s14 + $0x48] sm:$0xff]  ;;  %11088 = vst [vmem:[#allocation131_spill] sm:$0xff] %v6812_v42 }
 0x19b   : > { %11083 = vst [vmem:[#allocation126_spill] sm:$0xff] %v6798_v7 }
 0x19c   : > { %11084 = vst [vmem:[#allocation127_spill] sm:$0xff] %v6802_v52 }
 0x19d   : > { %v6769_v63 = vpop.permute.xlu2 %846 }
 0x19e   : > { %11073 = vst [vmem:[#allocation116_spill] sm:$0xff] %v6769_v63  ;;  %1294 = vperm.xlu0 %4821, %v6802_v52   ;;  %v6830_v52 = vld [vmem:[%s5302_s14 + $0x68] sm:$0xff] }
 0x19f   : > { %v6771_v59 = vpop.permute.xlu1 %796  ;;  %v6773_v62 = vpop.permute.xlu0 %791  ;;  %11094 = vst [vmem:[#allocation137_spill] sm:$0xff] %v6830_v52 }
 0x1a0   : > { %11074 = vst [vmem:[#allocation117_spill] sm:$0xff] %v6771_v59 }
 0x1a1   : > { %11075 = vst [vmem:[#allocation118_spill] sm:$0xff] %v6773_v62 }
 0x1a2   : > { %1286 = vperm.xlu1 %4822, %v6794_v16   ;;  %1290 = vperm.xlu2 %4820, %v6798_v7   ;;  %v6816_v16 = vld [vmem:[%s5302_s14 + $0x58] sm:$0xff]  ;;  %v6820_v7 = vld [vmem:[%s5302_s14 + $0x60] sm:$0xff] }
 0x1a3   : > { %11089 = vst [vmem:[#allocation132_spill] sm:$0xff] %v6816_v16 }
 0x1a4   : > { %11090 = vst [vmem:[#allocation133_spill] sm:$0xff] %v6820_v7 }
 0x1a5   : > { %v6787_v63 = vpop.permute.xlu2 %861 }
 0x1a6   : > { %11079 = vst [vmem:[#allocation122_spill] sm:$0xff] %v6787_v63  ;;  %1306 = vperm.xlu0 %4821, %v6820_v7   ;;  %v6848_v7 = vld [vmem:[%s5302_s14 + $0x80] sm:$0xff] }
 0x1a7   : > { %v6789_v59 = vpop.permute.xlu1 %811  ;;  %v6791_v62 = vpop.permute.xlu0 %806  ;;  %11100 = vst [vmem:[#allocation143_spill] sm:$0xff] %v6848_v7 }
 0x1a8   : > { %11080 = vst [vmem:[#allocation123_spill] sm:$0xff] %v6789_v59 }
 0x1a9   : > { %11081 = vst [vmem:[#allocation124_spill] sm:$0xff] %v6791_v62 }
 0x1aa   : > { %1298 = vperm.xlu1 %4822, %v6812_v42   ;;  %1302 = vperm.xlu2 %4820, %v6816_v16   ;;  %v6834_v42 = vld [vmem:[%s5302_s14 + $0x70] sm:$0xff]  ;;  %v6838_v16 = vld [vmem:[%s5302_s14 + $0x78] sm:$0xff] }
 0x1ab   : > { %11095 = vst [vmem:[#allocation138_spill] sm:$0xff] %v6834_v42 }
 0x1ac   : > { %11096 = vst [vmem:[#allocation139_spill] sm:$0xff] %v6838_v16 }
 0x1ad   : > { %v6805_v63 = vpop.permute.xlu2 %876 }
 0x1ae   : > { %11085 = vst [vmem:[#allocation128_spill] sm:$0xff] %v6805_v63  ;;  %1318 = vperm.xlu0 %4821, %v6838_v16   ;;  %v6866_v16 = vld [vmem:[%s5302_s14 + $0x98] sm:$0xff] }
 0x1af   : > { %v6807_v59 = vpop.permute.xlu1 %826  ;;  %v6809_v62 = vpop.permute.xlu0 %821  ;;  %11106 = vst [vmem:[#allocation149_spill] sm:$0xff] %v6866_v16 }
 0x1b0   : > { %11086 = vst [vmem:[#allocation129_spill] sm:$0xff] %v6807_v59 }
 0x1b1   : > { %11087 = vst [vmem:[#allocation130_spill] sm:$0xff] %v6809_v62 }
 0x1b2   : > { %1310 = vperm.xlu1 %4822, %v6830_v52   ;;  %1314 = vperm.xlu2 %4820, %v6834_v42   ;;  %v6852_v52 = vld [vmem:[%s5302_s14 + $0x88] sm:$0xff]  ;;  %v6856_v42 = vld [vmem:[%s5302_s14 + $0x90] sm:$0xff] }
 0x1b3   : > { %11101 = vst [vmem:[#allocation144_spill] sm:$0xff] %v6852_v52 }
 0x1b4   : > { %11102 = vst [vmem:[#allocation145_spill] sm:$0xff] %v6856_v42 }
 0x1b5   : > { %v6823_v63 = vpop.permute.xlu2 %891 }
 0x1b6   : > { %11091 = vst [vmem:[#allocation134_spill] sm:$0xff] %v6823_v63  ;;  %1330 = vperm.xlu0 %4821, %v6856_v42   ;;  %v6884_v42 = vld [vmem:[%s5302_s14 + $0xb0] sm:$0xff] }
 0x1b7   : > { %v6825_v59 = vpop.permute.xlu1 %841  ;;  %v6827_v62 = vpop.permute.xlu0 %836  ;;  %11112 = vst [vmem:[#allocation155_spill] sm:$0xff] %v6884_v42 }
 0x1b8   : > { %11092 = vst [vmem:[#allocation135_spill] sm:$0xff] %v6825_v59 }
 0x1b9   : > { %11093 = vst [vmem:[#allocation136_spill] sm:$0xff] %v6827_v62 }
 0x1ba   : > { %1322 = vperm.xlu1 %4822, %v6848_v7   ;;  %1326 = vperm.xlu2 %4820, %v6852_v52   ;;  %v6870_v7 = vld [vmem:[%s5302_s14 + $0xa0] sm:$0xff]  ;;  %v6874_v52 = vld [vmem:[%s5302_s14 + $0xa8] sm:$0xff] }
 0x1bb   : > { %11107 = vst [vmem:[#allocation150_spill] sm:$0xff] %v6870_v7 }
 0x1bc   : > { %11108 = vst [vmem:[#allocation151_spill] sm:$0xff] %v6874_v52 }
 0x1bd   : > { %v6841_v63 = vpop.permute.xlu2 %906 }
 0x1be   : > { %11097 = vst [vmem:[#allocation140_spill] sm:$0xff] %v6841_v63  ;;  %1342 = vperm.xlu0 %4821, %v6874_v52   ;;  %v6902_v52 = vld [vmem:[%s5302_s14 + $0xc8] sm:$0xff] }
 0x1bf   : > { %v6843_v59 = vpop.permute.xlu1 %856  ;;  %v6845_v62 = vpop.permute.xlu0 %851  ;;  %11118 = vst [vmem:[#allocation161_spill] sm:$0xff] %v6902_v52 }
 0x1c0   : > { %11098 = vst [vmem:[#allocation141_spill] sm:$0xff] %v6843_v59 }
 0x1c1   : > { %11099 = vst [vmem:[#allocation142_spill] sm:$0xff] %v6845_v62 }
 0x1c2   : > { %1334 = vperm.xlu1 %4822, %v6866_v16   ;;  %1338 = vperm.xlu2 %4820, %v6870_v7   ;;  %v6888_v16 = vld [vmem:[%s5302_s14 + $0xb8] sm:$0xff]  ;;  %v6892_v7 = vld [vmem:[%s5302_s14 + $0xc0] sm:$0xff] }
 0x1c3   : > { %11113 = vst [vmem:[#allocation156_spill] sm:$0xff] %v6888_v16 }
 0x1c4   : > { %11114 = vst [vmem:[#allocation157_spill] sm:$0xff] %v6892_v7 }
 0x1c5   : > { %v6859_v63 = vpop.permute.xlu2 %921 }
 0x1c6   : > { %11103 = vst [vmem:[#allocation146_spill] sm:$0xff] %v6859_v63  ;;  %1354 = vperm.xlu0 %4821, %v6892_v7   ;;  %v6920_v7 = vld [vmem:[%s5302_s14 + $0xe0] sm:$0xff] }
 0x1c7   : > { %v6861_v59 = vpop.permute.xlu1 %871  ;;  %v6863_v62 = vpop.permute.xlu0 %866  ;;  %11124 = vst [vmem:[#allocation167_spill] sm:$0xff] %v6920_v7 }
 0x1c8   : > { %11104 = vst [vmem:[#allocation147_spill] sm:$0xff] %v6861_v59 }
 0x1c9   : > { %11105 = vst [vmem:[#allocation148_spill] sm:$0xff] %v6863_v62 }
 0x1ca   : > { %1346 = vperm.xlu1 %4822, %v6884_v42   ;;  %1350 = vperm.xlu2 %4820, %v6888_v16   ;;  %v6906_v42 = vld [vmem:[%s5302_s14 + $0xd0] sm:$0xff]  ;;  %v6910_v16 = vld [vmem:[%s5302_s14 + $0xd8] sm:$0xff] }
 0x1cb   : > { %11119 = vst [vmem:[#allocation162_spill] sm:$0xff] %v6906_v42 }
 0x1cc   : > { %11120 = vst [vmem:[#allocation163_spill] sm:$0xff] %v6910_v16 }
 0x1cd   : > { %v6877_v63 = vpop.permute.xlu2 %936 }
 0x1ce   : > { %11109 = vst [vmem:[#allocation152_spill] sm:$0xff] %v6877_v63  ;;  %1366 = vperm.xlu0 %4821, %v6910_v16   ;;  %v4857_v16 = vld [vmem:[%s5302_s14 + $0xf8] sm:$0xff] }
 0x1cf   : > { %v6879_v59 = vpop.permute.xlu1 %886  ;;  %v6881_v62 = vpop.permute.xlu0 %881 }
 0x1d0   : > { %11110 = vst [vmem:[#allocation153_spill] sm:$0xff] %v6879_v59 }
 0x1d1   : > { %11111 = vst [vmem:[#allocation154_spill] sm:$0xff] %v6881_v62 }
 0x1d2   : > { %1358 = vperm.xlu1 %4822, %v6902_v52   ;;  %1362 = vperm.xlu2 %4820, %v6906_v42   ;;  %v6924_v52 = vld [vmem:[%s5302_s14 + $0xe8] sm:$0xff]  ;;  %v6928_v42 = vld [vmem:[%s5302_s14 + $0xf0] sm:$0xff] }
 0x1d3   : > { %11125 = vst [vmem:[#allocation168_spill] sm:$0xff] %v6924_v52 }
 0x1d4   : > { %11126 = vst [vmem:[#allocation169_spill] sm:$0xff] %v6928_v42 }
 0x1d5   : > { %v6895_v63 = vpop.permute.xlu2 %951 }
 0x1d6   : > { %11115 = vst [vmem:[#allocation158_spill] sm:$0xff] %v6895_v63  ;;  %1378 = vperm.xlu0 %4821, %v6928_v42  }
 0x1d7   : > { %v6897_v59 = vpop.permute.xlu1 %901  ;;  %v6899_v62 = vpop.permute.xlu0 %896 }
 0x1d8   : > { %11116 = vst [vmem:[#allocation159_spill] sm:$0xff] %v6897_v59 }
 0x1d9   : > { %11117 = vst [vmem:[#allocation160_spill] sm:$0xff] %v6899_v62 }
 0x1da   : > { %1370 = vperm.xlu1 %4822, %v6920_v7   ;;  %1374 = vperm.xlu2 %4820, %v6924_v52   ;;  %v4858_v7 = vld [vmem:[%s5302_s14 + $0x100] sm:$0xff] }
 0x1dd   : > { %v6913_v63 = vpop.permute.xlu2 %966 }
 0x1de   : > { %11121 = vst [vmem:[#allocation164_spill] sm:$0xff] %v6913_v63  ;;  %1390 = vperm.xlu0 %4821, %v6940_v51  }
 0x1df   : > { %v6915_v59 = vpop.permute.xlu1 %916  ;;  %v6917_v62 = vpop.permute.xlu0 %911 }
 0x1e0   : > { %11122 = vst [vmem:[#allocation165_spill] sm:$0xff] %v6915_v59 }
 0x1e1   : > { %11123 = vst [vmem:[#allocation166_spill] sm:$0xff] %v6917_v62 }
 0x1e2   : > { %1382 = vperm.xlu1 %4822, %v4857_v16   ;;  %1386 = vperm.xlu2 %4820, %v4858_v7   ;;  %v4862_v16 = vld [vmem:[%s5302_s14 + $0x120] sm:$0xff] }
 0x1e5   : > { %v6931_v63 = vpop.permute.xlu2 %981 }
 0x1e6   : > { %11127 = vst [vmem:[#allocation170_spill] sm:$0xff] %v6931_v63  ;;  %1402 = vperm.xlu0 %4821, %v4862_v16  }
 0x1e7   : > { %v6933_v59 = vpop.permute.xlu1 %931  ;;  %v6935_v62 = vpop.permute.xlu0 %926 }
 0x1e8   : > { %11128 = vst [vmem:[#allocation171_spill] sm:$0xff] %v6933_v59  ;;  %v4860_v59 = vld [vmem:[%s5302_s14 + $0x110] sm:$0xff] }
 0x1e9   : > { %11129 = vst [vmem:[#allocation172_spill] sm:$0xff] %v6935_v62  ;;  %v4861_v62 = vld [vmem:[%s5302_s14 + $0x118] sm:$0xff] }
 0x1ea   : > { %1394 = vperm.xlu1 %4822, %v4860_v59   ;;  %1398 = vperm.xlu2 %4820, %v4861_v62  }
 0x1ed   : > { %v6947_v63 = vpop.permute.xlu2 %1258 }
 0x1ee   : > { %11133 = vst [vmem:[#allocation176_spill] sm:$0xff] %v6947_v63  ;;  %v4865_v63 = vld [vmem:[%s5302_s14 + $0x138] sm:$0xff] }
 0x1ef   : > { %v6943_v52 = vpop.permute.xlu1 %946  ;;  %v6945_v42 = vpop.permute.xlu0 %941  ;;  %1414 = vperm.xlu0 %4821, %v4865_v63  }
 0x1f0   : > { %11131 = vst [vmem:[#allocation174_spill] sm:$0xff] %v6943_v52  ;;  %v4863_v52 = vld [vmem:[%s5302_s14 + $0x128] sm:$0xff] }
 0x1f1   : > { %11132 = vst [vmem:[#allocation175_spill] sm:$0xff] %v6945_v42  ;;  %v4864_v42 = vld [vmem:[%s5302_s14 + $0x130] sm:$0xff] }
 0x1f2   : > { %1406 = vperm.xlu1 %4822, %v4863_v52   ;;  %1410 = vperm.xlu2 %4820, %v4864_v42  }
 0x1f5   : > { %v6956_v51 = vpop.permute.xlu2 %1270 }
 0x1f6   : > { %11136 = vst [vmem:[#allocation179_spill] sm:$0xff] %v6956_v51  ;;  %v4868_v51 = vld [vmem:[%s5302_s14 + $0x150] sm:$0xff] }
 0x1f7   : > { %v6952_v7 = vpop.permute.xlu1 %961  ;;  %v6954_v9 = vpop.permute.xlu0 %956  ;;  %1426 = vperm.xlu0 %4821, %v4868_v51  }
 0x1f8   : > { %11134 = vst [vmem:[#allocation177_spill] sm:$0xff] %v6952_v7  ;;  %v4866_v7 = vld [vmem:[%s5302_s14 + $0x140] sm:$0xff] }
 0x1f9   : > { %11135 = vst [vmem:[#allocation178_spill] sm:$0xff] %v6954_v9  ;;  %v4867_v9 = vld [vmem:[%s5302_s14 + $0x148] sm:$0xff] }
 0x1fa   : > { %1418 = vperm.xlu1 %4822, %v4866_v7   ;;  %1422 = vperm.xlu2 %4820, %v4867_v9  }
 0x1fd   : > { %v6965_v16 = vpop.permute.xlu2 %1278 }
 0x1fe   : > { %11139 = vst [vmem:[#allocation182_spill] sm:$0xff] %v6965_v16  ;;  %v4871_v16 = vld [vmem:[%s5302_s14 + $0x168] sm:$0xff] }
 0x1ff   : > { %v6961_v59 = vpop.permute.xlu1 %976  ;;  %v6963_v62 = vpop.permute.xlu0 %971  ;;  %1438 = vperm.xlu0 %4821, %v4871_v16  }
 0x200   : > { %11137 = vst [vmem:[#allocation180_spill] sm:$0xff] %v6961_v59  ;;  %v4869_v59 = vld [vmem:[%s5302_s14 + $0x158] sm:$0xff] }
 0x201   : > { %11138 = vst [vmem:[#allocation181_spill] sm:$0xff] %v6963_v62  ;;  %v4870_v62 = vld [vmem:[%s5302_s14 + $0x160] sm:$0xff] }
 0x202   : > { %1430 = vperm.xlu1 %4822, %v4869_v59   ;;  %1434 = vperm.xlu2 %4820, %v4870_v62  }
 0x205   : > { %v6974_v63 = vpop.permute.xlu2 %1290 }
 0x206   : > { %11142 = vst [vmem:[#allocation185_spill] sm:$0xff] %v6974_v63  ;;  %v4874_v63 = vld [vmem:[%s5302_s14 + $0x180] sm:$0xff] }
 0x207   : > { %v6970_v52 = vpop.permute.xlu1 %991  ;;  %v6972_v42 = vpop.permute.xlu0 %986  ;;  %1450 = vperm.xlu0 %4821, %v4874_v63  }
 0x208   : > { %11140 = vst [vmem:[#allocation183_spill] sm:$0xff] %v6970_v52  ;;  %v4872_v52 = vld [vmem:[%s5302_s14 + $0x170] sm:$0xff] }
 0x209   : > { %11141 = vst [vmem:[#allocation184_spill] sm:$0xff] %v6972_v42  ;;  %v4873_v42 = vld [vmem:[%s5302_s14 + $0x178] sm:$0xff] }
 0x20a   : > { %1442 = vperm.xlu1 %4822, %v4872_v52   ;;  %1446 = vperm.xlu2 %4820, %v4873_v42  }
 0x20d   : > { %v6981_v9 = vpop.permute.xlu2 %1302 }
 0x20e   : > { %11144 = vst [vmem:[#allocation187_spill] sm:$0xff] %v6981_v9  ;;  %v4876_v9 = vld [vmem:[%s5302_s14 + $0x190] sm:$0xff] }
 0x20f   : > { %v6979_v7 = vpop.permute.xlu1 %1266  ;;  %v6983_v51 = vpop.permute.xlu0 %1262 }
 0x210   : > { %11143 = vst [vmem:[#allocation186_spill] sm:$0xff] %v6979_v7  ;;  %v4875_v7 = vld [vmem:[%s5302_s14 + $0x188] sm:$0xff] }
 0x211   : > { %11145 = vst [vmem:[#allocation188_spill] sm:$0xff] %v6983_v51  ;;  %v4877_v51 = vld [vmem:[%s5302_s14 + $0x198] sm:$0xff] }
 0x212   : > { %1454 = vperm.xlu1 %4822, %v4875_v7   ;;  %1458 = vperm.xlu2 %4820, %v4876_v9  }
 0x213   : > { %1462 = vperm.xlu0 %4821, %v4877_v51  }
 0x215   : > { %v6990_v62 = vpop.permute.xlu2 %1314 }
 0x216   : > { %11147 = vst [vmem:[#allocation190_spill] sm:$0xff] %v6990_v62  ;;  %v4879_v62 = vld [vmem:[%s5302_s14 + $0x1a8] sm:$0xff] }
 0x217   : > { %v6988_v59 = vpop.permute.xlu1 %1274  ;;  %v6992_v16 = vpop.permute.xlu0 %1282 }
 0x218   : > { %11146 = vst [vmem:[#allocation189_spill] sm:$0xff] %v6988_v59  ;;  %v4878_v59 = vld [vmem:[%s5302_s14 + $0x1a0] sm:$0xff] }
 0x219   : > { %11148 = vst [vmem:[#allocation191_spill] sm:$0xff] %v6992_v16  ;;  %v4880_v16 = vld [vmem:[%s5302_s14 + $0x1b0] sm:$0xff] }
 0x21a   : > { %1466 = vperm.xlu1 %4822, %v4878_v59   ;;  %1470 = vperm.xlu2 %4820, %v4879_v62  }
 0x21b   : > { %1474 = vperm.xlu0 %4821, %v4880_v16   ;;  %v4884_v16 = vld [vmem:[%s5302_s14 + $0x1d0] sm:$0xff] }
 0x21d   : > { %v6999_v42 = vpop.permute.xlu2 %1326 }
 0x21e   : > { %11150 = vst [vmem:[#allocation193_spill] sm:$0xff] %v6999_v42 }
 0x21f   : > { %v6997_v52 = vpop.permute.xlu1 %1286  ;;  %v7001_v63 = vpop.permute.xlu0 %1294 }
 0x220   : > { %11149 = vst [vmem:[#allocation192_spill] sm:$0xff] %v6997_v52  ;;  %v4881_v52 = vld [vmem:[%s5302_s14 + $0x1b8] sm:$0xff] }
 0x221   : > { %11151 = vst [vmem:[#allocation194_spill] sm:$0xff] %v7001_v63  ;;  %v4883_v63 = vld [vmem:[%s5302_s14 + $0x1c8] sm:$0xff] }
 0x222   : > { %1478 = vperm.xlu1 %4822, %v4881_v52   ;;  %1482 = vperm.xlu2 %4820, %v4882_v8   ;;  %v4886_v8 = vld [vmem:[%s5302_s14 + $0x1f0] sm:$0xff] }
 0x223   : > { %1486 = vperm.xlu0 %4821, %v4883_v63  }
 0x225   : > { %v7008_v9 = vpop.permute.xlu2 %1338 }
 0x226   : > { %11153 = vst [vmem:[#allocation196_spill] sm:$0xff] %v7008_v9 }
 0x227   : > { %v7006_v7 = vpop.permute.xlu1 %1298  ;;  %v7010_v51 = vpop.permute.xlu0 %1306 }
 0x228   : > { %11152 = vst [vmem:[#allocation195_spill] sm:$0xff] %v7006_v7  ;;  %v4885_v7 = vld [vmem:[%s5302_s14 + $0x1d8] sm:$0xff] }
 0x229   : > { %11154 = vst [vmem:[#allocation197_spill] sm:$0xff] %v7010_v51 }
 0x22a   : > { %1490 = vperm.xlu1 %4822, %v4884_v16   ;;  %1494 = vperm.xlu2 %4820, %v4885_v7  }
 0x22b   : > { %1498 = vperm.xlu0 %4821, %v5990_v21  }
 0x22d   : > { %v7017_v42 = vpop.permute.xlu2 %1350 }
 0x22f   : > { %v7015_v59 = vpop.permute.xlu1 %1310  ;;  %v7019_v62 = vpop.permute.xlu0 %1318 }
 0x230   : > { %11155 = vst [vmem:[#allocation198_spill] sm:$0xff] %v7019_v62 }
 0x232   : > { %1502 = vperm.xlu1 %4822, %v5983_v3   ;;  %1506 = vperm.xlu2 %4820, %v4886_v8  }
 0x233   : > { %1510 = vperm.xlu0 %4821, %v6040_v11  }
 0x235   : > { %v7026_v52 = vpop.permute.xlu2 %1362 }
 0x237   : > { %v7024_v51 = vpop.permute.xlu1 %1322  ;;  %v7028_v9 = vpop.permute.xlu0 %1330 }
 0x238   : > { %11156 = vst [vmem:[#allocation199_spill] sm:$0xff] %v7028_v9  ;;  %v11634_v9 = vld [vmem:[#allocation178_spill] sm:$0xff] }
 0x23a   : > { %1514 = vperm.xlu1 %4822, %v6033_v26   ;;  %1518 = vperm.xlu2 %4820, %v6030_v25  }
 0x23b   : > { %1522 = vperm.xlu0 %4821, %v6090_v33  }
 0x23d   : > { %v7035_v62 = vpop.permute.xlu2 %1374 }
 0x23e   : > { %11158 = vst [vmem:[#allocation201_spill] sm:$0xff] %v7035_v62 }
 0x23f   : > { %v7033_v63 = vpop.permute.xlu1 %1334  ;;  %v7037_v16 = vpop.permute.xlu0 %1342 }
 0x240   : > { %11157 = vst [vmem:[#allocation200_spill] sm:$0xff] %v7033_v63 }
 0x241   : > { %11159 = vst [vmem:[#allocation202_spill] sm:$0xff] %v7037_v16  ;;  %v11336_v16 = vld [vmem:[#allocation138_spill] sm:$0xff] }
 0x242   : > { %1526 = vperm.xlu1 %4822, %v6083_v32   ;;  %1530 = vperm.xlu2 %4820, %v6080_v31  }
 0x243   : > { %1534 = vperm.xlu0 %4821, %v6140_v40  }
 0x245   : > { %v7044_v7 = vpop.permute.xlu2 %1386 }
 0x246   : > { %11161 = vst [vmem:[#allocation204_spill] sm:$0xff] %v7044_v7  ;;  %v11303_v7 = vld [vmem:[#allocation33_spill] sm:$0xff] }
 0x247   : > { %v7042_v21 = vpop.permute.xlu1 %1346  ;;  %v7046_v3 = vpop.permute.xlu0 %1354 }
 0x248   : > { %11160 = vst [vmem:[#allocation203_spill] sm:$0xff] %v7042_v21 }
 0x249   : > { %11162 = vst [vmem:[#allocation205_spill] sm:$0xff] %v7046_v3  ;;  %v11300_v3 = vld [vmem:[#allocation32_spill] sm:$0xff] }
 0x24a   : > { %1538 = vperm.xlu1 %4822, %v6133_v39   ;;  %1542 = vperm.xlu2 %4820, %v6130_v37  }
 0x24b   : > { %1546 = vperm.xlu0 %4821, %v6190_v57  }
 0x24d   : > { %v7053_v8 = vpop.permute.xlu2 %1398 }
 0x24e   : > { %11164 = vst [vmem:[#allocation207_spill] sm:$0xff] %v7053_v8  ;;  %v11297_v8 = vld [vmem:[#allocation31_spill] sm:$0xff] }
 0x24f   : > { %v7051_v11 = vpop.permute.xlu1 %1358  ;;  %v7055_v26 = vpop.permute.xlu0 %1366 }
 0x250   : > { %11163 = vst [vmem:[#allocation206_spill] sm:$0xff] %v7051_v11 }
 0x251   : > { %11165 = vst [vmem:[#allocation208_spill] sm:$0xff] %v7055_v26 }
 0x252   : > { %1550 = vperm.xlu1 %4822, %v6183_v29   ;;  %1554 = vperm.xlu2 %4820, %v6180_v2  }
 0x253   : > { %1558 = vperm.xlu0 %4821, %v6228_v43  }
 0x255   : > { %v7062_v33 = vpop.permute.xlu2 %1410 }
 0x256   : > { %11167 = vst [vmem:[#allocation210_spill] sm:$0xff] %v7062_v33  ;;  %v11289_v33 = vld [vmem:[#allocation29_spill] sm:$0xff] }
 0x257   : > { %v7060_v25 = vpop.permute.xlu1 %1370  ;;  %v7064_v32 = vpop.permute.xlu0 %1378 }
 0x258   : > { %11166 = vst [vmem:[#allocation209_spill] sm:$0xff] %v7060_v25 }
 0x259   : > { %11168 = vst [vmem:[#allocation211_spill] sm:$0xff] %v7064_v32  ;;  %v11286_v32 = vld [vmem:[#allocation28_spill] sm:$0xff] }
 0x25a   : > { %1562 = vperm.xlu1 %4822, %v6219_v15   ;;  %1566 = vperm.xlu2 %4820, %v6208_v6  }
 0x25b   : > { %1570 = vperm.xlu0 %4821, %v6249_v30  }
 0x25d   : > { %v7071_v40 = vpop.permute.xlu2 %1422 }
 0x25e   : > { %11170 = vst [vmem:[#allocation213_spill] sm:$0xff] %v7071_v40  ;;  %v11284_v40 = vld [vmem:[#allocation139_spill] sm:$0xff] }
 0x25f   : > { %v7069_v31 = vpop.permute.xlu1 %1382  ;;  %v7073_v39 = vpop.permute.xlu0 %1390 }
 0x260   : > { %11169 = vst [vmem:[#allocation212_spill] sm:$0xff] %v7069_v31 }
 0x261   : > { %11171 = vst [vmem:[#allocation214_spill] sm:$0xff] %v7073_v39 }
 0x262   : > { %1574 = vperm.xlu1 %4822, %v6242_v54   ;;  %1578 = vperm.xlu2 %4820, %v6235_v23  }
 0x263   : > { %1582 = vperm.xlu0 %4821, %v6273_v1  }
 0x265   : > { %v7080_v57 = vpop.permute.xlu2 %1434 }
 0x266   : > { %11173 = vst [vmem:[#allocation216_spill] sm:$0xff] %v7080_v57 }
 0x267   : > { %v7078_v37 = vpop.permute.xlu1 %1394  ;;  %v7082_v29 = vpop.permute.xlu0 %1402 }
 0x268   : > { %11172 = vst [vmem:[#allocation215_spill] sm:$0xff] %v7078_v37 }
 0x269   : > { %11174 = vst [vmem:[#allocation217_spill] sm:$0xff] %v7082_v29  ;;  %v11279_v29 = vld [vmem:[#allocation131_spill] sm:$0xff] }
 0x26a   : > { %1586 = vperm.xlu1 %4822, %v6265_v18   ;;  %1590 = vperm.xlu2 %4820, %v6256_v61  }
 0x26b   : > { %1594 = vperm.xlu0 %4821, %v6300_v17  }
 0x26d   : > { %v7089_v43 = vpop.permute.xlu2 %1446 }
 0x26e   : > { %11176 = vst [vmem:[#allocation219_spill] sm:$0xff] %v7089_v43 }
 0x26f   : > { %v7087_v2 = vpop.permute.xlu1 %1406  ;;  %v7091_v15 = vpop.permute.xlu0 %1414 }
 0x270   : > { %11175 = vst [vmem:[#allocation218_spill] sm:$0xff] %v7087_v2  ;;  %v11278_v2 = vld [vmem:[#allocation26_spill] sm:$0xff] }
 0x271   : > { %11177 = vst [vmem:[#allocation220_spill] sm:$0xff] %v7091_v15  ;;  %v11277_v15 = vld [vmem:[#allocation25_spill] sm:$0xff] }
 0x272   : > { %1598 = vperm.xlu1 %4822, %v6293_v44   ;;  %1602 = vperm.xlu2 %4820, %v6284_v53  }
 0x273   : > { %1606 = vperm.xlu0 %4821, %v6321_v14  }
 0x275   : > { %v7098_v30 = vpop.permute.xlu2 %1458 }
 0x276   : > { %11179 = vst [vmem:[#allocation222_spill] sm:$0xff] %v7098_v30  ;;  %v11276_v30 = vld [vmem:[#allocation24_spill] sm:$0xff] }
 0x277   : > { %v7096_v6 = vpop.permute.xlu1 %1418  ;;  %v7100_v54 = vpop.permute.xlu0 %1426 }
 0x278   : > { %11178 = vst [vmem:[#allocation221_spill] sm:$0xff] %v7096_v6 }
 0x279   : > { %11180 = vst [vmem:[#allocation223_spill] sm:$0xff] %v7100_v54 }
 0x27a   : > { %1610 = vperm.xlu1 %4822, %v6314_v24   ;;  %1614 = vperm.xlu2 %4820, %v6307_v49  }
 0x27b   : > { %1618 = vperm.xlu0 %4821, %v6349_v0  }
 0x27d   : > { %v7107_v23 = vpop.permute.xlu2 %1470 }
 0x27e   : > { %11182 = vst [vmem:[#allocation225_spill] sm:$0xff] %v7107_v23 }
 0x27f   : > { %v7105_v1 = vpop.permute.xlu1 %1430  ;;  %v7109_v18 = vpop.permute.xlu0 %1438 }
 0x280   : > { %11181 = vst [vmem:[#allocation224_spill] sm:$0xff] %v7105_v1  ;;  %v11275_v1 = vld [vmem:[#allocation23_spill] sm:$0xff] }
 0x281   : > { %11183 = vst [vmem:[#allocation226_spill] sm:$0xff] %v7109_v18  ;;  %v11274_v18 = vld [vmem:[#allocation22_spill] sm:$0xff] }
 0x282   : > { %1622 = vperm.xlu1 %4822, %v6338_v13   ;;  %1626 = vperm.xlu2 %4820, %v6330_v48  }
 0x283   : > { %1630 = vperm.xlu0 %4821, %v6378_v34  }
 0x285   : > { %v7116_v61 = vpop.permute.xlu2 %1482 }
 0x286   : > { %11185 = vst [vmem:[#allocation228_spill] sm:$0xff] %v7116_v61  ;;  %v11273_v61 = vld [vmem:[#allocation21_spill] sm:$0xff] }
 0x287   : > { %v7114_v17 = vpop.permute.xlu1 %1442  ;;  %v7118_v44 = vpop.permute.xlu0 %1450 }
 0x288   : > { %11184 = vst [vmem:[#allocation227_spill] sm:$0xff] %v7114_v17 }
 0x289   : > { %11186 = vst [vmem:[#allocation229_spill] sm:$0xff] %v7118_v44 }
 0x28a   : > { %1634 = vperm.xlu1 %4822, %v6375_v41   ;;  %1638 = vperm.xlu2 %4820, %v6360_v4  }
 0x28b   : > { %1642 = vperm.xlu0 %4821, %v6408_v56  }
 0x28d   : > { %v7125_v53 = vpop.permute.xlu2 %1494 }
 0x28e   : > { %11188 = vst [vmem:[#allocation231_spill] sm:$0xff] %v7125_v53 }
 0x28f   : > { %v7123_v14 = vpop.permute.xlu1 %1454  ;;  %v7127_v24 = vpop.permute.xlu0 %1462 }
 0x290   : > { %11187 = vst [vmem:[#allocation230_spill] sm:$0xff] %v7123_v14  ;;  %v11272_v14 = vld [vmem:[#allocation20_spill] sm:$0xff] }
 0x291   : > { %11189 = vst [vmem:[#allocation232_spill] sm:$0xff] %v7127_v24  ;;  %v11271_v24 = vld [vmem:[#allocation19_spill] sm:$0xff] }
 0x292   : > { %1646 = vperm.xlu1 %4822, %v6405_v55   ;;  %1650 = vperm.xlu2 %4820, %v6396_v5  }
 0x293   : > { %1654 = vperm.xlu0 %4821, %v6438_v47  }
 0x295   : > { %v7134_v49 = vpop.permute.xlu2 %1506 }
 0x296   : > { %11191 = vst [vmem:[#allocation234_spill] sm:$0xff] %v7134_v49  ;;  %v11270_v49 = vld [vmem:[#allocation18_spill] sm:$0xff] }
 0x297   : > { %v7132_v0 = vpop.permute.xlu1 %1466  ;;  %v7136_v13 = vpop.permute.xlu0 %1474 }
 0x298   : > { %11190 = vst [vmem:[#allocation233_spill] sm:$0xff] %v7132_v0 }
 0x299   : > { %11192 = vst [vmem:[#allocation235_spill] sm:$0xff] %v7136_v13 }
 0x29a   : > { %1658 = vperm.xlu1 %4822, %v6435_v45   ;;  %1662 = vperm.xlu2 %4820, %v6426_v36   ;;  %v11202_v36 = vld [vmem:[#allocation64_spill] sm:$0xff] }
 0x29b   : > { %1666 = vperm.xlu0 %4821, %v6468_v58   ;;  %v11203_v58 = vld [vmem:[#allocation63_spill] sm:$0xff] }
 0x29d   : > { %v7143_v34 = vpop.permute.xlu2 %1518 }
 0x29e   : > { %11194 = vst [vmem:[#allocation237_spill] sm:$0xff] %v7143_v34  ;;  %v11268_v34 = vld [vmem:[#allocation16_spill] sm:$0xff] }
 0x29f   : > { %v7141_v48 = vpop.permute.xlu1 %1478  ;;  %v7145_v41 = vpop.permute.xlu0 %1486 }
 0x2a0   : > { %11193 = vst [vmem:[#allocation236_spill] sm:$0xff] %v7141_v48 }
 0x2a1   : > { %11195 = vst [vmem:[#allocation238_spill] sm:$0xff] %v7145_v41 }
 0x2a2   : > { %1670 = vperm.xlu1 %4822, %v6465_v35   ;;  %1674 = vperm.xlu2 %4820, %v6456_v28   ;;  %v11208_v28 = vld [vmem:[#allocation69_spill] sm:$0xff] }
 0x2a3   : > { %1678 = vperm.xlu0 %4821, %v6498_v22   ;;  %v11209_v22 = vld [vmem:[#allocation68_spill] sm:$0xff] }
 0x2a5   : > { %v7152_v56 = vpop.permute.xlu2 %1530 }
 0x2a6   : > { %11197 = vst [vmem:[#allocation240_spill] sm:$0xff] %v7152_v56 }
 0x2a7   : > { %v7150_v4 = vpop.permute.xlu1 %1490  ;;  %v7154_v55 = vpop.permute.xlu0 %1498 }
 0x2a8   : > { %11196 = vst [vmem:[#allocation239_spill] sm:$0xff] %v7150_v4  ;;  %v11204_v4 = vld [vmem:[#allocation70_spill] sm:$0xff] }
 0x2a9   : > { %11198 = vst [vmem:[#allocation241_spill] sm:$0xff] %v7154_v55 }
 0x2aa   : > { %1682 = vperm.xlu1 %4822, %v11202_v36   ;;  %1686 = vperm.xlu2 %4820, %v11203_v58   ;;  %v11214_v58 = vld [vmem:[#allocation75_spill] sm:$0xff] }
 0x2ab   : > { %1690 = vperm.xlu0 %4821, %v11204_v4   ;;  %v11215_v4 = vld [vmem:[#allocation74_spill] sm:$0xff] }
 0x2ad   : > { %v7161_v47 = vpop.permute.xlu2 %1542 }
 0x2ae   : > { %11200 = vst [vmem:[#allocation243_spill] sm:$0xff] %v7161_v47 }
 0x2af   : > { %v7159_v5 = vpop.permute.xlu1 %1502  ;;  %v7163_v45 = vpop.permute.xlu0 %1510 }
 0x2b0   : > { %11199 = vst [vmem:[#allocation242_spill] sm:$0xff] %v7159_v5  ;;  %v11210_v5 = vld [vmem:[#allocation76_spill] sm:$0xff] }
 0x2b1   : > { %11201 = vst [vmem:[#allocation244_spill] sm:$0xff] %v7163_v45 }
 0x2b2   : > { %1694 = vperm.xlu1 %4822, %v11208_v28   ;;  %1698 = vperm.xlu2 %4820, %v11209_v22   ;;  %v11220_v22 = vld [vmem:[#allocation81_spill] sm:$0xff] }
 0x2b3   : > { %1702 = vperm.xlu0 %4821, %v11210_v5   ;;  %v11221_v5 = vld [vmem:[#allocation80_spill] sm:$0xff] }
 0x2b5   : > { %v7170_v55 = vpop.permute.xlu2 %1554 }
 0x2b6   : > { %11206 = vst [vmem:[#allocation63_spill] sm:$0xff] %v7170_v55 }
 0x2b7   : > { %v7168_v56 = vpop.permute.xlu1 %1514  ;;  %v7172_v35 = vpop.permute.xlu0 %1522 }
 0x2b8   : > { %11205 = vst [vmem:[#allocation64_spill] sm:$0xff] %v7168_v56  ;;  %v11216_v56 = vld [vmem:[#allocation82_spill] sm:$0xff] }
 0x2b9   : > { %11207 = vst [vmem:[#allocation70_spill] sm:$0xff] %v7172_v35 }
 0x2ba   : > { %1706 = vperm.xlu1 %4822, %v11214_v58   ;;  %1710 = vperm.xlu2 %4820, %v11215_v4  }
 0x2bb   : > { %1714 = vperm.xlu0 %4821, %v11216_v56  }
 0x2bd   : > { %v7179_v45 = vpop.permute.xlu2 %1566 }
 0x2be   : > { %11212 = vst [vmem:[#allocation68_spill] sm:$0xff] %v7179_v45 }
 0x2bf   : > { %v7177_v47 = vpop.permute.xlu1 %1526  ;;  %v7181_v36 = vpop.permute.xlu0 %1534 }
 0x2c0   : > { %11211 = vst [vmem:[#allocation69_spill] sm:$0xff] %v7177_v47 }
 0x2c1   : > { %11213 = vst [vmem:[#allocation76_spill] sm:$0xff] %v7181_v36 }
 0x2c2   : > { %1718 = vperm.xlu1 %4822, %v11220_v22   ;;  %1722 = vperm.xlu2 %4820, %v11221_v5  }
 0x2c3   : > { %1726 = vperm.xlu0 %4821, %v6618_v10  }
 0x2c5   : > { %v7188_v35 = vpop.permute.xlu2 %1578 }
 0x2c6   : > { %11218 = vst [vmem:[#allocation74_spill] sm:$0xff] %v7188_v35 }
 0x2c7   : > { %v7186_v55 = vpop.permute.xlu1 %1538  ;;  %v7190_v28 = vpop.permute.xlu0 %1546 }
 0x2c8   : > { %11217 = vst [vmem:[#allocation75_spill] sm:$0xff] %v7186_v55  ;;  %v11264_v55 = vld [vmem:[#allocation14_spill] sm:$0xff] }
 0x2c9   : > { %11219 = vst [vmem:[#allocation82_spill] sm:$0xff] %v7190_v28  ;;  %v11263_v28 = vld [vmem:[#allocation13_spill] sm:$0xff] }
 0x2ca   : > { %1730 = vperm.xlu1 %4822, %v6615_v50   ;;  %1734 = vperm.xlu2 %4820, %v6606_v46   ;;  %v11231_v46 = vld [vmem:[#allocation96_spill] sm:$0xff] }
 0x2cb   : > { %1738 = vperm.xlu0 %4821, %v6648_v60  }
 0x2cd   : > { %v7197_v36 = vpop.permute.xlu2 %1590 }
 0x2ce   : > { %11223 = vst [vmem:[#allocation80_spill] sm:$0xff] %v7197_v36  ;;  %v11260_v36 = vld [vmem:[#allocation126_spill] sm:$0xff] }
 0x2cf   : > { %v7195_v45 = vpop.permute.xlu1 %1550  ;;  %v7199_v58 = vpop.permute.xlu0 %1558 }
 0x2d0   : > { %11222 = vst [vmem:[#allocation81_spill] sm:$0xff] %v7195_v45  ;;  %v11261_v45 = vld [vmem:[#allocation133_spill] sm:$0xff] }
 0x2d1   : > { %11224 = vst [vmem:[#allocation245_spill] sm:$0xff] %v7199_v58 }
 0x2d2   : > { %1742 = vperm.xlu1 %4822, %v6645_v38   ;;  %1746 = vperm.xlu2 %4820, %v6636_v20   ;;  %v11235_v20 = vld [vmem:[#allocation95_spill] sm:$0xff] }
 0x2d3   : > { %1750 = vperm.xlu0 %4821, %v6678_v27   ;;  %v5207_v27 = vmov 2  }
 0x2d5   : > { %v7206_v4 = vpop.permute.xlu2 %1602 }
 0x2d6   : > { %11226 = vst [vmem:[#allocation247_spill] sm:$0xff] %v7206_v4  ;;  %v11255_v4 = vld [vmem:[#allocation9_spill] sm:$0xff] }
 0x2d7   : > { %v7204_v56 = vpop.permute.xlu1 %1562  ;;  %v7208_v22 = vpop.permute.xlu0 %1570 }
 0x2d8   : > { %11225 = vst [vmem:[#allocation246_spill] sm:$0xff] %v7204_v56 }
 0x2d9   : > { %11227 = vst [vmem:[#allocation248_spill] sm:$0xff] %v7208_v22 }
 0x2da   : > { %1754 = vperm.xlu1 %4822, %v6675_v12   ;;  %1758 = vperm.xlu2 %4820, %v6666_v19  }
 0x2db   : > { %1762 = vperm.xlu0 %4821, %v11231_v46  }
 0x2dd   : > { %v7215_v5 = vpop.permute.xlu2 %1614 }
 0x2de   : > { %11229 = vst [vmem:[#allocation250_spill] sm:$0xff] %v7215_v5  ;;  %v11236_v5 = vld [vmem:[#allocation109_spill] sm:$0xff] }
 0x2df   : > { %v7213_v10 = vpop.permute.xlu1 %1574  ;;  %v7217_v50 = vpop.permute.xlu0 %1582 }
 0x2e0   : > { %11228 = vst [vmem:[#allocation249_spill] sm:$0xff] %v7213_v10 }
 0x2e1   : > { %11230 = vst [vmem:[#allocation251_spill] sm:$0xff] %v7217_v50  ;;  %v11237_v50 = vld [vmem:[#allocation115_spill] sm:$0xff] }
 0x2e2   : > { %1766 = vperm.xlu1 %4822, %v11235_v20   ;;  %4823 = vset.pattern.permute.xlu2 %v5207_v27 }
 0x2e3   : > { %4824 = vset.pattern.permute.xlu0 %v5207_v27  ;;  %2288 = vperm.xlu2 %4823, %v11236_v5  }
 0x2e4   : > { %2292 = vperm.xlu0 %4824, %v11237_v50   ;;  %v7246_v50 = vld [vmem:[#allocation2] sm:$0x77] }
 0x2e5   : > { %v7224_v22 = vpop.permute.xlu2 %1626 }
 0x2e6   : > { %11233 = vst [vmem:[#allocation252_spill] sm:$0xff] %v7224_v22  ;;  %v11242_v22 = vld [vmem:[#allocation114_spill] sm:$0xff] }
 0x2e7   : > { %v7222_v60 = vpop.permute.xlu1 %1586  ;;  %v7226_v38 = vpop.permute.xlu0 %1594 }
 0x2e8   : > { %11232 = vst [vmem:[#allocation96_spill] sm:$0xff] %v7222_v60  ;;  %v11241_v60 = vld [vmem:[#allocation113_spill] sm:$0xff] }
 0x2e9   : > { %11234 = vst [vmem:[#allocation253_spill] sm:$0xff] %v7226_v38  ;;  %v11243_v38 = vld [vmem:[#allocation121_spill] sm:$0xff] }
 0x2ea   : > { %4825 = vset.pattern.permute.xlu1 %v5207_v27 }
 0x2eb   : > { %2296 = vperm.xlu1 %4825, %v11241_v60   ;;  %2300 = vperm.xlu2 %4823, %v11242_v22   ;;  %v995_v22 = vperm.slane %v7246_v50, 0  ;;  %v996_v60 = vperm.slane %v7246_v50, 4 }
 0x2ec   : > { %2312 = vperm.xlu0 %4824, %v11243_v38  }
 0x2ed   : > { %v7233_v19 = vpop.permute.xlu2 %1638 }
 0x2ee   : > { %11239 = vst [vmem:[#allocation109_spill] sm:$0xff] %v7233_v19  ;;  %v11248_v19 = vld [vmem:[#allocation120_spill] sm:$0xff] }
 0x2ef   : > { %v7231_v12 = vpop.permute.xlu1 %1598  ;;  %v7235_v46 = vpop.permute.xlu0 %1606 }
 0x2f0   : > { %11238 = vst [vmem:[#allocation95_spill] sm:$0xff] %v7231_v12  ;;  %v11247_v12 = vld [vmem:[#allocation119_spill] sm:$0xff] }
 0x2f1   : > { %11240 = vst [vmem:[#allocation115_spill] sm:$0xff] %v7235_v46  ;;  %v11249_v46 = vld [vmem:[#allocation127_spill] sm:$0xff] }
 0x2f3   : > { %2304 = vperm.xlu1 %4825, %v11247_v12   ;;  %2308 = vperm.xlu2 %4823, %v11248_v19  }
 0x2f4   : > { %2324 = vperm.xlu0 %4824, %v11249_v46   ;;  %v11256_v46 = vld [vmem:[#allocation10_spill] sm:$0xff] }
 0x2f5   : > { %v7242_v10 = vpop.permute.xlu2 %1650 }
 0x2f6   : > { %11245 = vst [vmem:[#allocation114_spill] sm:$0xff] %v7242_v10  ;;  %v7259_v10 = vperm.slane %v995_v22, 0  ;;  %v11257_v22 = vld [vmem:[#allocation125_spill] sm:$0xff] }
 0x2f7   : > { %v7240_v20 = vpop.permute.xlu1 %1610  ;;  %v7244_v5 = vpop.permute.xlu0 %1618 }
 0x2f8   : > { %11244 = vst [vmem:[#allocation113_spill] sm:$0xff] %v7240_v20  ;;  %v7265_v12 = vmul.f32 %v7259_v10, %v11255_v4  ;;  %v7302_v35 = vmul.f32 %v7259_v10, %v11263_v28  ;;  %v7310_v47 = vmul.f32 %v7259_v10, %v11264_v55  ;;  %v7330_v48 = vmul.f32 %v7259_v10, %v11268_v34 }
 0x2f9   : > { %11246 = vst [vmem:[#allocation121_spill] sm:$0xff] %v7244_v5  ;;  %v7261_v5 = vperm.slane %v996_v60, 0  ;;  %v11258_v60 = vld [vmem:[#allocation11_spill] sm:$0xff]  ;;  %v7439_v25 = vmul.f32 %v7259_v10, %v11289_v33  ;;  %v7459_v11 = vmul.f32 %v7259_v10, %v11297_v8 }
 0x2fa   : > { %11253 = vst [vmem:[#allocation254_spill] sm:$0xff] %v7259_v10 }
 0x2fb   : > { %11254 = vst [vmem:[#allocation255_spill] sm:$0xff] %v7261_v5  ;;  %v7269_v19 = vmul.f32 %v7261_v5, %v11255_v4  ;;  %2316 = vperm.xlu1 %4825, %v11257_v22   ;;  %v7286_v56 = vmul.f32 %v7261_v5, %v11258_v60  ;;  %v11259_v4 = vld [vmem:[#allocation12_spill] sm:$0xff]  ;;  %2320 = vperm.xlu2 %4823, %v11260_v36  }
 0x2fc   : > { %v7290_v58 = vmul.f32 %v7259_v10, %v11259_v4  ;;  %2336 = vperm.xlu0 %4824, %v11261_v45   ;;  %v7298_v22 = vmul.f32 %v7261_v5, %v11259_v4  ;;  %v7318_v4 = vmul.f32 %v7261_v5, %v11264_v55  ;;  %v7350_v0 = vmul.f32 %v7261_v5, %v11270_v49 }
 0x2fd   : > { %v7255_v38 = vpop.permute.xlu2 %1662  ;;  %v7358_v53 = vmul.f32 %v7261_v5, %v11271_v24  ;;  %v7366_v44 = vmul.f32 %v7261_v5, %v11272_v14  ;;  %v7374_v17 = vmul.f32 %v7261_v5, %v11273_v61  ;;  %v7382_v23 = vmul.f32 %v7261_v5, %v11274_v18  ;;  %11290 = vst [vmem:[#allocation14_spill] sm:$0xff] %v7439_v25 }
 0x2fe   : > { %11251 = vst [vmem:[#allocation120_spill] sm:$0xff] %v7255_v38  ;;  %v7277_v38 = vmul.f32 %v7261_v5, %v11256_v46  ;;  %v7390_v54 = vmul.f32 %v7261_v5, %v11275_v1  ;;  %v7398_v6 = vmul.f32 %v7261_v5, %v11276_v30  ;;  %v7406_v43 = vmul.f32 %v7261_v5, %v11277_v15 }
 0x2ff   : > { %v7251_v27 = vpop.permute.xlu1 %1622  ;;  %v7257_v20 = vpop.permute.xlu0 %1630  ;;  %v7415_v57 = vmul.f32 %v7261_v5, %v11278_v2  ;;  %11298 = vst [vmem:[#allocation20_spill] sm:$0xff] %v7459_v11  ;;  %v7479_v21 = vmul.f32 %v7261_v5, %v11303_v7 }
 0x300   : > { %11250 = vst [vmem:[#allocation119_spill] sm:$0xff] %v7251_v27  ;;  %v7273_v27 = vmul.f32 %v7259_v10, %v11256_v46 }
 0x301   : > { %11252 = vst [vmem:[#allocation127_spill] sm:$0xff] %v7257_v20  ;;  %v7282_v20 = vmul.f32 %v7259_v10, %v11258_v60  ;;  %v7306_v60 = vmul.f32 %v7261_v5, %v11263_v28 }
 0x302   : > { %11305 = vst [vmem:[#allocation25_spill] sm:$0xff] %v7479_v21 }
 0x303   : > { %2328 = vperm.xlu1 %4825, %v11279_v29   ;;  %v7431_v29 = vmul.f32 %v7259_v10, %v11286_v32 }
 0x304   : > { %2348 = vperm.xlu0 %4824, %v11284_v40  }
 0x305   : > { %v7312_v36 = vpop.permute.xlu2 %1674  ;;  %11287 = vst [vmem:[#allocation133_spill] sm:$0xff] %v7431_v29  ;;  %v4888_v29 = vld [vmem:[%s5302_s14 + $0x100] sm:$0xff] }
 0x306   : > { %11265 = vst [vmem:[#allocation10_spill] sm:$0xff] %v7312_v36  ;;  %v7334_v36 = vmul.f32 %v7261_v5, %v11268_v34  ;;  %v7354_v34 = vmul.f32 %v7259_v10, %v11271_v24  ;;  %v7378_v24 = vmul.f32 %v7259_v10, %v11274_v18  ;;  %v7402_v18 = vmul.f32 %v7259_v10, %v11277_v15  ;;  %v11283_v15 = vld [vmem:[#allocation132_spill] sm:$0xff] }
 0x307   : > { %v7294_v46 = vpop.permute.xlu1 %1634  ;;  %v7314_v45 = vpop.permute.xlu0 %1642  ;;  %2332 = vperm.xlu2 %4823, %v11283_v15  }
 0x308   : > { %11262 = vst [vmem:[#allocation9_spill] sm:$0xff] %v7294_v46  ;;  %v11267_v46 = vld [vmem:[#allocation15_spill] sm:$0xff] }
 0x309   : > { %11266 = vst [vmem:[#allocation125_spill] sm:$0xff] %v7314_v45  ;;  %v7322_v41 = vmul.f32 %v7259_v10, %v11267_v46  ;;  %v7326_v28 = vmul.f32 %v7261_v5, %v11267_v46  ;;  %v11269_v45 = vld [vmem:[#allocation17_spill] sm:$0xff]  ;;  %v7346_v46 = vmul.f32 %v7259_v10, %v11270_v49  ;;  %v7370_v49 = vmul.f32 %v7259_v10, %v11273_v61 }
 0x30a   : > { %v7338_v55 = vmul.f32 %v7259_v10, %v11269_v45  ;;  %v7342_v13 = vmul.f32 %v7261_v5, %v11269_v45  ;;  %v7362_v45 = vmul.f32 %v7259_v10, %v11272_v14  ;;  %v7386_v14 = vmul.f32 %v7259_v10, %v11275_v1 }
 0x30b   : > { %v7394_v61 = vmul.f32 %v7259_v10, %v11276_v30  ;;  %v7410_v1 = vmul.f32 %v7259_v10, %v11278_v2  ;;  %v11280_v30 = vld [vmem:[#allocation27_spill] sm:$0xff]  ;;  %v7435_v2 = vmul.f32 %v7261_v5, %v11286_v32 }
 0x30c   : > { %v7419_v37 = vmul.f32 %v7259_v10, %v11280_v30  ;;  %v7423_v39 = vmul.f32 %v7261_v5, %v11280_v30  ;;  %v7443_v30 = vmul.f32 %v7261_v5, %v11289_v33  ;;  %v7463_v33 = vmul.f32 %v7261_v5, %v11297_v8 }
 0x30d   : > { %11288 = vst [vmem:[#allocation13_spill] sm:$0xff] %v7435_v2  ;;  %v7445_v15 = vpop.permute.xlu2 %1686  ;;  %v11631_v2 = vld [vmem:[#allocation182_spill] sm:$0xff] }
 0x30e   : > { %11281 = vst [vmem:[#allocation11_spill] sm:$0xff] %v7419_v37 }
 0x30f   : > { %11282 = vst [vmem:[#allocation12_spill] sm:$0xff] %v7423_v39  ;;  %v7427_v31 = vpop.permute.xlu1 %1646  ;;  %v7447_v40 = vpop.permute.xlu0 %1654  ;;  %2344 = vperm.xlu2 %4823, %v11336_v16   ;;  %v4887_v39 = vld [vmem:[%s5302_s14 + $0xf8] sm:$0xff] }
 0x310   : > { %11285 = vst [vmem:[#allocation126_spill] sm:$0xff] %v7427_v31  ;;  %v11294_v31 = vld [vmem:[#allocation30_spill] sm:$0xff] }
 0x311   : > { %11291 = vst [vmem:[#allocation15_spill] sm:$0xff] %v7443_v30  ;;  %v7451_v26 = vmul.f32 %v7259_v10, %v11294_v31  ;;  %v7455_v32 = vmul.f32 %v7261_v5, %v11294_v31  ;;  %v7475_v31 = vmul.f32 %v7259_v10, %v11303_v7  ;;  %v8336_v30 = vmul.f32 %v7259_v10, %v11634_v9 }
 0x312   : > { %11292 = vst [vmem:[#allocation16_spill] sm:$0xff] %v7445_v15  ;;  %v7467_v15 = vmul.f32 %v7259_v10, %v11300_v3 }
 0x313   : > { %11293 = vst [vmem:[#allocation17_spill] sm:$0xff] %v7447_v40  ;;  %v7471_v40 = vmul.f32 %v7261_v5, %v11300_v3 }
 0x314   : > { %11295 = vst [vmem:[#allocation18_spill] sm:$0xff] %v7451_v26 }
 0x315   : > { %11296 = vst [vmem:[#allocation19_spill] sm:$0xff] %v7455_v32  ;;  %v11306_v32 = vld [vmem:[#allocation34_spill] sm:$0xff]  ;;  %v7578_v16 = vpop.permute.xlu2 %1698 }
 0x316   : > { %11299 = vst [vmem:[#allocation21_spill] sm:$0xff] %v7463_v33  ;;  %v7483_v8 = vmul.f32 %v7259_v10, %v11306_v32  ;;  %v7487_v26 = vmul.f32 %v7261_v5, %v11306_v32  ;;  %v11309_v33 = vld [vmem:[#allocation35_spill] sm:$0xff] }
 0x317   : > { %11301 = vst [vmem:[#allocation22_spill] sm:$0xff] %v7467_v15  ;;  %v7491_v3 = vmul.f32 %v7259_v10, %v11309_v33  ;;  %v7495_v11 = vmul.f32 %v7261_v5, %v11309_v33  ;;  %v11626_v15 = vld [vmem:[#allocation172_spill] sm:$0xff] }
 0x318   : > { %11302 = vst [vmem:[#allocation23_spill] sm:$0xff] %v7471_v40  ;;  %v11585_v40 = vld [vmem:[#allocation152_spill] sm:$0xff]  ;;  %v8305_v63 = vmul.f32 %v7259_v10, %v11626_v15 }
 0x319   : > { %11304 = vst [vmem:[#allocation24_spill] sm:$0xff] %v7475_v31  ;;  %v11312_v31 = vld [vmem:[#allocation36_spill] sm:$0xff] }
 0x31a   : > { %11307 = vst [vmem:[#allocation26_spill] sm:$0xff] %v7483_v8  ;;  %v7499_v7 = vmul.f32 %v7259_v10, %v11312_v31  ;;  %v7503_v21 = vmul.f32 %v7261_v5, %v11312_v31  ;;  %v11315_v8 = vld [vmem:[#allocation37_spill] sm:$0xff] }
 0x31b   : > { %11308 = vst [vmem:[#allocation131_spill] sm:$0xff] %v7487_v26  ;;  %v7507_v32 = vmul.f32 %v7259_v10, %v11315_v8  ;;  %v7511_v26 = vmul.f32 %v7261_v5, %v11315_v8 }
 0x31c   : > { %11310 = vst [vmem:[#allocation27_spill] sm:$0xff] %v7491_v3  ;;  %v11318_v3 = vld [vmem:[#allocation38_spill] sm:$0xff] }
 0x31d   : > { %11311 = vst [vmem:[#allocation132_spill] sm:$0xff] %v7495_v11  ;;  %v7515_v33 = vmul.f32 %v7259_v10, %v11318_v3  ;;  %v7519_v11 = vmul.f32 %v7261_v5, %v11318_v3 }
 0x31e   : > { %11313 = vst [vmem:[#allocation139_spill] sm:$0xff] %v7499_v7  ;;  %v11321_v7 = vld [vmem:[#allocation39_spill] sm:$0xff] }
 0x31f   : > { %11314 = vst [vmem:[#allocation28_spill] sm:$0xff] %v7503_v21  ;;  %v7523_v31 = vmul.f32 %v7259_v10, %v11321_v7  ;;  %v7527_v21 = vmul.f32 %v7261_v5, %v11321_v7  ;;  %v11331_v7 = vld [vmem:[#allocation42_spill] sm:$0xff] }
 0x320   : > { %11316 = vst [vmem:[#allocation29_spill] sm:$0xff] %v7507_v32  ;;  %v11324_v32 = vld [vmem:[#allocation40_spill] sm:$0xff] }
 0x321   : > { %11317 = vst [vmem:[#allocation30_spill] sm:$0xff] %v7511_v26  ;;  %v7531_v8 = vmul.f32 %v7259_v10, %v11324_v32  ;;  %v7535_v26 = vmul.f32 %v7261_v5, %v11324_v32  ;;  %v11334_v32 = vld [vmem:[#allocation43_spill] sm:$0xff] }
 0x322   : > { %11319 = vst [vmem:[#allocation31_spill] sm:$0xff] %v7515_v33  ;;  %v11327_v33 = vld [vmem:[#allocation41_spill] sm:$0xff] }
 0x323   : > { %11320 = vst [vmem:[#allocation32_spill] sm:$0xff] %v7519_v11  ;;  %v7539_v3 = vmul.f32 %v7259_v10, %v11327_v33  ;;  %v7543_v11 = vmul.f32 %v7261_v5, %v11327_v33  ;;  %v7560_v33 = vpop.permute.xlu1 %1658 }
 0x324   : > { %11322 = vst [vmem:[#allocation33_spill] sm:$0xff] %v7523_v31  ;;  %v11330_v31 = vld [vmem:[#allocation137_spill] sm:$0xff] }
 0x325   : > { %11323 = vst [vmem:[#allocation34_spill] sm:$0xff] %v7527_v21  ;;  %2340 = vperm.xlu1 %4825, %v11330_v31   ;;  %v7548_v21 = vmul.f32 %v7259_v10, %v11331_v7  ;;  %v7564_v31 = vmul.f32 %v7261_v5, %v11334_v32 }
 0x326   : > { %11325 = vst [vmem:[#allocation35_spill] sm:$0xff] %v7531_v8  ;;  %v7552_v8 = vmul.f32 %v7261_v5, %v11331_v7 }
 0x327   : > { %11326 = vst [vmem:[#allocation36_spill] sm:$0xff] %v7535_v26  ;;  %v7556_v26 = vmul.f32 %v7259_v10, %v11334_v32 }
 0x328   : > { %11328 = vst [vmem:[#allocation37_spill] sm:$0xff] %v7539_v3  ;;  %v11337_v3 = vld [vmem:[#allocation145_spill] sm:$0xff] }
 0x329   : > { %11329 = vst [vmem:[#allocation38_spill] sm:$0xff] %v7543_v11  ;;  %2360 = vperm.xlu0 %4824, %v11337_v3   ;;  %v11340_v11 = vld [vmem:[#allocation44_spill] sm:$0xff]  ;;  %v7580_v3 = vpop.permute.xlu0 %1666 }
 0x32a   : > { %11332 = vst [vmem:[#allocation39_spill] sm:$0xff] %v7548_v21  ;;  %v7568_v21 = vmul.f32 %v7259_v10, %v11340_v11  ;;  %v7572_v7 = vmul.f32 %v7261_v5, %v11340_v11 }
 0x32b   : > { %11333 = vst [vmem:[#allocation40_spill] sm:$0xff] %v7552_v8  ;;  %v11343_v8 = vld [vmem:[#allocation45_spill] sm:$0xff] }
 0x32c   : > { %11335 = vst [vmem:[#allocation41_spill] sm:$0xff] %v7556_v26  ;;  %v7576_v26 = vmul.f32 %v7259_v10, %v11343_v8  ;;  %v7584_v32 = vmul.f32 %v7261_v5, %v11343_v8 }
 0x32d   : > { %11338 = vst [vmem:[#allocation137_spill] sm:$0xff] %v7560_v33  ;;  %v11348_v33 = vld [vmem:[#allocation46_spill] sm:$0xff] }
 0x32e   : > { %11339 = vst [vmem:[#allocation42_spill] sm:$0xff] %v7564_v31  ;;  %v7588_v31 = vmul.f32 %v7259_v10, %v11348_v33  ;;  %v7592_v11 = vmul.f32 %v7261_v5, %v11348_v33 }
 0x32f   : > { %11341 = vst [vmem:[#allocation43_spill] sm:$0xff] %v7568_v21 }
 0x330   : > { %11342 = vst [vmem:[#allocation138_spill] sm:$0xff] %v7572_v7  ;;  %v11351_v7 = vld [vmem:[#allocation47_spill] sm:$0xff] }
 0x331   : > { %11344 = vst [vmem:[#allocation145_spill] sm:$0xff] %v7576_v26  ;;  %v7596_v21 = vmul.f32 %v7259_v10, %v11351_v7  ;;  %v11357_v26 = vld [vmem:[#allocation49_spill] sm:$0xff] }
 0x332   : > { %11345 = vst [vmem:[#allocation44_spill] sm:$0xff] %v7578_v16  ;;  %v7600_v16 = vmul.f32 %v7261_v5, %v11351_v7  ;;  %v7612_v33 = vmul.f32 %v7259_v10, %v11357_v26 }
 0x333   : > { %11346 = vst [vmem:[#allocation45_spill] sm:$0xff] %v7580_v3  ;;  %v11354_v3 = vld [vmem:[#allocation48_spill] sm:$0xff] }
 0x334   : > { %11347 = vst [vmem:[#allocation256_spill] sm:$0xff] %v7584_v32  ;;  %v7604_v8 = vmul.f32 %v7259_v10, %v11354_v3  ;;  %v7608_v32 = vmul.f32 %v7261_v5, %v11354_v3 }
 0x335   : > { %11349 = vst [vmem:[#allocation46_spill] sm:$0xff] %v7588_v31  ;;  %v11360_v31 = vld [vmem:[#allocation50_spill] sm:$0xff] }
 0x336   : > { %11350 = vst [vmem:[#allocation257_spill] sm:$0xff] %v7592_v11  ;;  %v7616_v11 = vmul.f32 %v7261_v5, %v11357_v26  ;;  %v7620_v7 = vmul.f32 %v7259_v10, %v11360_v31 }
 0x337   : > { %11352 = vst [vmem:[#allocation47_spill] sm:$0xff] %v7596_v21  ;;  %v7693_v21 = vpop.permute.xlu1 %1670 }
 0x338   : > { %11353 = vst [vmem:[#allocation258_spill] sm:$0xff] %v7600_v16  ;;  %v7624_v16 = vmul.f32 %v7261_v5, %v11360_v31 }
 0x339   : > { %11355 = vst [vmem:[#allocation48_spill] sm:$0xff] %v7604_v8  ;;  %v11363_v8 = vld [vmem:[#allocation51_spill] sm:$0xff] }
 0x33a   : > { %11356 = vst [vmem:[#allocation259_spill] sm:$0xff] %v7608_v32  ;;  %v7628_v3 = vmul.f32 %v7259_v10, %v11363_v8  ;;  %v7632_v32 = vmul.f32 %v7261_v5, %v11363_v8 }
 0x33b   : > { %11358 = vst [vmem:[#allocation49_spill] sm:$0xff] %v7612_v33  ;;  %v11366_v33 = vld [vmem:[#allocation52_spill] sm:$0xff] }
 0x33c   : > { %11359 = vst [vmem:[#allocation260_spill] sm:$0xff] %v7616_v11  ;;  %v7636_v26 = vmul.f32 %v7259_v10, %v11366_v33  ;;  %v7640_v11 = vmul.f32 %v7261_v5, %v11366_v33 }
 0x33d   : > { %11361 = vst [vmem:[#allocation50_spill] sm:$0xff] %v7620_v7  ;;  %v11369_v7 = vld [vmem:[#allocation53_spill] sm:$0xff] }
 0x33e   : > { %11362 = vst [vmem:[#allocation261_spill] sm:$0xff] %v7624_v16  ;;  %v7644_v31 = vmul.f32 %v7259_v10, %v11369_v7  ;;  %v7648_v16 = vmul.f32 %v7261_v5, %v11369_v7 }
 0x33f   : > { %11364 = vst [vmem:[#allocation51_spill] sm:$0xff] %v7628_v3  ;;  %v11372_v3 = vld [vmem:[#allocation54_spill] sm:$0xff] }
 0x340   : > { %11365 = vst [vmem:[#allocation262_spill] sm:$0xff] %v7632_v32  ;;  %v7652_v8 = vmul.f32 %v7259_v10, %v11372_v3  ;;  %v7656_v32 = vmul.f32 %v7261_v5, %v11372_v3 }
 0x341   : > { %11367 = vst [vmem:[#allocation52_spill] sm:$0xff] %v7636_v26  ;;  %v11375_v26 = vld [vmem:[#allocation55_spill] sm:$0xff] }
 0x342   : > { %11368 = vst [vmem:[#allocation263_spill] sm:$0xff] %v7640_v11  ;;  %v7660_v33 = vmul.f32 %v7259_v10, %v11375_v26  ;;  %v7664_v11 = vmul.f32 %v7261_v5, %v11375_v26  ;;  %v11385_v26 = vld [vmem:[#allocation58_spill] sm:$0xff] }
 0x343   : > { %11370 = vst [vmem:[#allocation53_spill] sm:$0xff] %v7644_v31  ;;  %v11378_v31 = vld [vmem:[#allocation56_spill] sm:$0xff] }
 0x344   : > { %11371 = vst [vmem:[#allocation264_spill] sm:$0xff] %v7648_v16  ;;  %v7668_v7 = vmul.f32 %v7259_v10, %v11378_v31  ;;  %v7672_v16 = vmul.f32 %v7261_v5, %v11378_v31  ;;  %v11388_v31 = vld [vmem:[#allocation144_spill] sm:$0xff] }
 0x345   : > { %11373 = vst [vmem:[#allocation54_spill] sm:$0xff] %v7652_v8  ;;  %v11381_v8 = vld [vmem:[#allocation57_spill] sm:$0xff]  ;;  %2356 = vperm.xlu2 %4823, %v11388_v31   ;;  %v7711_v31 = vpop.permute.xlu2 %1710 }
 0x346   : > { %11374 = vst [vmem:[#allocation265_spill] sm:$0xff] %v7656_v32  ;;  %v7676_v3 = vmul.f32 %v7259_v10, %v11381_v8  ;;  %v11383_v32 = vld [vmem:[#allocation143_spill] sm:$0xff] }
 0x347   : > { %11376 = vst [vmem:[#allocation55_spill] sm:$0xff] %v7660_v33  ;;  %2352 = vperm.xlu1 %4825, %v11383_v32   ;;  %v7681_v33 = vmul.f32 %v7261_v5, %v11381_v8 }
 0x348   : > { %11377 = vst [vmem:[#allocation266_spill] sm:$0xff] %v7664_v11  ;;  %v7685_v11 = vmul.f32 %v7259_v10, %v11385_v26 }
 0x349   : > { %11379 = vst [vmem:[#allocation56_spill] sm:$0xff] %v7668_v7  ;;  %v7689_v7 = vmul.f32 %v7261_v5, %v11385_v26 }
 0x34a   : > { %11380 = vst [vmem:[#allocation267_spill] sm:$0xff] %v7672_v16  ;;  %v11389_v16 = vld [vmem:[#allocation151_spill] sm:$0xff] }
 0x34b   : > { %11382 = vst [vmem:[#allocation57_spill] sm:$0xff] %v7676_v3  ;;  %2372 = vperm.xlu0 %4824, %v11389_v16   ;;  %v11391_v3 = vld [vmem:[#allocation59_spill] sm:$0xff]  ;;  %v7713_v16 = vpop.permute.xlu0 %1678 }
 0x34c   : > { %11384 = vst [vmem:[#allocation143_spill] sm:$0xff] %v7681_v33  ;;  %v7697_v32 = vmul.f32 %v7259_v10, %v11391_v3  ;;  %v7701_v8 = vmul.f32 %v7261_v5, %v11391_v3  ;;  %v11394_v33 = vld [vmem:[#allocation60_spill] sm:$0xff] }
 0x34d   : > { %11386 = vst [vmem:[#allocation58_spill] sm:$0xff] %v7685_v11  ;;  %v7705_v11 = vmul.f32 %v7259_v10, %v11394_v33  ;;  %v7709_v26 = vmul.f32 %v7261_v5, %v11394_v33 }
 0x34e   : > { %11387 = vst [vmem:[#allocation268_spill] sm:$0xff] %v7689_v7 }
 0x34f   : > { %11390 = vst [vmem:[#allocation144_spill] sm:$0xff] %v7693_v21  ;;  %v11399_v21 = vld [vmem:[#allocation61_spill] sm:$0xff] }
 0x350   : > { %11392 = vst [vmem:[#allocation151_spill] sm:$0xff] %v7697_v32  ;;  %v7717_v7 = vmul.f32 %v7259_v10, %v11399_v21  ;;  %v7721_v3 = vmul.f32 %v7261_v5, %v11399_v21 }
 0x351   : > { %11393 = vst [vmem:[#allocation59_spill] sm:$0xff] %v7701_v8  ;;  %v11402_v8 = vld [vmem:[#allocation62_spill] sm:$0xff] }
 0x352   : > { %11395 = vst [vmem:[#allocation60_spill] sm:$0xff] %v7705_v11  ;;  %v7725_v32 = vmul.f32 %v7259_v10, %v11402_v8  ;;  %v7729_v33 = vmul.f32 %v7261_v5, %v11402_v8  ;;  %v11408_v11 = vld [vmem:[#allocation66_spill] sm:$0xff] }
 0x353   : > { %11396 = vst [vmem:[#allocation269_spill] sm:$0xff] %v7709_v26  ;;  %v11405_v26 = vld [vmem:[#allocation65_spill] sm:$0xff]  ;;  %v7741_v21 = vmul.f32 %v7259_v10, %v11408_v11 }
 0x354   : > { %11397 = vst [vmem:[#allocation270_spill] sm:$0xff] %v7711_v31  ;;  %v7733_v31 = vmul.f32 %v7259_v10, %v11405_v26 }
 0x355   : > { %11398 = vst [vmem:[#allocation271_spill] sm:$0xff] %v7713_v16  ;;  %v7737_v16 = vmul.f32 %v7261_v5, %v11405_v26 }
 0x356   : > { %11400 = vst [vmem:[#allocation61_spill] sm:$0xff] %v7717_v7  ;;  %v11411_v7 = vld [vmem:[#allocation67_spill] sm:$0xff] }
 0x357   : > { %11401 = vst [vmem:[#allocation272_spill] sm:$0xff] %v7721_v3  ;;  %v7745_v3 = vmul.f32 %v7261_v5, %v11408_v11  ;;  %v7749_v8 = vmul.f32 %v7259_v10, %v11411_v7 }
 0x358   : > { %11403 = vst [vmem:[#allocation62_spill] sm:$0xff] %v7725_v32  ;;  %v11441_v32 = vld [vmem:[#allocation150_spill] sm:$0xff] }
 0x359   : > { %11404 = vst [vmem:[#allocation273_spill] sm:$0xff] %v7729_v33  ;;  %v7753_v33 = vmul.f32 %v7261_v5, %v11411_v7  ;;  %2368 = vperm.xlu2 %4823, %v11441_v32   ;;  %v7844_v32 = vpop.permute.xlu2 %1722 }
 0x35a   : > { %11406 = vst [vmem:[#allocation65_spill] sm:$0xff] %v7733_v31  ;;  %v11414_v31 = vld [vmem:[#allocation71_spill] sm:$0xff] }
 0x35b   : > { %11407 = vst [vmem:[#allocation274_spill] sm:$0xff] %v7737_v16  ;;  %v7757_v26 = vmul.f32 %v7259_v10, %v11414_v31  ;;  %v7761_v16 = vmul.f32 %v7261_v5, %v11414_v31 }
 0x35c   : > { %11409 = vst [vmem:[#allocation66_spill] sm:$0xff] %v7741_v21  ;;  %v11417_v21 = vld [vmem:[#allocation72_spill] sm:$0xff] }
 0x35d   : > { %11410 = vst [vmem:[#allocation275_spill] sm:$0xff] %v7745_v3  ;;  %v7765_v11 = vmul.f32 %v7259_v10, %v11417_v21  ;;  %v7769_v3 = vmul.f32 %v7261_v5, %v11417_v21 }
 0x35e   : > { %11412 = vst [vmem:[#allocation67_spill] sm:$0xff] %v7749_v8  ;;  %v11420_v8 = vld [vmem:[#allocation73_spill] sm:$0xff] }
 0x35f   : > { %11413 = vst [vmem:[#allocation276_spill] sm:$0xff] %v7753_v33  ;;  %v7773_v7 = vmul.f32 %v7259_v10, %v11420_v8  ;;  %v7777_v33 = vmul.f32 %v7261_v5, %v11420_v8 }
 0x360   : > { %11415 = vst [vmem:[#allocation71_spill] sm:$0xff] %v7757_v26  ;;  %v11423_v26 = vld [vmem:[#allocation77_spill] sm:$0xff] }
 0x361   : > { %11416 = vst [vmem:[#allocation277_spill] sm:$0xff] %v7761_v16  ;;  %v7781_v31 = vmul.f32 %v7259_v10, %v11423_v26  ;;  %v7785_v16 = vmul.f32 %v7261_v5, %v11423_v26 }
 0x362   : > { %11418 = vst [vmem:[#allocation72_spill] sm:$0xff] %v7765_v11  ;;  %v11426_v11 = vld [vmem:[#allocation78_spill] sm:$0xff] }
 0x363   : > { %11419 = vst [vmem:[#allocation278_spill] sm:$0xff] %v7769_v3  ;;  %v7789_v21 = vmul.f32 %v7259_v10, %v11426_v11  ;;  %v7793_v3 = vmul.f32 %v7261_v5, %v11426_v11  ;;  %v11436_v11 = vld [vmem:[#allocation84_spill] sm:$0xff] }
 0x364   : > { %11421 = vst [vmem:[#allocation73_spill] sm:$0xff] %v7773_v7  ;;  %v11429_v7 = vld [vmem:[#allocation79_spill] sm:$0xff] }
 0x365   : > { %11422 = vst [vmem:[#allocation279_spill] sm:$0xff] %v7777_v33  ;;  %v7797_v8 = vmul.f32 %v7259_v10, %v11429_v7  ;;  %v7801_v33 = vmul.f32 %v7261_v5, %v11429_v7  ;;  %v11439_v7 = vld [vmem:[#allocation85_spill] sm:$0xff] }
 0x366   : > { %11424 = vst [vmem:[#allocation77_spill] sm:$0xff] %v7781_v31  ;;  %v11432_v31 = vld [vmem:[#allocation83_spill] sm:$0xff] }
 0x367   : > { %11425 = vst [vmem:[#allocation280_spill] sm:$0xff] %v7785_v16  ;;  %v7805_v26 = vmul.f32 %v7259_v10, %v11432_v31  ;;  %v7809_v16 = vmul.f32 %v7261_v5, %v11432_v31  ;;  %v7826_v31 = vpop.permute.xlu1 %1682 }
 0x368   : > { %11427 = vst [vmem:[#allocation78_spill] sm:$0xff] %v7789_v21  ;;  %v11435_v21 = vld [vmem:[#allocation149_spill] sm:$0xff] }
 0x369   : > { %11428 = vst [vmem:[#allocation281_spill] sm:$0xff] %v7793_v3  ;;  %2364 = vperm.xlu1 %4825, %v11435_v21   ;;  %v7814_v3 = vmul.f32 %v7259_v10, %v11436_v11  ;;  %v7830_v21 = vmul.f32 %v7261_v5, %v11439_v7 }
 0x36a   : > { %11430 = vst [vmem:[#allocation79_spill] sm:$0xff] %v7797_v8  ;;  %v7818_v8 = vmul.f32 %v7261_v5, %v11436_v11 }
 0x36b   : > { %11431 = vst [vmem:[#allocation282_spill] sm:$0xff] %v7801_v33  ;;  %v7822_v33 = vmul.f32 %v7259_v10, %v11439_v7 }
 0x36c   : > { %11433 = vst [vmem:[#allocation83_spill] sm:$0xff] %v7805_v26  ;;  %v11442_v26 = vld [vmem:[#allocation157_spill] sm:$0xff] }
 0x36d   : > { %11434 = vst [vmem:[#allocation283_spill] sm:$0xff] %v7809_v16  ;;  %2384 = vperm.xlu0 %4824, %v11442_v26   ;;  %v11445_v16 = vld [vmem:[#allocation86_spill] sm:$0xff]  ;;  %v7846_v26 = vpop.permute.xlu0 %1690 }
 0x36e   : > { %11437 = vst [vmem:[#allocation149_spill] sm:$0xff] %v7814_v3  ;;  %v7834_v3 = vmul.f32 %v7259_v10, %v11445_v16  ;;  %v7838_v11 = vmul.f32 %v7261_v5, %v11445_v16 }
 0x36f   : > { %11438 = vst [vmem:[#allocation84_spill] sm:$0xff] %v7818_v8  ;;  %v11448_v8 = vld [vmem:[#allocation87_spill] sm:$0xff] }
 0x370   : > { %11440 = vst [vmem:[#allocation85_spill] sm:$0xff] %v7822_v33  ;;  %v7842_v33 = vmul.f32 %v7259_v10, %v11448_v8  ;;  %v7850_v7 = vmul.f32 %v7261_v5, %v11448_v8 }
 0x371   : > { %11443 = vst [vmem:[#allocation150_spill] sm:$0xff] %v7826_v31  ;;  %v11453_v31 = vld [vmem:[#allocation88_spill] sm:$0xff] }
 0x372   : > { %11444 = vst [vmem:[#allocation157_spill] sm:$0xff] %v7830_v21  ;;  %v7854_v21 = vmul.f32 %v7259_v10, %v11453_v31  ;;  %v7858_v16 = vmul.f32 %v7261_v5, %v11453_v31 }
 0x373   : > { %11446 = vst [vmem:[#allocation86_spill] sm:$0xff] %v7834_v3 }
 0x374   : > { %11447 = vst [vmem:[#allocation284_spill] sm:$0xff] %v7838_v11  ;;  %v11456_v11 = vld [vmem:[#allocation89_spill] sm:$0xff] }
 0x375   : > { %11449 = vst [vmem:[#allocation87_spill] sm:$0xff] %v7842_v33  ;;  %v7862_v3 = vmul.f32 %v7259_v10, %v11456_v11  ;;  %v11462_v33 = vld [vmem:[#allocation91_spill] sm:$0xff] }
 0x376   : > { %11450 = vst [vmem:[#allocation285_spill] sm:$0xff] %v7844_v32  ;;  %v7866_v32 = vmul.f32 %v7261_v5, %v11456_v11  ;;  %v7878_v31 = vmul.f32 %v7259_v10, %v11462_v33 }
 0x377   : > { %11451 = vst [vmem:[#allocation286_spill] sm:$0xff] %v7846_v26  ;;  %v11459_v26 = vld [vmem:[#allocation90_spill] sm:$0xff] }
 0x378   : > { %11452 = vst [vmem:[#allocation287_spill] sm:$0xff] %v7850_v7  ;;  %v7870_v8 = vmul.f32 %v7259_v10, %v11459_v26  ;;  %v7874_v7 = vmul.f32 %v7261_v5, %v11459_v26 }
 0x379   : > { %11454 = vst [vmem:[#allocation88_spill] sm:$0xff] %v7854_v21  ;;  %v7959_v21 = vpop.permute.xlu1 %1694 }
 0x37a   : > { %11455 = vst [vmem:[#allocation288_spill] sm:$0xff] %v7858_v16  ;;  %v7882_v16 = vmul.f32 %v7261_v5, %v11462_v33 }
 0x37b   : > { %11457 = vst [vmem:[#allocation89_spill] sm:$0xff] %v7862_v3  ;;  %v11465_v3 = vld [vmem:[#allocation92_spill] sm:$0xff] }
 0x37c   : > { %11458 = vst [vmem:[#allocation289_spill] sm:$0xff] %v7866_v32  ;;  %v7886_v11 = vmul.f32 %v7259_v10, %v11465_v3  ;;  %v7890_v32 = vmul.f32 %v7261_v5, %v11465_v3 }
 0x37d   : > { %11460 = vst [vmem:[#allocation90_spill] sm:$0xff] %v7870_v8  ;;  %v11468_v8 = vld [vmem:[#allocation93_spill] sm:$0xff] }
 0x37e   : > { %11461 = vst [vmem:[#allocation290_spill] sm:$0xff] %v7874_v7  ;;  %v7894_v26 = vmul.f32 %v7259_v10, %v11468_v8  ;;  %v7898_v7 = vmul.f32 %v7261_v5, %v11468_v8 }
 0x37f   : > { %11463 = vst [vmem:[#allocation91_spill] sm:$0xff] %v7878_v31  ;;  %v11471_v31 = vld [vmem:[#allocation94_spill] sm:$0xff] }
 0x380   : > { %11464 = vst [vmem:[#allocation291_spill] sm:$0xff] %v7882_v16  ;;  %v7902_v33 = vmul.f32 %v7259_v10, %v11471_v31  ;;  %v7906_v16 = vmul.f32 %v7261_v5, %v11471_v31 }
 0x381   : > { %11466 = vst [vmem:[#allocation92_spill] sm:$0xff] %v7886_v11  ;;  %v11474_v11 = vld [vmem:[#allocation97_spill] sm:$0xff] }
 0x382   : > { %11467 = vst [vmem:[#allocation292_spill] sm:$0xff] %v7890_v32  ;;  %v7910_v3 = vmul.f32 %v7259_v10, %v11474_v11  ;;  %v7914_v32 = vmul.f32 %v7261_v5, %v11474_v11 }
 0x383   : > { %11469 = vst [vmem:[#allocation93_spill] sm:$0xff] %v7894_v26  ;;  %v11477_v26 = vld [vmem:[#allocation98_spill] sm:$0xff] }
 0x384   : > { %11470 = vst [vmem:[#allocation293_spill] sm:$0xff] %v7898_v7  ;;  %v7918_v8 = vmul.f32 %v7259_v10, %v11477_v26  ;;  %v7922_v7 = vmul.f32 %v7261_v5, %v11477_v26 }
 0x385   : > { %11472 = vst [vmem:[#allocation94_spill] sm:$0xff] %v7902_v33  ;;  %v11480_v33 = vld [vmem:[#allocation99_spill] sm:$0xff] }
 0x386   : > { %11473 = vst [vmem:[#allocation294_spill] sm:$0xff] %v7906_v16  ;;  %v7926_v31 = vmul.f32 %v7259_v10, %v11480_v33  ;;  %v7930_v16 = vmul.f32 %v7261_v5, %v11480_v33  ;;  %v11490_v33 = vld [vmem:[#allocation102_spill] sm:$0xff] }
 0x387   : > { %11475 = vst [vmem:[#allocation97_spill] sm:$0xff] %v7910_v3  ;;  %v11483_v3 = vld [vmem:[#allocation100_spill] sm:$0xff] }
 0x388   : > { %11476 = vst [vmem:[#allocation295_spill] sm:$0xff] %v7914_v32  ;;  %v7934_v11 = vmul.f32 %v7259_v10, %v11483_v3  ;;  %v7938_v32 = vmul.f32 %v7261_v5, %v11483_v3  ;;  %v11493_v3 = vld [vmem:[#allocation156_spill] sm:$0xff] }
 0x389   : > { %11478 = vst [vmem:[#allocation98_spill] sm:$0xff] %v7918_v8  ;;  %v11486_v8 = vld [vmem:[#allocation101_spill] sm:$0xff]  ;;  %2380 = vperm.xlu2 %4823, %v11493_v3   ;;  %v7977_v3 = vpop.permute.xlu2 %1734 }
 0x38a   : > { %11479 = vst [vmem:[#allocation296_spill] sm:$0xff] %v7922_v7  ;;  %v7942_v26 = vmul.f32 %v7259_v10, %v11486_v8  ;;  %v11488_v7 = vld [vmem:[#allocation155_spill] sm:$0xff] }
 0x38b   : > { %11481 = vst [vmem:[#allocation99_spill] sm:$0xff] %v7926_v31  ;;  %2376 = vperm.xlu1 %4825, %v11488_v7   ;;  %v7947_v31 = vmul.f32 %v7261_v5, %v11486_v8 }
 0x38c   : > { %11482 = vst [vmem:[#allocation297_spill] sm:$0xff] %v7930_v16  ;;  %v7951_v16 = vmul.f32 %v7259_v10, %v11490_v33 }
 0x38d   : > { %11484 = vst [vmem:[#allocation100_spill] sm:$0xff] %v7934_v11  ;;  %v7955_v11 = vmul.f32 %v7261_v5, %v11490_v33 }
 0x38e   : > { %11485 = vst [vmem:[#allocation298_spill] sm:$0xff] %v7938_v32  ;;  %v11494_v32 = vld [vmem:[#allocation163_spill] sm:$0xff] }
 0x38f   : > { %11487 = vst [vmem:[#allocation101_spill] sm:$0xff] %v7942_v26  ;;  %2396 = vperm.xlu0 %4824, %v11494_v32   ;;  %v11496_v26 = vld [vmem:[#allocation103_spill] sm:$0xff]  ;;  %v7979_v32 = vpop.permute.xlu0 %1702 }
 0x390   : > { %11489 = vst [vmem:[#allocation155_spill] sm:$0xff] %v7947_v31  ;;  %v7963_v7 = vmul.f32 %v7259_v10, %v11496_v26  ;;  %v7967_v8 = vmul.f32 %v7261_v5, %v11496_v26  ;;  %v11499_v31 = vld [vmem:[#allocation104_spill] sm:$0xff] }
 0x391   : > { %11491 = vst [vmem:[#allocation102_spill] sm:$0xff] %v7951_v16  ;;  %v7971_v16 = vmul.f32 %v7259_v10, %v11499_v31  ;;  %v7975_v33 = vmul.f32 %v7261_v5, %v11499_v31 }
 0x392   : > { %11492 = vst [vmem:[#allocation299_spill] sm:$0xff] %v7955_v11 }
 0x393   : > { %11495 = vst [vmem:[#allocation156_spill] sm:$0xff] %v7959_v21  ;;  %v11504_v21 = vld [vmem:[#allocation105_spill] sm:$0xff] }
 0x394   : > { %11497 = vst [vmem:[#allocation163_spill] sm:$0xff] %v7963_v7  ;;  %v7983_v11 = vmul.f32 %v7259_v10, %v11504_v21  ;;  %v7987_v26 = vmul.f32 %v7261_v5, %v11504_v21 }
 0x395   : > { %11498 = vst [vmem:[#allocation103_spill] sm:$0xff] %v7967_v8  ;;  %v11507_v8 = vld [vmem:[#allocation106_spill] sm:$0xff] }
 0x396   : > { %11500 = vst [vmem:[#allocation104_spill] sm:$0xff] %v7971_v16  ;;  %v7991_v7 = vmul.f32 %v7259_v10, %v11507_v8  ;;  %v7995_v31 = vmul.f32 %v7261_v5, %v11507_v8  ;;  %v11513_v16 = vld [vmem:[#allocation108_spill] sm:$0xff] }
 0x397   : > { %11501 = vst [vmem:[#allocation300_spill] sm:$0xff] %v7975_v33  ;;  %v11510_v33 = vld [vmem:[#allocation107_spill] sm:$0xff]  ;;  %v8007_v21 = vmul.f32 %v7259_v10, %v11513_v16 }
 0x398   : > { %11502 = vst [vmem:[#allocation301_spill] sm:$0xff] %v7977_v3  ;;  %v7999_v3 = vmul.f32 %v7259_v10, %v11510_v33 }
 0x399   : > { %11503 = vst [vmem:[#allocation302_spill] sm:$0xff] %v7979_v32  ;;  %v8003_v32 = vmul.f32 %v7261_v5, %v11510_v33 }
 0x39a   : > { %11505 = vst [vmem:[#allocation105_spill] sm:$0xff] %v7983_v11  ;;  %v11546_v11 = vld [vmem:[#allocation162_spill] sm:$0xff] }
 0x39b   : > { %11506 = vst [vmem:[#allocation303_spill] sm:$0xff] %v7987_v26  ;;  %v8011_v26 = vmul.f32 %v7261_v5, %v11513_v16  ;;  %2392 = vperm.xlu2 %4823, %v11546_v11   ;;  %v8110_v11 = vpop.permute.xlu2 %1746 }
 0x39c   : > { %11508 = vst [vmem:[#allocation106_spill] sm:$0xff] %v7991_v7  ;;  %v11516_v7 = vld [vmem:[#allocation110_spill] sm:$0xff] }
 0x39d   : > { %11509 = vst [vmem:[#allocation304_spill] sm:$0xff] %v7995_v31  ;;  %v8015_v8 = vmul.f32 %v7259_v10, %v11516_v7  ;;  %v8019_v31 = vmul.f32 %v7261_v5, %v11516_v7 }
 0x39e   : > { %11511 = vst [vmem:[#allocation107_spill] sm:$0xff] %v7999_v3  ;;  %v11519_v3 = vld [vmem:[#allocation111_spill] sm:$0xff] }
 0x39f   : > { %11512 = vst [vmem:[#allocation305_spill] sm:$0xff] %v8003_v32  ;;  %v8023_v33 = vmul.f32 %v7259_v10, %v11519_v3  ;;  %v8027_v32 = vmul.f32 %v7261_v5, %v11519_v3 }
 0x3a0   : > { %11514 = vst [vmem:[#allocation108_spill] sm:$0xff] %v8007_v21  ;;  %v11522_v21 = vld [vmem:[#allocation112_spill] sm:$0xff] }
 0x3a1   : > { %11515 = vst [vmem:[#allocation306_spill] sm:$0xff] %v8011_v26  ;;  %v8031_v16 = vmul.f32 %v7259_v10, %v11522_v21  ;;  %v8035_v26 = vmul.f32 %v7261_v5, %v11522_v21 }
 0x3a2   : > { %11517 = vst [vmem:[#allocation110_spill] sm:$0xff] %v8015_v8  ;;  %v11525_v8 = vld [vmem:[#allocation116_spill] sm:$0xff] }
 0x3a3   : > { %11518 = vst [vmem:[#allocation307_spill] sm:$0xff] %v8019_v31  ;;  %v8039_v7 = vmul.f32 %v7259_v10, %v11525_v8  ;;  %v8043_v31 = vmul.f32 %v7261_v5, %v11525_v8 }
 0x3a4   : > { %11520 = vst [vmem:[#allocation111_spill] sm:$0xff] %v8023_v33  ;;  %v11528_v33 = vld [vmem:[#allocation117_spill] sm:$0xff] }
 0x3a5   : > { %11521 = vst [vmem:[#allocation308_spill] sm:$0xff] %v8027_v32  ;;  %v8047_v3 = vmul.f32 %v7259_v10, %v11528_v33  ;;  %v8051_v32 = vmul.f32 %v7261_v5, %v11528_v33 }
 0x3a6   : > { %11523 = vst [vmem:[#allocation112_spill] sm:$0xff] %v8031_v16  ;;  %v11531_v16 = vld [vmem:[#allocation118_spill] sm:$0xff] }
 0x3a7   : > { %11524 = vst [vmem:[#allocation309_spill] sm:$0xff] %v8035_v26  ;;  %v8055_v21 = vmul.f32 %v7259_v10, %v11531_v16  ;;  %v8059_v26 = vmul.f32 %v7261_v5, %v11531_v16  ;;  %v11541_v16 = vld [vmem:[#allocation124_spill] sm:$0xff] }
 0x3a8   : > { %11526 = vst [vmem:[#allocation116_spill] sm:$0xff] %v8039_v7  ;;  %v11534_v7 = vld [vmem:[#allocation122_spill] sm:$0xff] }
 0x3a9   : > { %11527 = vst [vmem:[#allocation310_spill] sm:$0xff] %v8043_v31  ;;  %v8063_v8 = vmul.f32 %v7259_v10, %v11534_v7  ;;  %v8067_v31 = vmul.f32 %v7261_v5, %v11534_v7  ;;  %v11544_v7 = vld [vmem:[#allocation128_spill] sm:$0xff] }
 0x3aa   : > { %11529 = vst [vmem:[#allocation117_spill] sm:$0xff] %v8047_v3  ;;  %v11537_v3 = vld [vmem:[#allocation123_spill] sm:$0xff] }
 0x3ab   : > { %11530 = vst [vmem:[#allocation311_spill] sm:$0xff] %v8051_v32  ;;  %v8071_v33 = vmul.f32 %v7259_v10, %v11537_v3  ;;  %v8075_v32 = vmul.f32 %v7261_v5, %v11537_v3  ;;  %v8092_v3 = vpop.permute.xlu1 %1706 }
 0x3ac   : > { %11532 = vst [vmem:[#allocation118_spill] sm:$0xff] %v8055_v21  ;;  %v11540_v21 = vld [vmem:[#allocation161_spill] sm:$0xff] }
 0x3ad   : > { %11533 = vst [vmem:[#allocation312_spill] sm:$0xff] %v8059_v26  ;;  %2388 = vperm.xlu1 %4825, %v11540_v21   ;;  %v8080_v26 = vmul.f32 %v7259_v10, %v11541_v16  ;;  %v8096_v21 = vmul.f32 %v7261_v5, %v11544_v7 }
 0x3ae   : > { %11535 = vst [vmem:[#allocation122_spill] sm:$0xff] %v8063_v8  ;;  %v8084_v8 = vmul.f32 %v7261_v5, %v11541_v16 }
 0x3af   : > { %11536 = vst [vmem:[#allocation313_spill] sm:$0xff] %v8067_v31  ;;  %v8088_v31 = vmul.f32 %v7259_v10, %v11544_v7 }
 0x3b0   : > { %11538 = vst [vmem:[#allocation123_spill] sm:$0xff] %v8071_v33  ;;  %v11547_v33 = vld [vmem:[#allocation169_spill] sm:$0xff] }
 0x3b1   : > { %11539 = vst [vmem:[#allocation314_spill] sm:$0xff] %v8075_v32  ;;  %2408 = vperm.xlu0 %4824, %v11547_v33   ;;  %v11550_v32 = vld [vmem:[#allocation129_spill] sm:$0xff]  ;;  %v8112_v33 = vpop.permute.xlu0 %1714 }
 0x3b2   : > { %11542 = vst [vmem:[#allocation161_spill] sm:$0xff] %v8080_v26  ;;  %v8100_v26 = vmul.f32 %v7259_v10, %v11550_v32  ;;  %v8104_v16 = vmul.f32 %v7261_v5, %v11550_v32 }
 0x3b3   : > { %11543 = vst [vmem:[#allocation124_spill] sm:$0xff] %v8084_v8  ;;  %v11553_v8 = vld [vmem:[#allocation130_spill] sm:$0xff]  ;;  %v8219_v62 = vpop.permute.xlu1 %1718 }
 0x3b4   : > { %11545 = vst [vmem:[#allocation128_spill] sm:$0xff] %v8088_v31  ;;  %v8108_v31 = vmul.f32 %v7259_v10, %v11553_v8  ;;  %v8116_v7 = vmul.f32 %v7261_v5, %v11553_v8 }
 0x3b5   : > { %11548 = vst [vmem:[#allocation162_spill] sm:$0xff] %v8092_v3  ;;  %v11558_v3 = vld [vmem:[#allocation134_spill] sm:$0xff] }
 0x3b6   : > { %11549 = vst [vmem:[#allocation169_spill] sm:$0xff] %v8096_v21  ;;  %v8120_v21 = vmul.f32 %v7259_v10, %v11558_v3  ;;  %v8124_v32 = vmul.f32 %v7261_v5, %v11558_v3 }
 0x3b7   : > { %11551 = vst [vmem:[#allocation129_spill] sm:$0xff] %v8100_v26 }
 0x3b8   : > { %11552 = vst [vmem:[#allocation315_spill] sm:$0xff] %v8104_v16  ;;  %v11561_v16 = vld [vmem:[#allocation135_spill] sm:$0xff] }
 0x3b9   : > { %11554 = vst [vmem:[#allocation130_spill] sm:$0xff] %v8108_v31  ;;  %v8128_v26 = vmul.f32 %v7259_v10, %v11561_v16 }
 0x3ba   : > { %11555 = vst [vmem:[#allocation316_spill] sm:$0xff] %v8110_v11  ;;  %v8132_v11 = vmul.f32 %v7261_v5, %v11561_v16 }
 0x3bb   : > { %11556 = vst [vmem:[#allocation317_spill] sm:$0xff] %v8112_v33  ;;  %v11564_v33 = vld [vmem:[#allocation136_spill] sm:$0xff] }
 0x3bc   : > { %11557 = vst [vmem:[#allocation318_spill] sm:$0xff] %v8116_v7  ;;  %v8136_v8 = vmul.f32 %v7259_v10, %v11564_v33  ;;  %v8140_v7 = vmul.f32 %v7261_v5, %v11564_v33 }
 0x3bd   : > { %11559 = vst [vmem:[#allocation134_spill] sm:$0xff] %v8120_v21  ;;  %v11567_v21 = vld [vmem:[#allocation140_spill] sm:$0xff] }
 0x3be   : > { %11560 = vst [vmem:[#allocation319_spill] sm:$0xff] %v8124_v32  ;;  %v8144_v3 = vmul.f32 %v7259_v10, %v11567_v21  ;;  %v8148_v32 = vmul.f32 %v7261_v5, %v11567_v21 }
 0x3bf   : > { %11562 = vst [vmem:[#allocation135_spill] sm:$0xff] %v8128_v26  ;;  %v11570_v26 = vld [vmem:[#allocation141_spill] sm:$0xff] }
 0x3c0   : > { %11563 = vst [vmem:[#allocation320_spill] sm:$0xff] %v8132_v11  ;;  %v8152_v16 = vmul.f32 %v7259_v10, %v11570_v26  ;;  %v8156_v11 = vmul.f32 %v7261_v5, %v11570_v26 }
 0x3c1   : > { %11565 = vst [vmem:[#allocation136_spill] sm:$0xff] %v8136_v8  ;;  %v11573_v8 = vld [vmem:[#allocation142_spill] sm:$0xff] }
 0x3c2   : > { %11566 = vst [vmem:[#allocation321_spill] sm:$0xff] %v8140_v7  ;;  %v8160_v33 = vmul.f32 %v7259_v10, %v11573_v8  ;;  %v8164_v7 = vmul.f32 %v7261_v5, %v11573_v8 }
 0x3c3   : > { %11568 = vst [vmem:[#allocation140_spill] sm:$0xff] %v8144_v3  ;;  %v11576_v3 = vld [vmem:[#allocation146_spill] sm:$0xff] }
 0x3c4   : > { %11569 = vst [vmem:[#allocation322_spill] sm:$0xff] %v8148_v32  ;;  %v8168_v21 = vmul.f32 %v7259_v10, %v11576_v3  ;;  %v1769_v32 = vperm.slane %v7246_v50, 1  ;;  %v8174_v26 = vmul.f32 %v7261_v5, %v11576_v3  ;;  %v8194_v3 = vmul.f32 %v7259_v10, %v11585_v40 }
 0x3c5   : > { %11571 = vst [vmem:[#allocation141_spill] sm:$0xff] %v8152_v16  ;;  %v1770_v16 = vperm.slane %v7246_v50, 5 }
 0x3c6   : > { %11572 = vst [vmem:[#allocation323_spill] sm:$0xff] %v8156_v11  ;;  %v11579_v11 = vld [vmem:[#allocation147_spill] sm:$0xff] }
 0x3c7   : > { %11574 = vst [vmem:[#allocation142_spill] sm:$0xff] %v8160_v33  ;;  %v8178_v31 = vmul.f32 %v7259_v10, %v11579_v11  ;;  %v8182_v8 = vmul.f32 %v7261_v5, %v11579_v11 }
 0x3c8   : > { %11575 = vst [vmem:[#allocation324_spill] sm:$0xff] %v8164_v7  ;;  %v11582_v7 = vld [vmem:[#allocation148_spill] sm:$0xff] }
 0x3c9   : > { %11577 = vst [vmem:[#allocation146_spill] sm:$0xff] %v8168_v21  ;;  %v8186_v33 = vmul.f32 %v7259_v10, %v11582_v7  ;;  %v8190_v21 = vmul.f32 %v7261_v5, %v11582_v7  ;;  %v11592_v7 = vld [vmem:[#allocation154_spill] sm:$0xff] }
 0x3ca   : > { %11578 = vst [vmem:[#allocation325_spill] sm:$0xff] %v8174_v26  ;;  %v8198_v26 = vmul.f32 %v7261_v5, %v11585_v40  ;;  %v11595_v40 = vld [vmem:[#allocation168_spill] sm:$0xff] }
 0x3cb   : > { %11580 = vst [vmem:[#allocation147_spill] sm:$0xff] %v8178_v31  ;;  %v11588_v31 = vld [vmem:[#allocation153_spill] sm:$0xff]  ;;  %2404 = vperm.xlu2 %4823, %v11595_v40   ;;  %v11603_v40 = vld [vmem:[#allocation159_spill] sm:$0xff] }
 0x3cc   : > { %11581 = vst [vmem:[#allocation326_spill] sm:$0xff] %v8182_v8  ;;  %v8202_v11 = vmul.f32 %v7259_v10, %v11588_v31  ;;  %v11590_v8 = vld [vmem:[#allocation167_spill] sm:$0xff] }
 0x3cd   : > { %11583 = vst [vmem:[#allocation148_spill] sm:$0xff] %v8186_v33  ;;  %2400 = vperm.xlu1 %4825, %v11590_v8   ;;  %v8207_v33 = vmul.f32 %v7261_v5, %v11588_v31 }
 0x3ce   : > { %11584 = vst [vmem:[#allocation327_spill] sm:$0xff] %v8190_v21  ;;  %v8211_v21 = vmul.f32 %v7259_v10, %v11592_v7 }
 0x3cf   : > { %11586 = vst [vmem:[#allocation152_spill] sm:$0xff] %v8194_v3  ;;  %v8215_v3 = vmul.f32 %v7261_v5, %v11592_v7  ;;  %v8233_v7 = vpop.permute.xlu2 %1758 }
 0x3d0   : > { %11587 = vst [vmem:[#allocation328_spill] sm:$0xff] %v8198_v26  ;;  %v11596_v26 = vld [vmem:[#allocation173_spill] sm:$0xff] }
 0x3d1   : > { %11589 = vst [vmem:[#allocation153_spill] sm:$0xff] %v8202_v11  ;;  %2420 = vperm.xlu0 %4824, %v11596_v26   ;;  %v11598_v11 = vld [vmem:[#allocation158_spill] sm:$0xff]  ;;  %v8239_v26 = vmul.f32 %v7259_v10, %v11603_v40 }
 0x3d2   : > { %11591 = vst [vmem:[#allocation167_spill] sm:$0xff] %v8207_v33  ;;  %v8223_v8 = vmul.f32 %v7259_v10, %v11598_v11  ;;  %v8227_v31 = vmul.f32 %v7261_v5, %v11598_v11  ;;  %v8229_v33 = vperm.slane %v1769_v32, 1 }
 0x3d3   : > { %11593 = vst [vmem:[#allocation154_spill] sm:$0xff] %v8211_v21  ;;  %v8231_v21 = vperm.slane %v1770_v16, 1  ;;  %v11609_v16 = vld [vmem:[#allocation164_spill] sm:$0xff]  ;;  %2416 = vperm.xlu2 %4823, %v4888_v29  }
 0x3d4   : > { %11594 = vst [vmem:[#allocation329_spill] sm:$0xff] %v8215_v3  ;;  %v8235_v3 = vpop.permute.xlu0 %1726 }
 0x3d5   : > { %11597 = vst [vmem:[#allocation168_spill] sm:$0xff] %v8219_v62  ;;  %v8243_v62 = vmul.f32 %v7261_v5, %v11603_v40  ;;  %v2800_v40 = vperm.slane %v7246_v50, 6  ;;  %2412 = vperm.xlu1 %4825, %v4887_v39   ;;  %v353_v39 = vld [vmem:[#allocation4] sm:$0x3] }
 0x3d6   : > { %11599 = vst [vmem:[#allocation173_spill] sm:$0xff] %v8223_v8  ;;  %v11606_v8 = vld [vmem:[#allocation160_spill] sm:$0xff] }
 0x3d7   : > { %11600 = vst [vmem:[#allocation158_spill] sm:$0xff] %v8227_v31  ;;  %v8247_v11 = vmul.f32 %v7259_v10, %v11606_v8  ;;  %v8251_v32 = vmul.f32 %v7261_v5, %v11606_v8  ;;  %v2799_v31 = vperm.slane %v7246_v50, 2 }
 0x3d8   : > { %11601 = vst [vmem:[#allocation330_spill] sm:$0xff] %v8233_v7  ;;  %v8255_v7 = vmul.f32 %v7259_v10, %v11609_v16 }
 0x3d9   : > { %11602 = vst [vmem:[#allocation331_spill] sm:$0xff] %v8235_v3  ;;  %v8259_v3 = vmul.f32 %v7261_v5, %v11609_v16 }
 0x3da   : > { %11604 = vst [vmem:[#allocation159_spill] sm:$0xff] %v8239_v26 }
 0x3db   : > { %11605 = vst [vmem:[#allocation332_spill] sm:$0xff] %v8243_v62  ;;  %v11612_v62 = vld [vmem:[#allocation165_spill] sm:$0xff] }
 0x3dc   : > { %11607 = vst [vmem:[#allocation160_spill] sm:$0xff] %v8247_v11  ;;  %v8265_v26 = vmul.f32 %v7259_v10, %v11612_v62  ;;  %v8269_v8 = vmul.f32 %v7261_v5, %v11612_v62 }
 0x3dd   : > { %11608 = vst [vmem:[#allocation333_spill] sm:$0xff] %v8251_v32  ;;  %v11615_v32 = vld [vmem:[#allocation166_spill] sm:$0xff] }
 0x3de   : > { %11610 = vst [vmem:[#allocation164_spill] sm:$0xff] %v8255_v7  ;;  %v8273_v7 = vmul.f32 %v7259_v10, %v11615_v32  ;;  %v8277_v16 = vmul.f32 %v7261_v5, %v11615_v32 }
 0x3df   : > { %11611 = vst [vmem:[#allocation334_spill] sm:$0xff] %v8259_v3  ;;  %v11618_v3 = vld [vmem:[#allocation170_spill] sm:$0xff] }
 0x3e0   : > { %11613 = vst [vmem:[#allocation165_spill] sm:$0xff] %v8265_v26  ;;  %v8281_v11 = vmul.f32 %v7259_v10, %v11618_v3  ;;  %v8285_v50 = vmul.f32 %v7261_v5, %v11618_v3  ;;  %v11621_v26 = vld [vmem:[#allocation176_spill] sm:$0xff] }
 0x3e1   : > { %11614 = vst [vmem:[#allocation335_spill] sm:$0xff] %v8269_v8  ;;  %v1775_v62 = vmul.f32 %v8229_v33, %v11621_v26  ;;  %v1776_v8 = vmul.f32 %v8231_v21, %v11621_v26  ;;  %v8309_v26 = vmul.f32 %v7261_v5, %v11626_v15  ;;  %v4889_v15 = vld [vmem:[%s5302_s14 + $0x120] sm:$0xff] }
 0x3e2   : > { %11616 = vst [vmem:[#allocation166_spill] sm:$0xff] %v8273_v7  ;;  %v11622_v7 = vld [vmem:[#allocation171_spill] sm:$0xff]  ;;  %2432 = vperm.xlu0 %4824, %v4889_v15  }
 0x3e3   : > { %11617 = vst [vmem:[#allocation336_spill] sm:$0xff] %v8277_v16  ;;  %v8293_v32 = vmul.f32 %v7259_v10, %v11622_v7  ;;  %v8297_v16 = vmul.f32 %v7261_v5, %v11622_v7  ;;  %v8314_v7 = vperm.slane %v2800_v40, 2  ;;  %v2031_v40 = vadd.f32 %v1775_v62, %v7310_v47 }
 0x3e4   : > { %11619 = vst [vmem:[#allocation170_spill] sm:$0xff] %v8281_v11  ;;  %v11625_v11 = vld [vmem:[#allocation179_spill] sm:$0xff]  ;;  %v8346_v47 = vperm.slane %v353_v39, 0 }
 0x3e5   : > { %11620 = vst [vmem:[#allocation337_spill] sm:$0xff] %v8285_v50  ;;  %v1781_v3 = vmul.f32 %v8229_v33, %v11625_v11  ;;  %v1782_v50 = vmul.f32 %v8231_v21, %v11625_v11  ;;  %v1785_v11 = vmul.f32 %v8229_v33, %v11631_v2 }
 0x3e6   : > { %11623 = vst [vmem:[#allocation176_spill] sm:$0xff] %v8293_v32  ;;  %v8312_v32 = vperm.slane %v2799_v31, 2 }
 0x3e7   : > { %11624 = vst [vmem:[#allocation171_spill] sm:$0xff] %v8297_v16  ;;  %v11629_v16 = vld [vmem:[#allocation175_spill] sm:$0xff]  ;;  %v2037_v29 = vadd.f32 %v1781_v3, %v7330_v48  ;;  %v2038_v15 = vadd.f32 %v1782_v50, %v7334_v36  ;;  %v11638_v36 = vld [vmem:[#allocation186_spill] sm:$0xff] }
 0x3e8   : > { %11627 = vst [vmem:[#allocation179_spill] sm:$0xff] %v8305_v63  ;;  %v8318_v37 = vmul.f32 %v7259_v10, %v11629_v16  ;;  %v1786_v63 = vmul.f32 %v8231_v21, %v11631_v2  ;;  %v8330_v31 = vmul.f32 %v7261_v5, %v11629_v16  ;;  %v8338_v2 = vpop.permute.xlu0 %1738  ;;  %v2289_v5 = vpop.permute.xlu2 %2288  ;;  %v8353_v10 = vadd.f32 %v1785_v11, %v7273_v27 }
 0x3e9   : > { %11628 = vst [vmem:[#allocation172_spill] sm:$0xff] %v8309_v26  ;;  %v8326_v26 = vpop.permute.xlu1 %1730  ;;  %v2806_v62 = vmul.f32 %v8314_v7, %v2289_v5  ;;  %v1779_v50 = vmul.f32 %v8229_v33, %v11638_v36  ;;  %v1780_v3 = vmul.f32 %v8231_v21, %v11638_v36 }
 0x3ea   : > { %11630 = vst [vmem:[#allocation175_spill] sm:$0xff] %v8318_v37  ;;  %v2032_v37 = vadd.f32 %v1776_v8, %v7318_v4  ;;  %v8348_v4 = vperm.slane %v353_v39, 1  ;;  %v2805_v8 = vmul.f32 %v8312_v32, %v2289_v5  ;;  %v8356_v48 = vadd.f32 %v1786_v63, %v7277_v38  ;;  %v11640_v38 = vld [vmem:[#allocation188_spill] sm:$0xff] }
 0x3eb   : > { %11632 = vst [vmem:[#allocation182_spill] sm:$0xff] %v8326_v26  ;;  %v11637_v26 = vld [vmem:[#allocation185_spill] sm:$0xff]  ;;  %v1777_v9 = vmul.f32 %v8229_v33, %v11640_v38  ;;  %v1778_v36 = vmul.f32 %v8231_v21, %v11640_v38  ;;  %v4892_v38 = vld [vmem:[%s5302_s14 + $0x138] sm:$0xff] }
 0x3ec   : > { %11633 = vst [vmem:[#allocation338_spill] sm:$0xff] %v8330_v31  ;;  %v1791_v25 = vmul.f32 %v8229_v33, %v11637_v26  ;;  %v1792_v16 = vmul.f32 %v8231_v21, %v11637_v26  ;;  %v11639_v26 = vld [vmem:[#allocation187_spill] sm:$0xff]  ;;  %v3061_v5 = vadd.f32 %v2805_v8, %v2031_v40  ;;  %v3062_v27 = vadd.f32 %v2806_v62, %v2032_v37 }
 0x3ed   : > { %11635 = vst [vmem:[#allocation339_spill] sm:$0xff] %v8336_v30  ;;  %v1797_v39 = vmul.f32 %v8229_v33, %v11639_v26  ;;  %v1798_v30 = vmul.f32 %v8231_v21, %v11639_v26  ;;  %v4891_v26 = vld [vmem:[%s5302_s14 + $0x118] sm:$0xff]  ;;  %2444 = vperm.xlu0 %4824, %v4892_v38  }
 0x3ee   : > { %11636 = vst [vmem:[#allocation340_spill] sm:$0xff] %v8338_v2  ;;  %v8367_v11 = vadd.f32 %v1791_v25, %v7282_v20  ;;  %v8370_v63 = vadd.f32 %v1792_v16, %v7286_v56  ;;  %v11641_v2 = vld [vmem:[#allocation189_spill] sm:$0xff]  ;;  %v3322_v37 = vadd.f32 %v8346_v47, %v3061_v5  ;;  %v3323_v25 = vadd.f32 %v8348_v4, %v3062_v27  ;;  %v11642_v16 = vld [vmem:[#allocation190_spill] sm:$0xff]  ;;  %v11644_v38 = vld [vmem:[#allocation191_spill] sm:$0xff] }
 0x3ef   : > { %v1783_v31 = vmul.f32 %v8229_v33, %v11641_v2  ;;  %v1784_v40 = vmul.f32 %v8231_v21, %v11641_v2  ;;  %v4890_v20 = vld [vmem:[%s5302_s14 + $0x110] sm:$0xff]  ;;  %v8384_v56 = vadd.f32 %v1779_v50, %v7302_v35  ;;  %v1803_v8 = vmul.f32 %v8229_v33, %v11642_v16  ;;  %2428 = vperm.xlu2 %4823, %v4891_v26  }
 0x3f0   : > { %2424 = vperm.xlu1 %4825, %v4890_v20   ;;  %v1804_v62 = vmul.f32 %v8231_v21, %v11642_v16  ;;  %v8395_v5 = vadd.f32 %v1780_v3, %v7306_v60  ;;  %v8398_v27 = vadd.f32 %v1797_v39, %v7290_v58  ;;  %v8401_v35 = vadd.f32 %v1798_v30, %v7298_v22  ;;  %v8403_v20 = vpop.permute.xlu0 %1750  ;;  %v2301_v58 = vpop.permute.xlu2 %2300  ;;  %v11645_v39 = vld [vmem:[#allocation192_spill] sm:$0xff] }
 0x3f1   : > { %v8392_v2 = vpop.permute.xlu1 %1742  ;;  %v3578_v50 = vpack.c.bf16 %v3323_v25, %v3322_v37  ;;  %v8406_v16 = vadd.f32 %v1777_v9, %v7338_v55  ;;  %v8409_v26 = vadd.f32 %v1778_v36, %v7342_v13  ;;  %v1788_v60 = vmul.f32 %v8231_v21, %v11644_v38 }
 0x3f2   : > { %11643 = vst [vmem:[#allocation185_spill] sm:$0xff] %v8392_v2  ;;  %v1787_v2 = vmul.f32 %v8229_v33, %v11644_v38  ;;  %v8416_v3 = vadd.f32 %v1783_v31, %v7265_v12  ;;  %v8419_v22 = vadd.f32 %v1784_v40, %v7269_v19  ;;  %v2811_v9 = vmul.f32 %v8312_v32, %v2301_v58  ;;  %v11646_v19 = vld [vmem:[#allocation193_spill] sm:$0xff]  ;;  %v11648_v38 = vld [vmem:[#allocation195_spill] sm:$0xff] }
 0x3f3   : > { %3706 = vst [vmem:[%s5291_s9] sm:$0xff] %v3578_v50  ;;  %v2812_v55 = vmul.f32 %v8314_v7, %v2301_v58  ;;  %v8425_v13 = vadd.f32 %v1803_v8, %v7322_v41  ;;  %v8428_v30 = vadd.f32 %v1804_v62, %v7326_v28  ;;  %v1789_v36 = vmul.f32 %v8229_v33, %v11645_v39  ;;  %v11647_v8 = vld [vmem:[#allocation194_spill] sm:$0xff] }
 0x3f4   : > { %v1790_v12 = vmul.f32 %v8231_v21, %v11645_v39  ;;  %v1809_v31 = vmul.f32 %v8229_v33, %v11646_v19  ;;  %v1810_v40 = vmul.f32 %v8231_v21, %v11646_v19  ;;  %v3067_v37 = vadd.f32 %v2811_v9, %v2037_v29  ;;  %v4894_v39 = vld [vmem:[%s5302_s14 + $0x130] sm:$0xff] }
 0x3f5   : > { %v3068_v41 = vadd.f32 %v2812_v55, %v2038_v15  ;;  %v8439_v25 = vadd.f32 %v1787_v2, %v7362_v45  ;;  %v8442_v28 = vadd.f32 %v1788_v60, %v7366_v44  ;;  %v1793_v62 = vmul.f32 %v8229_v33, %v11647_v8  ;;  %v4893_v2 = vld [vmem:[%s5302_s14 + $0x128] sm:$0xff]  ;;  %v4895_v19 = vld [vmem:[%s5302_s14 + $0x150] sm:$0xff] }
 0x3f6   : > { %v1794_v50 = vmul.f32 %v8231_v21, %v11647_v8  ;;  %v1795_v58 = vmul.f32 %v8229_v33, %v11648_v38  ;;  %v1796_v29 = vmul.f32 %v8231_v21, %v11648_v38  ;;  %v3328_v15 = vadd.f32 %v8346_v47, %v3067_v37  ;;  %v11649_v60 = vld [vmem:[#allocation196_spill] sm:$0xff]  ;;  %2456 = vperm.xlu0 %4824, %v4895_v19  }
 0x3f7   : > { %v3329_v45 = vadd.f32 %v8348_v4, %v3068_v41  ;;  %v8456_v44 = vadd.f32 %v1789_v36, %v7354_v34  ;;  %v1815_v9 = vmul.f32 %v8229_v33, %v11649_v60  ;;  %v1816_v55 = vmul.f32 %v8231_v21, %v11649_v60  ;;  %2440 = vperm.xlu2 %4823, %v4894_v39   ;;  %v11652_v39 = vld [vmem:[#allocation197_spill] sm:$0xff] }
 0x3f8   : > { %2436 = vperm.xlu1 %4825, %v4893_v2   ;;  %v8467_v37 = vadd.f32 %v1790_v12, %v7358_v53  ;;  %v8470_v41 = vadd.f32 %v1809_v31, %v7346_v46  ;;  %v8473_v34 = vadd.f32 %v1810_v40, %v7350_v0  ;;  %v8475_v38 = vpop.permute.xlu0 %1762  ;;  %v8478_v2 = vadd.f32 %v1793_v62, %v7386_v14  ;;  %v2309_v46 = vpop.permute.xlu2 %2308 }
 0x3f9   : > { %v8464_v8 = vpop.permute.xlu1 %1754  ;;  %v3581_v36 = vpack.c.bf16 %v3329_v45, %v3328_v15  ;;  %11651 = vst [vmem:[#allocation187_spill] sm:$0xff] %v8475_v38  ;;  %v8481_v60 = vadd.f32 %v1794_v50, %v7390_v54  ;;  %v1799_v19 = vmul.f32 %v8229_v33, %v11652_v39  ;;  %v1800_v53 = vmul.f32 %v8231_v21, %v11652_v39  ;;  %v11653_v15 = vld [vmem:[#allocation198_spill] sm:$0xff]  ;;  %v4897_v39 = vld [vmem:[%s5302_s14 + $0x148] sm:$0xff] }
 0x3fa   : > { %11650 = vst [vmem:[#allocation186_spill] sm:$0xff] %v8464_v8  ;;  %v8488_v12 = vadd.f32 %v1795_v58, %v7378_v24  ;;  %v8491_v0 = vadd.f32 %v1796_v29, %v7382_v23  ;;  %v2815_v14 = vmul.f32 %v8312_v32, %v2309_v46  ;;  %v2816_v31 = vmul.f32 %v8314_v7, %v2309_v46 }
 0x3fb   : > { %3709 = vst [vmem:[%s5291_s9 + $0x24] sm:$0xff] %v3581_v36  ;;  %v8497_v54 = vadd.f32 %v1815_v9, %v7370_v49  ;;  %v8500_v40 = vadd.f32 %v1816_v55, %v7374_v17  ;;  %v1801_v62 = vmul.f32 %v8229_v33, %v7015_v59  ;;  %v1802_v24 = vmul.f32 %v8231_v21, %v7015_v59  ;;  %v4896_v9 = vld [vmem:[%s5302_s14 + $0x140] sm:$0xff] }
 0x3fc   : > { %v1821_v23 = vmul.f32 %v8229_v33, %v7017_v42  ;;  %v1822_v50 = vmul.f32 %v8231_v21, %v7017_v42  ;;  %v3071_v49 = vadd.f32 %v2815_v14, %v8353_v10  ;;  %v3072_v58 = vadd.f32 %v2816_v31, %v8356_v48  ;;  %v11655_v31 = vld [vmem:[#allocation14_spill] sm:$0xff] }
 0x3fd   : > { %v8513_v17 = vadd.f32 %v1799_v19, %v7410_v1  ;;  %v8516_v29 = vadd.f32 %v1800_v53, %v7415_v57  ;;  %v1805_v59 = vmul.f32 %v8229_v33, %v11653_v15  ;;  %v1806_v45 = vmul.f32 %v8231_v21, %v11653_v15  ;;  %v4898_v19 = vld [vmem:[%s5302_s14 + $0x168] sm:$0xff] }
 0x3fe   : > { %v1807_v42 = vmul.f32 %v8229_v33, %v7024_v51  ;;  %v1808_v10 = vmul.f32 %v8231_v21, %v7024_v51  ;;  %v3332_v48 = vadd.f32 %v8346_v47, %v3071_v49  ;;  %v3333_v1 = vadd.f32 %v8348_v4, %v3072_v58  ;;  %2468 = vperm.xlu0 %4824, %v4898_v19   ;;  %v11657_v58 = vld [vmem:[#allocation199_spill] sm:$0xff] }
 0x3ff   : > { %v8530_v57 = vadd.f32 %v1801_v62, %v7402_v18  ;;  %v1827_v55 = vmul.f32 %v8229_v33, %v7026_v52  ;;  %v1828_v36 = vmul.f32 %v8231_v21, %v7026_v52  ;;  %2452 = vperm.xlu2 %4823, %v4897_v39   ;;  %v8541_v53 = vadd.f32 %v1802_v24, %v7406_v43  ;;  %v11656_v52 = vld [vmem:[#allocation15_spill] sm:$0xff]  ;;  %v11661_v39 = vld [vmem:[#allocation12_spill] sm:$0xff] }
 0x400   : > { %2448 = vperm.xlu1 %4825, %v4896_v9   ;;  %v8544_v46 = vadd.f32 %v1821_v23, %v7394_v61  ;;  %v8547_v18 = vadd.f32 %v1822_v50, %v7398_v6  ;;  %v3583_v14 = vpack.c.bf16 %v3333_v1, %v3332_v48  ;;  %v8550_v62 = vadd.f32 %v1805_v59, %v11655_v31  ;;  %v2321_v24 = vpop.permute.xlu2 %2320  ;;  %v2293_v9 = vpop.permute.xlu0 %2292  ;;  %v11658_v61 = vld [vmem:[#allocation133_spill] sm:$0xff]  ;;  %v11660_v48 = vld [vmem:[#allocation11_spill] sm:$0xff] }
 0x401   : > { %v8538_v51 = vpop.permute.xlu1 %1766  ;;  %v8553_v49 = vadd.f32 %v1806_v45, %v11656_v52  ;;  %v1811_v15 = vmul.f32 %v8229_v33, %v11657_v58  ;;  %v1812_v43 = vmul.f32 %v8231_v21, %v11657_v58  ;;  %v8560_v23 = vadd.f32 %v1807_v42, %v11658_v61  ;;  %v11659_v6 = vld [vmem:[#allocation13_spill] sm:$0xff]  ;;  %v11662_v52 = vld [vmem:[#allocation200_spill] sm:$0xff] }
 0x402   : > { %11654 = vst [vmem:[#allocation188_spill] sm:$0xff] %v8538_v51  ;;  %v8563_v50 = vadd.f32 %v1808_v10, %v11659_v6  ;;  %v2821_v59 = vmul.f32 %v8312_v32, %v2321_v24  ;;  %v2822_v45 = vmul.f32 %v8314_v7, %v2321_v24  ;;  %v8569_v1 = vadd.f32 %v1827_v55, %v11660_v48  ;;  %v11663_v24 = vld [vmem:[#allocation22_spill] sm:$0xff] }
 0x403   : > { %3711 = vst [vmem:[%s5291_s9 + $0x3c] sm:$0xff] %v3583_v14  ;;  %v8572_v19 = vadd.f32 %v1828_v36, %v11661_v39  ;;  %v2807_v31 = vmul.f32 %v8312_v32, %v2293_v9  ;;  %v2808_v42 = vmul.f32 %v8314_v7, %v2293_v9  ;;  %v1813_v10 = vmul.f32 %v8229_v33, %v11662_v52  ;;  %v11664_v36 = vld [vmem:[#allocation201_spill] sm:$0xff]  ;;  %v11665_v39 = vld [vmem:[#allocation23_spill] sm:$0xff] }
 0x404   : > { %v1814_v14 = vmul.f32 %v8231_v21, %v11662_v52  ;;  %v3077_v58 = vadd.f32 %v2821_v59, %v8367_v11  ;;  %v3078_v55 = vadd.f32 %v2822_v45, %v8370_v63  ;;  %v8583_v61 = vadd.f32 %v1811_v15, %v11663_v24  ;;  %v4899_v59 = vld [vmem:[%s5302_s14 + $0x158] sm:$0xff] }
 0x405   : > { %v1833_v6 = vmul.f32 %v8229_v33, %v11664_v36  ;;  %v3063_v9 = vadd.f32 %v2807_v31, %v8406_v16  ;;  %v3064_v48 = vadd.f32 %v2808_v42, %v8409_v26  ;;  %v8590_v51 = vadd.f32 %v1812_v43, %v11665_v39  ;;  %v11666_v15 = vld [vmem:[#allocation202_spill] sm:$0xff]  ;;  %v4900_v26 = vld [vmem:[%s5302_s14 + $0x160] sm:$0xff] }
 0x406   : > { %v1834_v52 = vmul.f32 %v8231_v21, %v11664_v36  ;;  %v3338_v11 = vadd.f32 %v8346_v47, %v3077_v58  ;;  %v3339_v63 = vadd.f32 %v8348_v4, %v3078_v55  ;;  %v1817_v45 = vmul.f32 %v8229_v33, %v11666_v15  ;;  %v4901_v43 = vld [vmem:[%s5302_s14 + $0x180] sm:$0xff]  ;;  %v11668_v58 = vld [vmem:[#allocation21_spill] sm:$0xff] }
 0x407   : > { %v3324_v24 = vadd.f32 %v8346_v47, %v3063_v9  ;;  %v3325_v16 = vadd.f32 %v8348_v4, %v3064_v48  ;;  %2464 = vperm.xlu2 %4823, %v4900_v26   ;;  %2480 = vperm.xlu0 %4824, %v4901_v43   ;;  %v11667_v31 = vld [vmem:[#allocation20_spill] sm:$0xff]  ;;  %v8607_v36 = vadd.f32 %v1814_v14, %v11668_v58  ;;  %v11669_v9 = vld [vmem:[#allocation18_spill] sm:$0xff] }
 0x408   : > { %2460 = vperm.xlu1 %4825, %v4899_v59   ;;  %v8604_v42 = vadd.f32 %v1813_v10, %v11667_v31  ;;  %v1818_v55 = vmul.f32 %v8231_v21, %v11666_v15  ;;  %v3586_v39 = vpack.c.bf16 %v3339_v63, %v3338_v11  ;;  %v8612_v8 = vadd.f32 %v1833_v6, %v11669_v9  ;;  %v2333_v38 = vpop.permute.xlu2 %2332  ;;  %v2313_v10 = vpop.permute.xlu0 %2312  ;;  %v11670_v63 = vld [vmem:[#allocation19_spill] sm:$0xff] }
 0x409   : > { %v2297_v59 = vpop.permute.xlu1 %2296  ;;  %v3579_v48 = vpack.c.bf16 %v3325_v16, %v3324_v24  ;;  %v2827_v14 = vmul.f32 %v8312_v32, %v2333_v38  ;;  %v2828_v31 = vmul.f32 %v8314_v7, %v2333_v38  ;;  %v2817_v15 = vmul.f32 %v8312_v32, %v2313_v10  ;;  %v11671_v6 = vld [vmem:[#allocation27_spill] sm:$0xff] }
 0x40a   : > { %v2809_v26 = vmul.f32 %v8312_v32, %v2297_v59  ;;  %v2810_v43 = vmul.f32 %v8314_v7, %v2297_v59  ;;  %3714 = vst [vmem:[%s5291_s9 + $0x60] sm:$0xff] %v3586_v39  ;;  %v2818_v11 = vmul.f32 %v8314_v7, %v2313_v10  ;;  %v8622_v58 = vadd.f32 %v1834_v52, %v11670_v63  ;;  %v11672_v52 = vld [vmem:[#allocation132_spill] sm:$0xff] }
 0x40b   : > { %v8625_v24 = vadd.f32 %v1817_v45, %v11671_v6  ;;  %3707 = vst [vmem:[%s5291_s9 + $0xc] sm:$0xff] %v3579_v48  ;;  %v3083_v59 = vadd.f32 %v2827_v14, %v8398_v27  ;;  %v3084_v38 = vadd.f32 %v2828_v31, %v8401_v35  ;;  %v3073_v9 = vadd.f32 %v2817_v15, %v8439_v25  ;;  %v11673_v45 = vld [vmem:[#allocation203_spill] sm:$0xff] }
 0x40c   : > { %v3065_v16 = vadd.f32 %v2809_v26, %v8384_v56  ;;  %v3066_v39 = vadd.f32 %v2810_v43, %v8395_v5  ;;  %v3074_v10 = vadd.f32 %v2818_v11, %v8442_v28  ;;  %v8635_v63 = vadd.f32 %v1818_v55, %v11672_v52  ;;  %v4902_v28 = vld [vmem:[%s5302_s14 + $0x170] sm:$0xff]  ;;  %v11674_v43 = vld [vmem:[#allocation204_spill] sm:$0xff]  ;;  %v4903_v15 = vld [vmem:[%s5302_s14 + $0x178] sm:$0xff] }
 0x40d   : > { %v1819_v48 = vmul.f32 %v8229_v33, %v11673_v45  ;;  %v3344_v27 = vadd.f32 %v8346_v47, %v3083_v59  ;;  %v3345_v35 = vadd.f32 %v8348_v4, %v3084_v38  ;;  %v3334_v26 = vadd.f32 %v8346_v47, %v3073_v9  ;;  %v4904_v11 = vld [vmem:[%s5302_s14 + $0x198] sm:$0xff] }
 0x40e   : > { %v3326_v56 = vadd.f32 %v8346_v47, %v3065_v16  ;;  %v3327_v5 = vadd.f32 %v8348_v4, %v3066_v39  ;;  %v3335_v25 = vadd.f32 %v8348_v4, %v3074_v10  ;;  %v1820_v55 = vmul.f32 %v8231_v21, %v11673_v45  ;;  %v11675_v16 = vld [vmem:[#allocation205_spill] sm:$0xff]  ;;  %v11676_v10 = vld [vmem:[#allocation26_spill] sm:$0xff] }
 0x40f   : > { %v1839_v14 = vmul.f32 %v8229_v33, %v11674_v43  ;;  %2476 = vperm.xlu2 %4823, %v4903_v15   ;;  %2492 = vperm.xlu0 %4824, %v4904_v11   ;;  %v1840_v6 = vmul.f32 %v8231_v21, %v11674_v43  ;;  %v1823_v39 = vmul.f32 %v8229_v33, %v11675_v16  ;;  %v11678_v11 = vld [vmem:[#allocation24_spill] sm:$0xff] }
 0x410   : > { %2472 = vperm.xlu1 %4825, %v4902_v28   ;;  %v3580_v31 = vpack.c.bf16 %v3327_v5, %v3326_v56  ;;  %v3589_v59 = vpack.c.bf16 %v3345_v35, %v3344_v27  ;;  %v3584_v38 = vpack.c.bf16 %v3335_v25, %v3334_v26  ;;  %v8657_v52 = vadd.f32 %v1819_v48, %v11676_v10  ;;  %v2345_v28 = vpop.permute.xlu2 %2344  ;;  %v2325_v43 = vpop.permute.xlu0 %2324  ;;  %v11677_v26 = vld [vmem:[#allocation131_spill] sm:$0xff] }
 0x411   : > { %v2305_v9 = vpop.permute.xlu1 %2304  ;;  %v1824_v45 = vmul.f32 %v8231_v21, %v11675_v16  ;;  %v2833_v15 = vmul.f32 %v8312_v32, %v2345_v28  ;;  %v2834_v27 = vmul.f32 %v8314_v7, %v2345_v28  ;;  %v2823_v35 = vmul.f32 %v8312_v32, %v2325_v43 }
 0x412   : > { %3708 = vst [vmem:[%s5291_s9 + $0x18] sm:$0xff] %v3580_v31  ;;  %v2813_v56 = vmul.f32 %v8312_v32, %v2305_v9  ;;  %v2814_v5 = vmul.f32 %v8314_v7, %v2305_v9  ;;  %v2824_v48 = vmul.f32 %v8314_v7, %v2325_v43  ;;  %v8670_v25 = vadd.f32 %v1820_v55, %v11677_v26  ;;  %v11679_v55 = vld [vmem:[#allocation25_spill] sm:$0xff] }
 0x413   : > { %3717 = vst [vmem:[%s5291_s9 + $0x84] sm:$0xff] %v3589_v59  ;;  %v8673_v31 = vadd.f32 %v1839_v14, %v11678_v11  ;;  %v3089_v9 = vadd.f32 %v2833_v15, %v8425_v13  ;;  %v3090_v10 = vadd.f32 %v2834_v27, %v8428_v30  ;;  %v3079_v28 = vadd.f32 %v2823_v35, %v8478_v2  ;;  %v11680_v14 = vld [vmem:[#allocation31_spill] sm:$0xff]  ;;  %v4906_v27 = vld [vmem:[%s5302_s14 + $0x190] sm:$0xff] }
 0x414   : > { %3712 = vst [vmem:[%s5291_s9 + $0x48] sm:$0xff] %v3584_v38  ;;  %v3069_v16 = vadd.f32 %v2813_v56, %v8416_v3  ;;  %v3070_v59 = vadd.f32 %v2814_v5, %v8419_v22  ;;  %v3080_v43 = vadd.f32 %v2824_v48, %v8481_v60  ;;  %v8683_v26 = vadd.f32 %v1840_v6, %v11679_v55  ;;  %v4905_v60 = vld [vmem:[%s5302_s14 + $0x188] sm:$0xff]  ;;  %v4907_v35 = vld [vmem:[%s5302_s14 + $0x1b0] sm:$0xff] }
 0x415   : > { %v8686_v11 = vadd.f32 %v1823_v39, %v11680_v14  ;;  %v3350_v13 = vadd.f32 %v8346_v47, %v3089_v9  ;;  %v3351_v30 = vadd.f32 %v8348_v4, %v3090_v10  ;;  %v3340_v38 = vadd.f32 %v8346_v47, %v3079_v28  ;;  %v11681_v6 = vld [vmem:[#allocation32_spill] sm:$0xff]  ;;  %v11682_v39 = vld [vmem:[#allocation206_spill] sm:$0xff] }
 0x416   : > { %v3330_v3 = vadd.f32 %v8346_v47, %v3069_v16  ;;  %v3331_v22 = vadd.f32 %v8348_v4, %v3070_v59  ;;  %v3341_v2 = vadd.f32 %v8348_v4, %v3080_v43  ;;  %v8696_v56 = vadd.f32 %v1824_v45, %v11681_v6  ;;  %v11683_v16 = vld [vmem:[#allocation207_spill] sm:$0xff]  ;;  %v11684_v43 = vld [vmem:[#allocation208_spill] sm:$0xff] }
 0x417   : > { %v1825_v5 = vmul.f32 %v8229_v33, %v11682_v39  ;;  %2488 = vperm.xlu2 %4823, %v4906_v27   ;;  %2504 = vperm.xlu0 %4824, %v4907_v35   ;;  %v1826_v48 = vmul.f32 %v8231_v21, %v11682_v39  ;;  %v1845_v59 = vmul.f32 %v8229_v33, %v11683_v16 }
 0x418   : > { %2484 = vperm.xlu1 %4825, %v4905_v60   ;;  %v3582_v15 = vpack.c.bf16 %v3331_v22, %v3330_v3  ;;  %v3592_v9 = vpack.c.bf16 %v3351_v30, %v3350_v13  ;;  %v3587_v10 = vpack.c.bf16 %v3341_v2, %v3340_v38  ;;  %v1846_v28 = vmul.f32 %v8231_v21, %v11683_v16  ;;  %v2357_v22 = vpop.permute.xlu2 %2356  ;;  %v2337_v60 = vpop.permute.xlu0 %2336  ;;  %v11685_v2 = vld [vmem:[#allocation29_spill] sm:$0xff] }
 0x419   : > { %v2317_v45 = vpop.permute.xlu1 %2316  ;;  %v1829_v55 = vmul.f32 %v8229_v33, %v11684_v43  ;;  %v2839_v6 = vmul.f32 %v8312_v32, %v2357_v22  ;;  %v2840_v13 = vmul.f32 %v8314_v7, %v2357_v22  ;;  %v2829_v30 = vmul.f32 %v8312_v32, %v2337_v60 }
 0x41a   : > { %3710 = vst [vmem:[%s5291_s9 + $0x30] sm:$0xff] %v3582_v15  ;;  %v2819_v14 = vmul.f32 %v8312_v32, %v2317_v45  ;;  %v2820_v3 = vmul.f32 %v8314_v7, %v2317_v45  ;;  %v2830_v38 = vmul.f32 %v8314_v7, %v2337_v60  ;;  %v8719_v39 = vadd.f32 %v1825_v5, %v11685_v2  ;;  %v11686_v5 = vld [vmem:[#allocation30_spill] sm:$0xff] }
 0x41b   : > { %3720 = vst [vmem:[%s5291_s9 + $0xa8] sm:$0xff] %v3592_v9  ;;  %v1830_v15 = vmul.f32 %v8231_v21, %v11684_v43  ;;  %v3095_v16 = vadd.f32 %v2839_v6, %v8470_v41  ;;  %v3096_v9 = vadd.f32 %v2840_v13, %v8473_v34  ;;  %v3085_v45 = vadd.f32 %v2829_v30, %v8513_v17  ;;  %v11687_v43 = vld [vmem:[#allocation139_spill] sm:$0xff]  ;;  %v4909_v13 = vld [vmem:[%s5302_s14 + $0x1a8] sm:$0xff] }
 0x41c   : > { %3715 = vst [vmem:[%s5291_s9 + $0x6c] sm:$0xff] %v3587_v10  ;;  %v3075_v27 = vadd.f32 %v2819_v14, %v8456_v44  ;;  %v3076_v35 = vadd.f32 %v2820_v3, %v8467_v37  ;;  %v3086_v22 = vadd.f32 %v2830_v38, %v8516_v29  ;;  %v8731_v60 = vadd.f32 %v1826_v48, %v11686_v5  ;;  %v4908_v29 = vld [vmem:[%s5302_s14 + $0x1a0] sm:$0xff]  ;;  %v4910_v30 = vld [vmem:[%s5302_s14 + $0x1c8] sm:$0xff]  ;;  %v11690_v38 = vld [vmem:[#allocation38_spill] sm:$0xff] }
 0x41d   : > { %v8734_v2 = vadd.f32 %v1845_v59, %v11687_v43  ;;  %v3356_v41 = vadd.f32 %v8346_v47, %v3095_v16  ;;  %v3357_v34 = vadd.f32 %v8348_v4, %v3096_v9  ;;  %v3346_v10 = vadd.f32 %v8346_v47, %v3085_v45  ;;  %v11688_v48 = vld [vmem:[#allocation28_spill] sm:$0xff]  ;;  %v11689_v59 = vld [vmem:[#allocation37_spill] sm:$0xff] }
 0x41e   : > { %v3336_v44 = vadd.f32 %v8346_v47, %v3075_v27  ;;  %v3337_v37 = vadd.f32 %v8348_v4, %v3076_v35  ;;  %v3347_v17 = vadd.f32 %v8348_v4, %v3086_v22  ;;  %v8744_v14 = vadd.f32 %v1846_v28, %v11688_v48  ;;  %v11691_v35 = vld [vmem:[#allocation209_spill] sm:$0xff]  ;;  %v11692_v22 = vld [vmem:[#allocation210_spill] sm:$0xff]  ;;  %v11693_v48 = vld [vmem:[#allocation211_spill] sm:$0xff] }
 0x41f   : > { %v8747_v3 = vadd.f32 %v1829_v55, %v11689_v59  ;;  %2500 = vperm.xlu2 %4823, %v4909_v13   ;;  %2516 = vperm.xlu0 %4824, %v4910_v30   ;;  %v8752_v27 = vadd.f32 %v1830_v15, %v11690_v38  ;;  %v1831_v16 = vmul.f32 %v8229_v33, %v11691_v35 }
 0x420   : > { %2496 = vperm.xlu1 %4825, %v4908_v29   ;;  %v3585_v6 = vpack.c.bf16 %v3337_v37, %v3336_v44  ;;  %v3595_v9 = vpack.c.bf16 %v3357_v34, %v3356_v41  ;;  %v3590_v45 = vpack.c.bf16 %v3347_v17, %v3346_v10  ;;  %v1832_v55 = vmul.f32 %v8231_v21, %v11691_v35  ;;  %v2369_v15 = vpop.permute.xlu2 %2368  ;;  %v2349_v37 = vpop.permute.xlu0 %2348 }
 0x421   : > { %v2329_v28 = vpop.permute.xlu1 %2328  ;;  %v1851_v5 = vmul.f32 %v8229_v33, %v11692_v22  ;;  %v2845_v29 = vmul.f32 %v8312_v32, %v2369_v15  ;;  %v2846_v41 = vmul.f32 %v8314_v7, %v2369_v15  ;;  %v2835_v34 = vmul.f32 %v8312_v32, %v2349_v37  ;;  %v11696_v15 = vld [vmem:[#allocation33_spill] sm:$0xff] }
 0x422   : > { %3713 = vst [vmem:[%s5291_s9 + $0x54] sm:$0xff] %v3585_v6  ;;  %v2825_v43 = vmul.f32 %v8312_v32, %v2329_v28  ;;  %v2826_v44 = vmul.f32 %v8314_v7, %v2329_v28  ;;  %v2836_v10 = vmul.f32 %v8314_v7, %v2349_v37  ;;  %v1852_v17 = vmul.f32 %v8231_v21, %v11692_v22  ;;  %v11694_v28 = vld [vmem:[#allocation35_spill] sm:$0xff] }
 0x423   : > { %3723 = vst [vmem:[%s5291_s9 + $0xcc] sm:$0xff] %v3595_v9  ;;  %v1835_v59 = vmul.f32 %v8229_v33, %v11693_v48  ;;  %v3101_v30 = vadd.f32 %v2845_v29, %v8497_v54  ;;  %v3102_v38 = vadd.f32 %v2846_v41, %v8500_v40  ;;  %v3091_v35 = vadd.f32 %v2835_v34, %v8550_v62  ;;  %v4912_v41 = vld [vmem:[%s5302_s14 + $0x1c0] sm:$0xff] }
 0x424   : > { %3718 = vst [vmem:[%s5291_s9 + $0x90] sm:$0xff] %v3590_v45  ;;  %v3081_v6 = vadd.f32 %v2825_v43, %v8488_v12  ;;  %v3082_v13 = vadd.f32 %v2826_v44, %v8491_v0  ;;  %v3092_v9 = vadd.f32 %v2836_v10, %v8553_v49  ;;  %v8780_v22 = vadd.f32 %v1831_v16, %v11694_v28  ;;  %v4911_v49 = vld [vmem:[%s5302_s14 + $0x1b8] sm:$0xff]  ;;  %v11695_v16 = vld [vmem:[#allocation36_spill] sm:$0xff] }
 0x425   : > { %v1836_v45 = vmul.f32 %v8231_v21, %v11693_v48  ;;  %v3362_v54 = vadd.f32 %v8346_v47, %v3101_v30  ;;  %v3363_v40 = vadd.f32 %v8348_v4, %v3102_v38  ;;  %v3352_v43 = vadd.f32 %v8346_v47, %v3091_v35  ;;  %v4913_v34 = vld [vmem:[%s5302_s14 + $0x1e0] sm:$0xff]  ;;  %v11697_v10 = vld [vmem:[#allocation34_spill] sm:$0xff] }
 0x426   : > { %v3342_v12 = vadd.f32 %v8346_v47, %v3081_v6  ;;  %v3343_v0 = vadd.f32 %v8348_v4, %v3082_v13  ;;  %v3353_v62 = vadd.f32 %v8348_v4, %v3092_v9  ;;  %v8792_v44 = vadd.f32 %v1832_v55, %v11695_v16  ;;  %v11698_v6 = vld [vmem:[#allocation43_spill] sm:$0xff]  ;;  %v11699_v35 = vld [vmem:[#allocation138_spill] sm:$0xff] }
 0x427   : > { %v8795_v37 = vadd.f32 %v1851_v5, %v11696_v15  ;;  %2512 = vperm.xlu2 %4823, %v4912_v41   ;;  %2528 = vperm.xlu0 %4824, %v4913_v34   ;;  %v8800_v48 = vadd.f32 %v1852_v17, %v11697_v10  ;;  %v8803_v13 = vadd.f32 %v1835_v59, %v11698_v6  ;;  %v11700_v5 = vld [vmem:[#allocation212_spill] sm:$0xff] }
 0x428   : > { %2508 = vperm.xlu1 %4825, %v4911_v49   ;;  %v3588_v29 = vpack.c.bf16 %v3343_v0, %v3342_v12  ;;  %v3598_v30 = vpack.c.bf16 %v3363_v40, %v3362_v54  ;;  %v3593_v38 = vpack.c.bf16 %v3353_v62, %v3352_v43  ;;  %v8806_v9 = vadd.f32 %v1836_v45, %v11699_v35  ;;  %v2381_v17 = vpop.permute.xlu2 %2380  ;;  %v2361_v49 = vpop.permute.xlu0 %2360  ;;  %v11701_v62 = vld [vmem:[#allocation213_spill] sm:$0xff] }
 0x429   : > { %v2341_v55 = vpop.permute.xlu1 %2340  ;;  %v1837_v28 = vmul.f32 %v8229_v33, %v11700_v5  ;;  %v2851_v59 = vmul.f32 %v8312_v32, %v2381_v17  ;;  %v2852_v54 = vmul.f32 %v8314_v7, %v2381_v17  ;;  %v2841_v40 = vmul.f32 %v8312_v32, %v2361_v49 }
 0x42a   : > { %3716 = vst [vmem:[%s5291_s9 + $0x78] sm:$0xff] %v3588_v29  ;;  %v2831_v12 = vmul.f32 %v8312_v32, %v2341_v55  ;;  %v2832_v0 = vmul.f32 %v8314_v7, %v2341_v55  ;;  %v2842_v45 = vmul.f32 %v8314_v7, %v2361_v49  ;;  %v1838_v43 = vmul.f32 %v8231_v21, %v11700_v5  ;;  %v11702_v55 = vld [vmem:[#allocation214_spill] sm:$0xff]  ;;  %v11703_v5 = vld [vmem:[#allocation41_spill] sm:$0xff] }
 0x42b   : > { %3726 = vst [vmem:[%s5291_s9 + $0xf0] sm:$0xff] %v3598_v30  ;;  %v1857_v16 = vmul.f32 %v8229_v33, %v11701_v62  ;;  %v3107_v41 = vadd.f32 %v2851_v59, %v8544_v46  ;;  %v3108_v34 = vadd.f32 %v2852_v54, %v8547_v18  ;;  %v3097_v10 = vadd.f32 %v2841_v40, %v8583_v61  ;;  %v4915_v49 = vld [vmem:[%s5302_s14 + $0x1d8] sm:$0xff] }
 0x42c   : > { %3721 = vst [vmem:[%s5291_s9 + $0xb4] sm:$0xff] %v3593_v38  ;;  %v3087_v15 = vadd.f32 %v2831_v12, %v8530_v57  ;;  %v3088_v29 = vadd.f32 %v2832_v0, %v8541_v53  ;;  %v3098_v6 = vadd.f32 %v2842_v45, %v8590_v51  ;;  %v1858_v30 = vmul.f32 %v8231_v21, %v11701_v62  ;;  %v4914_v51 = vld [vmem:[%s5302_s14 + $0x1d0] sm:$0xff]  ;;  %v4916_v59 = vld [vmem:[%s5302_s14 + $0x1f8] sm:$0xff] }
 0x42d   : > { %v1841_v38 = vmul.f32 %v8229_v33, %v11702_v55  ;;  %v3368_v46 = vadd.f32 %v8346_v47, %v3107_v41  ;;  %v3369_v18 = vadd.f32 %v8348_v4, %v3108_v34  ;;  %v3358_v35 = vadd.f32 %v8346_v47, %v3097_v10  ;;  %v11704_v54 = vld [vmem:[#allocation42_spill] sm:$0xff]  ;;  %v11705_v45 = vld [vmem:[#allocation39_spill] sm:$0xff]  ;;  %v11706_v41 = vld [vmem:[#allocation40_spill] sm:$0xff] }
 0x42e   : > { %v3348_v57 = vadd.f32 %v8346_v47, %v3087_v15  ;;  %v3349_v53 = vadd.f32 %v8348_v4, %v3088_v29  ;;  %v3359_v61 = vadd.f32 %v8348_v4, %v3098_v6  ;;  %v8841_v12 = vadd.f32 %v1837_v28, %v11703_v5  ;;  %v11707_v10 = vld [vmem:[#allocation47_spill] sm:$0xff] }
 0x42f   : > { %v1842_v0 = vmul.f32 %v8231_v21, %v11702_v55  ;;  %2524 = vperm.xlu2 %4823, %v4915_v49   ;;  %2540 = vperm.xlu0 %4824, %v4916_v59   ;;  %v8848_v40 = vadd.f32 %v1838_v43, %v11704_v54  ;;  %v8851_v62 = vadd.f32 %v1857_v16, %v11705_v45 }
 0x430   : > { %2520 = vperm.xlu1 %4825, %v4914_v51   ;;  %v3591_v17 = vpack.c.bf16 %v3349_v53, %v3348_v57  ;;  %v3601_v15 = vpack.c.bf16 %v3369_v18, %v3368_v46  ;;  %v3596_v29 = vpack.c.bf16 %v3359_v61, %v3358_v35  ;;  %v8854_v34 = vadd.f32 %v1858_v30, %v11706_v41  ;;  %v2393_v43 = vpop.permute.xlu2 %2392  ;;  %v2373_v53 = vpop.permute.xlu0 %2372  ;;  %v11708_v35 = vld [vmem:[#allocation258_spill] sm:$0xff] }
 0x431   : > { %v2353_v28 = vpop.permute.xlu1 %2352  ;;  %v8857_v6 = vadd.f32 %v1841_v38, %v11707_v10  ;;  %v2857_v16 = vmul.f32 %v8312_v32, %v2393_v43  ;;  %v2858_v46 = vmul.f32 %v8314_v7, %v2393_v43  ;;  %v2847_v18 = vmul.f32 %v8312_v32, %v2373_v53  ;;  %v11709_v38 = vld [vmem:[#allocation215_spill] sm:$0xff]  ;;  %v11711_v10 = vld [vmem:[#allocation217_spill] sm:$0xff] }
 0x432   : > { %3719 = vst [vmem:[%s5291_s9 + $0x9c] sm:$0xff] %v3591_v17  ;;  %v2837_v55 = vmul.f32 %v8312_v32, %v2353_v28  ;;  %v2838_v57 = vmul.f32 %v8314_v7, %v2353_v28  ;;  %v2848_v30 = vmul.f32 %v8314_v7, %v2373_v53  ;;  %v8868_v61 = vadd.f32 %v1842_v0, %v11708_v35  ;;  %v4918_v43 = vld [vmem:[%s5302_s14 + $0x1f0] sm:$0xff] }
 0x433   : > { %3729 = vst [vmem:[%s5291_s9 + $0x114] sm:$0xff] %v3601_v15  ;;  %v1843_v51 = vmul.f32 %v8229_v33, %v11709_v38  ;;  %v3113_v49 = vadd.f32 %v2857_v16, %v8569_v1  ;;  %v3114_v59 = vadd.f32 %v2858_v46, %v8572_v19  ;;  %v3103_v54 = vadd.f32 %v2847_v18, %v8625_v24  ;;  %v11710_v15 = vld [vmem:[#allocation216_spill] sm:$0xff]  ;;  %v4919_v53 = vld [vmem:[%s5302_s14 + $0x210] sm:$0xff] }
 0x434   : > { %3724 = vst [vmem:[%s5291_s9 + $0xd8] sm:$0xff] %v3596_v29  ;;  %v3093_v5 = vadd.f32 %v2837_v55, %v8560_v23  ;;  %v3094_v17 = vadd.f32 %v2838_v57, %v8563_v50  ;;  %v3104_v45 = vadd.f32 %v2848_v30, %v8635_v63  ;;  %v1844_v0 = vmul.f32 %v8231_v21, %v11709_v38  ;;  %v4917_v63 = vld [vmem:[%s5302_s14 + $0x1e8] sm:$0xff]  ;;  %v11712_v16 = vld [vmem:[#allocation46_spill] sm:$0xff] }
 0x435   : > { %v1863_v29 = vmul.f32 %v8229_v33, %v11710_v15  ;;  %v3374_v1 = vadd.f32 %v8346_v47, %v3113_v49  ;;  %v3375_v19 = vadd.f32 %v8348_v4, %v3114_v59  ;;  %v3364_v28 = vadd.f32 %v8346_v47, %v3103_v54  ;;  %v11714_v49 = vld [vmem:[#allocation145_spill] sm:$0xff] }
 0x436   : > { %v3354_v23 = vadd.f32 %v8346_v47, %v3093_v5  ;;  %v3355_v50 = vadd.f32 %v8348_v4, %v3094_v17  ;;  %v3365_v24 = vadd.f32 %v8348_v4, %v3104_v45  ;;  %v1864_v41 = vmul.f32 %v8231_v21, %v11710_v15  ;;  %v11713_v5 = vld [vmem:[#allocation257_spill] sm:$0xff] }
 0x437   : > { %v1847_v55 = vmul.f32 %v8229_v33, %v11711_v10  ;;  %2536 = vperm.xlu2 %4823, %v4918_v43   ;;  %2552 = vperm.xlu0 %4824, %v4919_v53   ;;  %v8897_v46 = vadd.f32 %v1843_v51, %v11712_v16  ;;  %v1848_v18 = vmul.f32 %v8231_v21, %v11711_v10 }
 0x438   : > { %2532 = vperm.xlu1 %4825, %v4917_v63   ;;  %v3594_v57 = vpack.c.bf16 %v3355_v50, %v3354_v23  ;;  %v3604_v30 = vpack.c.bf16 %v3375_v19, %v3374_v1  ;;  %v3599_v35 = vpack.c.bf16 %v3365_v24, %v3364_v28  ;;  %v8902_v17 = vadd.f32 %v1844_v0, %v11713_v5  ;;  %v2405_v51 = vpop.permute.xlu2 %2404  ;;  %v2385_v15 = vpop.permute.xlu0 %2384  ;;  %v11715_v19 = vld [vmem:[#allocation256_spill] sm:$0xff]  ;;  %v11719_v5 = vld [vmem:[#allocation219_spill] sm:$0xff] }
 0x439   : > { %v2365_v38 = vpop.permute.xlu1 %2364  ;;  %v8905_v59 = vadd.f32 %v1863_v29, %v11714_v49  ;;  %v2863_v23 = vmul.f32 %v8312_v32, %v2405_v51  ;;  %v2864_v50 = vmul.f32 %v8314_v7, %v2405_v51  ;;  %v2853_v1 = vmul.f32 %v8312_v32, %v2385_v15  ;;  %v11716_v29 = vld [vmem:[#allocation50_spill] sm:$0xff]  ;;  %v4922_v51 = vld [vmem:[%s5302_s14 + $0x228] sm:$0xff] }
 0x43a   : > { %3722 = vst [vmem:[%s5291_s9 + $0xc0] sm:$0xff] %v3594_v57  ;;  %v2843_v54 = vmul.f32 %v8312_v32, %v2365_v38  ;;  %v2844_v45 = vmul.f32 %v8314_v7, %v2365_v38  ;;  %v2854_v0 = vmul.f32 %v8314_v7, %v2385_v15  ;;  %v8916_v28 = vadd.f32 %v1864_v41, %v11715_v19  ;;  %v11717_v41 = vld [vmem:[#allocation261_spill] sm:$0xff] }
 0x43b   : > { %3732 = vst [vmem:[%s5291_s9 + $0x138] sm:$0xff] %v3604_v30  ;;  %v8919_v24 = vadd.f32 %v1847_v55, %v11716_v29  ;;  %v3119_v57 = vadd.f32 %v2863_v23, %v8612_v8  ;;  %v3120_v43 = vadd.f32 %v2864_v50, %v8622_v58  ;;  %v3109_v53 = vadd.f32 %v2853_v1, %v8686_v11  ;;  %v11718_v55 = vld [vmem:[#allocation218_spill] sm:$0xff]  ;;  %v11720_v23 = vld [vmem:[#allocation220_spill] sm:$0xff]  ;;  %v11721_v29 = vld [vmem:[#allocation49_spill] sm:$0xff] }
 0x43c   : > { %3727 = vst [vmem:[%s5291_s9 + $0xfc] sm:$0xff] %v3599_v35  ;;  %v3099_v63 = vadd.f32 %v2843_v54, %v8604_v42  ;;  %v3100_v10 = vadd.f32 %v2844_v45, %v8607_v36  ;;  %v3110_v16 = vadd.f32 %v2854_v0, %v8696_v56  ;;  %v8929_v30 = vadd.f32 %v1848_v18, %v11717_v41  ;;  %v4920_v56 = vld [vmem:[%s5302_s14 + $0x200] sm:$0xff]  ;;  %v4921_v45 = vld [vmem:[%s5302_s14 + $0x208] sm:$0xff] }
 0x43d   : > { %v1849_v35 = vmul.f32 %v8229_v33, %v11718_v55  ;;  %v3380_v8 = vadd.f32 %v8346_v47, %v3119_v57  ;;  %v3381_v58 = vadd.f32 %v8348_v4, %v3120_v43  ;;  %v3370_v38 = vadd.f32 %v8346_v47, %v3109_v53 }
 0x43e   : > { %v3360_v42 = vadd.f32 %v8346_v47, %v3099_v63  ;;  %v3361_v36 = vadd.f32 %v8348_v4, %v3100_v10  ;;  %v3371_v11 = vadd.f32 %v8348_v4, %v3110_v16  ;;  %v1850_v18 = vmul.f32 %v8231_v21, %v11718_v55 }
 0x43f   : > { %v1869_v49 = vmul.f32 %v8229_v33, %v11719_v5  ;;  %2548 = vperm.xlu2 %4823, %v4921_v45   ;;  %2564 = vperm.xlu0 %4824, %v4922_v51   ;;  %v1870_v15 = vmul.f32 %v8231_v21, %v11719_v5  ;;  %v1853_v50 = vmul.f32 %v8229_v33, %v11720_v23 }
 0x440   : > { %2544 = vperm.xlu1 %4825, %v4920_v56   ;;  %v3597_v54 = vpack.c.bf16 %v3361_v36, %v3360_v42  ;;  %v3607_v1 = vpack.c.bf16 %v3381_v58, %v3380_v8  ;;  %v3602_v0 = vpack.c.bf16 %v3371_v11, %v3370_v38  ;;  %v8951_v63 = vadd.f32 %v1849_v35, %v11721_v29  ;;  %v2417_v53 = vpop.permute.xlu2 %2416  ;;  %v2397_v16 = vpop.permute.xlu0 %2396  ;;  %v11722_v36 = vld [vmem:[#allocation260_spill] sm:$0xff] }
 0x441   : > { %v2377_v19 = vpop.permute.xlu1 %2376  ;;  %v1854_v10 = vmul.f32 %v8231_v21, %v11720_v23  ;;  %v2869_v41 = vmul.f32 %v8312_v32, %v2417_v53  ;;  %v2870_v55 = vmul.f32 %v8314_v7, %v2417_v53  ;;  %v2859_v42 = vmul.f32 %v8312_v32, %v2397_v16  ;;  %v11723_v58 = vld [vmem:[#allocation48_spill] sm:$0xff] }
 0x442   : > { %3725 = vst [vmem:[%s5291_s9 + $0xe4] sm:$0xff] %v3597_v54  ;;  %v2849_v57 = vmul.f32 %v8312_v32, %v2377_v19  ;;  %v2850_v43 = vmul.f32 %v8314_v7, %v2377_v19  ;;  %v2860_v35 = vmul.f32 %v8314_v7, %v2397_v16  ;;  %v8964_v8 = vadd.f32 %v1850_v18, %v11722_v36  ;;  %v11724_v18 = vld [vmem:[#allocation259_spill] sm:$0xff] }
 0x443   : > { %3735 = vst [vmem:[%s5291_s9 + $0x15c] sm:$0xff] %v3607_v1  ;;  %v8967_v38 = vadd.f32 %v1869_v49, %v11723_v58  ;;  %v3125_v5 = vadd.f32 %v2869_v41, %v8673_v31  ;;  %v3126_v54 = vadd.f32 %v2870_v55, %v8683_v26  ;;  %v3115_v45 = vadd.f32 %v2859_v42, %v8747_v3  ;;  %v11725_v49 = vld [vmem:[#allocation53_spill] sm:$0xff]  ;;  %v4925_v53 = vld [vmem:[%s5302_s14 + $0x240] sm:$0xff]  ;;  %v11728_v41 = vld [vmem:[#allocation222_spill] sm:$0xff] }
 0x444   : > { %3730 = vst [vmem:[%s5291_s9 + $0x120] sm:$0xff] %v3602_v0  ;;  %v3105_v11 = vadd.f32 %v2849_v57, %v8657_v52  ;;  %v3106_v56 = vadd.f32 %v2850_v43, %v8670_v25  ;;  %v3116_v51 = vadd.f32 %v2860_v35, %v8752_v27  ;;  %v8977_v23 = vadd.f32 %v1870_v15, %v11724_v18  ;;  %v4923_v27 = vld [vmem:[%s5302_s14 + $0x218] sm:$0xff]  ;;  %v11726_v15 = vld [vmem:[#allocation264_spill] sm:$0xff] }
 0x445   : > { %v8980_v1 = vadd.f32 %v1853_v50, %v11725_v49  ;;  %v3386_v31 = vadd.f32 %v8346_v47, %v3125_v5  ;;  %v3387_v26 = vadd.f32 %v8348_v4, %v3126_v54  ;;  %v3376_v0 = vadd.f32 %v8346_v47, %v3115_v45  ;;  %v11727_v50 = vld [vmem:[#allocation221_spill] sm:$0xff]  ;;  %v4924_v43 = vld [vmem:[%s5302_s14 + $0x220] sm:$0xff] }
 0x446   : > { %v3366_v52 = vadd.f32 %v8346_v47, %v3105_v11  ;;  %v3367_v25 = vadd.f32 %v8348_v4, %v3106_v56  ;;  %v3377_v3 = vadd.f32 %v8348_v4, %v3116_v51  ;;  %v8990_v19 = vadd.f32 %v1854_v10, %v11726_v15  ;;  %v11729_v58 = vld [vmem:[#allocation223_spill] sm:$0xff] }
 0x447   : > { %v1855_v29 = vmul.f32 %v8229_v33, %v11727_v50  ;;  %2560 = vperm.xlu2 %4823, %v4924_v43   ;;  %2576 = vperm.xlu0 %4824, %v4925_v53   ;;  %v1856_v16 = vmul.f32 %v8231_v21, %v11727_v50  ;;  %v1875_v55 = vmul.f32 %v8229_v33, %v11728_v41  ;;  %v11732_v53 = vld [vmem:[#allocation51_spill] sm:$0xff] }
 0x448   : > { %2556 = vperm.xlu1 %4825, %v4923_v27   ;;  %v3600_v57 = vpack.c.bf16 %v3367_v25, %v3366_v52  ;;  %v3610_v42 = vpack.c.bf16 %v3387_v26, %v3386_v31  ;;  %v3605_v35 = vpack.c.bf16 %v3377_v3, %v3376_v0  ;;  %v1876_v36 = vmul.f32 %v8231_v21, %v11728_v41  ;;  %v2409_v45 = vpop.permute.xlu0 %2408  ;;  %v11730_v25 = vld [vmem:[#allocation52_spill] sm:$0xff] }
 0x449   : > { %v2389_v10 = vpop.permute.xlu1 %2388  ;;  %v1859_v11 = vmul.f32 %v8229_v33, %v11729_v58  ;;  %v2429_v54 = vpop.permute.xlu2 %2428  ;;  %v2865_v49 = vmul.f32 %v8312_v32, %v2409_v45  ;;  %v2866_v52 = vmul.f32 %v8314_v7, %v2409_v45  ;;  %v9013_v31 = vadd.f32 %v1855_v29, %v11730_v25  ;;  %v11731_v29 = vld [vmem:[#allocation263_spill] sm:$0xff]  ;;  %v11737_v25 = vld [vmem:[#allocation225_spill] sm:$0xff] }
 0x44a   : > { %3728 = vst [vmem:[%s5291_s9 + $0x108] sm:$0xff] %v3600_v57  ;;  %v2855_v56 = vmul.f32 %v8312_v32, %v2389_v10  ;;  %v2856_v5 = vmul.f32 %v8314_v7, %v2389_v10  ;;  %v2875_v51 = vmul.f32 %v8312_v32, %v2429_v54  ;;  %v2876_v18 = vmul.f32 %v8314_v7, %v2429_v54  ;;  %v11735_v54 = vld [vmem:[#allocation267_spill] sm:$0xff] }
 0x44b   : > { %3738 = vst [vmem:[%s5291_s9 + $0x180] sm:$0xff] %v3610_v42  ;;  %v1860_v26 = vmul.f32 %v8231_v21, %v11729_v58  ;;  %v3121_v50 = vadd.f32 %v2865_v49, %v8803_v13  ;;  %v3122_v57 = vadd.f32 %v2866_v52, %v8806_v9  ;;  %v9025_v43 = vadd.f32 %v1856_v16, %v11731_v29  ;;  %v4926_v9 = vld [vmem:[%s5302_s14 + $0x230] sm:$0xff] }
 0x44c   : > { %3733 = vst [vmem:[%s5291_s9 + $0x144] sm:$0xff] %v3605_v35  ;;  %v3111_v0 = vadd.f32 %v2855_v56, %v8719_v39  ;;  %v3112_v3 = vadd.f32 %v2856_v5, %v8731_v60  ;;  %v3131_v27 = vadd.f32 %v2875_v51, %v8734_v2  ;;  %v3132_v15 = vadd.f32 %v2876_v18, %v8744_v14  ;;  %v11733_v16 = vld [vmem:[#allocation262_spill] sm:$0xff]  ;;  %v11736_v51 = vld [vmem:[#allocation224_spill] sm:$0xff] }
 0x44d   : > { %v9028_v41 = vadd.f32 %v1875_v55, %v11732_v53  ;;  %v3382_v42 = vadd.f32 %v8346_v47, %v3121_v50  ;;  %v3383_v13 = vadd.f32 %v8348_v4, %v3122_v57  ;;  %v9038_v35 = vadd.f32 %v1876_v36, %v11733_v16  ;;  %v11734_v55 = vld [vmem:[#allocation56_spill] sm:$0xff]  ;;  %v4927_v56 = vld [vmem:[%s5302_s14 + $0x238] sm:$0xff] }
 0x44e   : > { %v3372_v39 = vadd.f32 %v8346_v47, %v3111_v0  ;;  %v3373_v60 = vadd.f32 %v8348_v4, %v3112_v3  ;;  %v3392_v2 = vadd.f32 %v8346_v47, %v3131_v27  ;;  %v3393_v14 = vadd.f32 %v8348_v4, %v3132_v15  ;;  %v4928_v5 = vld [vmem:[%s5302_s14 + $0x258] sm:$0xff] }
 0x44f   : > { %v9041_v10 = vadd.f32 %v1859_v11, %v11734_v55  ;;  %2572 = vperm.xlu2 %4823, %v4927_v56   ;;  %2588 = vperm.xlu0 %4824, %v4928_v5   ;;  %v9046_v45 = vadd.f32 %v1860_v26, %v11735_v54  ;;  %v1861_v18 = vmul.f32 %v8229_v33, %v11736_v51 }
 0x450   : > { %2568 = vperm.xlu1 %4825, %v4926_v9   ;;  %v3603_v58 = vpack.c.bf16 %v3373_v60, %v3372_v39  ;;  %v3613_v49 = vpack.c.bf16 %v3393_v14, %v3392_v2  ;;  %v3608_v52 = vpack.c.bf16 %v3383_v13, %v3382_v42  ;;  %v1862_v11 = vmul.f32 %v8231_v21, %v11736_v51  ;;  %v2421_v15 = vpop.permute.xlu0 %2420  ;;  %v11738_v60 = vld [vmem:[#allocation226_spill] sm:$0xff] }
 0x451   : > { %v2401_v36 = vpop.permute.xlu1 %2400  ;;  %v1881_v0 = vmul.f32 %v8229_v33, %v11737_v25  ;;  %v2441_v26 = vpop.permute.xlu2 %2440  ;;  %v2871_v29 = vmul.f32 %v8312_v32, %v2421_v15  ;;  %v2872_v53 = vmul.f32 %v8314_v7, %v2421_v15  ;;  %v1882_v39 = vmul.f32 %v8231_v21, %v11737_v25  ;;  %v11740_v51 = vld [vmem:[#allocation266_spill] sm:$0xff]  ;;  %v11743_v15 = vld [vmem:[#allocation151_spill] sm:$0xff] }
 0x452   : > { %3731 = vst [vmem:[%s5291_s9 + $0x12c] sm:$0xff] %v3603_v58  ;;  %v2861_v3 = vmul.f32 %v8312_v32, %v2401_v36  ;;  %v2862_v27 = vmul.f32 %v8314_v7, %v2401_v36  ;;  %v2881_v50 = vmul.f32 %v8312_v32, %v2441_v26  ;;  %v2882_v57 = vmul.f32 %v8314_v7, %v2441_v26  ;;  %v11739_v58 = vld [vmem:[#allocation55_spill] sm:$0xff]  ;;  %v4930_v25 = vld [vmem:[%s5302_s14 + $0x250] sm:$0xff] }
 0x453   : > { %3741 = vst [vmem:[%s5291_s9 + $0x1a4] sm:$0xff] %v3613_v49  ;;  %v1865_v2 = vmul.f32 %v8229_v33, %v11738_v60  ;;  %v3127_v16 = vadd.f32 %v2871_v29, %v8857_v6  ;;  %v3128_v55 = vadd.f32 %v2872_v53, %v8868_v61  ;;  %v9074_v56 = vadd.f32 %v1861_v18, %v11739_v58  ;;  %v4929_v61 = vld [vmem:[%s5302_s14 + $0x248] sm:$0xff]  ;;  %v11741_v49 = vld [vmem:[#allocation54_spill] sm:$0xff]  ;;  %v11744_v53 = vld [vmem:[#allocation59_spill] sm:$0xff] }
 0x454   : > { %3736 = vst [vmem:[%s5291_s9 + $0x168] sm:$0xff] %v3608_v52  ;;  %v3117_v14 = vadd.f32 %v2861_v3, %v8780_v22  ;;  %v3118_v42 = vadd.f32 %v2862_v27, %v8792_v44  ;;  %v3137_v13 = vadd.f32 %v2881_v50, %v8795_v37  ;;  %v3138_v9 = vadd.f32 %v2882_v57, %v8800_v48  ;;  %v4931_v3 = vld [vmem:[%s5302_s14 + $0x270] sm:$0xff] }
 0x455   : > { %v1866_v5 = vmul.f32 %v8231_v21, %v11738_v60  ;;  %v3388_v54 = vadd.f32 %v8346_v47, %v3127_v16  ;;  %v3389_v6 = vadd.f32 %v8348_v4, %v3128_v55  ;;  %v9086_v18 = vadd.f32 %v1862_v11, %v11740_v51  ;;  %v11742_v27 = vld [vmem:[#allocation265_spill] sm:$0xff] }
 0x456   : > { %v3378_v22 = vadd.f32 %v8346_v47, %v3117_v14  ;;  %v3379_v44 = vadd.f32 %v8348_v4, %v3118_v42  ;;  %v3398_v37 = vadd.f32 %v8346_v47, %v3137_v13  ;;  %v3399_v48 = vadd.f32 %v8348_v4, %v3138_v9 }
 0x457   : > { %v9089_v52 = vadd.f32 %v1881_v0, %v11741_v49  ;;  %2584 = vperm.xlu2 %4823, %v4930_v25   ;;  %2600 = vperm.xlu0 %4824, %v4931_v3   ;;  %v9094_v26 = vadd.f32 %v1882_v39, %v11742_v27  ;;  %v9097_v50 = vadd.f32 %v1865_v2, %v11743_v15  ;;  %v11745_v0 = vld [vmem:[#allocation227_spill] sm:$0xff]  ;;  %v11748_v27 = vld [vmem:[#allocation58_spill] sm:$0xff] }
 0x458   : > { %2580 = vperm.xlu1 %4825, %v4929_v61   ;;  %v3606_v36 = vpack.c.bf16 %v3379_v44, %v3378_v22  ;;  %v3616_v57 = vpack.c.bf16 %v3399_v48, %v3398_v37  ;;  %v3611_v29 = vpack.c.bf16 %v3389_v6, %v3388_v54  ;;  %v9100_v60 = vadd.f32 %v1866_v5, %v11744_v53  ;;  %v2433_v9 = vpop.permute.xlu0 %2432  ;;  %v11746_v22 = vld [vmem:[#allocation228_spill] sm:$0xff] }
 0x459   : > { %v2413_v11 = vpop.permute.xlu1 %2412  ;;  %v1867_v14 = vmul.f32 %v8229_v33, %v11745_v0  ;;  %v2453_v39 = vpop.permute.xlu2 %2452  ;;  %v2877_v55 = vmul.f32 %v8312_v32, %v2433_v9  ;;  %v2878_v58 = vmul.f32 %v8314_v7, %v2433_v9  ;;  %v1868_v5 = vmul.f32 %v8231_v21, %v11745_v0  ;;  %v4934_v53 = vld [vmem:[%s5302_s14 + $0x288] sm:$0xff] }
 0x45a   : > { %3734 = vst [vmem:[%s5291_s9 + $0x150] sm:$0xff] %v3606_v36  ;;  %v2867_v42 = vmul.f32 %v8312_v32, %v2413_v11  ;;  %v2868_v13 = vmul.f32 %v8314_v7, %v2413_v11  ;;  %v2887_v2 = vmul.f32 %v8312_v32, %v2453_v39  ;;  %v2888_v16 = vmul.f32 %v8314_v7, %v2453_v39  ;;  %v11747_v36 = vld [vmem:[#allocation229_spill] sm:$0xff]  ;;  %v11749_v0 = vld [vmem:[#allocation268_spill] sm:$0xff] }
 0x45b   : > { %3744 = vst [vmem:[%s5291_s9 + $0x1c8] sm:$0xff] %v3616_v57  ;;  %v1887_v44 = vmul.f32 %v8229_v33, %v11746_v22  ;;  %v3133_v61 = vadd.f32 %v2877_v55, %v8919_v24  ;;  %v3134_v51 = vadd.f32 %v2878_v58, %v8929_v30  ;;  %v1888_v49 = vmul.f32 %v8231_v21, %v11746_v22  ;;  %v4932_v30 = vld [vmem:[%s5302_s14 + $0x260] sm:$0xff]  ;;  %v4933_v11 = vld [vmem:[%s5302_s14 + $0x268] sm:$0xff]  ;;  %v11752_v58 = vld [vmem:[#allocation62_spill] sm:$0xff] }
 0x45c   : > { %3739 = vst [vmem:[%s5291_s9 + $0x18c] sm:$0xff] %v3611_v29  ;;  %v3123_v37 = vadd.f32 %v2867_v42, %v8841_v12  ;;  %v3124_v48 = vadd.f32 %v2868_v13, %v8848_v40  ;;  %v3143_v54 = vadd.f32 %v2887_v2, %v8851_v62  ;;  %v3144_v6 = vadd.f32 %v2888_v16, %v8854_v34  ;;  %v11750_v13 = vld [vmem:[#allocation57_spill] sm:$0xff]  ;;  %v11751_v16 = vld [vmem:[#allocation143_spill] sm:$0xff] }
 0x45d   : > { %v1871_v25 = vmul.f32 %v8229_v33, %v11747_v36  ;;  %v3394_v3 = vadd.f32 %v8346_v47, %v3133_v61  ;;  %v3395_v24 = vadd.f32 %v8348_v4, %v3134_v51  ;;  %v9135_v15 = vadd.f32 %v1867_v14, %v11748_v27 }
 0x45e   : > { %v3384_v12 = vadd.f32 %v8346_v47, %v3123_v37  ;;  %v3385_v40 = vadd.f32 %v8348_v4, %v3124_v48  ;;  %v3404_v62 = vadd.f32 %v8346_v47, %v3143_v54  ;;  %v3405_v34 = vadd.f32 %v8348_v4, %v3144_v6 }
 0x45f   : > { %v1872_v57 = vmul.f32 %v8231_v21, %v11747_v36  ;;  %2596 = vperm.xlu2 %4823, %v4933_v11   ;;  %2612 = vperm.xlu0 %4824, %v4934_v53   ;;  %v9142_v42 = vadd.f32 %v1868_v5, %v11749_v0  ;;  %v9145_v39 = vadd.f32 %v1887_v44, %v11750_v13  ;;  %v11756_v0 = vld [vmem:[#allocation232_spill] sm:$0xff] }
 0x460   : > { %2592 = vperm.xlu1 %4825, %v4932_v30   ;;  %v3609_v29 = vpack.c.bf16 %v3385_v40, %v3384_v12  ;;  %v3619_v9 = vpack.c.bf16 %v3405_v34, %v3404_v62  ;;  %v3614_v2 = vpack.c.bf16 %v3395_v24, %v3394_v3  ;;  %v9148_v55 = vadd.f32 %v1888_v49, %v11751_v16  ;;  %v2445_v54 = vpop.permute.xlu0 %2444  ;;  %v11753_v49 = vld [vmem:[#allocation273_spill] sm:$0xff] }
 0x461   : > { %v9151_v22 = vadd.f32 %v1871_v25, %v11752_v58  ;;  %v2465_v5 = vpop.permute.xlu2 %2464  ;;  %v2883_v61 = vmul.f32 %v8312_v32, %v2445_v54  ;;  %v2884_v51 = vmul.f32 %v8314_v7, %v2445_v54  ;;  %v9162_v36 = vadd.f32 %v1872_v57, %v11753_v49  ;;  %v11754_v25 = vld [vmem:[#allocation230_spill] sm:$0xff]  ;;  %v11755_v57 = vld [vmem:[#allocation231_spill] sm:$0xff]  ;;  %v11757_v16 = vld [vmem:[#allocation61_spill] sm:$0xff] }
 0x462   : > { %v2425_v14 = vpop.permute.xlu1 %2424  ;;  %3737 = vst [vmem:[%s5291_s9 + $0x174] sm:$0xff] %v3609_v29  ;;  %v2893_v44 = vmul.f32 %v8312_v32, %v2465_v5  ;;  %v2894_v6 = vmul.f32 %v8314_v7, %v2465_v5  ;;  %v1873_v12 = vmul.f32 %v8229_v33, %v11754_v25  ;;  %v1874_v27 = vmul.f32 %v8231_v21, %v11754_v25 }
 0x463   : > { %v2873_v37 = vmul.f32 %v8312_v32, %v2425_v14  ;;  %v2874_v48 = vmul.f32 %v8314_v7, %v2425_v14  ;;  %3747 = vst [vmem:[%s5291_s9 + $0x1ec] sm:$0xff] %v3619_v9  ;;  %v3139_v24 = vadd.f32 %v2883_v61, %v8980_v1  ;;  %v3140_v30 = vadd.f32 %v2884_v51, %v8990_v19  ;;  %v4935_v19 = vld [vmem:[%s5302_s14 + $0x278] sm:$0xff]  ;;  %v4937_v14 = vld [vmem:[%s5302_s14 + $0x2a0] sm:$0xff] }
 0x464   : > { %3742 = vst [vmem:[%s5291_s9 + $0x1b0] sm:$0xff] %v3614_v2  ;;  %v3149_v34 = vadd.f32 %v2893_v44, %v8905_v59  ;;  %v3150_v3 = vadd.f32 %v2894_v6, %v8916_v28  ;;  %v1893_v29 = vmul.f32 %v8229_v33, %v11755_v57  ;;  %v1894_v53 = vmul.f32 %v8231_v21, %v11755_v57  ;;  %v4936_v2 = vld [vmem:[%s5302_s14 + $0x280] sm:$0xff] }
 0x465   : > { %v3129_v40 = vadd.f32 %v2873_v37, %v8897_v46  ;;  %v3130_v62 = vadd.f32 %v2874_v48, %v8902_v17  ;;  %v3400_v11 = vadd.f32 %v8346_v47, %v3139_v24  ;;  %v3401_v1 = vadd.f32 %v8348_v4, %v3140_v30  ;;  %v11758_v44 = vld [vmem:[#allocation272_spill] sm:$0xff]  ;;  %v11760_v30 = vld [vmem:[#allocation269_spill] sm:$0xff]  ;;  %v11761_v57 = vld [vmem:[#allocation67_spill] sm:$0xff] }
 0x466   : > { %v3410_v59 = vadd.f32 %v8346_v47, %v3149_v34  ;;  %v3411_v28 = vadd.f32 %v8348_v4, %v3150_v3  ;;  %v1877_v13 = vmul.f32 %v8229_v33, %v11756_v0  ;;  %v9191_v58 = vadd.f32 %v1873_v12, %v11757_v16  ;;  %v11759_v61 = vld [vmem:[#allocation60_spill] sm:$0xff] }
 0x467   : > { %v3390_v46 = vadd.f32 %v8346_v47, %v3129_v40  ;;  %v3391_v17 = vadd.f32 %v8348_v4, %v3130_v62  ;;  %2608 = vperm.xlu2 %4823, %v4936_v2   ;;  %2624 = vperm.xlu0 %4824, %v4937_v14   ;;  %v1878_v37 = vmul.f32 %v8231_v21, %v11756_v0  ;;  %v11763_v0 = vld [vmem:[#allocation233_spill] sm:$0xff]  ;;  %v11764_v14 = vld [vmem:[#allocation234_spill] sm:$0xff] }
 0x468   : > { %2604 = vperm.xlu1 %4825, %v4935_v19   ;;  %v3622_v48 = vpack.c.bf16 %v3411_v28, %v3410_v59  ;;  %v3617_v5 = vpack.c.bf16 %v3401_v1, %v3400_v11  ;;  %v9196_v6 = vadd.f32 %v1874_v27, %v11758_v44  ;;  %v9199_v51 = vadd.f32 %v1893_v29, %v11759_v61  ;;  %v2457_v40 = vpop.permute.xlu0 %2456  ;;  %v11762_v19 = vld [vmem:[#allocation276_spill] sm:$0xff]  ;;  %v11765_v44 = vld [vmem:[#allocation235_spill] sm:$0xff] }
 0x469   : > { %v3612_v9 = vpack.c.bf16 %v3391_v17, %v3390_v46  ;;  %v2477_v12 = vpop.permute.xlu2 %2476  ;;  %v2889_v3 = vmul.f32 %v8312_v32, %v2457_v40  ;;  %v2890_v24 = vmul.f32 %v8314_v7, %v2457_v40  ;;  %v9210_v27 = vadd.f32 %v1894_v53, %v11760_v30  ;;  %v11766_v40 = vld [vmem:[#allocation66_spill] sm:$0xff] }
 0x46a   : > { %v2437_v54 = vpop.permute.xlu1 %2436  ;;  %3750 = vst [vmem:[%s5291_s9 + $0x210] sm:$0xff] %v3622_v48  ;;  %v2899_v62 = vmul.f32 %v8312_v32, %v2477_v12  ;;  %v2900_v34 = vmul.f32 %v8314_v7, %v2477_v12  ;;  %v9213_v29 = vadd.f32 %v1877_v13, %v11761_v57  ;;  %v9223_v53 = vadd.f32 %v1878_v37, %v11762_v19  ;;  %v4939_v48 = vld [vmem:[%s5302_s14 + $0x298] sm:$0xff]  ;;  %v11768_v19 = vld [vmem:[#allocation65_spill] sm:$0xff] }
 0x46b   : > { %3740 = vst [vmem:[%s5291_s9 + $0x198] sm:$0xff] %v3612_v9  ;;  %v2879_v49 = vmul.f32 %v8312_v32, %v2437_v54  ;;  %v2880_v25 = vmul.f32 %v8314_v7, %v2437_v54  ;;  %v3145_v11 = vadd.f32 %v2889_v3, %v9041_v10  ;;  %v3146_v1 = vadd.f32 %v2890_v24, %v9046_v45  ;;  %v4938_v45 = vld [vmem:[%s5302_s14 + $0x290] sm:$0xff] }
 0x46c   : > { %3745 = vst [vmem:[%s5291_s9 + $0x1d4] sm:$0xff] %v3617_v5  ;;  %v3155_v59 = vadd.f32 %v2899_v62, %v8967_v38  ;;  %v3156_v28 = vadd.f32 %v2900_v34, %v8977_v23  ;;  %v1879_v13 = vmul.f32 %v8229_v33, %v11763_v0  ;;  %v1880_v2 = vmul.f32 %v8231_v21, %v11763_v0  ;;  %v4940_v5 = vld [vmem:[%s5302_s14 + $0x2b8] sm:$0xff] }
 0x46d   : > { %v3135_v46 = vadd.f32 %v2879_v49, %v8951_v63  ;;  %v3136_v17 = vadd.f32 %v2880_v25, %v8964_v8  ;;  %v3406_v9 = vadd.f32 %v8346_v47, %v3145_v11  ;;  %v3407_v10 = vadd.f32 %v8348_v4, %v3146_v1  ;;  %v11767_v11 = vld [vmem:[#allocation275_spill] sm:$0xff] }
 0x46e   : > { %v3416_v38 = vadd.f32 %v8346_v47, %v3155_v59  ;;  %v3417_v23 = vadd.f32 %v8348_v4, %v3156_v28  ;;  %v1899_v16 = vmul.f32 %v8229_v33, %v11764_v14  ;;  %v1900_v54 = vmul.f32 %v8231_v21, %v11764_v14 }
 0x46f   : > { %v3396_v63 = vadd.f32 %v8346_v47, %v3135_v46  ;;  %v3397_v8 = vadd.f32 %v8348_v4, %v3136_v17  ;;  %2620 = vperm.xlu2 %4823, %v4939_v48   ;;  %2636 = vperm.xlu0 %4824, %v4940_v5   ;;  %v1883_v61 = vmul.f32 %v8229_v33, %v11765_v44  ;;  %v11772_v5 = vld [vmem:[#allocation236_spill] sm:$0xff] }
 0x470   : > { %2616 = vperm.xlu1 %4825, %v4938_v45   ;;  %v3625_v49 = vpack.c.bf16 %v3417_v23, %v3416_v38  ;;  %v3620_v25 = vpack.c.bf16 %v3407_v10, %v3406_v9  ;;  %v9245_v62 = vadd.f32 %v1879_v13, %v11766_v40  ;;  %v1884_v34 = vmul.f32 %v8231_v21, %v11765_v44  ;;  %v2469_v57 = vpop.permute.xlu0 %2468  ;;  %v11769_v10 = vld [vmem:[#allocation274_spill] sm:$0xff] }
 0x471   : > { %v3615_v37 = vpack.c.bf16 %v3397_v8, %v3396_v63  ;;  %v2489_v30 = vpop.permute.xlu2 %2488  ;;  %v2895_v59 = vmul.f32 %v8312_v32, %v2469_v57  ;;  %v2896_v28 = vmul.f32 %v8314_v7, %v2469_v57  ;;  %v9258_v1 = vadd.f32 %v1880_v2, %v11767_v11  ;;  %v11770_v2 = vld [vmem:[#allocation73_spill] sm:$0xff]  ;;  %v11774_v57 = vld [vmem:[#allocation238_spill] sm:$0xff] }
 0x472   : > { %v2449_v12 = vpop.permute.xlu1 %2448  ;;  %3753 = vst [vmem:[%s5291_s9 + $0x234] sm:$0xff] %v3625_v49  ;;  %v2905_v46 = vmul.f32 %v8312_v32, %v2489_v30  ;;  %v2906_v17 = vmul.f32 %v8314_v7, %v2489_v30  ;;  %v9261_v0 = vadd.f32 %v1899_v16, %v11768_v19  ;;  %v9271_v45 = vadd.f32 %v1900_v54, %v11769_v10  ;;  %v4943_v49 = vld [vmem:[%s5302_s14 + $0x2d0] sm:$0xff] }
 0x473   : > { %3743 = vst [vmem:[%s5291_s9 + $0x1bc] sm:$0xff] %v3615_v37  ;;  %v2885_v3 = vmul.f32 %v8312_v32, %v2449_v12  ;;  %v2886_v24 = vmul.f32 %v8314_v7, %v2449_v12  ;;  %v3151_v23 = vadd.f32 %v2895_v59, %v9097_v50  ;;  %v3152_v9 = vadd.f32 %v2896_v28, %v9100_v60  ;;  %v4941_v60 = vld [vmem:[%s5302_s14 + $0x2a8] sm:$0xff]  ;;  %v11771_v37 = vld [vmem:[#allocation279_spill] sm:$0xff] }
 0x474   : > { %3748 = vst [vmem:[%s5291_s9 + $0x1f8] sm:$0xff] %v3620_v25  ;;  %v3161_v8 = vadd.f32 %v2905_v46, %v9028_v41  ;;  %v3162_v38 = vadd.f32 %v2906_v17, %v9038_v35  ;;  %v9274_v14 = vadd.f32 %v1883_v61, %v11770_v2  ;;  %v9284_v48 = vadd.f32 %v1884_v34, %v11771_v37  ;;  %v4942_v61 = vld [vmem:[%s5302_s14 + $0x2b0] sm:$0xff] }
 0x475   : > { %v3141_v13 = vadd.f32 %v2885_v3, %v9013_v31  ;;  %v3142_v63 = vadd.f32 %v2886_v24, %v9025_v43  ;;  %v3412_v16 = vadd.f32 %v8346_v47, %v3151_v23  ;;  %v3413_v50 = vadd.f32 %v8348_v4, %v3152_v9  ;;  %v11773_v12 = vld [vmem:[#allocation237_spill] sm:$0xff] }
 0x476   : > { %v3422_v41 = vadd.f32 %v8346_v47, %v3161_v8  ;;  %v3423_v35 = vadd.f32 %v8348_v4, %v3162_v38  ;;  %v1885_v54 = vmul.f32 %v8229_v33, %v11772_v5  ;;  %v1886_v25 = vmul.f32 %v8231_v21, %v11772_v5  ;;  %v11775_v38 = vld [vmem:[#allocation72_spill] sm:$0xff] }
 0x477   : > { %v3402_v31 = vadd.f32 %v8346_v47, %v3141_v13  ;;  %v3403_v43 = vadd.f32 %v8348_v4, %v3142_v63  ;;  %2632 = vperm.xlu2 %4823, %v4942_v61   ;;  %2648 = vperm.xlu0 %4824, %v4943_v49   ;;  %v1905_v40 = vmul.f32 %v8229_v33, %v11773_v12  ;;  %v11779_v61 = vld [vmem:[#allocation79_spill] sm:$0xff] }
 0x478   : > { %2628 = vperm.xlu1 %4825, %v4941_v60   ;;  %v3628_v3 = vpack.c.bf16 %v3423_v35, %v3422_v41  ;;  %v3623_v24 = vpack.c.bf16 %v3413_v50, %v3412_v16  ;;  %v1906_v30 = vmul.f32 %v8231_v21, %v11773_v12  ;;  %v1889_v46 = vmul.f32 %v8229_v33, %v11774_v57  ;;  %v11776_v16 = vld [vmem:[#allocation278_spill] sm:$0xff]  ;;  %v11777_v60 = vld [vmem:[#allocation71_spill] sm:$0xff]  ;;  %v4945_v12 = vld [vmem:[%s5302_s14 + $0x2c8] sm:$0xff] }
 0x479   : > { %v3618_v44 = vpack.c.bf16 %v3403_v43, %v3402_v31  ;;  %v2501_v28 = vpop.permute.xlu2 %2500  ;;  %v2481_v11 = vpop.permute.xlu0 %2480  ;;  %v9307_v23 = vadd.f32 %v1885_v54, %v11775_v38  ;;  %v1890_v9 = vmul.f32 %v8231_v21, %v11774_v57  ;;  %v9319_v50 = vadd.f32 %v1886_v25, %v11776_v16  ;;  %v11778_v54 = vld [vmem:[#allocation277_spill] sm:$0xff] }
 0x47a   : > { %v2461_v34 = vpop.permute.xlu1 %2460  ;;  %3756 = vst [vmem:[%s5291_s9 + $0x258] sm:$0xff] %v3628_v3  ;;  %v2911_v19 = vmul.f32 %v8312_v32, %v2501_v28  ;;  %v2912_v13 = vmul.f32 %v8314_v7, %v2501_v28  ;;  %v2901_v63 = vmul.f32 %v8312_v32, %v2481_v11  ;;  %v2902_v8 = vmul.f32 %v8314_v7, %v2481_v11  ;;  %v11780_v3 = vld [vmem:[#allocation282_spill] sm:$0xff]  ;;  %v11782_v28 = vld [vmem:[#allocation240_spill] sm:$0xff] }
 0x47b   : > { %3746 = vst [vmem:[%s5291_s9 + $0x1e0] sm:$0xff] %v3618_v44  ;;  %v2891_v17 = vmul.f32 %v8312_v32, %v2461_v34  ;;  %v2892_v59 = vmul.f32 %v8314_v7, %v2461_v34  ;;  %v9322_v37 = vadd.f32 %v1905_v40, %v11777_v60  ;;  %v9332_v44 = vadd.f32 %v1906_v30, %v11778_v54  ;;  %v4946_v40 = vld [vmem:[%s5302_s14 + $0x2e8] sm:$0xff]  ;;  %v11781_v34 = vld [vmem:[#allocation239_spill] sm:$0xff] }
 0x47c   : > { %3751 = vst [vmem:[%s5291_s9 + $0x21c] sm:$0xff] %v3623_v24  ;;  %v3167_v31 = vadd.f32 %v2911_v19, %v9089_v52  ;;  %v3168_v43 = vadd.f32 %v2912_v13, %v9094_v26  ;;  %v3157_v41 = vadd.f32 %v2901_v63, %v9151_v22  ;;  %v3158_v35 = vadd.f32 %v2902_v8, %v9162_v36  ;;  %v4944_v36 = vld [vmem:[%s5302_s14 + $0x2c0] sm:$0xff]  ;;  %v11785_v54 = vld [vmem:[#allocation281_spill] sm:$0xff] }
 0x47d   : > { %v3147_v10 = vadd.f32 %v2891_v17, %v9074_v56  ;;  %v3148_v2 = vadd.f32 %v2892_v59, %v9086_v18  ;;  %v9335_v49 = vadd.f32 %v1889_v46, %v11779_v61  ;;  %v9340_v24 = vadd.f32 %v1890_v9, %v11780_v3  ;;  %v4948_v3 = vld [vmem:[%s5302_s14 + $0x2e0] sm:$0xff] }
 0x47e   : > { %v3428_v52 = vadd.f32 %v8346_v47, %v3167_v31  ;;  %v3429_v26 = vadd.f32 %v8348_v4, %v3168_v43  ;;  %v3418_v5 = vadd.f32 %v8346_v47, %v3157_v41  ;;  %v3419_v22 = vadd.f32 %v8348_v4, %v3158_v35  ;;  %v11783_v43 = vld [vmem:[#allocation241_spill] sm:$0xff] }
 0x47f   : > { %v3408_v56 = vadd.f32 %v8346_v47, %v3147_v10  ;;  %v3409_v18 = vadd.f32 %v8348_v4, %v3148_v2  ;;  %2644 = vperm.xlu2 %4823, %v4945_v12   ;;  %2660 = vperm.xlu0 %4824, %v4946_v40   ;;  %v1891_v57 = vmul.f32 %v8229_v33, %v11781_v34 }
 0x480   : > { %2640 = vperm.xlu1 %4825, %v4944_v36   ;;  %v3631_v17 = vpack.c.bf16 %v3429_v26, %v3428_v52  ;;  %v3626_v59 = vpack.c.bf16 %v3419_v22, %v3418_v5  ;;  %v1892_v46 = vmul.f32 %v8231_v21, %v11781_v34  ;;  %v1911_v11 = vmul.f32 %v8229_v33, %v11782_v28  ;;  %v11784_v26 = vld [vmem:[#allocation78_spill] sm:$0xff]  ;;  %v4949_v34 = vld [vmem:[%s5302_s14 + $0x300] sm:$0xff] }
 0x481   : > { %v3621_v25 = vpack.c.bf16 %v3409_v18, %v3408_v56  ;;  %v2513_v63 = vpop.permute.xlu2 %2512  ;;  %v2493_v8 = vpop.permute.xlu0 %2492  ;;  %v1912_v31 = vmul.f32 %v8231_v21, %v11782_v28  ;;  %v1895_v41 = vmul.f32 %v8229_v33, %v11783_v43  ;;  %v9368_v5 = vadd.f32 %v1891_v57, %v11784_v26  ;;  %v11787_v57 = vld [vmem:[#allocation280_spill] sm:$0xff] }
 0x482   : > { %v2473_v30 = vpop.permute.xlu1 %2472  ;;  %3759 = vst [vmem:[%s5291_s9 + $0x27c] sm:$0xff] %v3631_v17  ;;  %v2917_v38 = vmul.f32 %v8312_v32, %v2513_v63  ;;  %v2918_v9 = vmul.f32 %v8314_v7, %v2513_v63  ;;  %v2907_v10 = vmul.f32 %v8312_v32, %v2493_v8  ;;  %v2908_v2 = vmul.f32 %v8314_v7, %v2493_v8 }
 0x483   : > { %3749 = vst [vmem:[%s5291_s9 + $0x204] sm:$0xff] %v3621_v25  ;;  %v2897_v19 = vmul.f32 %v8312_v32, %v2473_v30  ;;  %v2898_v13 = vmul.f32 %v8314_v7, %v2473_v30  ;;  %v1896_v22 = vmul.f32 %v8231_v21, %v11783_v43  ;;  %v9380_v61 = vadd.f32 %v1892_v46, %v11785_v54  ;;  %v11786_v25 = vld [vmem:[#allocation77_spill] sm:$0xff] }
 0x484   : > { %3754 = vst [vmem:[%s5291_s9 + $0x240] sm:$0xff] %v3626_v59  ;;  %v3173_v60 = vadd.f32 %v2917_v38, %v9145_v39  ;;  %v3174_v56 = vadd.f32 %v2918_v9, %v9148_v55  ;;  %v3163_v18 = vadd.f32 %v2907_v10, %v9213_v29  ;;  %v3164_v52 = vadd.f32 %v2908_v2, %v9223_v53  ;;  %v4947_v53 = vld [vmem:[%s5302_s14 + $0x2d8] sm:$0xff]  ;;  %v11788_v59 = vld [vmem:[#allocation85_spill] sm:$0xff] }
 0x485   : > { %v3153_v35 = vadd.f32 %v2897_v19, %v9135_v15  ;;  %v3154_v16 = vadd.f32 %v2898_v13, %v9142_v42  ;;  %v9383_v12 = vadd.f32 %v1911_v11, %v11786_v25  ;;  %v9388_v17 = vadd.f32 %v1912_v31, %v11787_v57  ;;  %v11789_v13 = vld [vmem:[#allocation157_spill] sm:$0xff]  ;;  %v11790_v11 = vld [vmem:[#allocation242_spill] sm:$0xff]  ;;  %v11794_v57 = vld [vmem:[#allocation84_spill] sm:$0xff] }
 0x486   : > { %v3434_v39 = vadd.f32 %v8346_v47, %v3173_v60  ;;  %v3435_v55 = vadd.f32 %v8348_v4, %v3174_v56  ;;  %v3424_v36 = vadd.f32 %v8346_v47, %v3163_v18  ;;  %v3425_v29 = vadd.f32 %v8348_v4, %v3164_v52  ;;  %v11791_v60 = vld [vmem:[#allocation243_spill] sm:$0xff] }
 0x487   : > { %v3414_v15 = vadd.f32 %v8346_v47, %v3153_v35  ;;  %v3415_v42 = vadd.f32 %v8348_v4, %v3154_v16  ;;  %2656 = vperm.xlu2 %4823, %v4948_v3   ;;  %2672 = vperm.xlu0 %4824, %v4949_v34   ;;  %v9391_v30 = vadd.f32 %v1895_v41, %v11788_v59  ;;  %v4951_v3 = vld [vmem:[%s5302_s14 + $0x2f8] sm:$0xff] }
 0x488   : > { %2652 = vperm.xlu1 %4825, %v4947_v53   ;;  %v3634_v28 = vpack.c.bf16 %v3435_v55, %v3434_v39  ;;  %v3629_v19 = vpack.c.bf16 %v3425_v29, %v3424_v36  ;;  %v9394_v63 = vadd.f32 %v1896_v22, %v11789_v13  ;;  %v1897_v8 = vmul.f32 %v8229_v33, %v11790_v11  ;;  %v11792_v55 = vld [vmem:[#allocation244_spill] sm:$0xff]  ;;  %v11793_v53 = vld [vmem:[#allocation149_spill] sm:$0xff]  ;;  %v4952_v34 = vld [vmem:[%s5302_s14 + $0x318] sm:$0xff] }
 0x489   : > { %v3624_v40 = vpack.c.bf16 %v3415_v42, %v3414_v15  ;;  %v2525_v10 = vpop.permute.xlu2 %2524  ;;  %v2505_v2 = vpop.permute.xlu0 %2504  ;;  %v1898_v16 = vmul.f32 %v8231_v21, %v11790_v11  ;;  %v1917_v56 = vmul.f32 %v8229_v33, %v11791_v60  ;;  %v1918_v39 = vmul.f32 %v8231_v21, %v11791_v60 }
 0x48a   : > { %v2485_v46 = vpop.permute.xlu1 %2484  ;;  %3762 = vst [vmem:[%s5291_s9 + $0x2a0] sm:$0xff] %v3634_v28  ;;  %v2923_v31 = vmul.f32 %v8312_v32, %v2525_v10  ;;  %v2924_v43 = vmul.f32 %v8314_v7, %v2525_v10  ;;  %v2913_v41 = vmul.f32 %v8312_v32, %v2505_v2  ;;  %v2914_v35 = vmul.f32 %v8314_v7, %v2505_v2  ;;  %v11795_v28 = vld [vmem:[#allocation83_spill] sm:$0xff] }
 0x48b   : > { %3752 = vst [vmem:[%s5291_s9 + $0x228] sm:$0xff] %v3624_v40  ;;  %v2903_v38 = vmul.f32 %v8312_v32, %v2485_v46  ;;  %v2904_v9 = vmul.f32 %v8314_v7, %v2485_v46  ;;  %v1901_v36 = vmul.f32 %v8229_v33, %v11792_v55  ;;  %v9429_v54 = vadd.f32 %v1897_v8, %v11793_v53  ;;  %v11796_v8 = vld [vmem:[#allocation283_spill] sm:$0xff] }
 0x48c   : > { %3757 = vst [vmem:[%s5291_s9 + $0x264] sm:$0xff] %v3629_v19  ;;  %v3179_v26 = vadd.f32 %v2923_v31, %v9199_v51  ;;  %v3180_v22 = vadd.f32 %v2924_v43, %v9210_v27  ;;  %v3169_v15 = vadd.f32 %v2913_v41, %v9274_v14  ;;  %v3170_v42 = vadd.f32 %v2914_v35, %v9284_v48  ;;  %v4950_v48 = vld [vmem:[%s5302_s14 + $0x2f0] sm:$0xff] }
 0x48d   : > { %v3159_v18 = vadd.f32 %v2903_v38, %v9191_v58  ;;  %v3160_v52 = vadd.f32 %v2904_v9, %v9196_v6  ;;  %v1902_v25 = vmul.f32 %v8231_v21, %v11792_v55  ;;  %v9436_v59 = vadd.f32 %v1898_v16, %v11794_v57  ;;  %v11797_v9 = vld [vmem:[#allocation88_spill] sm:$0xff] }
 0x48e   : > { %v3440_v51 = vadd.f32 %v8346_v47, %v3179_v26  ;;  %v3441_v27 = vadd.f32 %v8348_v4, %v3180_v22  ;;  %v3430_v29 = vadd.f32 %v8346_v47, %v3169_v15  ;;  %v3431_v14 = vadd.f32 %v8348_v4, %v3170_v42  ;;  %v11799_v26 = vld [vmem:[#allocation64_spill] sm:$0xff] }
 0x48f   : > { %v3420_v58 = vadd.f32 %v8346_v47, %v3159_v18  ;;  %v3421_v6 = vadd.f32 %v8348_v4, %v3160_v52  ;;  %2668 = vperm.xlu2 %4823, %v4951_v3   ;;  %2684 = vperm.xlu0 %4824, %v4952_v34   ;;  %v9439_v19 = vadd.f32 %v1917_v56, %v11795_v28  ;;  %v11798_v18 = vld [vmem:[#allocation288_spill] sm:$0xff]  ;;  %v4955_v3 = vld [vmem:[%s5302_s14 + $0x330] sm:$0xff]  ;;  %v11802_v34 = vld [vmem:[#allocation87_spill] sm:$0xff] }
 0x490   : > { %2664 = vperm.xlu1 %4825, %v4950_v48   ;;  %v3637_v46 = vpack.c.bf16 %v3441_v27, %v3440_v51  ;;  %v3632_v13 = vpack.c.bf16 %v3431_v14, %v3430_v29  ;;  %v9442_v38 = vadd.f32 %v1918_v39, %v11796_v8  ;;  %v9445_v10 = vadd.f32 %v1901_v36, %v11797_v9  ;;  %v11800_v51 = vld [vmem:[#allocation63_spill] sm:$0xff]  ;;  %v11801_v48 = vld [vmem:[#allocation70_spill] sm:$0xff] }
 0x491   : > { %v3627_v40 = vpack.c.bf16 %v3421_v6, %v3420_v58  ;;  %v2537_v43 = vpop.permute.xlu2 %2536  ;;  %v2517_v41 = vpop.permute.xlu0 %2516  ;;  %v9456_v52 = vadd.f32 %v1902_v25, %v11798_v18  ;;  %v1903_v22 = vmul.f32 %v8229_v33, %v11799_v26  ;;  %v1904_v6 = vmul.f32 %v8231_v21, %v11799_v26  ;;  %v11803_v8 = vld [vmem:[#allocation287_spill] sm:$0xff] }
 0x492   : > { %v2497_v11 = vpop.permute.xlu1 %2496  ;;  %3765 = vst [vmem:[%s5291_s9 + $0x2c4] sm:$0xff] %v3637_v46  ;;  %v2929_v35 = vmul.f32 %v8312_v32, %v2537_v43  ;;  %v2930_v16 = vmul.f32 %v8314_v7, %v2537_v43  ;;  %v2919_v60 = vmul.f32 %v8312_v32, %v2517_v41  ;;  %v2920_v56 = vmul.f32 %v8314_v7, %v2517_v41 }
 0x493   : > { %3755 = vst [vmem:[%s5291_s9 + $0x24c] sm:$0xff] %v3627_v40  ;;  %v2909_v2 = vmul.f32 %v8312_v32, %v2497_v11  ;;  %v2910_v31 = vmul.f32 %v8314_v7, %v2497_v11  ;;  %v1923_v27 = vmul.f32 %v8229_v33, %v11800_v51  ;;  %v1924_v14 = vmul.f32 %v8231_v21, %v11800_v51  ;;  %v4954_v40 = vld [vmem:[%s5302_s14 + $0x310] sm:$0xff] }
 0x494   : > { %3760 = vst [vmem:[%s5291_s9 + $0x288] sm:$0xff] %v3632_v13  ;;  %v3185_v39 = vadd.f32 %v2929_v35, %v9261_v0  ;;  %v3186_v55 = vadd.f32 %v2930_v16, %v9271_v45  ;;  %v3175_v36 = vadd.f32 %v2919_v60, %v9335_v49  ;;  %v3176_v58 = vadd.f32 %v2920_v56, %v9340_v24  ;;  %v4953_v24 = vld [vmem:[%s5302_s14 + $0x308] sm:$0xff] }
 0x495   : > { %v3165_v15 = vadd.f32 %v2909_v2, %v9245_v62  ;;  %v3166_v42 = vadd.f32 %v2910_v31, %v9258_v1  ;;  %v1907_v53 = vmul.f32 %v8229_v33, %v11801_v48  ;;  %v9485_v57 = vadd.f32 %v1903_v22, %v11802_v34  ;;  %v11804_v2 = vld [vmem:[#allocation86_spill] sm:$0xff]  ;;  %v11805_v22 = vld [vmem:[#allocation284_spill] sm:$0xff] }
 0x496   : > { %v3446_v0 = vadd.f32 %v8346_v47, %v3185_v39  ;;  %v3447_v45 = vadd.f32 %v8348_v4, %v3186_v55  ;;  %v3436_v29 = vadd.f32 %v8346_v47, %v3175_v36  ;;  %v3437_v49 = vadd.f32 %v8348_v4, %v3176_v58 }
 0x497   : > { %v3426_v62 = vadd.f32 %v8346_v47, %v3165_v15  ;;  %v3427_v1 = vadd.f32 %v8348_v4, %v3166_v42  ;;  %2680 = vperm.xlu2 %4823, %v4954_v40   ;;  %2696 = vperm.xlu0 %4824, %v4955_v3   ;;  %v1908_v28 = vmul.f32 %v8231_v21, %v11801_v48  ;;  %v11806_v42 = vld [vmem:[#allocation91_spill] sm:$0xff]  ;;  %v11810_v3 = vld [vmem:[#allocation76_spill] sm:$0xff] }
 0x498   : > { %2676 = vperm.xlu1 %4825, %v4953_v24   ;;  %v3640_v46 = vpack.c.bf16 %v3447_v45, %v3446_v0  ;;  %v3635_v13 = vpack.c.bf16 %v3437_v49, %v3436_v29  ;;  %v9490_v9 = vadd.f32 %v1904_v6, %v11803_v8  ;;  %v9493_v31 = vadd.f32 %v1923_v27, %v11804_v2  ;;  %v11808_v0 = vld [vmem:[#allocation69_spill] sm:$0xff]  ;;  %v11809_v24 = vld [vmem:[#allocation68_spill] sm:$0xff] }
 0x499   : > { %v3630_v25 = vpack.c.bf16 %v3427_v1, %v3426_v62  ;;  %v2549_v35 = vpop.permute.xlu2 %2548  ;;  %v2529_v16 = vpop.permute.xlu0 %2528  ;;  %v9504_v15 = vadd.f32 %v1924_v14, %v11805_v22  ;;  %v9507_v39 = vadd.f32 %v1907_v53, %v11806_v42  ;;  %v11807_v62 = vld [vmem:[#allocation291_spill] sm:$0xff]  ;;  %v1909_v45 = vmul.f32 %v8229_v33, %v11808_v0  ;;  %v4957_v53 = vld [vmem:[%s5302_s14 + $0x328] sm:$0xff]  ;;  %v11812_v22 = vld [vmem:[#allocation290_spill] sm:$0xff] }
 0x49a   : > { %v2509_v11 = vpop.permute.xlu1 %2508  ;;  %3768 = vst [vmem:[%s5291_s9 + $0x2e8] sm:$0xff] %v3640_v46  ;;  %v2935_v60 = vmul.f32 %v8312_v32, %v2549_v35  ;;  %v2936_v56 = vmul.f32 %v8314_v7, %v2549_v35  ;;  %v2925_v18 = vmul.f32 %v8312_v32, %v2529_v16  ;;  %v2926_v26 = vmul.f32 %v8314_v7, %v2529_v16 }
 0x49b   : > { %3758 = vst [vmem:[%s5291_s9 + $0x270] sm:$0xff] %v3630_v25  ;;  %v2915_v43 = vmul.f32 %v8312_v32, %v2509_v11  ;;  %v2916_v41 = vmul.f32 %v8314_v7, %v2509_v11  ;;  %v9517_v1 = vadd.f32 %v1908_v28, %v11807_v62  ;;  %v1910_v49 = vmul.f32 %v8231_v21, %v11808_v0  ;;  %v4958_v25 = vld [vmem:[%s5302_s14 + $0x348] sm:$0xff]  ;;  %v11811_v11 = vld [vmem:[#allocation90_spill] sm:$0xff] }
 0x49c   : > { %3763 = vst [vmem:[%s5291_s9 + $0x2ac] sm:$0xff] %v3635_v13  ;;  %v3191_v58 = vadd.f32 %v2935_v60, %v9322_v37  ;;  %v3192_v6 = vadd.f32 %v2936_v56, %v9332_v44  ;;  %v3181_v51 = vadd.f32 %v2925_v18, %v9391_v30  ;;  %v3182_v27 = vadd.f32 %v2926_v26, %v9394_v63  ;;  %v4956_v63 = vld [vmem:[%s5302_s14 + $0x320] sm:$0xff] }
 0x49d   : > { %v3171_v55 = vadd.f32 %v2915_v43, %v9307_v23  ;;  %v3172_v36 = vadd.f32 %v2916_v41, %v9319_v50  ;;  %v1929_v14 = vmul.f32 %v8229_v33, %v11809_v24  ;;  %v1930_v40 = vmul.f32 %v8231_v21, %v11809_v24 }
 0x49e   : > { %v3452_v37 = vadd.f32 %v8346_v47, %v3191_v58  ;;  %v3453_v44 = vadd.f32 %v8348_v4, %v3192_v6  ;;  %v3442_v29 = vadd.f32 %v8346_v47, %v3181_v51  ;;  %v3443_v30 = vadd.f32 %v8348_v4, %v3182_v27 }
 0x49f   : > { %v3432_v23 = vadd.f32 %v8346_v47, %v3171_v55  ;;  %v3433_v50 = vadd.f32 %v8348_v4, %v3172_v36  ;;  %2692 = vperm.xlu2 %4823, %v4957_v53   ;;  %2708 = vperm.xlu0 %4824, %v4958_v25   ;;  %v1913_v34 = vmul.f32 %v8229_v33, %v11810_v3  ;;  %v11813_v55 = vld [vmem:[#allocation89_spill] sm:$0xff]  ;;  %v11818_v25 = vld [vmem:[#allocation74_spill] sm:$0xff] }
 0x4a0   : > { %2688 = vperm.xlu1 %4825, %v4956_v63   ;;  %v3643_v28 = vpack.c.bf16 %v3453_v44, %v3452_v37  ;;  %v3638_v46 = vpack.c.bf16 %v3443_v30, %v3442_v29  ;;  %v9539_v8 = vadd.f32 %v1909_v45, %v11811_v11  ;;  %v1914_v2 = vmul.f32 %v8231_v21, %v11810_v3  ;;  %v11814_v45 = vld [vmem:[#allocation289_spill] sm:$0xff]  ;;  %v11816_v29 = vld [vmem:[#allocation294_spill] sm:$0xff]  ;;  %v11817_v63 = vld [vmem:[#allocation75_spill] sm:$0xff] }
 0x4a1   : > { %v3633_v48 = vpack.c.bf16 %v3433_v50, %v3432_v23  ;;  %v2561_v35 = vpop.permute.xlu2 %2560  ;;  %v2541_v16 = vpop.permute.xlu0 %2540  ;;  %v9552_v42 = vadd.f32 %v1910_v49, %v11812_v22  ;;  %v9555_v36 = vadd.f32 %v1929_v14, %v11813_v55  ;;  %v9565_v23 = vadd.f32 %v1930_v40, %v11814_v45  ;;  %v11815_v50 = vld [vmem:[#allocation94_spill] sm:$0xff]  ;;  %v4960_v14 = vld [vmem:[%s5302_s14 + $0x340] sm:$0xff]  ;;  %v11821_v45 = vld [vmem:[#allocation293_spill] sm:$0xff] }
 0x4a2   : > { %v2521_v13 = vpop.permute.xlu1 %2520  ;;  %3771 = vst [vmem:[%s5291_s9 + $0x30c] sm:$0xff] %v3643_v28  ;;  %v2941_v60 = vmul.f32 %v8312_v32, %v2561_v35  ;;  %v2942_v56 = vmul.f32 %v8314_v7, %v2561_v35  ;;  %v2931_v18 = vmul.f32 %v8312_v32, %v2541_v16  ;;  %v2932_v26 = vmul.f32 %v8314_v7, %v2541_v16 }
 0x4a3   : > { %3761 = vst [vmem:[%s5291_s9 + $0x294] sm:$0xff] %v3633_v48  ;;  %v2921_v43 = vmul.f32 %v8312_v32, %v2521_v13  ;;  %v2922_v41 = vmul.f32 %v8314_v7, %v2521_v13  ;;  %v9568_v37 = vadd.f32 %v1913_v34, %v11815_v50  ;;  %v9578_v30 = vadd.f32 %v1914_v2, %v11816_v29  ;;  %v4961_v48 = vld [vmem:[%s5302_s14 + $0x360] sm:$0xff]  ;;  %v11819_v13 = vld [vmem:[#allocation82_spill] sm:$0xff] }
 0x4a4   : > { %3766 = vst [vmem:[%s5291_s9 + $0x2d0] sm:$0xff] %v3638_v46  ;;  %v3197_v51 = vadd.f32 %v2941_v60, %v9383_v12  ;;  %v3198_v27 = vadd.f32 %v2942_v56, %v9388_v17  ;;  %v3187_v62 = vadd.f32 %v2931_v18, %v9445_v10  ;;  %v3188_v0 = vadd.f32 %v2932_v26, %v9456_v52  ;;  %v4959_v52 = vld [vmem:[%s5302_s14 + $0x338] sm:$0xff]  ;;  %v11820_v26 = vld [vmem:[#allocation93_spill] sm:$0xff] }
 0x4a5   : > { %v3177_v58 = vadd.f32 %v2921_v43, %v9368_v5  ;;  %v3178_v6 = vadd.f32 %v2922_v41, %v9380_v61  ;;  %v1915_v49 = vmul.f32 %v8229_v33, %v11817_v63  ;;  %v1916_v53 = vmul.f32 %v8231_v21, %v11817_v63  ;;  %v4963_v63 = vld [vmem:[%s5302_s14 + $0x358] sm:$0xff] }
 0x4a6   : > { %v3458_v12 = vadd.f32 %v8346_v47, %v3197_v51  ;;  %v3459_v17 = vadd.f32 %v8348_v4, %v3198_v27  ;;  %v3448_v44 = vadd.f32 %v8346_v47, %v3187_v62  ;;  %v3449_v10 = vadd.f32 %v8348_v4, %v3188_v0 }
 0x4a7   : > { %v3438_v5 = vadd.f32 %v8346_v47, %v3177_v58  ;;  %v3439_v61 = vadd.f32 %v8348_v4, %v3178_v6  ;;  %2704 = vperm.xlu2 %4823, %v4960_v14   ;;  %2720 = vperm.xlu0 %4824, %v4961_v48   ;;  %v1935_v40 = vmul.f32 %v8229_v33, %v11818_v25  ;;  %v11826_v48 = vld [vmem:[#allocation81_spill] sm:$0xff] }
 0x4a8   : > { %2700 = vperm.xlu1 %4825, %v4959_v52   ;;  %v3646_v3 = vpack.c.bf16 %v3459_v17, %v3458_v12  ;;  %v3641_v34 = vpack.c.bf16 %v3449_v10, %v3448_v44  ;;  %v1936_v46 = vmul.f32 %v8231_v21, %v11818_v25  ;;  %v1919_v11 = vmul.f32 %v8229_v33, %v11819_v13  ;;  %v11823_v17 = vld [vmem:[#allocation292_spill] sm:$0xff]  ;;  %v11824_v10 = vld [vmem:[#allocation99_spill] sm:$0xff] }
 0x4a9   : > { %v3636_v24 = vpack.c.bf16 %v3439_v61, %v3438_v5  ;;  %v2573_v41 = vpop.permute.xlu2 %2572  ;;  %v2553_v35 = vpop.permute.xlu0 %2552  ;;  %v9601_v22 = vadd.f32 %v1915_v49, %v11820_v26  ;;  %v1920_v55 = vmul.f32 %v8231_v21, %v11819_v13  ;;  %v9613_v50 = vadd.f32 %v1916_v53, %v11821_v45  ;;  %v11822_v5 = vld [vmem:[#allocation92_spill] sm:$0xff]  ;;  %v4964_v49 = vld [vmem:[%s5302_s14 + $0x378] sm:$0xff] }
 0x4aa   : > { %v2533_v28 = vpop.permute.xlu1 %2532  ;;  %3774 = vst [vmem:[%s5291_s9 + $0x330] sm:$0xff] %v3646_v3  ;;  %v2947_v16 = vmul.f32 %v8312_v32, %v2573_v41  ;;  %v2948_v60 = vmul.f32 %v8314_v7, %v2573_v41  ;;  %v2937_v56 = vmul.f32 %v8312_v32, %v2553_v35  ;;  %v2938_v18 = vmul.f32 %v8314_v7, %v2553_v35 }
 0x4ab   : > { %3764 = vst [vmem:[%s5291_s9 + $0x2b8] sm:$0xff] %v3636_v24  ;;  %v2927_v2 = vmul.f32 %v8312_v32, %v2533_v28  ;;  %v2928_v43 = vmul.f32 %v8314_v7, %v2533_v28  ;;  %v9616_v61 = vadd.f32 %v1935_v40, %v11822_v5  ;;  %v9626_v44 = vadd.f32 %v1936_v46, %v11823_v17  ;;  %v11825_v24 = vld [vmem:[#allocation297_spill] sm:$0xff]  ;;  %v11827_v28 = vld [vmem:[#allocation80_spill] sm:$0xff] }
 0x4ac   : > { %3769 = vst [vmem:[%s5291_s9 + $0x2f4] sm:$0xff] %v3641_v34  ;;  %v3203_v51 = vadd.f32 %v2947_v16, %v9439_v19  ;;  %v3204_v27 = vadd.f32 %v2948_v60, %v9442_v38  ;;  %v3193_v62 = vadd.f32 %v2937_v56, %v9507_v39  ;;  %v3194_v0 = vadd.f32 %v2938_v18, %v9517_v1  ;;  %v4962_v1 = vld [vmem:[%s5302_s14 + $0x350] sm:$0xff] }
 0x4ad   : > { %v3183_v58 = vadd.f32 %v2927_v2, %v9429_v54  ;;  %v3184_v6 = vadd.f32 %v2928_v43, %v9436_v59  ;;  %v9629_v52 = vadd.f32 %v1919_v11, %v11824_v10  ;;  %v9634_v14 = vadd.f32 %v1920_v55, %v11825_v24  ;;  %v11828_v18 = vld [vmem:[#allocation245_spill] sm:$0xff]  ;;  %v11832_v10 = vld [vmem:[#allocation295_spill] sm:$0xff] }
 0x4ae   : > { %v3464_v19 = vadd.f32 %v8346_v47, %v3203_v51  ;;  %v3465_v38 = vadd.f32 %v8348_v4, %v3204_v27  ;;  %v3454_v12 = vadd.f32 %v8346_v47, %v3193_v62  ;;  %v3455_v39 = vadd.f32 %v8348_v4, %v3194_v0  ;;  %v11829_v0 = vld [vmem:[#allocation98_spill] sm:$0xff] }
 0x4af   : > { %v3444_v54 = vadd.f32 %v8346_v47, %v3183_v58  ;;  %v3445_v59 = vadd.f32 %v8348_v4, %v3184_v6  ;;  %2716 = vperm.xlu2 %4823, %v4963_v63   ;;  %2732 = vperm.xlu0 %4824, %v4964_v49   ;;  %v1921_v53 = vmul.f32 %v8229_v33, %v11826_v48  ;;  %v4967_v17 = vld [vmem:[%s5302_s14 + $0x390] sm:$0xff] }
 0x4b0   : > { %2712 = vperm.xlu1 %4825, %v4962_v1   ;;  %v3649_v25 = vpack.c.bf16 %v3465_v38, %v3464_v19  ;;  %v3644_v40 = vpack.c.bf16 %v3455_v39, %v3454_v12  ;;  %v1922_v34 = vmul.f32 %v8231_v21, %v11826_v48  ;;  %v1941_v46 = vmul.f32 %v8229_v33, %v11827_v28  ;;  %v11831_v38 = vld [vmem:[#allocation97_spill] sm:$0xff]  ;;  %v11833_v63 = vld [vmem:[#allocation102_spill] sm:$0xff] }
 0x4b1   : > { %v3639_v29 = vpack.c.bf16 %v3445_v59, %v3444_v54  ;;  %v2585_v2 = vpop.permute.xlu2 %2584  ;;  %v2565_v43 = vpop.permute.xlu0 %2564  ;;  %v1942_v56 = vmul.f32 %v8231_v21, %v11827_v28  ;;  %v1925_v26 = vmul.f32 %v8229_v33, %v11828_v18  ;;  %v9662_v45 = vadd.f32 %v1921_v53, %v11829_v0  ;;  %v11830_v59 = vld [vmem:[#allocation296_spill] sm:$0xff]  ;;  %v4966_v1 = vld [vmem:[%s5302_s14 + $0x370] sm:$0xff] }
 0x4b2   : > { %v2545_v3 = vpop.permute.xlu1 %2544  ;;  %3777 = vst [vmem:[%s5291_s9 + $0x354] sm:$0xff] %v3649_v25  ;;  %v2953_v41 = vmul.f32 %v8312_v32, %v2585_v2  ;;  %v2954_v35 = vmul.f32 %v8314_v7, %v2585_v2  ;;  %v2943_v16 = vmul.f32 %v8312_v32, %v2565_v43  ;;  %v2944_v60 = vmul.f32 %v8314_v7, %v2565_v43  ;;  %v11834_v25 = vld [vmem:[#allocation299_spill] sm:$0xff] }
 0x4b3   : > { %3767 = vst [vmem:[%s5291_s9 + $0x2dc] sm:$0xff] %v3639_v29  ;;  %v2933_v13 = vmul.f32 %v8312_v32, %v2545_v3  ;;  %v2934_v11 = vmul.f32 %v8314_v7, %v2545_v3  ;;  %v1926_v5 = vmul.f32 %v8231_v21, %v11828_v18  ;;  %v9674_v19 = vadd.f32 %v1922_v34, %v11830_v59  ;;  %v11835_v3 = vld [vmem:[#allocation246_spill] sm:$0xff] }
 0x4b4   : > { %3772 = vst [vmem:[%s5291_s9 + $0x318] sm:$0xff] %v3644_v40  ;;  %v3209_v6 = vadd.f32 %v2953_v41, %v9493_v31  ;;  %v3210_v51 = vadd.f32 %v2954_v35, %v9504_v15  ;;  %v3199_v27 = vadd.f32 %v2943_v16, %v9568_v37  ;;  %v3200_v62 = vadd.f32 %v2944_v60, %v9578_v30  ;;  %v4965_v30 = vld [vmem:[%s5302_s14 + $0x368] sm:$0xff]  ;;  %v11836_v60 = vld [vmem:[#allocation247_spill] sm:$0xff] }
 0x4b5   : > { %v3189_v55 = vadd.f32 %v2933_v13, %v9485_v57  ;;  %v3190_v58 = vadd.f32 %v2934_v11, %v9490_v9  ;;  %v9677_v12 = vadd.f32 %v1941_v46, %v11831_v38  ;;  %v9682_v29 = vadd.f32 %v1942_v56, %v11832_v10  ;;  %v11840_v38 = vld [vmem:[#allocation100_spill] sm:$0xff] }
 0x4b6   : > { %v3470_v31 = vadd.f32 %v8346_v47, %v3209_v6  ;;  %v3471_v15 = vadd.f32 %v8348_v4, %v3210_v51  ;;  %v3460_v54 = vadd.f32 %v8346_v47, %v3199_v27  ;;  %v3461_v37 = vadd.f32 %v8348_v4, %v3200_v62  ;;  %v11837_v62 = vld [vmem:[#allocation248_spill] sm:$0xff] }
 0x4b7   : > { %v3450_v57 = vadd.f32 %v8346_v47, %v3189_v55  ;;  %v3451_v9 = vadd.f32 %v8348_v4, %v3190_v58  ;;  %2728 = vperm.xlu2 %4823, %v4966_v1   ;;  %2744 = vperm.xlu0 %4824, %v4967_v17   ;;  %v9685_v49 = vadd.f32 %v1925_v26, %v11833_v63  ;;  %v11841_v63 = vld [vmem:[#allocation298_spill] sm:$0xff] }
 0x4b8   : > { %2724 = vperm.xlu1 %4825, %v4965_v30   ;;  %v3652_v24 = vpack.c.bf16 %v3471_v15, %v3470_v31  ;;  %v3647_v48 = vpack.c.bf16 %v3461_v37, %v3460_v54  ;;  %v9688_v40 = vadd.f32 %v1926_v5, %v11834_v25  ;;  %v1927_v34 = vmul.f32 %v8229_v33, %v11835_v3  ;;  %v4969_v54 = vld [vmem:[%s5302_s14 + $0x388] sm:$0xff]  ;;  %v11839_v30 = vld [vmem:[#allocation155_spill] sm:$0xff] }
 0x4b9   : > { %v3642_v39 = vpack.c.bf16 %v3451_v9, %v3450_v57  ;;  %v2597_v13 = vpop.permute.xlu2 %2596  ;;  %v2577_v11 = vpop.permute.xlu0 %2576  ;;  %v1928_v16 = vmul.f32 %v8231_v21, %v11835_v3  ;;  %v1947_v56 = vmul.f32 %v8229_v33, %v11836_v60  ;;  %v1948_v27 = vmul.f32 %v8231_v21, %v11836_v60  ;;  %v11838_v57 = vld [vmem:[#allocation101_spill] sm:$0xff] }
 0x4ba   : > { %v2557_v53 = vpop.permute.xlu1 %2556  ;;  %3780 = vst [vmem:[%s5291_s9 + $0x378] sm:$0xff] %v3652_v24  ;;  %v2959_v2 = vmul.f32 %v8312_v32, %v2597_v13  ;;  %v2960_v43 = vmul.f32 %v8314_v7, %v2597_v13  ;;  %v2949_v41 = vmul.f32 %v8312_v32, %v2577_v11  ;;  %v2950_v35 = vmul.f32 %v8314_v7, %v2577_v11  ;;  %v4970_v37 = vld [vmem:[%s5302_s14 + $0x3a8] sm:$0xff] }
 0x4bb   : > { %3770 = vst [vmem:[%s5291_s9 + $0x300] sm:$0xff] %v3642_v39  ;;  %v2939_v28 = vmul.f32 %v8312_v32, %v2557_v53  ;;  %v2940_v46 = vmul.f32 %v8314_v7, %v2557_v53  ;;  %v1931_v0 = vmul.f32 %v8229_v33, %v11837_v62  ;;  %v9723_v9 = vadd.f32 %v1927_v34, %v11838_v57 }
 0x4bc   : > { %3775 = vst [vmem:[%s5291_s9 + $0x33c] sm:$0xff] %v3647_v48  ;;  %v3215_v55 = vadd.f32 %v2959_v2, %v9555_v36  ;;  %v3216_v58 = vadd.f32 %v2960_v43, %v9565_v23  ;;  %v3205_v6 = vadd.f32 %v2949_v41, %v9629_v52  ;;  %v3206_v51 = vadd.f32 %v2950_v35, %v9634_v14  ;;  %v4968_v14 = vld [vmem:[%s5302_s14 + $0x380] sm:$0xff]  ;;  %v11842_v48 = vld [vmem:[#allocation105_spill] sm:$0xff] }
 0x4bd   : > { %v3195_v18 = vadd.f32 %v2939_v28, %v9539_v8  ;;  %v3196_v26 = vadd.f32 %v2940_v46, %v9552_v42  ;;  %v1932_v31 = vmul.f32 %v8231_v21, %v11837_v62  ;;  %v9730_v59 = vadd.f32 %v1928_v16, %v11839_v30  ;;  %v11843_v43 = vld [vmem:[#allocation303_spill] sm:$0xff]  ;;  %v11844_v35 = vld [vmem:[#allocation249_spill] sm:$0xff] }
 0x4be   : > { %v3476_v36 = vadd.f32 %v8346_v47, %v3215_v55  ;;  %v3477_v23 = vadd.f32 %v8348_v4, %v3216_v58  ;;  %v3466_v5 = vadd.f32 %v8346_v47, %v3205_v6  ;;  %v3467_v52 = vadd.f32 %v8348_v4, %v3206_v51  ;;  %v11845_v51 = vld [vmem:[#allocation250_spill] sm:$0xff] }
 0x4bf   : > { %v3456_v8 = vadd.f32 %v8346_v47, %v3195_v18  ;;  %v3457_v42 = vadd.f32 %v8348_v4, %v3196_v26  ;;  %2740 = vperm.xlu2 %4823, %v4969_v54   ;;  %2756 = vperm.xlu0 %4824, %v4970_v37   ;;  %v9733_v39 = vadd.f32 %v1947_v56, %v11840_v38  ;;  %v11848_v37 = vld [vmem:[#allocation300_spill] sm:$0xff]  ;;  %v11849_v38 = vld [vmem:[#allocation163_spill] sm:$0xff] }
 0x4c0   : > { %2736 = vperm.xlu1 %4825, %v4968_v14   ;;  %v3655_v1 = vpack.c.bf16 %v3477_v23, %v3476_v36  ;;  %v3650_v17 = vpack.c.bf16 %v3467_v52, %v3466_v5  ;;  %v9736_v24 = vadd.f32 %v1948_v27, %v11841_v63  ;;  %v2187_v53 = vadd.f32 %v1931_v0, %v11842_v48  ;;  %v4972_v23 = vld [vmem:[%s5302_s14 + $0x3a0] sm:$0xff] }
 0x4c1   : > { %v3645_v15 = vpack.c.bf16 %v3457_v42, %v3456_v8  ;;  %v2609_v34 = vpop.permute.xlu2 %2608  ;;  %v2589_v28 = vpop.permute.xlu0 %2588  ;;  %v2188_v41 = vadd.f32 %v1932_v31, %v11843_v43  ;;  %v1933_v16 = vmul.f32 %v8229_v33, %v11844_v35  ;;  %v1934_v6 = vmul.f32 %v8231_v21, %v11844_v35  ;;  %v11846_v8 = vld [vmem:[#allocation251_spill] sm:$0xff]  ;;  %v11847_v52 = vld [vmem:[#allocation104_spill] sm:$0xff] }
 0x4c2   : > { %v2569_v10 = vpop.permute.xlu1 %2568  ;;  %3783 = vst [vmem:[%s5291_s9 + $0x39c] sm:$0xff] %v3655_v1  ;;  %v2965_v46 = vmul.f32 %v8312_v32, %v2609_v34  ;;  %v2966_v13 = vmul.f32 %v8314_v7, %v2609_v34  ;;  %v2955_v11 = vmul.f32 %v8312_v32, %v2589_v28  ;;  %v2956_v2 = vmul.f32 %v8314_v7, %v2589_v28  ;;  %v4973_v5 = vld [vmem:[%s5302_s14 + $0x3c0] sm:$0xff] }
 0x4c3   : > { %3773 = vst [vmem:[%s5291_s9 + $0x324] sm:$0xff] %v3645_v15  ;;  %v2945_v25 = vmul.f32 %v8312_v32, %v2569_v10  ;;  %v2946_v3 = vmul.f32 %v8314_v7, %v2569_v10  ;;  %v1953_v27 = vmul.f32 %v8229_v33, %v11845_v51  ;;  %v1954_v0 = vmul.f32 %v8231_v21, %v11845_v51 }
 0x4c4   : > { %3778 = vst [vmem:[%s5291_s9 + $0x360] sm:$0xff] %v3650_v17  ;;  %v3221_v18 = vadd.f32 %v2965_v46, %v9616_v61  ;;  %v3222_v26 = vadd.f32 %v2966_v13, %v9626_v44  ;;  %v3211_v55 = vadd.f32 %v2955_v11, %v9685_v49  ;;  %v3212_v58 = vadd.f32 %v2956_v2, %v9688_v40  ;;  %v4971_v40 = vld [vmem:[%s5302_s14 + $0x398] sm:$0xff]  ;;  %v11851_v11 = vld [vmem:[#allocation108_spill] sm:$0xff] }
 0x4c5   : > { %v3201_v60 = vadd.f32 %v2945_v25, %v9601_v22  ;;  %v3202_v56 = vadd.f32 %v2946_v3, %v9613_v50  ;;  %v1937_v42 = vmul.f32 %v8229_v33, %v11846_v8  ;;  %v9775_v14 = vadd.f32 %v1933_v16, %v11847_v52  ;;  %v11850_v46 = vld [vmem:[#allocation103_spill] sm:$0xff] }
 0x4c6   : > { %v3482_v61 = vadd.f32 %v8346_v47, %v3221_v18  ;;  %v3483_v44 = vadd.f32 %v8348_v4, %v3222_v26  ;;  %v3472_v62 = vadd.f32 %v8346_v47, %v3211_v55  ;;  %v3473_v49 = vadd.f32 %v8348_v4, %v3212_v58  ;;  %v11852_v26 = vld [vmem:[#allocation306_spill] sm:$0xff]  ;;  %v11853_v58 = vld [vmem:[#allocation96_spill] sm:$0xff] }
 0x4c7   : > { %v3462_v22 = vadd.f32 %v8346_v47, %v3201_v60  ;;  %v3463_v50 = vadd.f32 %v8348_v4, %v3202_v56  ;;  %2752 = vperm.xlu2 %4823, %v4972_v23   ;;  %2768 = vperm.xlu0 %4824, %v4973_v5   ;;  %v1938_v57 = vmul.f32 %v8231_v21, %v11846_v8  ;;  %v11856_v23 = vld [vmem:[#allocation107_spill] sm:$0xff] }
 0x4c8   : > { %2748 = vperm.xlu1 %4825, %v4971_v40   ;;  %v3658_v31 = vpack.c.bf16 %v3483_v44, %v3482_v61  ;;  %v3653_v15 = vpack.c.bf16 %v3473_v49, %v3472_v62  ;;  %v9780_v30 = vadd.f32 %v1934_v6, %v11848_v37  ;;  %v9783_v1 = vadd.f32 %v1953_v27, %v11849_v38  ;;  %v4975_v44 = vld [vmem:[%s5302_s14 + $0x3b8] sm:$0xff]  ;;  %v11855_v40 = vld [vmem:[#allocation253_spill] sm:$0xff] }
 0x4c9   : > { %v3648_v36 = vpack.c.bf16 %v3463_v50, %v3462_v22  ;;  %v2621_v63 = vpop.permute.xlu2 %2620  ;;  %v2601_v48 = vpop.permute.xlu0 %2600  ;;  %v9794_v13 = vadd.f32 %v1954_v0, %v11850_v46  ;;  %v2193_v2 = vadd.f32 %v1937_v42, %v11851_v11  ;;  %v2194_v55 = vadd.f32 %v1938_v57, %v11852_v26  ;;  %v11854_v22 = vld [vmem:[#allocation252_spill] sm:$0xff]  ;;  %v4976_v62 = vld [vmem:[%s5302_s14 + $0x3d8] sm:$0xff] }
 0x4ca   : > { %v2581_v54 = vpop.permute.xlu1 %2580  ;;  %3786 = vst [vmem:[%s5291_s9 + $0x3c0] sm:$0xff] %v3658_v31  ;;  %v2971_v25 = vmul.f32 %v8312_v32, %v2621_v63  ;;  %v2972_v3 = vmul.f32 %v8314_v7, %v2621_v63  ;;  %v2961_v34 = vmul.f32 %v8312_v32, %v2601_v48  ;;  %v2962_v28 = vmul.f32 %v8314_v7, %v2601_v48  ;;  %v11857_v63 = vld [vmem:[#allocation305_spill] sm:$0xff] }
 0x4cb   : > { %3776 = vst [vmem:[%s5291_s9 + $0x348] sm:$0xff] %v3648_v36  ;;  %v2951_v17 = vmul.f32 %v8312_v32, %v2581_v54  ;;  %v2952_v10 = vmul.f32 %v8314_v7, %v2581_v54  ;;  %v1939_v6 = vmul.f32 %v8229_v33, %v11853_v58  ;;  %v1959_v50 = vmul.f32 %v8229_v33, %v11854_v22 }
 0x4cc   : > { %3781 = vst [vmem:[%s5291_s9 + $0x384] sm:$0xff] %v3653_v15  ;;  %v3227_v16 = vadd.f32 %v2971_v25, %v9677_v12  ;;  %v3228_v60 = vadd.f32 %v2972_v3, %v9682_v29  ;;  %v3217_v56 = vadd.f32 %v2961_v34, %v2187_v53  ;;  %v3218_v18 = vadd.f32 %v2962_v28, %v2188_v41  ;;  %v4974_v53 = vld [vmem:[%s5302_s14 + $0x3b0] sm:$0xff] }
 0x4cd   : > { %v3207_v43 = vadd.f32 %v2951_v17, %v9662_v45  ;;  %v3208_v35 = vadd.f32 %v2952_v10, %v9674_v19  ;;  %v1940_v41 = vmul.f32 %v8231_v21, %v11853_v58  ;;  %v1960_v49 = vmul.f32 %v8231_v21, %v11854_v22  ;;  %v11858_v25 = vld [vmem:[#allocation106_spill] sm:$0xff] }
 0x4ce   : > { %v3488_v45 = vadd.f32 %v8346_v47, %v3227_v16  ;;  %v3489_v19 = vadd.f32 %v8348_v4, %v3228_v60  ;;  %v3478_v12 = vadd.f32 %v8346_v47, %v3217_v56  ;;  %v3479_v29 = vadd.f32 %v8348_v4, %v3218_v18  ;;  %v11859_v16 = vld [vmem:[#allocation304_spill] sm:$0xff] }
 0x4cf   : > { %v3468_v51 = vadd.f32 %v8346_v47, %v3207_v43  ;;  %v3469_v27 = vadd.f32 %v8348_v4, %v3208_v35  ;;  %2764 = vperm.xlu2 %4823, %v4975_v44   ;;  %2780 = vperm.xlu0 %4824, %v4976_v62   ;;  %v1943_v0 = vmul.f32 %v8229_v33, %v11855_v40  ;;  %v11860_v56 = vld [vmem:[#allocation112_spill] sm:$0xff]  ;;  %v11864_v62 = vld [vmem:[#allocation115_spill] sm:$0xff] }
 0x4d0   : > { %2760 = vperm.xlu1 %4825, %v4974_v53   ;;  %v3661_v8 = vpack.c.bf16 %v3489_v19, %v3488_v45  ;;  %v3656_v42 = vpack.c.bf16 %v3479_v29, %v3478_v12  ;;  %v9823_v5 = vadd.f32 %v1939_v6, %v11856_v23  ;;  %v1944_v52 = vmul.f32 %v8231_v21, %v11855_v40  ;;  %v4978_v19 = vld [vmem:[%s5302_s14 + $0x3d0] sm:$0xff] }
 0x4d1   : > { %v3651_v61 = vpack.c.bf16 %v3469_v27, %v3468_v51  ;;  %v2633_v15 = vpop.permute.xlu2 %2632  ;;  %v2613_v54 = vpop.permute.xlu0 %2612  ;;  %v9836_v48 = vadd.f32 %v1940_v41, %v11857_v63  ;;  %v9839_v3 = vadd.f32 %v1959_v50, %v11858_v25  ;;  %v9847_v60 = vadd.f32 %v1960_v49, %v11859_v16  ;;  %v11862_v51 = vld [vmem:[#allocation95_spill] sm:$0xff]  ;;  %v4979_v12 = vld [vmem:[%s5302_s14 + $0x3f0] sm:$0xff] }
 0x4d2   : > { %v2593_v36 = vpop.permute.xlu1 %2592  ;;  %3789 = vst [vmem:[%s5291_s9 + $0x3e4] sm:$0xff] %v3661_v8  ;;  %v2977_v37 = vmul.f32 %v8312_v32, %v2633_v15  ;;  %v2978_v38 = vmul.f32 %v8314_v7, %v2633_v15  ;;  %v2967_v17 = vmul.f32 %v8312_v32, %v2613_v54  ;;  %v2968_v10 = vmul.f32 %v8314_v7, %v2613_v54  ;;  %v11863_v53 = vld [vmem:[#allocation109_spill] sm:$0xff]  ;;  %v4980_v16 = vld [vmem:[%s5302_s14 + $0x3e0] sm:$0xff] }
 0x4d3   : > { %3779 = vst [vmem:[%s5291_s9 + $0x36c] sm:$0xff] %v3651_v61  ;;  %v2957_v57 = vmul.f32 %v8312_v32, %v2593_v36  ;;  %v2958_v31 = vmul.f32 %v8314_v7, %v2593_v36  ;;  %v2199_v18 = vadd.f32 %v1943_v0, %v11860_v56  ;;  %v1945_v27 = vmul.f32 %v8229_v33, %v11862_v51  ;;  %v11868_v56 = vld [vmem:[#allocation307_spill] sm:$0xff] }
 0x4d4   : > { %3784 = vst [vmem:[%s5291_s9 + $0x3a8] sm:$0xff] %v3656_v42  ;;  %v3233_v46 = vadd.f32 %v2977_v37, %v9733_v39  ;;  %v3234_v11 = vadd.f32 %v2978_v38, %v9736_v24  ;;  %v3223_v43 = vadd.f32 %v2967_v17, %v2193_v2  ;;  %v3224_v35 = vadd.f32 %v2968_v10, %v2194_v55  ;;  %v4977_v2 = vld [vmem:[%s5302_s14 + $0x3c8] sm:$0xff] }
 0x4d5   : > { %v3213_v34 = vadd.f32 %v2957_v57, %v9723_v9  ;;  %v3214_v28 = vadd.f32 %v2958_v31, %v9730_v59  ;;  %v11861_v55 = vld [vmem:[#allocation309_spill] sm:$0xff]  ;;  %v1946_v29 = vmul.f32 %v8231_v21, %v11862_v51  ;;  %v1965_v41 = vmul.f32 %v8229_v33, %v11863_v53  ;;  %v11865_v31 = vld [vmem:[#allocation111_spill] sm:$0xff] }
 0x4d6   : > { %v3494_v9 = vadd.f32 %v8346_v47, %v3233_v46  ;;  %v3495_v59 = vadd.f32 %v8348_v4, %v3234_v11  ;;  %v3484_v39 = vadd.f32 %v8346_v47, %v3223_v43  ;;  %v3485_v24 = vadd.f32 %v8348_v4, %v3224_v35  ;;  %v11867_v46 = vld [vmem:[#allocation110_spill] sm:$0xff] }
 0x4d7   : > { %v3474_v26 = vadd.f32 %v8346_v47, %v3213_v34  ;;  %v3475_v58 = vadd.f32 %v8348_v4, %v3214_v28  ;;  %v2200_v6 = vadd.f32 %v1944_v52, %v11861_v55  ;;  %2776 = vperm.xlu2 %4823, %v4978_v19   ;;  %2792 = vperm.xlu0 %4824, %v4979_v12   ;;  %v11866_v34 = vld [vmem:[#allocation308_spill] sm:$0xff]  ;;  %v11872_v19 = vld [vmem:[#allocation114_spill] sm:$0xff] }
 0x4d8   : > { %2772 = vperm.xlu1 %4825, %v4977_v2   ;;  %v3664_v22 = vpack.c.bf16 %v3495_v59, %v3494_v9  ;;  %v3659_v50 = vpack.c.bf16 %v3485_v24, %v3484_v39  ;;  %v1966_v44 = vmul.f32 %v8231_v21, %v11863_v53  ;;  %v1949_v49 = vmul.f32 %v8229_v33, %v11864_v62  ;;  %v11870_v9 = vld [vmem:[#allocation312_spill] sm:$0xff]  ;;  %v11871_v2 = vld [vmem:[#allocation113_spill] sm:$0xff] }
 0x4d9   : > { %v3654_v45 = vpack.c.bf16 %v3475_v58, %v3474_v26  ;;  %v2645_v8 = vpop.permute.xlu2 %2644  ;;  %v2625_v42 = vpop.permute.xlu0 %2624  ;;  %v9879_v15 = vadd.f32 %v1945_v27, %v11865_v31  ;;  %v1950_v54 = vmul.f32 %v8231_v21, %v11864_v62  ;;  %v9889_v28 = vadd.f32 %v1946_v29, %v11866_v34  ;;  %v11869_v26 = vld [vmem:[#allocation118_spill] sm:$0xff]  ;;  %v4981_v24 = vld [vmem:[%s5302_s14 + $0x3e8] sm:$0xff] }
 0x4da   : > { %v2605_v61 = vpop.permute.xlu1 %2604  ;;  %3792 = vst [vmem:[%s5291_s9 + $0x408] sm:$0xff] %v3664_v22  ;;  %v2983_v36 = vmul.f32 %v8312_v32, %v2645_v8  ;;  %v2984_v23 = vmul.f32 %v8314_v7, %v2645_v8  ;;  %v2973_v52 = vmul.f32 %v8312_v32, %v2625_v42  ;;  %v2974_v57 = vmul.f32 %v8314_v7, %v2625_v42  ;;  %v11876_v34 = vld [vmem:[#allocation116_spill] sm:$0xff] }
 0x4db   : > { %3782 = vst [vmem:[%s5291_s9 + $0x390] sm:$0xff] %v3654_v45  ;;  %v2963_v40 = vmul.f32 %v8312_v32, %v2605_v61  ;;  %v2964_v0 = vmul.f32 %v8314_v7, %v2605_v61  ;;  %v9892_v11 = vadd.f32 %v1965_v41, %v11867_v46  ;;  %v2205_v58 = vadd.f32 %v1949_v49, %v11869_v26 }
 0x4dc   : > { %3787 = vst [vmem:[%s5291_s9 + $0x3cc] sm:$0xff] %v3659_v50  ;;  %v3239_v17 = vadd.f32 %v2983_v36, %v9783_v1  ;;  %v3240_v10 = vadd.f32 %v2984_v23, %v9794_v13  ;;  %v3229_v63 = vadd.f32 %v2973_v52, %v2199_v18  ;;  %v3230_v25 = vadd.f32 %v2974_v57, %v2200_v6 }
 0x4dd   : > { %v3219_v37 = vadd.f32 %v2963_v40, %v9775_v14  ;;  %v3220_v38 = vadd.f32 %v2964_v0, %v9780_v30  ;;  %v9902_v18 = vadd.f32 %v1966_v44, %v11868_v56  ;;  %v2206_v59 = vadd.f32 %v1950_v54, %v11870_v9  ;;  %v11873_v40 = vld [vmem:[#allocation121_spill] sm:$0xff]  ;;  %v11880_v56 = vld [vmem:[#allocation119_spill] sm:$0xff] }
 0x4de   : > { %v3500_v14 = vadd.f32 %v8346_v47, %v3239_v17  ;;  %v3501_v30 = vadd.f32 %v8348_v4, %v3240_v10  ;;  %v3490_v1 = vadd.f32 %v8346_v47, %v3229_v63  ;;  %v3491_v13 = vadd.f32 %v8348_v4, %v3230_v25  ;;  %v11874_v54 = vld [vmem:[#allocation117_spill] sm:$0xff]  ;;  %v4982_v25 = vld [vmem:[%s5302_s14 + $0x3f8] sm:$0xff] }
 0x4df   : > { %v3480_v43 = vadd.f32 %v8346_v47, %v3219_v37  ;;  %v3481_v35 = vadd.f32 %v8348_v4, %v3220_v38  ;;  %2788 = vperm.xlu2 %4823, %v4981_v24   ;;  %v1951_v55 = vmul.f32 %v8229_v33, %v11871_v2  ;;  %v1952_v6 = vmul.f32 %v8231_v21, %v11871_v2  ;;  %v11875_v38 = vld [vmem:[#allocation311_spill] sm:$0xff]  ;;  %v11881_v24 = vld [vmem:[#allocation120_spill] sm:$0xff] }
 0x4e0   : > { %2784 = vperm.xlu1 %4825, %v4980_v16   ;;  %v3667_v51 = vpack.c.bf16 %v3501_v30, %v3500_v14  ;;  %v3662_v27 = vpack.c.bf16 %v3491_v13, %v3490_v1  ;;  %v1971_v12 = vmul.f32 %v8229_v33, %v11872_v19  ;;  %v1972_v29 = vmul.f32 %v8231_v21, %v11872_v19  ;;  %v11878_v14 = vld [vmem:[#allocation161_spill] sm:$0xff]  ;;  %v11879_v13 = vld [vmem:[#allocation124_spill] sm:$0xff] }
 0x4e1   : > { %v3657_v39 = vpack.c.bf16 %v3481_v35, %v3480_v43  ;;  %v2657_v22 = vpop.permute.xlu2 %2656  ;;  %v2637_v50 = vpop.permute.xlu0 %2636  ;;  %v1955_v0 = vmul.f32 %v8229_v33, %v11873_v40  ;;  %v1956_v8 = vmul.f32 %v8231_v21, %v11873_v40  ;;  %v9933_v37 = vadd.f32 %v1951_v55, %v11874_v54  ;;  %v11877_v43 = vld [vmem:[#allocation310_spill] sm:$0xff] }
 0x4e2   : > { %v2617_v45 = vpop.permute.xlu1 %2616  ;;  %3795 = vst [vmem:[%s5291_s9 + $0x42c] sm:$0xff] %v3667_v51  ;;  %v2989_v61 = vmul.f32 %v8312_v32, %v2657_v22  ;;  %v2990_v44 = vmul.f32 %v8314_v7, %v2657_v22  ;;  %v2979_v62 = vmul.f32 %v8312_v32, %v2637_v50  ;;  %v2980_v49 = vmul.f32 %v8314_v7, %v2637_v50 }
 0x4e3   : > { %3785 = vst [vmem:[%s5291_s9 + $0x3b4] sm:$0xff] %v3657_v39  ;;  %v2969_v53 = vmul.f32 %v8312_v32, %v2617_v45  ;;  %v2970_v41 = vmul.f32 %v8314_v7, %v2617_v45  ;;  %v9936_v17 = vadd.f32 %v1952_v6, %v11875_v38  ;;  %v9946_v46 = vadd.f32 %v1971_v12, %v11876_v34  ;;  %v11886_v38 = vld [vmem:[#allocation130_spill] sm:$0xff] }
 0x4e4   : > { %3790 = vst [vmem:[%s5291_s9 + $0x3f0] sm:$0xff] %v3662_v27  ;;  %v3245_v23 = vadd.f32 %v2989_v61, %v9839_v3  ;;  %v3246_v52 = vadd.f32 %v2990_v44, %v9847_v60  ;;  %v3235_v57 = vadd.f32 %v2979_v62, %v2205_v58  ;;  %v3236_v31 = vadd.f32 %v2980_v49, %v2206_v59 }
 0x4e5   : > { %v3225_v42 = vadd.f32 %v2969_v53, %v9823_v5  ;;  %v3226_v36 = vadd.f32 %v2970_v41, %v9836_v48  ;;  %v9949_v35 = vadd.f32 %v1972_v29, %v11877_v43  ;;  %v2211_v30 = vadd.f32 %v1955_v0, %v11878_v14  ;;  %v11882_v53 = vld [vmem:[#allocation127_spill] sm:$0xff] }
 0x4e6   : > { %v3506_v5 = vadd.f32 %v8346_v47, %v3245_v23  ;;  %v3507_v48 = vadd.f32 %v8348_v4, %v3246_v52  ;;  %v3496_v3 = vadd.f32 %v8346_v47, %v3235_v57  ;;  %v3497_v60 = vadd.f32 %v8348_v4, %v3236_v31  ;;  %v11883_v0 = vld [vmem:[#allocation123_spill] sm:$0xff]  ;;  %v11884_v52 = vld [vmem:[#allocation314_spill] sm:$0xff] }
 0x4e7   : > { %v3486_v10 = vadd.f32 %v8346_v47, %v3225_v42  ;;  %v3487_v63 = vadd.f32 %v8348_v4, %v3226_v36  ;;  %v2212_v16 = vadd.f32 %v1956_v8, %v11879_v13  ;;  %v1957_v26 = vmul.f32 %v8229_v33, %v11880_v56  ;;  %v11885_v31 = vld [vmem:[#allocation122_spill] sm:$0xff] }
 0x4e8   : > { %2796 = vperm.xlu1 %4825, %v4982_v25   ;;  %v3670_v58 = vpack.c.bf16 %v3507_v48, %v3506_v5  ;;  %v3665_v9 = vpack.c.bf16 %v3497_v60, %v3496_v3  ;;  %v1958_v39 = vmul.f32 %v8231_v21, %v11880_v56  ;;  %v1977_v2 = vmul.f32 %v8229_v33, %v11881_v24  ;;  %v11887_v5 = vld [vmem:[#allocation318_spill] sm:$0xff]  ;;  %v11888_v3 = vld [vmem:[#allocation9_spill] sm:$0xff] }
 0x4e9   : > { %v3660_v1 = vpack.c.bf16 %v3487_v63, %v3486_v10  ;;  %v2669_v51 = vpop.permute.xlu2 %2668  ;;  %v2649_v27 = vpop.permute.xlu0 %2648  ;;  %v1961_v41 = vmul.f32 %v8229_v33, %v11882_v53  ;;  %v1962_v22 = vmul.f32 %v8231_v21, %v11882_v53  ;;  %v9977_v8 = vadd.f32 %v1957_v26, %v11883_v0 }
 0x4ea   : > { %v2629_v59 = vpop.permute.xlu1 %2628  ;;  %3798 = vst [vmem:[%s5291_s9 + $0x450] sm:$0xff] %v3670_v58  ;;  %v2995_v45 = vmul.f32 %v8312_v32, %v2669_v51  ;;  %v2996_v19 = vmul.f32 %v8314_v7, %v2669_v51  ;;  %v2985_v12 = vmul.f32 %v8312_v32, %v2649_v27  ;;  %v2986_v29 = vmul.f32 %v8314_v7, %v2649_v27 }
 0x4eb   : > { %3788 = vst [vmem:[%s5291_s9 + $0x3d8] sm:$0xff] %v3660_v1  ;;  %v2975_v55 = vmul.f32 %v8312_v32, %v2629_v59  ;;  %v2976_v6 = vmul.f32 %v8314_v7, %v2629_v59  ;;  %v1978_v42 = vmul.f32 %v8231_v21, %v11881_v24  ;;  %v9988_v57 = vadd.f32 %v1958_v39, %v11884_v52  ;;  %v11890_v24 = vld [vmem:[#allocation125_spill] sm:$0xff] }
 0x4ec   : > { %3793 = vst [vmem:[%s5291_s9 + $0x414] sm:$0xff] %v3665_v9  ;;  %v3251_v44 = vadd.f32 %v2995_v45, %v9892_v11  ;;  %v3252_v62 = vadd.f32 %v2996_v19, %v9902_v18  ;;  %v3241_v49 = vadd.f32 %v2985_v12, %v2211_v30  ;;  %v3242_v40 = vadd.f32 %v2986_v29, %v2212_v16  ;;  %v11889_v30 = vld [vmem:[#allocation10_spill] sm:$0xff]  ;;  %v11891_v29 = vld [vmem:[#allocation313_spill] sm:$0xff] }
 0x4ed   : > { %v3231_v50 = vadd.f32 %v2975_v55, %v9879_v15  ;;  %v3232_v61 = vadd.f32 %v2976_v6, %v9889_v28  ;;  %v9991_v54 = vadd.f32 %v1977_v2, %v11885_v31  ;;  %v2217_v10 = vadd.f32 %v1961_v41, %v11886_v38  ;;  %v11897_v31 = vld [vmem:[#allocation126_spill] sm:$0xff] }
 0x4ee   : > { %v3512_v15 = vadd.f32 %v8346_v47, %v3251_v44  ;;  %v3513_v28 = vadd.f32 %v8348_v4, %v3252_v62  ;;  %v3502_v11 = vadd.f32 %v8346_v47, %v3241_v49  ;;  %v3503_v18 = vadd.f32 %v8348_v4, %v3242_v40  ;;  %v11893_v62 = vld [vmem:[#allocation315_spill] sm:$0xff]  ;;  %v11894_v40 = vld [vmem:[#allocation128_spill] sm:$0xff] }
 0x4ef   : > { %v3492_v36 = vadd.f32 %v8346_v47, %v3231_v50  ;;  %v3493_v23 = vadd.f32 %v8348_v4, %v3232_v61  ;;  %v2218_v48 = vadd.f32 %v1962_v22, %v11887_v5  ;;  %v1963_v60 = vmul.f32 %v8229_v33, %v11888_v3  ;;  %v11892_v61 = vld [vmem:[#allocation129_spill] sm:$0xff] }
 0x4f0   : > { %v3673_v25 = vpack.c.bf16 %v3513_v28, %v3512_v15  ;;  %v3668_v34 = vpack.c.bf16 %v3503_v18, %v3502_v11  ;;  %v1964_v14 = vmul.f32 %v8231_v21, %v11888_v3  ;;  %v1983_v1 = vmul.f32 %v8229_v33, %v11889_v30  ;;  %v11896_v15 = vld [vmem:[#allocation321_spill] sm:$0xff] }
 0x4f1   : > { %v3663_v63 = vpack.c.bf16 %v3493_v23, %v3492_v36  ;;  %v2681_v56 = vpop.permute.xlu2 %2680  ;;  %v2661_v26 = vpop.permute.xlu0 %2660  ;;  %v1967_v2 = vmul.f32 %v8229_v33, %v11890_v24  ;;  %v1968_v55 = vmul.f32 %v8231_v21, %v11890_v24  ;;  %v2234_v53 = vadd.f32 %v1978_v42, %v11891_v29  ;;  %v11895_v36 = vld [vmem:[#allocation136_spill] sm:$0xff] }
 0x4f2   : > { %v2641_v43 = vpop.permute.xlu1 %2640  ;;  %3801 = vst [vmem:[%s5291_s9 + $0x474] sm:$0xff] %v3673_v25  ;;  %v3001_v58 = vmul.f32 %v8312_v32, %v2681_v56  ;;  %v3002_v9 = vmul.f32 %v8314_v7, %v2681_v56  ;;  %v2991_v59 = vmul.f32 %v8312_v32, %v2661_v26  ;;  %v2992_v39 = vmul.f32 %v8314_v7, %v2661_v26 }
 0x4f3   : > { %3791 = vst [vmem:[%s5291_s9 + $0x3fc] sm:$0xff] %v3663_v63  ;;  %v2981_v13 = vmul.f32 %v8312_v32, %v2641_v43  ;;  %v2982_v16 = vmul.f32 %v8314_v7, %v2641_v43  ;;  %v1984_v41 = vmul.f32 %v8231_v21, %v11889_v30  ;;  %v2219_v44 = vadd.f32 %v1963_v60, %v11892_v61  ;;  %v11905_v61 = vld [vmem:[#allocation324_spill] sm:$0xff] }
 0x4f4   : > { %3796 = vst [vmem:[%s5291_s9 + $0x438] sm:$0xff] %v3668_v34  ;;  %v3257_v27 = vadd.f32 %v3001_v58, %v9946_v46  ;;  %v3258_v45 = vadd.f32 %v3002_v9, %v9949_v35  ;;  %v3247_v19 = vadd.f32 %v2991_v59, %v2217_v10  ;;  %v3248_v12 = vadd.f32 %v2992_v39, %v2218_v48  ;;  %v11900_v39 = vld [vmem:[#allocation169_spill] sm:$0xff] }
 0x4f5   : > { %v3237_v6 = vadd.f32 %v2981_v13, %v9933_v37  ;;  %v3238_v51 = vadd.f32 %v2982_v16, %v9936_v17  ;;  %v2220_v49 = vadd.f32 %v1964_v14, %v11893_v62  ;;  %v2239_v0 = vadd.f32 %v1983_v1, %v11894_v40  ;;  %v11898_v14 = vld [vmem:[#allocation16_spill] sm:$0xff]  ;;  %v11899_v1 = vld [vmem:[#allocation17_spill] sm:$0xff] }
 0x4f6   : > { %v3518_v37 = vadd.f32 %v8346_v47, %v3257_v27  ;;  %v3519_v17 = vadd.f32 %v8348_v4, %v3258_v45  ;;  %v3508_v46 = vadd.f32 %v8346_v47, %v3247_v19  ;;  %v3509_v35 = vadd.f32 %v8348_v4, %v3248_v12  ;;  %v11901_v27 = vld [vmem:[#allocation135_spill] sm:$0xff]  ;;  %v11902_v19 = vld [vmem:[#allocation320_spill] sm:$0xff]  ;;  %v11906_v40 = vld [vmem:[#allocation137_spill] sm:$0xff] }
 0x4f7   : > { %v3498_v22 = vadd.f32 %v8346_v47, %v3237_v6  ;;  %v3499_v50 = vadd.f32 %v8348_v4, %v3238_v51  ;;  %v2223_v23 = vadd.f32 %v1967_v2, %v11895_v36  ;;  %v2224_v28 = vadd.f32 %v1968_v55, %v11896_v15 }
 0x4f8   : > { %v3676_v11 = vpack.c.bf16 %v3519_v17, %v3518_v37  ;;  %v3671_v18 = vpack.c.bf16 %v3509_v35, %v3508_v46  ;;  %v1969_v38 = vmul.f32 %v8229_v33, %v11897_v31  ;;  %v1970_v10 = vmul.f32 %v8231_v21, %v11897_v31 }
 0x4f9   : > { %v3666_v42 = vpack.c.bf16 %v3499_v50, %v3498_v22  ;;  %v2693_v48 = vpop.permute.xlu2 %2692  ;;  %v2673_v3 = vpop.permute.xlu0 %2672  ;;  %v1989_v30 = vmul.f32 %v8229_v33, %v11898_v14  ;;  %v1973_v13 = vmul.f32 %v8229_v33, %v11899_v1  ;;  %v2240_v24 = vadd.f32 %v1984_v41, %v11900_v39  ;;  %v11903_v41 = vld [vmem:[#allocation134_spill] sm:$0xff] }
 0x4fa   : > { %v2653_v52 = vpop.permute.xlu1 %2652  ;;  %3804 = vst [vmem:[%s5291_s9 + $0x498] sm:$0xff] %v3676_v11  ;;  %v3007_v60 = vmul.f32 %v8312_v32, %v2693_v48  ;;  %v3008_v25 = vmul.f32 %v8314_v7, %v2693_v48  ;;  %v2997_v34 = vmul.f32 %v8312_v32, %v2673_v3  ;;  %v2998_v43 = vmul.f32 %v8314_v7, %v2673_v3  ;;  %v11904_v50 = vld [vmem:[#allocation142_spill] sm:$0xff] }
 0x4fb   : > { %3794 = vst [vmem:[%s5291_s9 + $0x420] sm:$0xff] %v3666_v42  ;;  %v2987_v63 = vmul.f32 %v8312_v32, %v2653_v52  ;;  %v2988_v5 = vmul.f32 %v8314_v7, %v2653_v52  ;;  %v1974_v2 = vmul.f32 %v8231_v21, %v11899_v1  ;;  %v2225_v45 = vadd.f32 %v1969_v38, %v11901_v27 }
 0x4fc   : > { %3799 = vst [vmem:[%s5291_s9 + $0x45c] sm:$0xff] %v3671_v18  ;;  %v3263_v26 = vadd.f32 %v3007_v60, %v9991_v54  ;;  %v3264_v58 = vadd.f32 %v3008_v25, %v2234_v53  ;;  %v3253_v9 = vadd.f32 %v2997_v34, %v2223_v23  ;;  %v3254_v59 = vadd.f32 %v2998_v43, %v2224_v28  ;;  %v11908_v43 = vld [vmem:[#allocation45_spill] sm:$0xff] }
 0x4fd   : > { %v3243_v16 = vadd.f32 %v2987_v63, %v9977_v8  ;;  %v3244_v56 = vadd.f32 %v2988_v5, %v9988_v57  ;;  %v2226_v12 = vadd.f32 %v1970_v10, %v11902_v19  ;;  %v1990_v29 = vmul.f32 %v8231_v21, %v11898_v14  ;;  %v11907_v10 = vld [vmem:[#allocation44_spill] sm:$0xff]  ;;  %v11914_v19 = vld [vmem:[#allocation327_spill] sm:$0xff] }
 0x4fe   : > { %v3524_v51 = vadd.f32 %v8346_v47, %v3263_v26  ;;  %v3525_v8 = vadd.f32 %v8348_v4, %v3264_v58  ;;  %v3514_v57 = vadd.f32 %v8346_v47, %v3253_v9  ;;  %v3515_v54 = vadd.f32 %v8348_v4, %v3254_v59  ;;  %v11910_v58 = vld [vmem:[#allocation141_spill] sm:$0xff] }
 0x4ff   : > { %v3504_v55 = vadd.f32 %v8346_v47, %v3243_v16  ;;  %v3505_v6 = vadd.f32 %v8348_v4, %v3244_v56  ;;  %v2245_v22 = vadd.f32 %v1989_v30, %v11903_v41  ;;  %v2229_v37 = vadd.f32 %v1973_v13, %v11904_v50  ;;  %v11909_v56 = vld [vmem:[#allocation319_spill] sm:$0xff] }
 0x500   : > { %v3679_v17 = vpack.c.bf16 %v3525_v8, %v3524_v51  ;;  %v3674_v46 = vpack.c.bf16 %v3515_v54, %v3514_v57  ;;  %v2230_v62 = vadd.f32 %v1974_v2, %v11905_v61  ;;  %v1975_v42 = vmul.f32 %v8229_v33, %v11906_v40  ;;  %v11913_v54 = vld [vmem:[#allocation148_spill] sm:$0xff] }
 0x501   : > { %v3669_v53 = vpack.c.bf16 %v3505_v6, %v3504_v55  ;;  %v2705_v15 = vpop.permute.xlu2 %2704  ;;  %v2685_v28 = vpop.permute.xlu0 %2684  ;;  %v1976_v38 = vmul.f32 %v8231_v21, %v11906_v40  ;;  %v1995_v63 = vmul.f32 %v8229_v33, %v11907_v10  ;;  %v1979_v14 = vmul.f32 %v8229_v33, %v11908_v43  ;;  %v11912_v55 = vld [vmem:[#allocation140_spill] sm:$0xff] }
 0x502   : > { %v2665_v35 = vpop.permute.xlu1 %2664  ;;  %3807 = vst [vmem:[%s5291_s9 + $0x4bc] sm:$0xff] %v3679_v17  ;;  %v3013_v11 = vmul.f32 %v8312_v32, %v2705_v15  ;;  %v3014_v18 = vmul.f32 %v8314_v7, %v2705_v15  ;;  %v3003_v52 = vmul.f32 %v8312_v32, %v2685_v28  ;;  %v3004_v31 = vmul.f32 %v8314_v7, %v2685_v28 }
 0x503   : > { %3797 = vst [vmem:[%s5291_s9 + $0x444] sm:$0xff] %v3669_v53  ;;  %v2993_v36 = vmul.f32 %v8312_v32, %v2665_v35  ;;  %v2994_v23 = vmul.f32 %v8314_v7, %v2665_v35  ;;  %v1980_v30 = vmul.f32 %v8231_v21, %v11908_v43  ;;  %v2246_v26 = vadd.f32 %v1990_v29, %v11909_v56 }
 0x504   : > { %3802 = vst [vmem:[%s5291_s9 + $0x480] sm:$0xff] %v3674_v46  ;;  %v3269_v3 = vadd.f32 %v3013_v11, %v2239_v0  ;;  %v3270_v60 = vadd.f32 %v3014_v18, %v2240_v24  ;;  %v3259_v25 = vadd.f32 %v3003_v52, %v2229_v37  ;;  %v3260_v34 = vadd.f32 %v3004_v31, %v2230_v62  ;;  %v11911_v24 = vld [vmem:[#allocation323_spill] sm:$0xff]  ;;  %v11915_v62 = vld [vmem:[#allocation144_spill] sm:$0xff] }
 0x505   : > { %v3249_v5 = vadd.f32 %v2993_v36, %v2219_v44  ;;  %v3250_v48 = vadd.f32 %v2994_v23, %v2220_v49  ;;  %v2231_v9 = vadd.f32 %v1975_v42, %v11910_v58  ;;  %v1996_v59 = vmul.f32 %v8231_v21, %v11907_v10  ;;  %v11916_v52 = vld [vmem:[#allocation271_spill] sm:$0xff] }
 0x506   : > { %v3530_v16 = vadd.f32 %v8346_v47, %v3269_v3  ;;  %v3531_v44 = vadd.f32 %v8348_v4, %v3270_v60  ;;  %v3520_v49 = vadd.f32 %v8346_v47, %v3259_v25  ;;  %v3521_v0 = vadd.f32 %v8348_v4, %v3260_v34  ;;  %v11918_v60 = vld [vmem:[#allocation270_spill] sm:$0xff] }
 0x507   : > { %v3510_v1 = vadd.f32 %v8346_v47, %v3249_v5  ;;  %v3511_v13 = vadd.f32 %v8348_v4, %v3250_v48  ;;  %v2232_v2 = vadd.f32 %v1976_v38, %v11911_v24  ;;  %v2251_v6 = vadd.f32 %v1995_v63, %v11912_v55  ;;  %v11917_v48 = vld [vmem:[#allocation322_spill] sm:$0xff] }
 0x508   : > { %v3682_v51 = vpack.c.bf16 %v3531_v44, %v3530_v16  ;;  %v3677_v8 = vpack.c.bf16 %v3521_v0, %v3520_v49  ;;  %v2235_v27 = vadd.f32 %v1979_v14, %v11913_v54  ;;  %v2236_v53 = vadd.f32 %v1980_v30, %v11914_v19  ;;  %v11919_v14 = vld [vmem:[#allocation147_spill] sm:$0xff]  ;;  %v11921_v0 = vld [vmem:[#allocation154_spill] sm:$0xff] }
 0x509   : > { %v3672_v39 = vpack.c.bf16 %v3511_v13, %v3510_v1  ;;  %v2717_v50 = vpop.permute.xlu2 %2716  ;;  %v2697_v37 = vpop.permute.xlu0 %2696  ;;  %v1981_v40 = vmul.f32 %v8229_v33, %v11915_v62  ;;  %v1982_v42 = vmul.f32 %v8231_v21, %v11915_v62  ;;  %v1985_v31 = vmul.f32 %v8229_v33, %v11916_v52  ;;  %v11920_v1 = vld [vmem:[#allocation326_spill] sm:$0xff] }
 0x50a   : > { %v2677_v57 = vpop.permute.xlu1 %2676  ;;  %3810 = vst [vmem:[%s5291_s9 + $0x4e0] sm:$0xff] %v3682_v51  ;;  %v3019_v17 = vmul.f32 %v8312_v32, %v2717_v50  ;;  %v3020_v46 = vmul.f32 %v8314_v7, %v2717_v50  ;;  %v3009_v35 = vmul.f32 %v8312_v32, %v2697_v37  ;;  %v3010_v61 = vmul.f32 %v8314_v7, %v2697_v37 }
 0x50b   : > { %3800 = vst [vmem:[%s5291_s9 + $0x468] sm:$0xff] %v3672_v39  ;;  %v2999_v29 = vmul.f32 %v8312_v32, %v2677_v57  ;;  %v3000_v41 = vmul.f32 %v8314_v7, %v2677_v57  ;;  %v1986_v38 = vmul.f32 %v8231_v21, %v11916_v52  ;;  %v2252_v3 = vadd.f32 %v1996_v59, %v11917_v48 }
 0x50c   : > { %3805 = vst [vmem:[%s5291_s9 + $0x4a4] sm:$0xff] %v3677_v8  ;;  %v3275_v15 = vadd.f32 %v3019_v17, %v2245_v22  ;;  %v3276_v28 = vadd.f32 %v3020_v46, %v2246_v26  ;;  %v3265_v11 = vadd.f32 %v3009_v35, %v2235_v27  ;;  %v3266_v18 = vadd.f32 %v3010_v61, %v2236_v53  ;;  %v11922_v26 = vld [vmem:[#allocation329_spill] sm:$0xff]  ;;  %v11923_v27 = vld [vmem:[#allocation146_spill] sm:$0xff] }
 0x50d   : > { %v3255_v36 = vadd.f32 %v2999_v29, %v2225_v45  ;;  %v3256_v23 = vadd.f32 %v3000_v41, %v2226_v12  ;;  %v2001_v25 = vmul.f32 %v8229_v33, %v11918_v60  ;;  %v2002_v34 = vmul.f32 %v8231_v21, %v11918_v60  ;;  %v11924_v53 = vld [vmem:[#allocation150_spill] sm:$0xff] }
 0x50e   : > { %v3536_v5 = vadd.f32 %v8346_v47, %v3275_v15  ;;  %v3537_v45 = vadd.f32 %v8348_v4, %v3276_v28  ;;  %v3526_v12 = vadd.f32 %v8346_v47, %v3265_v11  ;;  %v3527_v22 = vadd.f32 %v8348_v4, %v3266_v18  ;;  %v11925_v61 = vld [vmem:[#allocation286_spill] sm:$0xff]  ;;  %v11926_v15 = vld [vmem:[#allocation325_spill] sm:$0xff] }
 0x50f   : > { %v3516_v10 = vadd.f32 %v8346_v47, %v3255_v36  ;;  %v3517_v63 = vadd.f32 %v8348_v4, %v3256_v23  ;;  %v2237_v30 = vadd.f32 %v1981_v40, %v11919_v14  ;;  %v2238_v13 = vadd.f32 %v1982_v42, %v11920_v1  ;;  %v11927_v18 = vld [vmem:[#allocation285_spill] sm:$0xff] }
 0x510   : > { %v3685_v16 = vpack.c.bf16 %v3537_v45, %v3536_v5  ;;  %v3680_v44 = vpack.c.bf16 %v3527_v22, %v3526_v12  ;;  %v2241_v56 = vadd.f32 %v1985_v31, %v11921_v0  ;;  %v2242_v58 = vadd.f32 %v1986_v38, %v11922_v26  ;;  %v11928_v38 = vld [vmem:[#allocation153_spill] sm:$0xff]  ;;  %v11929_v22 = vld [vmem:[#allocation160_spill] sm:$0xff]  ;;  %v11931_v0 = vld [vmem:[#allocation167_spill] sm:$0xff] }
 0x511   : > { %v3675_v43 = vpack.c.bf16 %v3517_v63, %v3516_v10  ;;  %v2729_v24 = vpop.permute.xlu2 %2728  ;;  %v2709_v55 = vpop.permute.xlu0 %2708  ;;  %v2257_v19 = vadd.f32 %v2001_v25, %v11923_v27  ;;  %v1987_v29 = vmul.f32 %v8229_v33, %v11924_v53  ;;  %v1991_v62 = vmul.f32 %v8229_v33, %v11925_v61  ;;  %v11932_v26 = vld [vmem:[#allocation152_spill] sm:$0xff] }
 0x512   : > { %v2689_v49 = vpop.permute.xlu1 %2688  ;;  %3813 = vst [vmem:[%s5291_s9 + $0x504] sm:$0xff] %v3685_v16  ;;  %v3025_v51 = vmul.f32 %v8312_v32, %v2729_v24  ;;  %v3026_v8 = vmul.f32 %v8314_v7, %v2729_v24  ;;  %v3015_v57 = vmul.f32 %v8312_v32, %v2709_v55  ;;  %v3016_v54 = vmul.f32 %v8314_v7, %v2709_v55 }
 0x513   : > { %3803 = vst [vmem:[%s5291_s9 + $0x48c] sm:$0xff] %v3675_v43  ;;  %v3005_v59 = vmul.f32 %v8312_v32, %v2689_v49  ;;  %v3006_v39 = vmul.f32 %v8314_v7, %v2689_v49  ;;  %v1992_v40 = vmul.f32 %v8231_v21, %v11925_v61  ;;  %v2258_v28 = vadd.f32 %v2002_v34, %v11926_v15  ;;  %v11938_v15 = vld [vmem:[#allocation336_spill] sm:$0xff] }
 0x514   : > { %3808 = vst [vmem:[%s5291_s9 + $0x4c8] sm:$0xff] %v3680_v44  ;;  %v3281_v37 = vadd.f32 %v3025_v51, %v2251_v6  ;;  %v3282_v17 = vadd.f32 %v3026_v8, %v2252_v3  ;;  %v3271_v46 = vadd.f32 %v3015_v57, %v2241_v56  ;;  %v3272_v35 = vadd.f32 %v3016_v54, %v2242_v58  ;;  %v11930_v3 = vld [vmem:[#allocation333_spill] sm:$0xff]  ;;  %v11933_v57 = vld [vmem:[#allocation302_spill] sm:$0xff] }
 0x515   : > { %v3261_v41 = vadd.f32 %v3005_v59, %v2231_v9  ;;  %v3262_v50 = vadd.f32 %v3006_v39, %v2232_v2  ;;  %v1988_v11 = vmul.f32 %v8231_v21, %v11924_v53  ;;  %v2007_v52 = vmul.f32 %v8229_v33, %v11927_v18 }
 0x516   : > { %v3542_v23 = vadd.f32 %v8346_v47, %v3281_v37  ;;  %v3543_v9 = vadd.f32 %v8348_v4, %v3282_v17  ;;  %v3532_v2 = vadd.f32 %v8346_v47, %v3271_v46  ;;  %v3533_v6 = vadd.f32 %v8348_v4, %v3272_v35  ;;  %v11935_v17 = vld [vmem:[#allocation156_spill] sm:$0xff] }
 0x517   : > { %v3522_v42 = vadd.f32 %v8346_v47, %v3261_v41  ;;  %v3523_v36 = vadd.f32 %v8348_v4, %v3262_v50  ;;  %v2243_v10 = vadd.f32 %v1987_v29, %v11928_v38  ;;  %v2008_v63 = vmul.f32 %v8231_v21, %v11927_v18  ;;  %v11934_v50 = vld [vmem:[#allocation328_spill] sm:$0xff] }
 0x518   : > { %v3688_v5 = vpack.c.bf16 %v3543_v9, %v3542_v23  ;;  %v3683_v45 = vpack.c.bf16 %v3533_v6, %v3532_v2  ;;  %v2247_v48 = vadd.f32 %v1991_v62, %v11929_v22  ;;  %v2248_v60 = vadd.f32 %v1992_v40, %v11930_v3  ;;  %v11936_v62 = vld [vmem:[#allocation301_spill] sm:$0xff]  ;;  %v11937_v2 = vld [vmem:[#allocation166_spill] sm:$0xff] }
 0x519   : > { %v3678_v31 = vpack.c.bf16 %v3523_v36, %v3522_v42  ;;  %v2741_v43 = vpop.permute.xlu2 %2740  ;;  %v2721_v14 = vpop.permute.xlu0 %2720  ;;  %v2244_v56 = vadd.f32 %v1988_v11, %v11931_v0  ;;  %v2263_v58 = vadd.f32 %v2007_v52, %v11932_v26  ;;  %v1997_v54 = vmul.f32 %v8229_v33, %v11933_v57 }
 0x51a   : > { %v2701_v12 = vpop.permute.xlu1 %2700  ;;  %3816 = vst [vmem:[%s5291_s9 + $0x528] sm:$0xff] %v3688_v5  ;;  %v3031_v1 = vmul.f32 %v8312_v32, %v2741_v43  ;;  %v3032_v16 = vmul.f32 %v8314_v7, %v2741_v43  ;;  %v3021_v44 = vmul.f32 %v8312_v32, %v2721_v14  ;;  %v3022_v49 = vmul.f32 %v8314_v7, %v2721_v14 }
 0x51b   : > { %3806 = vst [vmem:[%s5291_s9 + $0x4b0] sm:$0xff] %v3678_v31  ;;  %v3011_v25 = vmul.f32 %v8312_v32, %v2701_v12  ;;  %v3012_v34 = vmul.f32 %v8314_v7, %v2701_v12  ;;  %v1998_v27 = vmul.f32 %v8231_v21, %v11933_v57  ;;  %v2264_v37 = vadd.f32 %v2008_v63, %v11934_v50  ;;  %v11939_v12 = vld [vmem:[#allocation159_spill] sm:$0xff] }
 0x51c   : > { %3811 = vst [vmem:[%s5291_s9 + $0x4ec] sm:$0xff] %v3683_v45  ;;  %v3287_v24 = vadd.f32 %v3031_v1, %v2257_v19  ;;  %v3288_v55 = vadd.f32 %v3032_v16, %v2258_v28  ;;  %v3277_v51 = vadd.f32 %v3021_v44, %v2247_v48  ;;  %v3278_v8 = vadd.f32 %v3022_v49, %v2248_v60  ;;  %v11940_v48 = vld [vmem:[#allocation332_spill] sm:$0xff]  ;;  %v11941_v16 = vld [vmem:[#allocation317_spill] sm:$0xff] }
 0x51d   : > { %v3267_v59 = vadd.f32 %v3011_v25, %v2237_v30  ;;  %v3268_v39 = vadd.f32 %v3012_v34, %v2238_v13  ;;  %v1993_v46 = vmul.f32 %v8229_v33, %v11935_v17  ;;  %v1994_v35 = vmul.f32 %v8231_v21, %v11935_v17 }
 0x51e   : > { %v3548_v41 = vadd.f32 %v8346_v47, %v3287_v24  ;;  %v3549_v30 = vadd.f32 %v8348_v4, %v3288_v55  ;;  %v3538_v13 = vadd.f32 %v8346_v47, %v3277_v51  ;;  %v3539_v19 = vadd.f32 %v8348_v4, %v3278_v8  ;;  %v11943_v55 = vld [vmem:[#allocation158_spill] sm:$0xff] }
 0x51f   : > { %v3528_v53 = vadd.f32 %v8346_v47, %v3267_v59  ;;  %v3529_v29 = vadd.f32 %v8348_v4, %v3268_v39  ;;  %v2013_v40 = vmul.f32 %v8229_v33, %v11936_v62  ;;  %v2014_v42 = vmul.f32 %v8231_v21, %v11936_v62  ;;  %v11942_v39 = vld [vmem:[#allocation173_spill] sm:$0xff]  ;;  %v11944_v8 = vld [vmem:[#allocation162_spill] sm:$0xff] }
 0x520   : > { %v3691_v36 = vpack.c.bf16 %v3549_v30, %v3548_v41  ;;  %v3686_v23 = vpack.c.bf16 %v3539_v19, %v3538_v13  ;;  %v2253_v6 = vadd.f32 %v1997_v54, %v11937_v2  ;;  %v2254_v28 = vadd.f32 %v1998_v27, %v11938_v15  ;;  %v11946_v19 = vld [vmem:[#allocation179_spill] sm:$0xff] }
 0x521   : > { %v3681_v61 = vpack.c.bf16 %v3529_v29, %v3528_v53  ;;  %v2753_v52 = vpop.permute.xlu2 %2752  ;;  %v2733_v31 = vpop.permute.xlu0 %2732  ;;  %v2249_v22 = vadd.f32 %v1993_v46, %v11939_v12  ;;  %v2250_v3 = vadd.f32 %v1994_v35, %v11940_v48  ;;  %v2003_v44 = vmul.f32 %v8229_v33, %v11941_v16  ;;  %v11945_v53 = vld [vmem:[#allocation316_spill] sm:$0xff] }
 0x522   : > { %v2713_v9 = vpop.permute.xlu1 %2712  ;;  %3819 = vst [vmem:[%s5291_s9 + $0x54c] sm:$0xff] %v3691_v36  ;;  %v3037_v38 = vmul.f32 %v8312_v32, %v2753_v52  ;;  %v3038_v63 = vmul.f32 %v8314_v7, %v2753_v52  ;;  %v3027_v5 = vmul.f32 %v8312_v32, %v2733_v31  ;;  %v3028_v45 = vmul.f32 %v8314_v7, %v2733_v31 }
 0x523   : > { %3809 = vst [vmem:[%s5291_s9 + $0x4d4] sm:$0xff] %v3681_v61  ;;  %v3017_v11 = vmul.f32 %v8312_v32, %v2713_v9  ;;  %v3018_v18 = vmul.f32 %v8314_v7, %v2713_v9  ;;  %v2004_v49 = vmul.f32 %v8231_v21, %v11941_v16  ;;  %v2269_v24 = vadd.f32 %v2013_v40, %v11942_v39  ;;  %v11948_v9 = vld [vmem:[#allocation165_spill] sm:$0xff] }
 0x524   : > { %3814 = vst [vmem:[%s5291_s9 + $0x510] sm:$0xff] %v3686_v23  ;;  %v3293_v34 = vadd.f32 %v3037_v38, %v2263_v58  ;;  %v3294_v43 = vadd.f32 %v3038_v63, %v2264_v37  ;;  %v3283_v14 = vadd.f32 %v3027_v5, %v2253_v6  ;;  %v3284_v1 = vadd.f32 %v3028_v45, %v2254_v28  ;;  %v11947_v37 = vld [vmem:[#allocation172_spill] sm:$0xff]  ;;  %v11949_v38 = vld [vmem:[#allocation331_spill] sm:$0xff] }
 0x525   : > { %v3273_v60 = vadd.f32 %v3017_v11, %v2243_v10  ;;  %v3274_v25 = vadd.f32 %v3018_v18, %v2244_v56  ;;  %v2270_v51 = vadd.f32 %v2014_v42, %v11943_v55  ;;  %v1999_v57 = vmul.f32 %v8229_v33, %v11944_v8 }
 0x526   : > { %v3554_v59 = vadd.f32 %v8346_v47, %v3293_v34  ;;  %v3555_v10 = vadd.f32 %v8348_v4, %v3294_v43  ;;  %v3544_v56 = vadd.f32 %v8346_v47, %v3283_v14  ;;  %v3545_v58 = vadd.f32 %v8348_v4, %v3284_v1  ;;  %v11951_v43 = vld [vmem:[#allocation164_spill] sm:$0xff]  ;;  %v11952_v1 = vld [vmem:[#allocation334_spill] sm:$0xff] }
 0x527   : > { %v3534_v0 = vadd.f32 %v8346_v47, %v3273_v60  ;;  %v3535_v26 = vadd.f32 %v8348_v4, %v3274_v25  ;;  %v2000_v27 = vmul.f32 %v8231_v21, %v11944_v8  ;;  %v2019_v29 = vmul.f32 %v8229_v33, %v11945_v53  ;;  %v11950_v25 = vld [vmem:[#allocation335_spill] sm:$0xff] }
 0x528   : > { %v3694_v41 = vpack.c.bf16 %v3555_v10, %v3554_v59  ;;  %v3689_v30 = vpack.c.bf16 %v3545_v58, %v3544_v56  ;;  %v2259_v50 = vadd.f32 %v2003_v44, %v11946_v19  ;;  %v2260_v17 = vadd.f32 %v2004_v49, %v11947_v37  ;;  %v11953_v49 = vld [vmem:[#allocation168_spill] sm:$0xff]  ;;  %v11954_v58 = vld [vmem:[#allocation175_spill] sm:$0xff] }
 0x529   : > { %v3684_v54 = vpack.c.bf16 %v3535_v26, %v3534_v0  ;;  %v2765_v61 = vpop.permute.xlu2 %2764  ;;  %v2745_v62 = vpop.permute.xlu0 %2744  ;;  %v2255_v2 = vadd.f32 %v1999_v57, %v11948_v9  ;;  %v2020_v6 = vmul.f32 %v8231_v21, %v11945_v53  ;;  %v2009_v63 = vmul.f32 %v8229_v33, %v11949_v38 }
 0x52a   : > { %v2725_v13 = vpop.permute.xlu1 %2724  ;;  %3822 = vst [vmem:[%s5291_s9 + $0x570] sm:$0xff] %v3694_v41  ;;  %v3043_v40 = vmul.f32 %v8312_v32, %v2765_v61  ;;  %v3044_v42 = vmul.f32 %v8314_v7, %v2765_v61  ;;  %v3033_v36 = vmul.f32 %v8312_v32, %v2745_v62  ;;  %v3034_v23 = vmul.f32 %v8314_v7, %v2745_v62  ;;  %v11957_v62 = vld [vmem:[#allocation340_spill] sm:$0xff] }
 0x52b   : > { %3812 = vst [vmem:[%s5291_s9 + $0x4f8] sm:$0xff] %v3684_v54  ;;  %v3023_v46 = vmul.f32 %v8312_v32, %v2725_v13  ;;  %v3024_v35 = vmul.f32 %v8314_v7, %v2725_v13  ;;  %v2010_v5 = vmul.f32 %v8231_v21, %v11949_v38  ;;  %v2256_v34 = vadd.f32 %v2000_v27, %v11950_v25  ;;  %v11961_v38 = vld [vmem:[#allocation171_spill] sm:$0xff] }
 0x52c   : > { %3817 = vst [vmem:[%s5291_s9 + $0x534] sm:$0xff] %v3689_v30  ;;  %v3299_v11 = vadd.f32 %v3043_v40, %v2269_v24  ;;  %v3300_v18 = vadd.f32 %v3044_v42, %v2270_v51  ;;  %v3289_v52 = vadd.f32 %v3033_v36, %v2259_v50  ;;  %v3290_v31 = vadd.f32 %v3034_v23, %v2260_v17  ;;  %v11955_v24 = vld [vmem:[#allocation338_spill] sm:$0xff] }
 0x52d   : > { %v3279_v15 = vadd.f32 %v3023_v46, %v2249_v22  ;;  %v3280_v28 = vadd.f32 %v3024_v35, %v2250_v3  ;;  %v2275_v14 = vadd.f32 %v2019_v29, %v11951_v43  ;;  %v2276_v16 = vadd.f32 %v2020_v6, %v11952_v1  ;;  %v11956_v30 = vld [vmem:[#allocation330_spill] sm:$0xff] }
 0x52e   : > { %v3560_v48 = vadd.f32 %v8346_v47, %v3299_v11  ;;  %v3561_v22 = vadd.f32 %v8348_v4, %v3300_v18  ;;  %v3550_v3 = vadd.f32 %v8346_v47, %v3289_v52  ;;  %v3551_v60 = vadd.f32 %v8348_v4, %v3290_v31  ;;  %v11959_v11 = vld [vmem:[#allocation255_spill] sm:$0xff]  ;;  %v11960_v52 = vld [vmem:[#allocation176_spill] sm:$0xff] }
 0x52f   : > { %v3540_v45 = vadd.f32 %v8346_v47, %v3279_v15  ;;  %v3541_v12 = vadd.f32 %v8348_v4, %v3280_v28  ;;  %v2005_v0 = vmul.f32 %v8229_v33, %v11953_v49  ;;  %v2006_v26 = vmul.f32 %v8231_v21, %v11953_v49  ;;  %v11958_v28 = vld [vmem:[#allocation178_spill] sm:$0xff] }
 0x530   : > { %v3697_v59 = vpack.c.bf16 %v3561_v22, %v3560_v48  ;;  %v3692_v10 = vpack.c.bf16 %v3551_v60, %v3550_v3  ;;  %v2265_v39 = vadd.f32 %v2009_v63, %v11954_v58  ;;  %v2266_v55 = vadd.f32 %v2010_v5, %v11955_v24  ;;  %v11963_v48 = vld [vmem:[#allocation337_spill] sm:$0xff] }
 0x531   : > { %v3687_v44 = vpack.c.bf16 %v3541_v12, %v3540_v45  ;;  %v2777_v57 = vpop.permute.xlu2 %2776  ;;  %v2757_v54 = vpop.permute.xlu0 %2756  ;;  %v2025_v13 = vmul.f32 %v8229_v33, %v11956_v30  ;;  %v2026_v19 = vmul.f32 %v8231_v21, %v11956_v30  ;;  %v2015_v40 = vmul.f32 %v8229_v33, %v11957_v62  ;;  %v11962_v45 = vld [vmem:[#allocation170_spill] sm:$0xff] }
 0x532   : > { %v2737_v56 = vpop.permute.xlu1 %2736  ;;  %3825 = vst [vmem:[%s5291_s9 + $0x594] sm:$0xff] %v3697_v59  ;;  %v3049_v27 = vmul.f32 %v8312_v32, %v2777_v57  ;;  %v3050_v53 = vmul.f32 %v8314_v7, %v2777_v57  ;;  %v3039_v29 = vmul.f32 %v8312_v32, %v2757_v54  ;;  %v3040_v41 = vmul.f32 %v8314_v7, %v2757_v54 }
 0x533   : > { %3815 = vst [vmem:[%s5291_s9 + $0x51c] sm:$0xff] %v3687_v44  ;;  %v3029_v51 = vmul.f32 %v8312_v32, %v2737_v56  ;;  %v3030_v8 = vmul.f32 %v8314_v7, %v2737_v56  ;;  %v2016_v42 = vmul.f32 %v8231_v21, %v11957_v62  ;;  %v1242_v18 = vmul.f32 %v11959_v11, %v11958_v28  ;;  %v11965_v56 = vld [vmem:[#allocation182_spill] sm:$0xff] }
 0x534   : > { %3820 = vst [vmem:[%s5291_s9 + $0x558] sm:$0xff] %v3692_v10  ;;  %v3305_v17 = vadd.f32 %v3049_v27, %v2275_v14  ;;  %v3306_v46 = vadd.f32 %v3050_v53, %v2276_v16  ;;  %v3295_v35 = vadd.f32 %v3039_v29, %v2265_v39  ;;  %v3296_v61 = vadd.f32 %v3040_v41, %v2266_v55 }
 0x535   : > { %v3285_v50 = vadd.f32 %v3029_v51, %v2255_v2  ;;  %v3286_v37 = vadd.f32 %v3030_v8, %v2256_v34  ;;  %v2261_v31 = vadd.f32 %v2005_v0, %v11960_v52  ;;  %v2262_v63 = vadd.f32 %v2006_v26, %v11961_v38  ;;  %v11964_v34 = vld [vmem:[#allocation339_spill] sm:$0xff] }
 0x536   : > { %v3566_v9 = vadd.f32 %v8346_v47, %v3305_v17  ;;  %v3567_v2 = vadd.f32 %v8348_v4, %v3306_v46  ;;  %v3556_v6 = vadd.f32 %v8346_v47, %v3295_v35  ;;  %v3557_v15 = vadd.f32 %v8348_v4, %v3296_v61  ;;  %v11967_v17 = vld [vmem:[#allocation254_spill] sm:$0xff]  ;;  %v11968_v61 = vld [vmem:[#allocation181_spill] sm:$0xff] }
 0x537   : > { %v3546_v36 = vadd.f32 %v8346_v47, %v3285_v50  ;;  %v3547_v23 = vadd.f32 %v8348_v4, %v3286_v37  ;;  %v2281_v12 = vadd.f32 %v2025_v13, %v11962_v45  ;;  %v2282_v22 = vadd.f32 %v2026_v19, %v11963_v48  ;;  %v11966_v37 = vld [vmem:[#allocation174_spill] sm:$0xff]  ;;  %v11969_v48 = vld [vmem:[#allocation185_spill] sm:$0xff] }
 0x538   : > { %v3700_v3 = vpack.c.bf16 %v3567_v2, %v3566_v9  ;;  %v3695_v60 = vpack.c.bf16 %v3557_v15, %v3556_v6  ;;  %v2271_v43 = vadd.f32 %v2015_v40, %v11964_v34  ;;  %v2272_v14 = vadd.f32 %v2016_v42, %v1242_v18  ;;  %v11970_v34 = vld [vmem:[#allocation187_spill] sm:$0xff] }
 0x539   : > { %v3690_v5 = vpack.c.bf16 %v3547_v23, %v3546_v36  ;;  %v2789_v44 = vpop.permute.xlu2 %2788  ;;  %v2769_v49 = vpop.permute.xlu0 %2768  ;;  %v2011_v58 = vmul.f32 %v8229_v33, %v11965_v56  ;;  %v2012_v39 = vmul.f32 %v8231_v21, %v11965_v56  ;;  %v2021_v27 = vmul.f32 %v8229_v33, %v8403_v20 }
 0x53a   : > { %v2749_v25 = vpop.permute.xlu1 %2748  ;;  %3828 = vst [vmem:[%s5291_s9 + $0x5b8] sm:$0xff] %v3700_v3  ;;  %v3055_v0 = vmul.f32 %v8312_v32, %v2789_v44  ;;  %v3056_v26 = vmul.f32 %v8314_v7, %v2789_v44  ;;  %v3045_v59 = vmul.f32 %v8312_v32, %v2769_v49  ;;  %v3046_v10 = vmul.f32 %v8314_v7, %v2769_v49  ;;  %v11971_v44 = vld [vmem:[#allocation177_spill] sm:$0xff] }
 0x53b   : > { %3818 = vst [vmem:[%s5291_s9 + $0x540] sm:$0xff] %v3690_v5  ;;  %v3035_v1 = vmul.f32 %v8312_v32, %v2749_v25  ;;  %v3036_v16 = vmul.f32 %v8314_v7, %v2749_v25  ;;  %v2022_v53 = vmul.f32 %v8231_v21, %v8403_v20  ;;  %v1237_v46 = vmul.f32 %v11967_v17, %v11966_v37 }
 0x53c   : > { %3823 = vst [vmem:[%s5291_s9 + $0x57c] sm:$0xff] %v3695_v60  ;;  %v3311_v51 = vadd.f32 %v3055_v0, %v2281_v12  ;;  %v3312_v8 = vadd.f32 %v3056_v26, %v2282_v22  ;;  %v3301_v57 = vadd.f32 %v3045_v59, %v2271_v43  ;;  %v3302_v54 = vadd.f32 %v3046_v10, %v2272_v14  ;;  %v11972_v59 = vld [vmem:[#allocation184_spill] sm:$0xff] }
 0x53d   : > { %v3291_v24 = vadd.f32 %v3035_v1, %v2261_v31  ;;  %v3292_v55 = vadd.f32 %v3036_v16, %v2262_v63  ;;  %v1238_v20 = vmul.f32 %v11959_v11, %v11966_v37  ;;  %v1247_v62 = vmul.f32 %v11967_v17, %v11968_v61 }
 0x53e   : > { %v3572_v30 = vadd.f32 %v8346_v47, %v3311_v51  ;;  %v3573_v13 = vadd.f32 %v8348_v4, %v3312_v8  ;;  %v3562_v19 = vadd.f32 %v8346_v47, %v3301_v57  ;;  %v3563_v50 = vadd.f32 %v8348_v4, %v3302_v54 }
 0x53f   : > { %v3552_v29 = vadd.f32 %v8346_v47, %v3291_v24  ;;  %v3553_v41 = vadd.f32 %v8348_v4, %v3292_v55  ;;  %v1248_v40 = vmul.f32 %v11959_v11, %v11968_v61  ;;  %v2267_v9 = vadd.f32 %v2011_v58, %v1237_v46 }
 0x540   : > { %v3703_v42 = vpack.c.bf16 %v3573_v13, %v3572_v30  ;;  %v3698_v36 = vpack.c.bf16 %v3563_v50, %v3562_v19  ;;  %v2268_v2 = vadd.f32 %v2012_v39, %v1238_v20  ;;  %v2277_v18 = vadd.f32 %v2021_v27, %v1247_v62  ;;  %v11973_v50 = vld [vmem:[#allocation186_spill] sm:$0xff] }
 0x541   : > { %v3693_v35 = vpack.c.bf16 %v3553_v41, %v3552_v29  ;;  %v2781_v28 = vpop.permute.xlu0 %2780  ;;  %v2278_v52 = vadd.f32 %v2022_v53, %v1248_v40  ;;  %v2017_v22 = vmul.f32 %v8229_v33, %v11969_v48  ;;  %v2018_v3 = vmul.f32 %v8231_v21, %v11969_v48  ;;  %v11974_v40 = vld [vmem:[#allocation180_spill] sm:$0xff]  ;;  %v11976_v48 = vld [vmem:[#allocation183_spill] sm:$0xff] }
 0x542   : > { %v2761_v23 = vpop.permute.xlu1 %2760  ;;  %3831 = vst [vmem:[%s5291_s9 + $0x5dc] sm:$0xff] %v3703_v42  ;;  %v3051_v31 = vmul.f32 %v8312_v32, %v2781_v28  ;;  %v3052_v38 = vmul.f32 %v8314_v7, %v2781_v28  ;;  %v2027_v43 = vmul.f32 %v8229_v33, %v11970_v34  ;;  %v2028_v14 = vmul.f32 %v8231_v21, %v11970_v34 }
 0x543   : > { %3821 = vst [vmem:[%s5291_s9 + $0x564] sm:$0xff] %v3693_v35  ;;  %v3041_v6 = vmul.f32 %v8312_v32, %v2761_v23  ;;  %v3042_v15 = vmul.f32 %v8314_v7, %v2761_v23  ;;  %v1243_v49 = vmul.f32 %v11967_v17, %v11971_v44  ;;  %v1244_v0 = vmul.f32 %v11959_v11, %v11971_v44 }
 0x544   : > { %3826 = vst [vmem:[%s5291_s9 + $0x5a0] sm:$0xff] %v3698_v36  ;;  %v3307_v45 = vadd.f32 %v3051_v31, %v2277_v18  ;;  %v3308_v12 = vadd.f32 %v3052_v38, %v2278_v52  ;;  %v1253_v10 = vmul.f32 %v11967_v17, %v11972_v59  ;;  %v1254_v56 = vmul.f32 %v11959_v11, %v11972_v59  ;;  %v11975_v38 = vld [vmem:[#allocation188_spill] sm:$0xff] }
 0x545   : > { %v3297_v63 = vadd.f32 %v3041_v6, %v2267_v9  ;;  %v3298_v5 = vadd.f32 %v3042_v15, %v2268_v2  ;;  %v2273_v24 = vadd.f32 %v2017_v22, %v1243_v49  ;;  %v2274_v55 = vadd.f32 %v2018_v3, %v1244_v0 }
 0x546   : > { %v3568_v1 = vadd.f32 %v8346_v47, %v3307_v45  ;;  %v3569_v16 = vadd.f32 %v8348_v4, %v3308_v12  ;;  %v2283_v54 = vadd.f32 %v2027_v43, %v1253_v10  ;;  %v2284_v27 = vadd.f32 %v2028_v14, %v1254_v56 }
 0x547   : > { %v3558_v60 = vadd.f32 %v8346_v47, %v3297_v63  ;;  %v3559_v25 = vadd.f32 %v8348_v4, %v3298_v5  ;;  %v2023_v37 = vmul.f32 %v8229_v33, %v11973_v50  ;;  %v2024_v46 = vmul.f32 %v8231_v21, %v11973_v50 }
 0x548   : > { %v3701_v58 = vpack.c.bf16 %v3569_v16, %v3568_v1  ;;  %v1249_v42 = vmul.f32 %v11967_v17, %v11974_v40  ;;  %v1250_v36 = vmul.f32 %v11959_v11, %v11974_v40  ;;  %v2029_v63 = vmul.f32 %v8229_v33, %v11975_v38 }
 0x549   : > { %v3696_v26 = vpack.c.bf16 %v3559_v25, %v3558_v60  ;;  %v2793_v57 = vpop.permute.xlu0 %2792  ;;  %v2030_v5 = vmul.f32 %v8231_v21, %v11975_v38  ;;  %v1255_v22 = vmul.f32 %v11967_v17, %v11976_v48  ;;  %v1256_v3 = vmul.f32 %v11959_v11, %v11976_v48 }
 0x54a   : > { %v2773_v39 = vpop.permute.xlu1 %2772  ;;  %3829 = vst [vmem:[%s5291_s9 + $0x5c4] sm:$0xff] %v3701_v58  ;;  %v3057_v53 = vmul.f32 %v8312_v32, %v2793_v57  ;;  %v3058_v29 = vmul.f32 %v8314_v7, %v2793_v57  ;;  %v2279_v6 = vadd.f32 %v2023_v37, %v1249_v42  ;;  %v2280_v15 = vadd.f32 %v2024_v46, %v1250_v36 }
 0x54b   : > { %3824 = vst [vmem:[%s5291_s9 + $0x588] sm:$0xff] %v3696_v26  ;;  %v3047_v51 = vmul.f32 %v8312_v32, %v2773_v39  ;;  %v3048_v8 = vmul.f32 %v8314_v7, %v2773_v39  ;;  %v2285_v34 = vadd.f32 %v2029_v63, %v1255_v22  ;;  %v2286_v43 = vadd.f32 %v2030_v5, %v1256_v3 }
 0x54c   : > { %v3313_v13 = vadd.f32 %v3057_v53, %v2283_v54  ;;  %v3314_v19 = vadd.f32 %v3058_v29, %v2284_v27 }
 0x54d   : > { %v3303_v41 = vadd.f32 %v3047_v51, %v2273_v24  ;;  %v3304_v30 = vadd.f32 %v3048_v8, %v2274_v55 }
 0x54e   : > { %v3574_v61 = vadd.f32 %v8346_v47, %v3313_v13  ;;  %v3575_v62 = vadd.f32 %v8348_v4, %v3314_v19 }
 0x54f   : > { %v3564_v20 = vadd.f32 %v8346_v47, %v3303_v41  ;;  %v3565_v35 = vadd.f32 %v8348_v4, %v3304_v30 }
 0x550   : > { %v3704_v9 = vpack.c.bf16 %v3575_v62, %v3574_v61 }
 0x551   : > { %v3699_v23 = vpack.c.bf16 %v3565_v35, %v3564_v20 }
 0x552   : > { %v2785_v2 = vpop.permute.xlu1 %2784  ;;  %3832 = vst [vmem:[%s5291_s9 + $0x5e8] sm:$0xff] %v3704_v9 }
 0x553   : > { %3827 = vst [vmem:[%s5291_s9 + $0x5ac] sm:$0xff] %v3699_v23  ;;  %v3053_v28 = vmul.f32 %v8312_v32, %v2785_v2  ;;  %v3054_v18 = vmul.f32 %v8314_v7, %v2785_v2 }
 0x555   : > { %v3309_v52 = vadd.f32 %v3053_v28, %v2279_v6  ;;  %v3310_v31 = vadd.f32 %v3054_v18, %v2280_v15 }
 0x557   : > { %v3570_v45 = vadd.f32 %v8346_v47, %v3309_v52  ;;  %v3571_v12 = vadd.f32 %v8348_v4, %v3310_v31 }
 0x559   : > { %v3702_v60 = vpack.c.bf16 %v3571_v12, %v3570_v45 }
 0x55a   : > { %v2797_v25 = vpop.permute.xlu1 %2796 }
 0x55b   : > { %3830 = vst [vmem:[%s5291_s9 + $0x5d0] sm:$0xff] %v3702_v60  ;;  %v3059_v33 = vmul.f32 %v8312_v32, %v2797_v25  ;;  %v3060_v21 = vmul.f32 %v8314_v7, %v2797_v25 }
 0x55d   : > { %v3315_v14 = vadd.f32 %v3059_v33, %v2285_v34  ;;  %v3316_v1 = vadd.f32 %v3060_v21, %v2286_v43 }
 0x55f   : > { %v3576_v16 = vadd.f32 %v8346_v47, %v3315_v14  ;;  %v3577_v44 = vadd.f32 %v8348_v4, %v3316_v1  ;;  %4225 = sbr.rel (!%p5253_p4) target bundleno = 1496 (0x5d8), region = 44 }
 0x561   : > { %v3705_v49 = vpack.c.bf16 %v3577_v44, %v3576_v16 }
 0x563   : > { %3833 = vst [vmem:[%s5291_s9 + $0x5f4] sm:$0xff] %v3705_v49 }
 0x564   : > { %s11989_s17 = smov (!%p4228_p11, %s4227_s17), 128 }
 0x565   : > { %s4625_s24 = smul.u32 12, %s11989_s17 }
 0x567   : > { %p4629_p12 = scmp.eq.s32.totalorder %s4625_s24, 0 }
 0x568   : > { %s4241_s20 = scalar_lea.vmem (!%p4629_p12), %s5291_s9, 8 [#allocation6]   ;;  %s4242_s25 = scalar_lea.vmem (!%p4629_p12), %s10392_s23, 8  }
 0x569   : > { %4238 = sbr.rel (%p4629_p12) target bundleno = 1496 (0x5d8), region = 48  ;;  %s10400_s26 = sshrl.u32 (!%p4629_p12), %s11989_s17, 5 }
 0x56a   : > { %p4630_p13 = scmp.le.s32.totalorder (!%p4629_p12), %s10400_s26, 0 }
 0x56e   : > { %4523 = sbr.rel (%p4630_p13) target bundleno = 1428 (0x594), region = 115  ;;  %s11977_s15 = smov (!%p4630_p13), %s10392_s23 }
 0x56f   : > { %s11978_s27 = smov (!%p4630_p13), %s5291_s9  ;;  %s10411_s28 = smov (!%p4630_p13), 0  }
 0x570   : > { %s10413_s29 = smov (!%p4630_p13), 0  }
 0x573 LB: >> { %v4253_v32 = vld [vmem:[%s5145_s27] sm:$0xff]  ;;  %v4255_v7 = vld [vmem:[%s5145_s27 + $0xc] sm:$0xff]  ;;  %v4257_v47 = vld [vmem:[%s5145_s27 + $0x18] sm:$0xff]  ;;  %s4317_s30 = sadd.s32 1, %s5149_s28  ;;  %s4247_s29 = sadd.s32 1, %s5153_s29   ;;  %s5153_s29 = sphi %s10413_s29, %s4247_s29   ;;  %s5149_s28 = sphi %s10411_s28, %s11981_s28   ;;  %s5145_s27 = sphi %s11978_s27, %s11980_s27   ;;  %s5141_s15 = sphi %s11977_s15, %s11979_s15  }
 0x574   : >> { %4254 = vst [vmem:[%s5141_s15] sm:$0xff] %v4253_v32  ;;  %v4259_v4 = vld [vmem:[%s5145_s27 + $0x24] sm:$0xff]  ;;  %p4318_p0 = scmp.ge.s32.totalorder %s4317_s30, %s10400_s26  ;;  %v4261_v11 = vld [vmem:[%s5145_s27 + $0x30] sm:$0xff]  ;;  %v4263_v17 = vld [vmem:[%s5145_s27 + $0x3c] sm:$0xff]  ;;  %p4246_p1 = scmp.ge.s32.totalorder %s4247_s29, %s10400_s26 }
 0x575   : >> { %4256 = vst [vmem:[%s5141_s15 + $0xc] sm:$0xff] %v4255_v7  ;;  %v4265_v0 = vld [vmem:[%s5145_s27 + $0x48] sm:$0xff]  ;;  %v4267_v26 = vld [vmem:[%s5145_s27 + $0x54] sm:$0xff]  ;;  %v4269_v59 = vld [vmem:[%s5145_s27 + $0x60] sm:$0xff] }
 0x576   : >> { %4258 = vst [vmem:[%s5141_s15 + $0x18] sm:$0xff] %v4257_v47  ;;  %s11991_s30 = smov (%p4318_p0, %s4317_s30), 0  ;;  %v4271_v10 = vld [vmem:[%s5145_s27 + $0x6c] sm:$0xff]  ;;  %v4273_v56 = vld [vmem:[%s5145_s27 + $0x78] sm:$0xff]  ;;  %v4275_v58 = vld [vmem:[%s5145_s27 + $0x84] sm:$0xff] }
 0x577   : >> { %4260 = vst [vmem:[%s5141_s15 + $0x24] sm:$0xff] %v4259_v4  ;;  %s4320_s4 = smul.u32 384, %s11991_s30  ;;  %v4277_v39 = vld [vmem:[%s5145_s27 + $0x90] sm:$0xff]  ;;  %v4279_v24 = vld [vmem:[%s5145_s27 + $0x9c] sm:$0xff]  ;;  %v4281_v55 = vld [vmem:[%s5145_s27 + $0xa8] sm:$0xff]  ;;  %s11981_s28 = smov %s11991_s30 }
 0x578   : >> { %4262 = vst [vmem:[%s5141_s15 + $0x30] sm:$0xff] %v4261_v11  ;;  %v4283_v51 = vld [vmem:[%s5145_s27 + $0xb4] sm:$0xff]  ;;  %v4285_v8 = vld [vmem:[%s5145_s27 + $0xc0] sm:$0xff]  ;;  %v4287_v57 = vld [vmem:[%s5145_s27 + $0xcc] sm:$0xff] }
 0x579   : >> { %4264 = vst [vmem:[%s5141_s15 + $0x3c] sm:$0xff] %v4263_v17  ;;  %s10447_s5 = scalar_lea.vmem %s5291_s9, %s4320_s4 [#allocation6]   ;;  %s10450_s6 = scalar_lea.vmem %s10392_s23, %s4320_s4   ;;  %v4289_v54 = vld [vmem:[%s5145_s27 + $0xd8] sm:$0xff]  ;;  %v4291_v27 = vld [vmem:[%s5145_s27 + $0xe4] sm:$0xff]  ;;  %v4293_v53 = vld [vmem:[%s5145_s27 + $0xf0] sm:$0xff] }
 0x57a   : >> { %4266 = vst [vmem:[%s5141_s15 + $0x48] sm:$0xff] %v4265_v0  ;;  %v4295_v29 = vld [vmem:[%s5145_s27 + $0xfc] sm:$0xff]  ;;  %v4297_v41 = vld [vmem:[%s5145_s27 + $0x108] sm:$0xff]  ;;  %v4299_v30 = vld [vmem:[%s5145_s27 + $0x114] sm:$0xff] }
 0x57b   : >> { %4268 = vst [vmem:[%s5141_s15 + $0x54] sm:$0xff] %v4267_v26  ;;  %v4301_v13 = vld [vmem:[%s5145_s27 + $0x120] sm:$0xff]  ;;  %v4303_v19 = vld [vmem:[%s5145_s27 + $0x12c] sm:$0xff]  ;;  %v4305_v50 = vld [vmem:[%s5145_s27 + $0x138] sm:$0xff] }
 0x57c   : >> { %4270 = vst [vmem:[%s5141_s15 + $0x60] sm:$0xff] %v4269_v59  ;;  %v4307_v37 = vld [vmem:[%s5145_s27 + $0x144] sm:$0xff]  ;;  %v4309_v46 = vld [vmem:[%s5145_s27 + $0x150] sm:$0xff]  ;;  %v4311_v20 = vld [vmem:[%s5145_s27 + $0x15c] sm:$0xff] }
 0x57d   : >> { %4272 = vst [vmem:[%s5141_s15 + $0x6c] sm:$0xff] %v4271_v10  ;;  %v4313_v35 = vld [vmem:[%s5145_s27 + $0x168] sm:$0xff]  ;;  %v4315_v61 = vld [vmem:[%s5145_s27 + $0x174] sm:$0xff]  ;;  %s11980_s27 = smov %s10447_s5 }
 0x57e   : >> { %4274 = vst [vmem:[%s5141_s15 + $0x78] sm:$0xff] %v4273_v56 }
 0x57f   : >> { %4276 = vst [vmem:[%s5141_s15 + $0x84] sm:$0xff] %v4275_v58 }
 0x580   : >> { %4278 = vst [vmem:[%s5141_s15 + $0x90] sm:$0xff] %v4277_v39 }
 0x581   : >> { %4280 = vst [vmem:[%s5141_s15 + $0x9c] sm:$0xff] %v4279_v24 }
 0x582   : >> { %4282 = vst [vmem:[%s5141_s15 + $0xa8] sm:$0xff] %v4281_v55 }
 0x583   : >> { %4284 = vst [vmem:[%s5141_s15 + $0xb4] sm:$0xff] %v4283_v51 }
 0x584   : >> { %4286 = vst [vmem:[%s5141_s15 + $0xc0] sm:$0xff] %v4285_v8 }
 0x585   : >> { %4288 = vst [vmem:[%s5141_s15 + $0xcc] sm:$0xff] %v4287_v57 }
 0x586   : >> { %4290 = vst [vmem:[%s5141_s15 + $0xd8] sm:$0xff] %v4289_v54 }
 0x587   : >> { %4292 = vst [vmem:[%s5141_s15 + $0xe4] sm:$0xff] %v4291_v27 }
 0x588   : >> { %4294 = vst [vmem:[%s5141_s15 + $0xf0] sm:$0xff] %v4293_v53 }
 0x589   : >> { %4296 = vst [vmem:[%s5141_s15 + $0xfc] sm:$0xff] %v4295_v29 }
 0x58a   : >> { %4298 = vst [vmem:[%s5141_s15 + $0x108] sm:$0xff] %v4297_v41 }
 0x58b   : >> { %4300 = vst [vmem:[%s5141_s15 + $0x114] sm:$0xff] %v4299_v30 }
 0x58c   : >> { %4302 = vst [vmem:[%s5141_s15 + $0x120] sm:$0xff] %v4301_v13 }
 0x58d   : >> { %4304 = vst [vmem:[%s5141_s15 + $0x12c] sm:$0xff] %v4303_v19 }
 0x58e   : >> { %4306 = vst [vmem:[%s5141_s15 + $0x138] sm:$0xff] %v4305_v50 }
 0x58f   : >> { %4308 = vst [vmem:[%s5141_s15 + $0x144] sm:$0xff] %v4307_v37  ;;  %4249 = sbr.rel (!%p4246_p1) target bundleno = 1395 (0x573), region = 121 }
 0x590   : >> { %4310 = vst [vmem:[%s5141_s15 + $0x150] sm:$0xff] %v4309_v46 }
 0x591   : >> { %4312 = vst [vmem:[%s5141_s15 + $0x15c] sm:$0xff] %v4311_v20 }
 0x592   : >> { %4314 = vst [vmem:[%s5141_s15 + $0x168] sm:$0xff] %v4313_v35 }
 0x593   : >> { %4316 = vst [vmem:[%s5141_s15 + $0x174] sm:$0xff] %v4315_v61  ;;  %s11979_s15 = smov %s10450_s6 }
 0x594 PF: > { %s10513_s7 = sand.u32 31, %s11989_s17   ;;  %s4632_s8 = smul.u32 384, %s10400_s26 }
 0x595   : > { %p4634_p2 = scmp.le.s32.totalorder %s10513_s7, 0 }
 0x596   : > { %s10517_s10 = scalar_lea.vmem %s5291_s9, %s4632_s8 [#allocation6]   ;;  %s10520_s11 = scalar_lea.vmem %s10392_s23, %s4632_s8  }
 0x597   : > { %4537 = sbr.rel (%p4634_p2) target bundleno = 1444 (0x5a4), region = 126  ;;  %s5155_s12 = smov (!%p4634_p2), %s10520_s11  }
 0x598   : > { %s5159_s14 = smov (!%p4634_p2), %s10517_s10   ;;  %s5163_s18 = smov (!%p4634_p2), 0  }
 0x599   : > { %s5167_s21 = smov (!%p4634_p2), 0  }
 0x59c LB: >> { %v4340_v62 = vld [vmem:[%s5161_s14] sm:$0xff]  ;;  %s4342_s17 = sadd.s32 1, %s5165_s18  ;;  %s4334_s21 = sadd.s32 1, %s5169_s21   ;;  %s5169_s21 = sphi %s5167_s21, %s4334_s21   ;;  %s5165_s18 = sphi %s5163_s18, %s5164_s18   ;;  %s5161_s14 = sphi %s5159_s14, %s4347_s14   ;;  %s5157_s12 = sphi %s5155_s12, %s4348_s12  }
 0x59d   : >> { %4341 = vst [vmem:[%s5157_s12] sm:$0xff] %v4340_v62  ;;  %p4343_p3 = scmp.ge.s32.totalorder %s4342_s17, %s10513_s7  ;;  %p4333_p4 = scmp.ge.s32.totalorder %s4334_s21, %s10513_s7 }
 0x59f   : >> { %s11993_s17 = smov (%p4343_p3, %s4342_s17), 0  ;;  %4336 = sbr.rel (!%p4333_p4) target bundleno = 1436 (0x59c), region = 132 }
 0x5a0   : >> { %s4345_s22 = smul.u32 12, %s11993_s17  ;;  %s5164_s18 = smov %s11993_s17  }
 0x5a2   : >> { %s4347_s14 = scalar_lea.vmem %s10517_s10, %s4345_s22 [#allocation6]   ;;  %s4348_s12 = scalar_lea.vmem %s10520_s11, %s4345_s22  }
 0x5a4 PF: > { %4551 = sbr.rel (%p4630_p13) target bundleno = 1482 (0x5ca), region = 137  ;;  %s10541_s24 = smov (!%p4630_p13), 0  }
 0x5a5   : > { %s10543_s15 = smov (!%p4630_p13), 0  }
 0x5a9 LB: >> { %v4361_v40 = vld [vmem:[%s5177_s20] sm:$0xf]  ;;  %v4363_v42 = vld [vmem:[%s5177_s20 + $0xc] sm:$0xf]  ;;  %v4365_v36 = vld [vmem:[%s5177_s20 + $0x18] sm:$0xf]  ;;  %s5185_s15 = sphi %s10543_s15, %s4355_s15   ;;  %s5181_s24 = sphi %s10541_s24, %s11984_s24   ;;  %s5177_s20 = sphi %s4241_s20, %s11983_s20   ;;  %s5173_s25 = sphi %s4242_s25, %s11982_s25  }
 0x5aa   : >> { %4362 = vst [vmem:[%s5173_s25] sm:$0xf] %v4361_v40  ;;  %v4367_v23 = vld [vmem:[%s5177_s20 + $0x24] sm:$0xf]  ;;  %v4369_v9 = vld [vmem:[%s5177_s20 + $0x30] sm:$0xf]  ;;  %s4425_s27 = sadd.s32 1, %s5181_s24 }
 0x5ab   : >> { %4364 = vst [vmem:[%s5173_s25 + $0xc] sm:$0xf] %v4363_v42  ;;  %v4371_v2 = vld [vmem:[%s5177_s20 + $0x3c] sm:$0xf]  ;;  %v4373_v6 = vld [vmem:[%s5177_s20 + $0x48] sm:$0xf]  ;;  %p4426_p5 = scmp.ge.s32.totalorder %s4425_s27, %s10400_s26 }
 0x5ac   : >> { %4366 = vst [vmem:[%s5173_s25 + $0x18] sm:$0xf] %v4365_v36  ;;  %v4375_v15 = vld [vmem:[%s5177_s20 + $0x54] sm:$0xf]  ;;  %v4377_v28 = vld [vmem:[%s5177_s20 + $0x60] sm:$0xf] }
 0x5ad   : >> { %4368 = vst [vmem:[%s5173_s25 + $0x24] sm:$0xf] %v4367_v23  ;;  %v4379_v18 = vld [vmem:[%s5177_s20 + $0x6c] sm:$0xf]  ;;  %v4381_v52 = vld [vmem:[%s5177_s20 + $0x78] sm:$0xf] }
 0x5ae   : >> { %4370 = vst [vmem:[%s5173_s25 + $0x30] sm:$0xf] %v4369_v9  ;;  %v4383_v31 = vld [vmem:[%s5177_s20 + $0x84] sm:$0xf]  ;;  %v4385_v38 = vld [vmem:[%s5177_s20 + $0x90] sm:$0xf] }
 0x5af   : >> { %4372 = vst [vmem:[%s5173_s25 + $0x3c] sm:$0xf] %v4371_v2  ;;  %v4387_v63 = vld [vmem:[%s5177_s20 + $0x9c] sm:$0xf]  ;;  %v4389_v5 = vld [vmem:[%s5177_s20 + $0xa8] sm:$0xf] }
 0x5b0   : >> { %4374 = vst [vmem:[%s5173_s25 + $0x48] sm:$0xf] %v4373_v6  ;;  %v4391_v45 = vld [vmem:[%s5177_s20 + $0xb4] sm:$0xf]  ;;  %v4393_v12 = vld [vmem:[%s5177_s20 + $0xc0] sm:$0xf] }
 0x5b1   : >> { %4376 = vst [vmem:[%s5173_s25 + $0x54] sm:$0xf] %v4375_v15  ;;  %v4395_v48 = vld [vmem:[%s5177_s20 + $0xcc] sm:$0xf]  ;;  %s11995_s27 = smov (%p4426_p5, %s4425_s27), 0  ;;  %s4355_s15 = sadd.s32 1, %s5185_s15  }
 0x5b2   : >> { %4378 = vst [vmem:[%s5173_s25 + $0x60] sm:$0xf] %v4377_v28  ;;  %v4397_v22 = vld [vmem:[%s5177_s20 + $0xd8] sm:$0xf]  ;;  %v4399_v3 = vld [vmem:[%s5177_s20 + $0xe4] sm:$0xf]  ;;  %p4354_p6 = scmp.ge.s32.totalorder %s4355_s15, %s10400_s26  ;;  %s11984_s24 = smov %s11995_s27 }
 0x5b3   : >> { %4380 = vst [vmem:[%s5173_s25 + $0x6c] sm:$0xf] %v4379_v18  ;;  %s4498_s28 = smul.u32 384, %s11995_s27  ;;  %v4401_v60 = vld [vmem:[%s5177_s20 + $0xf0] sm:$0xf] }
 0x5b4   : >> { %4382 = vst [vmem:[%s5173_s25 + $0x78] sm:$0xf] %v4381_v52  ;;  %v4403_v25 = vld [vmem:[%s5177_s20 + $0xfc] sm:$0xf]  ;;  %v4405_v34 = vld [vmem:[%s5177_s20 + $0x108] sm:$0xf] }
 0x5b5   : >> { %4384 = vst [vmem:[%s5173_s25 + $0x84] sm:$0xf] %v4383_v31  ;;  %s10604_s29 = scalar_lea.vmem %s5291_s9, %s4498_s28 [#allocation6]  ;;  %s4502_s30 = scalar_lea.vmem %s10392_s23, %s4498_s28  ;;  %v4407_v43 = vld [vmem:[%s5177_s20 + $0x114] sm:$0xf]  ;;  %v4409_v33 = vld [vmem:[%s5177_s20 + $0x120] sm:$0xf] }
 0x5b6   : >> { %4386 = vst [vmem:[%s5173_s25 + $0x90] sm:$0xf] %v4385_v38  ;;  %s4500_s4 = scalar_lea.vmem %s10604_s29, 8 [#allocation6]   ;;  %s4503_s5 = scalar_lea.vmem %s4502_s30, 8   ;;  %v4411_v21 = vld [vmem:[%s5177_s20 + $0x12c] sm:$0xf] }
 0x5b7   : >> { %4388 = vst [vmem:[%s5173_s25 + $0x9c] sm:$0xf] %v4387_v63  ;;  %v4413_v14 = vld [vmem:[%s5177_s20 + $0x138] sm:$0xf]  ;;  %v4415_v1 = vld [vmem:[%s5177_s20 + $0x144] sm:$0xf] }
 0x5b8   : >> { %4390 = vst [vmem:[%s5173_s25 + $0xa8] sm:$0xf] %v4389_v5  ;;  %v4417_v16 = vld [vmem:[%s5177_s20 + $0x150] sm:$0xf]  ;;  %v4419_v44 = vld [vmem:[%s5177_s20 + $0x15c] sm:$0xf] }
 0x5b9   : >> { %4392 = vst [vmem:[%s5173_s25 + $0xb4] sm:$0xf] %v4391_v45  ;;  %v4421_v49 = vld [vmem:[%s5177_s20 + $0x168] sm:$0xf]  ;;  %v4423_v32 = vld [vmem:[%s5177_s20 + $0x174] sm:$0xf]  ;;  %s11983_s20 = smov %s4500_s4 }
 0x5ba   : >> { %4394 = vst [vmem:[%s5173_s25 + $0xc0] sm:$0xf] %v4393_v12 }
 0x5bb   : >> { %4396 = vst [vmem:[%s5173_s25 + $0xcc] sm:$0xf] %v4395_v48 }
 0x5bc   : >> { %4398 = vst [vmem:[%s5173_s25 + $0xd8] sm:$0xf] %v4397_v22 }
 0x5bd   : >> { %4400 = vst [vmem:[%s5173_s25 + $0xe4] sm:$0xf] %v4399_v3 }
 0x5be   : >> { %4402 = vst [vmem:[%s5173_s25 + $0xf0] sm:$0xf] %v4401_v60 }
 0x5bf   : >> { %4404 = vst [vmem:[%s5173_s25 + $0xfc] sm:$0xf] %v4403_v25 }
 0x5c0   : >> { %4406 = vst [vmem:[%s5173_s25 + $0x108] sm:$0xf] %v4405_v34 }
 0x5c1   : >> { %4408 = vst [vmem:[%s5173_s25 + $0x114] sm:$0xf] %v4407_v43 }
 0x5c2   : >> { %4410 = vst [vmem:[%s5173_s25 + $0x120] sm:$0xf] %v4409_v33 }
 0x5c3   : >> { %4412 = vst [vmem:[%s5173_s25 + $0x12c] sm:$0xf] %v4411_v21 }
 0x5c4   : >> { %4414 = vst [vmem:[%s5173_s25 + $0x138] sm:$0xf] %v4413_v14 }
 0x5c5   : >> { %4416 = vst [vmem:[%s5173_s25 + $0x144] sm:$0xf] %v4415_v1  ;;  %4357 = sbr.rel (!%p4354_p6) target bundleno = 1449 (0x5a9), region = 143 }
 0x5c6   : >> { %4418 = vst [vmem:[%s5173_s25 + $0x150] sm:$0xf] %v4417_v16 }
 0x5c7   : >> { %4420 = vst [vmem:[%s5173_s25 + $0x15c] sm:$0xf] %v4419_v44 }
 0x5c8   : >> { %4422 = vst [vmem:[%s5173_s25 + $0x168] sm:$0xf] %v4421_v49 }
 0x5c9   : >> { %4424 = vst [vmem:[%s5173_s25 + $0x174] sm:$0xf] %v4423_v32  ;;  %s11982_s25 = smov %s4503_s5 }
 0x5ca PF: > { %s4506_s6 = scalar_lea.vmem %s10517_s10, 8 [#allocation6]   ;;  %s4509_s8 = scalar_lea.vmem %s10520_s11, 8  }
 0x5cb   : > { %4565 = sbr.rel (%p4634_p2) target bundleno = 1496 (0x5d8), region = 148  ;;  %s5187_s12 = smov (!%p4634_p2), %s4509_s8  }
 0x5cc   : > { %s5191_s14 = smov (!%p4634_p2), %s4506_s6   ;;  %s5195_s18 = smov (!%p4634_p2), 0  }
 0x5cd   : > { %s5199_s21 = smov (!%p4634_p2), 0  }
 0x5d0 LB: >> { %v4448_v7 = vld [vmem:[%s5193_s14] sm:$0xf]  ;;  %s4450_s9 = sadd.s32 1, %s5197_s18  ;;  %s4442_s21 = sadd.s32 1, %s5201_s21   ;;  %s5201_s21 = sphi %s5199_s21, %s4442_s21   ;;  %s5197_s18 = sphi %s5195_s18, %s5196_s18   ;;  %s5193_s14 = sphi %s5191_s14, %s4512_s14   ;;  %s5189_s12 = sphi %s5187_s12, %s4515_s12  }
 0x5d1   : >> { %4449 = vst [vmem:[%s5189_s12] sm:$0xf] %v4448_v7  ;;  %p4451_p7 = scmp.ge.s32.totalorder %s4450_s9, %s10513_s7  ;;  %p4441_p8 = scmp.ge.s32.totalorder %s4442_s21, %s10513_s7 }
 0x5d3   : >> { %s11997_s9 = smov (%p4451_p7, %s4450_s9), 0  ;;  %4444 = sbr.rel (!%p4441_p8) target bundleno = 1488 (0x5d0), region = 154 }
 0x5d4   : >> { %s4510_s23 = smul.u32 12, %s11997_s9  ;;  %s5196_s18 = smov %s11997_s9  }
 0x5d6   : >> { %s4511_s20 = scalar_lea.vmem %s10517_s10, %s4510_s23 [#allocation6]  ;;  %s4514_s25 = scalar_lea.vmem %s10520_s11, %s4510_s23 }
 0x5d7   : >> { %s4512_s14 = scalar_lea.vmem %s4511_s20, 8 [#allocation6]   ;;  %s4515_s12 = scalar_lea.vmem %s4514_s25, 8  }
 0x5d8 PF: > { %p12_p9 = scmp.ge.s32.totalorder %s5243_s16, 4   ;;  %s11985_s12 = smov %s5133_s13 }
 0x5d9   : > { %s11986_s13 = smov %s5251_s19  ;;  %s11987_s14 = smov %s5243_s16 }
 0x5da   :  { %14 = sbr.rel (!%p12_p9) target bundleno = 3 (0x3), region = 165 }
 0x5df   :  { %4470 = vsyncpa [#allocation3], 1 }
 0x5e0   :  { %4472 = vsyncpa [#allocation3 + $0x1], 1 }
 0x5e1   :  { %4473 = vsyncpa [#allocation5], 1 }

</bundles_post_ra>
